<compile_context>
chip_gen: v7x
topology: tpu7x:2x2x1
jax: 0.10.0
libtpu: 0.0.40
codegen_flags: <defaults>
</compile_context>

<pallas_src>
import jax
import jax.numpy as jnp
from jax import lax
from jax.experimental import pallas as pl
from jax.experimental.pallas import tpu as pltpu

EPS = 1e-5
H = W = 8          # chess board
CIN = 12           # input planes
C = 64             # trunk channels
SHIFTS = tuple(dy * 8 + dx for dy in (-1, 0, 1) for dx in (-1, 0, 1))


# ---------------------------------------------------------------------------
# Fused forward kernel (single invocation, everything VMEM resident)
# ---------------------------------------------------------------------------
def _chess_fused_kernel(pin_ref, mask_ref, l_ref, rv_ref,
                        w_in_ref, a_in_ref,
                        w_r1_ref, a_r1_ref,
                        w_r2_ref, a_r2_ref,
                        w_pv_ref, a_pv_ref,
                        w_p0_ref, w_p1_ref, b_fcp_ref,
                        w_v1_ref, b_v1_ref, w_v2_ref, b_v2_ref,
                        policy_ref, value_ref):
    R = mask_ref.shape[0]                     # R = B * 64 rows, ordered (b, y, x)

    def bn_relu(y, aff_ref, residual=None):
        # aff rows: [conv_bias, bn_gamma, bn_beta]; training-mode BN over rows.
        y = y + aff_ref[0:1, :]
        mean = jnp.mean(y, axis=0, keepdims=True)
        var = jnp.maximum(jnp.mean(y * y, axis=0, keepdims=True) - mean * mean, 0.0)
        out = aff_ref[1:2, :] * ((y - mean) * lax.rsqrt(var + EPS)) + aff_ref[2:3, :]
        if residual is not None:
            out = out + residual
        return jnp.maximum(out, 0.0)

    # Hoisted 0/1 tap-validity masks, broadcast once, reused by both residual convs.
    masks = mask_ref[...]                                            # (R, 9)
    mask64 = [jnp.broadcast_to(masks[:, t:t + 1], (R, C)) for t in range(9)]

    def conv3x3_res(a, w_ref):
        # a: (R, 64) NHWC-flattened activation; w_ref: (9*64, 64) bf16 im2col weight.
        pad = jnp.zeros((16, C), jnp.float32)
        abig = jnp.concatenate([pad, a, pad], axis=0)                # (R + 32, 64)
        pieces = [abig[16 + s:16 + s + R, :] * mask64[t]
                  for t, s in enumerate(SHIFTS)]
        patches = jnp.concatenate(pieces, axis=1).astype(jnp.bfloat16)  # (R, 576)
        return jnp.dot(patches, w_ref[...], preferred_element_type=jnp.float32)

    # trunk: input conv (patches prebuilt in wrapper) + residual block
    t0 = bn_relu(jnp.dot(pin_ref[...], w_in_ref[...],
                         preferred_element_type=jnp.float32), a_in_ref)    # (R, 64)
    h1 = bn_relu(conv3x3_res(t0, w_r1_ref), a_r1_ref)                       # (R, 64)
    t1 = bn_relu(conv3x3_res(h1, w_r2_ref), a_r2_ref, residual=t0)

    # merged policy(2ch) + value(1ch) 1x1 conv + BN + ReLU -> (R, 3)
    pv = bn_relu(jnp.dot(t1, w_pv_ref[...], preferred_element_type=jnp.float32),
                 a_pv_ref)

    # relayout (B*64, 1) columns -> (B, 64) for all three head channels with ONE
    # 0/1 matmul: (L @ concat_c(col_c * Rv))[b, c*64 + p] = col_c[b*64 + p]
    rv = rv_ref[...]                                                 # (R, 64)
    x192 = jnp.concatenate([pv[:, c:c + 1] * rv for c in range(3)], axis=1)
    y = jnp.dot(l_ref[...], x192, preferred_element_type=jnp.float32)  # (B, 192)
    p0, p1, v0 = y[:, 0:64], y[:, 64:128], y[:, 128:192]

    # policy FC (channel-split weight == NCHW flatten) + softmax
    logits = (jnp.dot(p0.astype(jnp.bfloat16), w_p0_ref[...],
                      preferred_element_type=jnp.float32)
              + jnp.dot(p1.astype(jnp.bfloat16), w_p1_ref[...],
                        preferred_element_type=jnp.float32)
              + b_fcp_ref[...])
    m = jnp.max(logits, axis=-1, keepdims=True)
    e = jnp.exp(logits - m)
    policy_ref[...] = e / jnp.sum(e, axis=-1, keepdims=True)

    # value head: FC + ReLU, FC + tanh (kept f32; tiny)
    hv = jnp.maximum(jnp.dot(v0, w_v1_ref[...], preferred_element_type=jnp.float32)
                     + b_v1_ref[...], 0.0)
    value_ref[...] = jnp.tanh(jnp.dot(hv, w_v2_ref[...],
                                      preferred_element_type=jnp.float32)
                              + b_v2_ref[...])


# ---------------------------------------------------------------------------
# Wrapper: builds tiny static constants + input-conv im2col, one fused pallas_call
# ---------------------------------------------------------------------------
def _make_tap_masks(B):
    r = jnp.arange(B * 64)
    y = (r % 64) // 8
    x = r % 8
    cols = []
    for dy in (-1, 0, 1):
        for dx in (-1, 0, 1):
            cols.append((y + dy >= 0) & (y + dy < 8) & (x + dx >= 0) & (x + dx < 8))
    return jnp.stack(cols, axis=1).astype(jnp.float32)               # (R, 9)


def _im2col_3x3(x_nhwc):
    B, h, w, c = x_nhwc.shape
    xp = jnp.pad(x_nhwc, ((0, 0), (1, 1), (1, 1), (0, 0)))
    cols = [xp[:, ky:ky + h, kx:kx + w, :] for ky in range(3) for kx in range(3)]
    return jnp.concatenate(cols, axis=-1).reshape(B * h * w, 9 * c)


def chess_network_forward(x_nchw, p):
    B = x_nchw.shape[0]
    R = B * H * W
    x_nhwc = jnp.transpose(x_nchw, (0, 2, 3, 1)).astype(jnp.float32)
    pin = _im2col_3x3(x_nhwc).astype(jnp.bfloat16)                   # (R, 108)
    masks = _make_tap_masks(B)                                       # (R, 9)
    lmat = (jnp.arange(R)[None, :] // 64 ==
            jnp.arange(B)[:, None]).astype(jnp.float32)              # (B, R)
    rvmat = (jnp.arange(R)[:, None] % 64 ==
             jnp.arange(64)[None, :]).astype(jnp.float32)            # (R, 64)

    operands = (pin, masks, lmat, rvmat,
                p["w_in"], p["aff_in"], p["w_r1"], p["aff_r1"],
                p["w_r2"], p["aff_r2"], p["w_pv"], p["aff_pv"],
                p["w_p0"], p["w_p1"], p["b_fcp"],
                p["w_v1"], p["b_v1"], p["w_v2"], p["b_v2"])

    flops = 2 * (R * (9 * CIN) * C + 2 * R * (9 * C) * C + R * C * 3
                 + B * R * 192 + 2 * B * 64 * 4096 + B * (64 * 256 + 256))
    bytes_accessed = int(sum(op.size * op.dtype.itemsize for op in operands)
                         + B * 4096 * 4 + B * 4)
    cost = pl.CostEstimate(flops=int(flops),
                           transcendentals=int(B * (4096 + 256 + 1)),
                           bytes_accessed=bytes_accessed)

    policy, value = pl.pallas_call(
        _chess_fused_kernel,
        out_shape=(jax.ShapeDtypeStruct((B, 4096), jnp.float32),
                   jax.ShapeDtypeStruct((B, 1), jnp.float32)),
        compiler_params=pltpu.CompilerParams(vmem_limit_bytes=32 * 1024 * 1024),
        cost_estimate=cost,
    )(*operands)
    return policy, value


# ---------------------------------------------------------------------------
# Parameter construction (deterministic, PyTorch-like init, pre-laid-out)
# ---------------------------------------------------------------------------
def _conv_init(key, cout, cin, k):
    wk, bk = jax.random.split(key)
    bound = 1.0 / (cin * k * k) ** 0.5
    w = jax.random.uniform(wk, (cout, cin, k, k), jnp.float32, -bound, bound)
    b = jax.random.uniform(bk, (cout,), jnp.float32, -bound, bound)
    return w, b


def _linear_init(key, fout, fin):
    wk, bk = jax.random.split(key)
    bound = 1.0 / fin ** 0.5
    w = jax.random.uniform(wk, (fout, fin), jnp.float32, -bound, bound)
    b = jax.random.uniform(bk, (fout,), jnp.float32, -bound, bound)
    return w, b


def _taps_flat(w):   # (Cout, Cin, 3, 3) -> (9*Cin, Cout) bf16, row = (ky*3+kx)*Cin+ci
    cout, cin = w.shape[0], w.shape[1]
    return jnp.transpose(w, (2, 3, 1, 0)).reshape(9 * cin, cout).astype(jnp.bfloat16)


def _aff(bias, c):   # rows: [conv_bias, bn_gamma, bn_beta]
    return jnp.stack([bias, jnp.ones((c,), jnp.float32),
                      jnp.zeros((c,), jnp.float32)], axis=0)


def make_params(seed=0):
    keys = jax.random.split(jax.random.PRNGKey(seed), 8)
    p = {}
    w, b = _conv_init(keys[0], C, CIN, 3)
    p["w_in"], p["aff_in"] = _taps_flat(w), _aff(b, C)
    w, b = _conv_init(keys[1], C, C, 3)
    p["w_r1"], p["aff_r1"] = _taps_flat(w), _aff(b, C)
    w, b = _conv_init(keys[2], C, C, 3)
    p["w_r2"], p["aff_r2"] = _taps_flat(w), _aff(b, C)
    # merged policy(2) + value(1) 1x1 convs -> (64, 3) matmul (small, kept f32)
    wp, bp = _conv_init(keys[3], 2, C, 1)
    wv, bv = _conv_init(keys[4], 1, C, 1)
    p["w_pv"] = jnp.concatenate([wp.reshape(2, C).T, wv.reshape(1, C).T], axis=1)
    p["aff_pv"] = _aff(jnp.concatenate([bp, bv]), 3)
    # fc_policy (4096, 128): split by input channel so the kernel never needs the
    # NHWC->NCHW re-flatten (rows of each piece are spatial positions p = y*8+x).
    w, b = _linear_init(keys[5], 4096, 2 * 8 * 8)
    p["w_p0"] = w[:, :64].T.astype(jnp.bfloat16)
    p["w_p1"] = w[:, 64:].T.astype(jnp.bfloat16)
    p["b_fcp"] = b.reshape(1, 4096)
    w, b = _linear_init(keys[6], 256, 8 * 8)
    p["w_v1"], p["b_v1"] = w.T, b.reshape(1, 256)
    w, b = _linear_init(keys[7], 1, 256)
    p["w_v2"], p["b_v2"] = w.T, b.reshape(1, 1)
    return p


# ---------------------------------------------------------------------------
# Plain-JAX reference (independent lowering via lax.conv) for correctness
# ---------------------------------------------------------------------------
def _ref_bn_relu(y_nhwc, aff, residual=None):
    y = y_nhwc + aff[0][None, None, None, :]
    mean = jnp.mean(y, axis=(0, 1, 2), keepdims=True)
    var = jnp.mean((y - mean) ** 2, axis=(0, 1, 2), keepdims=True)
    out = aff[1] * ((y - mean) * lax.rsqrt(var + EPS)) + aff[2]
    if residual is not None:
        out = out + residual
    return jnp.maximum(out, 0.0)


def _ref_conv3x3(x_nhwc, w_flat, cin):
    w = w_flat.astype(jnp.float32).reshape(3, 3, cin, -1)            # HWIO
    return lax.conv_general_dilated(x_nhwc, w, (1, 1), 'SAME',
                                    dimension_numbers=('NHWC', 'HWIO', 'NHWC'),
                                    precision=lax.Precision.HIGHEST)


def chess_network_forward_ref(x_nchw, p):
    B = x_nchw.shape[0]
    x = jnp.transpose(x_nchw, (0, 2, 3, 1)).astype(jnp.float32)
    t0 = _ref_bn_relu(_ref_conv3x3(x, p["w_in"], CIN), p["aff_in"])
    h1 = _ref_bn_relu(_ref_conv3x3(t0, p["w_r1"], C), p["aff_r1"])
    t1 = _ref_bn_relu(_ref_conv3x3(h1, p["w_r2"], C), p["aff_r2"], residual=t0)
    pv = _ref_bn_relu(jnp.einsum('bhwc,cd->bhwd', t1, p["w_pv"],
                                 precision=lax.Precision.HIGHEST), p["aff_pv"])
    # policy: PyTorch NCHW flatten (c*64 + p) then FC + softmax
    pol = jnp.transpose(pv[..., :2], (0, 3, 1, 2)).reshape(B, 2 * 64)
    w_full = jnp.concatenate([p["w_p0"], p["w_p1"]], axis=0).astype(jnp.float32)
    logits = jnp.dot(pol, w_full, precision=lax.Precision.HIGHEST) + p["b_fcp"]
    policy = jax.nn.softmax(logits, axis=-1)
    # value
    v = pv[..., 2].reshape(B, 64)
    hv = jnp.maximum(jnp.dot(v, p["w_v1"], precision=lax.Precision.HIGHEST)
                     + p["b_v1"], 0.0)
    value = jnp.tanh(jnp.dot(hv, p["w_v2"], precision=lax.Precision.HIGHEST)
                     + p["b_v2"])
    return policy, value


# ---------------------------------------------------------------------------
if __name__ == "__main__":
    B = 2
    key = jax.random.PRNGKey(0)
    x = jax.random.normal(key, (B, CIN, H, W), jnp.float32)   # NCHW like PyTorch
    params = make_params(seed=0)

    fwd = jax.jit(chess_network_forward)
    policy, value = fwd(x, params)
    jax.block_until_ready((policy, value))

    # sanity / correctness checks (bf16 weights are shared by kernel and reference;
    # remaining diffs come from bf16 LHS rounding + accumulation order)
    assert policy.shape == (B, 4096) and value.shape == (B, 1)
    assert bool(jnp.all(jnp.isfinite(policy))) and bool(jnp.all(jnp.isfinite(value)))
    assert bool(jnp.allclose(jnp.sum(policy, axis=-1), 1.0, atol=1e-3))
    pol_ref, val_ref = chess_network_forward_ref(x, params)
    assert bool(jnp.allclose(policy, pol_ref, rtol=2e-2, atol=1e-3)), "policy mismatch"
    assert bool(jnp.allclose(value, val_ref, rtol=5e-2, atol=5e-3)), "value mismatch"

    print("KERNEL_OK")
</pallas_src>

<mosaic_0001>
module attributes {stable_mosaic.version = 11 : i64} {
  func.func @_chess_fused_kernel(%arg0: memref<128x108xbf16, #tpu.memory_space<vmem>>, %arg1: memref<128x9xf32, #tpu.memory_space<vmem>>, %arg2: memref<2x128xf32, #tpu.memory_space<vmem>>, %arg3: memref<128x64xf32, #tpu.memory_space<vmem>>, %arg4: memref<108x64xbf16, #tpu.memory_space<vmem>>, %arg5: memref<3x64xf32, #tpu.memory_space<vmem>>, %arg6: memref<576x64xbf16, #tpu.memory_space<vmem>>, %arg7: memref<3x64xf32, #tpu.memory_space<vmem>>, %arg8: memref<576x64xbf16, #tpu.memory_space<vmem>>, %arg9: memref<3x64xf32, #tpu.memory_space<vmem>>, %arg10: memref<64x3xf32, #tpu.memory_space<vmem>>, %arg11: memref<3x3xf32, #tpu.memory_space<vmem>>, %arg12: memref<64x4096xbf16, #tpu.memory_space<vmem>>, %arg13: memref<64x4096xbf16, #tpu.memory_space<vmem>>, %arg14: memref<1x4096xf32, #tpu.memory_space<vmem>>, %arg15: memref<64x256xf32, #tpu.memory_space<vmem>>, %arg16: memref<1x256xf32, #tpu.memory_space<vmem>>, %arg17: memref<256x1xf32, #tpu.memory_space<vmem>>, %arg18: memref<1x1xf32, #tpu.memory_space<vmem>>, %arg19: memref<2x4096xf32, #tpu.memory_space<vmem>>, %arg20: memref<2x1xf32, #tpu.memory_space<vmem>>) attributes {dimension_semantics = [], scalar_prefetch = 0 : i64, scratch_operands = 0 : i64, tpu.core_type = #tpu.core_type<tc>} {
    %c0 = arith.constant 0 : index
    %c0_0 = arith.constant 0 : index
    %0 = vector.load %arg1[%c0, %c0_0] : memref<128x9xf32, #tpu.memory_space<vmem>>, vector<128x9xf32>
    %1 = vector.extract_strided_slice %0 {offsets = [0, 0], sizes = [128, 1], strides = [1, 1]} : vector<128x9xf32> to vector<128x1xf32>
    %2 = vector.shape_cast %1 : vector<128x1xf32> to vector<128x1xf32>
    %3 = vector.broadcast %2 : vector<128x1xf32> to vector<128x64xf32>
    %4 = vector.extract_strided_slice %0 {offsets = [0, 1], sizes = [128, 1], strides = [1, 1]} : vector<128x9xf32> to vector<128x1xf32>
    %5 = vector.shape_cast %4 : vector<128x1xf32> to vector<128x1xf32>
    %6 = vector.broadcast %5 : vector<128x1xf32> to vector<128x64xf32>
    %7 = vector.extract_strided_slice %0 {offsets = [0, 2], sizes = [128, 1], strides = [1, 1]} : vector<128x9xf32> to vector<128x1xf32>
    %8 = vector.shape_cast %7 : vector<128x1xf32> to vector<128x1xf32>
    %9 = vector.broadcast %8 : vector<128x1xf32> to vector<128x64xf32>
    %10 = vector.extract_strided_slice %0 {offsets = [0, 3], sizes = [128, 1], strides = [1, 1]} : vector<128x9xf32> to vector<128x1xf32>
    %11 = vector.shape_cast %10 : vector<128x1xf32> to vector<128x1xf32>
    %12 = vector.broadcast %11 : vector<128x1xf32> to vector<128x64xf32>
    %13 = vector.extract_strided_slice %0 {offsets = [0, 4], sizes = [128, 1], strides = [1, 1]} : vector<128x9xf32> to vector<128x1xf32>
    %14 = vector.shape_cast %13 : vector<128x1xf32> to vector<128x1xf32>
    %15 = vector.broadcast %14 : vector<128x1xf32> to vector<128x64xf32>
    %16 = vector.extract_strided_slice %0 {offsets = [0, 5], sizes = [128, 1], strides = [1, 1]} : vector<128x9xf32> to vector<128x1xf32>
    %17 = vector.shape_cast %16 : vector<128x1xf32> to vector<128x1xf32>
    %18 = vector.broadcast %17 : vector<128x1xf32> to vector<128x64xf32>
    %19 = vector.extract_strided_slice %0 {offsets = [0, 6], sizes = [128, 1], strides = [1, 1]} : vector<128x9xf32> to vector<128x1xf32>
    %20 = vector.shape_cast %19 : vector<128x1xf32> to vector<128x1xf32>
    %21 = vector.broadcast %20 : vector<128x1xf32> to vector<128x64xf32>
    %22 = vector.extract_strided_slice %0 {offsets = [0, 7], sizes = [128, 1], strides = [1, 1]} : vector<128x9xf32> to vector<128x1xf32>
    %23 = vector.shape_cast %22 : vector<128x1xf32> to vector<128x1xf32>
    %24 = vector.broadcast %23 : vector<128x1xf32> to vector<128x64xf32>
    %25 = vector.extract_strided_slice %0 {offsets = [0, 8], sizes = [128, 1], strides = [1, 1]} : vector<128x9xf32> to vector<128x1xf32>
    %26 = vector.shape_cast %25 : vector<128x1xf32> to vector<128x1xf32>
    %27 = vector.broadcast %26 : vector<128x1xf32> to vector<128x64xf32>
    %c0_1 = arith.constant 0 : index
    %c0_2 = arith.constant 0 : index
    %28 = vector.load %arg0[%c0_1, %c0_2] : memref<128x108xbf16, #tpu.memory_space<vmem>>, vector<128x108xbf16>
    %c0_3 = arith.constant 0 : index
    %c0_4 = arith.constant 0 : index
    %29 = vector.load %arg4[%c0_3, %c0_4] : memref<108x64xbf16, #tpu.memory_space<vmem>>, vector<108x64xbf16>
    %cst = arith.constant dense<0.000000e+00> : vector<128x64xf32>
    %30 = tpu.matmul %28, %29, %cst {dimension_numbers = #tpu.dot_dimension_numbers<[1], [0], [0], [1], [0, 0, 1, 1], [], []>} : vector<128x108xbf16>, vector<108x64xbf16>, vector<128x64xf32> -> vector<128x64xf32>
    %c0_5 = arith.constant 0 : index
    %c0_6 = arith.constant 0 : index
    %31 = vector.load %arg5[%c0_5, %c0_6] : memref<3x64xf32, #tpu.memory_space<vmem>>, vector<1x64xf32>
    %32 = vector.broadcast %31 : vector<1x64xf32> to vector<128x64xf32>
    %33 = arith.addf %30, %32 : vector<128x64xf32>
    %cst_7 = arith.constant dense<0.000000e+00> : vector<64xf32>
    %34 = vector.multi_reduction <add>, %33, %cst_7 [0] : vector<128x64xf32> to vector<64xf32>
    %35 = vector.shape_cast %34 : vector<64xf32> to vector<1x64xf32>
    %cst_8 = arith.constant 1.280000e+02 : f32
    %36 = vector.broadcast %cst_8 : f32 to vector<1x64xf32>
    %37 = arith.divf %35, %36 : vector<1x64xf32>
    %38 = arith.mulf %33, %33 : vector<128x64xf32>
    %cst_9 = arith.constant dense<0.000000e+00> : vector<64xf32>
    %39 = vector.multi_reduction <add>, %38, %cst_9 [0] : vector<128x64xf32> to vector<64xf32>
    %40 = vector.shape_cast %39 : vector<64xf32> to vector<1x64xf32>
    %cst_10 = arith.constant 1.280000e+02 : f32
    %41 = vector.broadcast %cst_10 : f32 to vector<1x64xf32>
    %42 = arith.divf %40, %41 : vector<1x64xf32>
    %43 = arith.mulf %37, %37 : vector<1x64xf32>
    %44 = arith.subf %42, %43 : vector<1x64xf32>
    %cst_11 = arith.constant 0.000000e+00 : f32
    %45 = vector.broadcast %cst_11 : f32 to vector<1x64xf32>
    %46 = arith.maximumf %44, %45 : vector<1x64xf32>
    %c1 = arith.constant 1 : index
    %c0_12 = arith.constant 0 : index
    %47 = vector.load %arg5[%c1, %c0_12] : memref<3x64xf32, #tpu.memory_space<vmem>>, vector<1x64xf32>
    %48 = vector.broadcast %37 : vector<1x64xf32> to vector<128x64xf32>
    %49 = arith.subf %33, %48 : vector<128x64xf32>
    %cst_13 = arith.constant 9.99999974E-6 : f32
    %50 = vector.broadcast %cst_13 : f32 to vector<1x64xf32>
    %51 = arith.addf %46, %50 : vector<1x64xf32>
    %52 = math.rsqrt %51 : vector<1x64xf32>
    %53 = vector.broadcast %52 : vector<1x64xf32> to vector<128x64xf32>
    %54 = arith.mulf %49, %53 : vector<128x64xf32>
    %55 = vector.broadcast %47 : vector<1x64xf32> to vector<128x64xf32>
    %56 = arith.mulf %55, %54 : vector<128x64xf32>
    %c2 = arith.constant 2 : index
    %c0_14 = arith.constant 0 : index
    %57 = vector.load %arg5[%c2, %c0_14] : memref<3x64xf32, #tpu.memory_space<vmem>>, vector<1x64xf32>
    %58 = vector.broadcast %57 : vector<1x64xf32> to vector<128x64xf32>
    %59 = arith.addf %56, %58 : vector<128x64xf32>
    %cst_15 = arith.constant 0.000000e+00 : f32
    %60 = vector.broadcast %cst_15 : f32 to vector<128x64xf32>
    %61 = arith.maximumf %59, %60 : vector<128x64xf32>
    %cst_16 = arith.constant 0.000000e+00 : f32
    %62 = vector.broadcast %cst_16 : f32 to vector<16x64xf32>
    %63 = tpu.concatenate %62, %61, %62 in 0 : vector<16x64xf32>, vector<128x64xf32>, vector<16x64xf32> -> vector<160x64xf32>
    %64 = vector.extract_strided_slice %63 {offsets = [7, 0], sizes = [128, 64], strides = [1, 1]} : vector<160x64xf32> to vector<128x64xf32>
    %65 = arith.mulf %64, %3 : vector<128x64xf32>
    %66 = vector.extract_strided_slice %63 {offsets = [8, 0], sizes = [128, 64], strides = [1, 1]} : vector<160x64xf32> to vector<128x64xf32>
    %67 = arith.mulf %66, %6 : vector<128x64xf32>
    %68 = vector.extract_strided_slice %63 {offsets = [9, 0], sizes = [128, 64], strides = [1, 1]} : vector<160x64xf32> to vector<128x64xf32>
    %69 = arith.mulf %68, %9 : vector<128x64xf32>
    %70 = vector.extract_strided_slice %63 {offsets = [15, 0], sizes = [128, 64], strides = [1, 1]} : vector<160x64xf32> to vector<128x64xf32>
    %71 = arith.mulf %70, %12 : vector<128x64xf32>
    %72 = vector.extract_strided_slice %63 {offsets = [16, 0], sizes = [128, 64], strides = [1, 1]} : vector<160x64xf32> to vector<128x64xf32>
    %73 = arith.mulf %72, %15 : vector<128x64xf32>
    %74 = vector.extract_strided_slice %63 {offsets = [17, 0], sizes = [128, 64], strides = [1, 1]} : vector<160x64xf32> to vector<128x64xf32>
    %75 = arith.mulf %74, %18 : vector<128x64xf32>
    %76 = vector.extract_strided_slice %63 {offsets = [23, 0], sizes = [128, 64], strides = [1, 1]} : vector<160x64xf32> to vector<128x64xf32>
    %77 = arith.mulf %76, %21 : vector<128x64xf32>
    %78 = vector.extract_strided_slice %63 {offsets = [24, 0], sizes = [128, 64], strides = [1, 1]} : vector<160x64xf32> to vector<128x64xf32>
    %79 = arith.mulf %78, %24 : vector<128x64xf32>
    %80 = vector.extract_strided_slice %63 {offsets = [25, 0], sizes = [128, 64], strides = [1, 1]} : vector<160x64xf32> to vector<128x64xf32>
    %81 = arith.mulf %80, %27 : vector<128x64xf32>
    %82 = tpu.concatenate %65, %67, %69, %71, %73, %75, %77, %79, %81 in 1 : vector<128x64xf32>, vector<128x64xf32>, vector<128x64xf32>, vector<128x64xf32>, vector<128x64xf32>, vector<128x64xf32>, vector<128x64xf32>, vector<128x64xf32>, vector<128x64xf32> -> vector<128x576xf32>
    %83 = arith.truncf %82 : vector<128x576xf32> to vector<128x576xbf16>
    %c0_17 = arith.constant 0 : index
    %c0_18 = arith.constant 0 : index
    %84 = vector.load %arg6[%c0_17, %c0_18] : memref<576x64xbf16, #tpu.memory_space<vmem>>, vector<576x64xbf16>
    %cst_19 = arith.constant dense<0.000000e+00> : vector<128x64xf32>
    %85 = tpu.matmul %83, %84, %cst_19 {dimension_numbers = #tpu.dot_dimension_numbers<[1], [0], [0], [1], [0, 0, 1, 1], [], []>} : vector<128x576xbf16>, vector<576x64xbf16>, vector<128x64xf32> -> vector<128x64xf32>
    %c0_20 = arith.constant 0 : index
    %c0_21 = arith.constant 0 : index
    %86 = vector.load %arg7[%c0_20, %c0_21] : memref<3x64xf32, #tpu.memory_space<vmem>>, vector<1x64xf32>
    %87 = vector.broadcast %86 : vector<1x64xf32> to vector<128x64xf32>
    %88 = arith.addf %85, %87 : vector<128x64xf32>
    %cst_22 = arith.constant dense<0.000000e+00> : vector<64xf32>
    %89 = vector.multi_reduction <add>, %88, %cst_22 [0] : vector<128x64xf32> to vector<64xf32>
    %90 = vector.shape_cast %89 : vector<64xf32> to vector<1x64xf32>
    %cst_23 = arith.constant 1.280000e+02 : f32
    %91 = vector.broadcast %cst_23 : f32 to vector<1x64xf32>
    %92 = arith.divf %90, %91 : vector<1x64xf32>
    %93 = arith.mulf %88, %88 : vector<128x64xf32>
    %cst_24 = arith.constant dense<0.000000e+00> : vector<64xf32>
    %94 = vector.multi_reduction <add>, %93, %cst_24 [0] : vector<128x64xf32> to vector<64xf32>
    %95 = vector.shape_cast %94 : vector<64xf32> to vector<1x64xf32>
    %cst_25 = arith.constant 1.280000e+02 : f32
    %96 = vector.broadcast %cst_25 : f32 to vector<1x64xf32>
    %97 = arith.divf %95, %96 : vector<1x64xf32>
    %98 = arith.mulf %92, %92 : vector<1x64xf32>
    %99 = arith.subf %97, %98 : vector<1x64xf32>
    %cst_26 = arith.constant 0.000000e+00 : f32
    %100 = vector.broadcast %cst_26 : f32 to vector<1x64xf32>
    %101 = arith.maximumf %99, %100 : vector<1x64xf32>
    %c1_27 = arith.constant 1 : index
    %c0_28 = arith.constant 0 : index
    %102 = vector.load %arg7[%c1_27, %c0_28] : memref<3x64xf32, #tpu.memory_space<vmem>>, vector<1x64xf32>
    %103 = vector.broadcast %92 : vector<1x64xf32> to vector<128x64xf32>
    %104 = arith.subf %88, %103 : vector<128x64xf32>
    %cst_29 = arith.constant 9.99999974E-6 : f32
    %105 = vector.broadcast %cst_29 : f32 to vector<1x64xf32>
    %106 = arith.addf %101, %105 : vector<1x64xf32>
    %107 = math.rsqrt %106 : vector<1x64xf32>
    %108 = vector.broadcast %107 : vector<1x64xf32> to vector<128x64xf32>
    %109 = arith.mulf %104, %108 : vector<128x64xf32>
    %110 = vector.broadcast %102 : vector<1x64xf32> to vector<128x64xf32>
    %111 = arith.mulf %110, %109 : vector<128x64xf32>
    %c2_30 = arith.constant 2 : index
    %c0_31 = arith.constant 0 : index
    %112 = vector.load %arg7[%c2_30, %c0_31] : memref<3x64xf32, #tpu.memory_space<vmem>>, vector<1x64xf32>
    %113 = vector.broadcast %112 : vector<1x64xf32> to vector<128x64xf32>
    %114 = arith.addf %111, %113 : vector<128x64xf32>
    %cst_32 = arith.constant 0.000000e+00 : f32
    %115 = vector.broadcast %cst_32 : f32 to vector<128x64xf32>
    %116 = arith.maximumf %114, %115 : vector<128x64xf32>
    %cst_33 = arith.constant 0.000000e+00 : f32
    %117 = vector.broadcast %cst_33 : f32 to vector<16x64xf32>
    %118 = tpu.concatenate %117, %116, %117 in 0 : vector<16x64xf32>, vector<128x64xf32>, vector<16x64xf32> -> vector<160x64xf32>
    %119 = vector.extract_strided_slice %118 {offsets = [7, 0], sizes = [128, 64], strides = [1, 1]} : vector<160x64xf32> to vector<128x64xf32>
    %120 = arith.mulf %119, %3 : vector<128x64xf32>
    %121 = vector.extract_strided_slice %118 {offsets = [8, 0], sizes = [128, 64], strides = [1, 1]} : vector<160x64xf32> to vector<128x64xf32>
    %122 = arith.mulf %121, %6 : vector<128x64xf32>
    %123 = vector.extract_strided_slice %118 {offsets = [9, 0], sizes = [128, 64], strides = [1, 1]} : vector<160x64xf32> to vector<128x64xf32>
    %124 = arith.mulf %123, %9 : vector<128x64xf32>
    %125 = vector.extract_strided_slice %118 {offsets = [15, 0], sizes = [128, 64], strides = [1, 1]} : vector<160x64xf32> to vector<128x64xf32>
    %126 = arith.mulf %125, %12 : vector<128x64xf32>
    %127 = vector.extract_strided_slice %118 {offsets = [16, 0], sizes = [128, 64], strides = [1, 1]} : vector<160x64xf32> to vector<128x64xf32>
    %128 = arith.mulf %127, %15 : vector<128x64xf32>
    %129 = vector.extract_strided_slice %118 {offsets = [17, 0], sizes = [128, 64], strides = [1, 1]} : vector<160x64xf32> to vector<128x64xf32>
    %130 = arith.mulf %129, %18 : vector<128x64xf32>
    %131 = vector.extract_strided_slice %118 {offsets = [23, 0], sizes = [128, 64], strides = [1, 1]} : vector<160x64xf32> to vector<128x64xf32>
    %132 = arith.mulf %131, %21 : vector<128x64xf32>
    %133 = vector.extract_strided_slice %118 {offsets = [24, 0], sizes = [128, 64], strides = [1, 1]} : vector<160x64xf32> to vector<128x64xf32>
    %134 = arith.mulf %133, %24 : vector<128x64xf32>
    %135 = vector.extract_strided_slice %118 {offsets = [25, 0], sizes = [128, 64], strides = [1, 1]} : vector<160x64xf32> to vector<128x64xf32>
    %136 = arith.mulf %135, %27 : vector<128x64xf32>
    %137 = tpu.concatenate %120, %122, %124, %126, %128, %130, %132, %134, %136 in 1 : vector<128x64xf32>, vector<128x64xf32>, vector<128x64xf32>, vector<128x64xf32>, vector<128x64xf32>, vector<128x64xf32>, vector<128x64xf32>, vector<128x64xf32>, vector<128x64xf32> -> vector<128x576xf32>
    %138 = arith.truncf %137 : vector<128x576xf32> to vector<128x576xbf16>
    %c0_34 = arith.constant 0 : index
    %c0_35 = arith.constant 0 : index
    %139 = vector.load %arg8[%c0_34, %c0_35] : memref<576x64xbf16, #tpu.memory_space<vmem>>, vector<576x64xbf16>
    %cst_36 = arith.constant dense<0.000000e+00> : vector<128x64xf32>
    %140 = tpu.matmul %138, %139, %cst_36 {dimension_numbers = #tpu.dot_dimension_numbers<[1], [0], [0], [1], [0, 0, 1, 1], [], []>} : vector<128x576xbf16>, vector<576x64xbf16>, vector<128x64xf32> -> vector<128x64xf32>
    %c0_37 = arith.constant 0 : index
    %c0_38 = arith.constant 0 : index
    %141 = vector.load %arg9[%c0_37, %c0_38] : memref<3x64xf32, #tpu.memory_space<vmem>>, vector<1x64xf32>
    %142 = vector.broadcast %141 : vector<1x64xf32> to vector<128x64xf32>
    %143 = arith.addf %140, %142 : vector<128x64xf32>
    %cst_39 = arith.constant dense<0.000000e+00> : vector<64xf32>
    %144 = vector.multi_reduction <add>, %143, %cst_39 [0] : vector<128x64xf32> to vector<64xf32>
    %145 = vector.shape_cast %144 : vector<64xf32> to vector<1x64xf32>
    %cst_40 = arith.constant 1.280000e+02 : f32
    %146 = vector.broadcast %cst_40 : f32 to vector<1x64xf32>
    %147 = arith.divf %145, %146 : vector<1x64xf32>
    %148 = arith.mulf %143, %143 : vector<128x64xf32>
    %cst_41 = arith.constant dense<0.000000e+00> : vector<64xf32>
    %149 = vector.multi_reduction <add>, %148, %cst_41 [0] : vector<128x64xf32> to vector<64xf32>
    %150 = vector.shape_cast %149 : vector<64xf32> to vector<1x64xf32>
    %cst_42 = arith.constant 1.280000e+02 : f32
    %151 = vector.broadcast %cst_42 : f32 to vector<1x64xf32>
    %152 = arith.divf %150, %151 : vector<1x64xf32>
    %153 = arith.mulf %147, %147 : vector<1x64xf32>
    %154 = arith.subf %152, %153 : vector<1x64xf32>
    %cst_43 = arith.constant 0.000000e+00 : f32
    %155 = vector.broadcast %cst_43 : f32 to vector<1x64xf32>
    %156 = arith.maximumf %154, %155 : vector<1x64xf32>
    %c1_44 = arith.constant 1 : index
    %c0_45 = arith.constant 0 : index
    %157 = vector.load %arg9[%c1_44, %c0_45] : memref<3x64xf32, #tpu.memory_space<vmem>>, vector<1x64xf32>
    %158 = vector.broadcast %147 : vector<1x64xf32> to vector<128x64xf32>
    %159 = arith.subf %143, %158 : vector<128x64xf32>
    %cst_46 = arith.constant 9.99999974E-6 : f32
    %160 = vector.broadcast %cst_46 : f32 to vector<1x64xf32>
    %161 = arith.addf %156, %160 : vector<1x64xf32>
    %162 = math.rsqrt %161 : vector<1x64xf32>
    %163 = vector.broadcast %162 : vector<1x64xf32> to vector<128x64xf32>
    %164 = arith.mulf %159, %163 : vector<128x64xf32>
    %165 = vector.broadcast %157 : vector<1x64xf32> to vector<128x64xf32>
    %166 = arith.mulf %165, %164 : vector<128x64xf32>
    %c2_47 = arith.constant 2 : index
    %c0_48 = arith.constant 0 : index
    %167 = vector.load %arg9[%c2_47, %c0_48] : memref<3x64xf32, #tpu.memory_space<vmem>>, vector<1x64xf32>
    %168 = vector.broadcast %167 : vector<1x64xf32> to vector<128x64xf32>
    %169 = arith.addf %166, %168 : vector<128x64xf32>
    %170 = arith.addf %169, %61 : vector<128x64xf32>
    %cst_49 = arith.constant 0.000000e+00 : f32
    %171 = vector.broadcast %cst_49 : f32 to vector<128x64xf32>
    %172 = arith.maximumf %170, %171 : vector<128x64xf32>
    %c0_50 = arith.constant 0 : index
    %c0_51 = arith.constant 0 : index
    %173 = vector.load %arg10[%c0_50, %c0_51] : memref<64x3xf32, #tpu.memory_space<vmem>>, vector<64x3xf32>
    %cst_52 = arith.constant dense<0.000000e+00> : vector<128x3xf32>
    %174 = tpu.matmul %172, %173, %cst_52 {dimension_numbers = #tpu.dot_dimension_numbers<[1], [0], [0], [1], [0, 0, 1, 1], [], []>} : vector<128x64xf32>, vector<64x3xf32>, vector<128x3xf32> -> vector<128x3xf32>
    %c0_53 = arith.constant 0 : index
    %c0_54 = arith.constant 0 : index
    %175 = vector.load %arg11[%c0_53, %c0_54] : memref<3x3xf32, #tpu.memory_space<vmem>>, vector<1x3xf32>
    %176 = vector.broadcast %175 : vector<1x3xf32> to vector<128x3xf32>
    %177 = arith.addf %174, %176 : vector<128x3xf32>
    %cst_55 = arith.constant dense<0.000000e+00> : vector<3xf32>
    %178 = vector.multi_reduction <add>, %177, %cst_55 [0] : vector<128x3xf32> to vector<3xf32>
    %179 = vector.shape_cast %178 : vector<3xf32> to vector<1x3xf32>
    %cst_56 = arith.constant 1.280000e+02 : f32
    %180 = vector.broadcast %cst_56 : f32 to vector<1x3xf32>
    %181 = arith.divf %179, %180 : vector<1x3xf32>
    %182 = arith.mulf %177, %177 : vector<128x3xf32>
    %cst_57 = arith.constant dense<0.000000e+00> : vector<3xf32>
    %183 = vector.multi_reduction <add>, %182, %cst_57 [0] : vector<128x3xf32> to vector<3xf32>
    %184 = vector.shape_cast %183 : vector<3xf32> to vector<1x3xf32>
    %cst_58 = arith.constant 1.280000e+02 : f32
    %185 = vector.broadcast %cst_58 : f32 to vector<1x3xf32>
    %186 = arith.divf %184, %185 : vector<1x3xf32>
    %187 = arith.mulf %181, %181 : vector<1x3xf32>
    %188 = arith.subf %186, %187 : vector<1x3xf32>
    %cst_59 = arith.constant 0.000000e+00 : f32
    %189 = vector.broadcast %cst_59 : f32 to vector<1x3xf32>
    %190 = arith.maximumf %188, %189 : vector<1x3xf32>
    %c1_60 = arith.constant 1 : index
    %c0_61 = arith.constant 0 : index
    %191 = vector.load %arg11[%c1_60, %c0_61] : memref<3x3xf32, #tpu.memory_space<vmem>>, vector<1x3xf32>
    %192 = vector.broadcast %181 : vector<1x3xf32> to vector<128x3xf32>
    %193 = arith.subf %177, %192 : vector<128x3xf32>
    %cst_62 = arith.constant 9.99999974E-6 : f32
    %194 = vector.broadcast %cst_62 : f32 to vector<1x3xf32>
    %195 = arith.addf %190, %194 : vector<1x3xf32>
    %196 = math.rsqrt %195 : vector<1x3xf32>
    %197 = vector.broadcast %196 : vector<1x3xf32> to vector<128x3xf32>
    %198 = arith.mulf %193, %197 : vector<128x3xf32>
    %199 = vector.broadcast %191 : vector<1x3xf32> to vector<128x3xf32>
    %200 = arith.mulf %199, %198 : vector<128x3xf32>
    %c2_63 = arith.constant 2 : index
    %c0_64 = arith.constant 0 : index
    %201 = vector.load %arg11[%c2_63, %c0_64] : memref<3x3xf32, #tpu.memory_space<vmem>>, vector<1x3xf32>
    %202 = vector.broadcast %201 : vector<1x3xf32> to vector<128x3xf32>
    %203 = arith.addf %200, %202 : vector<128x3xf32>
    %cst_65 = arith.constant 0.000000e+00 : f32
    %204 = vector.broadcast %cst_65 : f32 to vector<128x3xf32>
    %205 = arith.maximumf %203, %204 : vector<128x3xf32>
    %c0_66 = arith.constant 0 : index
    %c0_67 = arith.constant 0 : index
    %206 = vector.load %arg3[%c0_66, %c0_67] : memref<128x64xf32, #tpu.memory_space<vmem>>, vector<128x64xf32>
    %207 = vector.extract_strided_slice %205 {offsets = [0, 0], sizes = [128, 1], strides = [1, 1]} : vector<128x3xf32> to vector<128x1xf32>
    %208 = vector.broadcast %207 : vector<128x1xf32> to vector<128x64xf32>
    %209 = arith.mulf %208, %206 : vector<128x64xf32>
    %210 = vector.extract_strided_slice %205 {offsets = [0, 1], sizes = [128, 1], strides = [1, 1]} : vector<128x3xf32> to vector<128x1xf32>
    %211 = vector.broadcast %210 : vector<128x1xf32> to vector<128x64xf32>
    %212 = arith.mulf %211, %206 : vector<128x64xf32>
    %213 = vector.extract_strided_slice %205 {offsets = [0, 2], sizes = [128, 1], strides = [1, 1]} : vector<128x3xf32> to vector<128x1xf32>
    %214 = vector.broadcast %213 : vector<128x1xf32> to vector<128x64xf32>
    %215 = arith.mulf %214, %206 : vector<128x64xf32>
    %216 = tpu.concatenate %209, %212, %215 in 1 : vector<128x64xf32>, vector<128x64xf32>, vector<128x64xf32> -> vector<128x192xf32>
    %c0_68 = arith.constant 0 : index
    %c0_69 = arith.constant 0 : index
    %217 = vector.load %arg2[%c0_68, %c0_69] : memref<2x128xf32, #tpu.memory_space<vmem>>, vector<2x128xf32>
    %cst_70 = arith.constant dense<0.000000e+00> : vector<2x192xf32>
    %218 = tpu.matmul %217, %216, %cst_70 {dimension_numbers = #tpu.dot_dimension_numbers<[1], [0], [0], [1], [0, 0, 1, 1], [], []>} : vector<2x128xf32>, vector<128x192xf32>, vector<2x192xf32> -> vector<2x192xf32>
    %219 = vector.extract_strided_slice %218 {offsets = [0, 0], sizes = [2, 64], strides = [1, 1]} : vector<2x192xf32> to vector<2x64xf32>
    %220 = vector.extract_strided_slice %218 {offsets = [0, 64], sizes = [2, 64], strides = [1, 1]} : vector<2x192xf32> to vector<2x64xf32>
    %221 = vector.extract_strided_slice %218 {offsets = [0, 128], sizes = [2, 64], strides = [1, 1]} : vector<2x192xf32> to vector<2x64xf32>
    %222 = arith.truncf %219 : vector<2x64xf32> to vector<2x64xbf16>
    %c0_71 = arith.constant 0 : index
    %c0_72 = arith.constant 0 : index
    %223 = vector.load %arg12[%c0_71, %c0_72] : memref<64x4096xbf16, #tpu.memory_space<vmem>>, vector<64x4096xbf16>
    %cst_73 = arith.constant dense<0.000000e+00> : vector<2x4096xf32>
    %224 = tpu.matmul %222, %223, %cst_73 {dimension_numbers = #tpu.dot_dimension_numbers<[1], [0], [0], [1], [0, 0, 1, 1], [], []>} : vector<2x64xbf16>, vector<64x4096xbf16>, vector<2x4096xf32> -> vector<2x4096xf32>
    %225 = arith.truncf %220 : vector<2x64xf32> to vector<2x64xbf16>
    %c0_74 = arith.constant 0 : index
    %c0_75 = arith.constant 0 : index
    %226 = vector.load %arg13[%c0_74, %c0_75] : memref<64x4096xbf16, #tpu.memory_space<vmem>>, vector<64x4096xbf16>
    %cst_76 = arith.constant dense<0.000000e+00> : vector<2x4096xf32>
    %227 = tpu.matmul %225, %226, %cst_76 {dimension_numbers = #tpu.dot_dimension_numbers<[1], [0], [0], [1], [0, 0, 1, 1], [], []>} : vector<2x64xbf16>, vector<64x4096xbf16>, vector<2x4096xf32> -> vector<2x4096xf32>
    %228 = arith.addf %224, %227 : vector<2x4096xf32>
    %c0_77 = arith.constant 0 : index
    %c0_78 = arith.constant 0 : index
    %229 = vector.load %arg14[%c0_77, %c0_78] : memref<1x4096xf32, #tpu.memory_space<vmem>>, vector<1x4096xf32>
    %230 = vector.broadcast %229 : vector<1x4096xf32> to vector<2x4096xf32>
    %231 = arith.addf %228, %230 : vector<2x4096xf32>
    %cst_79 = arith.constant dense<0xFF800000> : vector<2xf32>
    %232 = vector.multi_reduction <maximumf>, %231, %cst_79 [1] : vector<2x4096xf32> to vector<2xf32>
    %233 = vector.shape_cast %232 : vector<2xf32> to vector<2x1xf32>
    %234 = vector.broadcast %233 : vector<2x1xf32> to vector<2x4096xf32>
    %235 = arith.subf %231, %234 : vector<2x4096xf32>
    %236 = math.exp %235 : vector<2x4096xf32>
    %cst_80 = arith.constant dense<0.000000e+00> : vector<2xf32>
    %237 = vector.multi_reduction <add>, %236, %cst_80 [1] : vector<2x4096xf32> to vector<2xf32>
    %238 = vector.shape_cast %237 : vector<2xf32> to vector<2x1xf32>
    %239 = vector.broadcast %238 : vector<2x1xf32> to vector<2x4096xf32>
    %240 = arith.divf %236, %239 : vector<2x4096xf32>
    %c0_81 = arith.constant 0 : index
    %c0_82 = arith.constant 0 : index
    %241 = vector.load %arg19[%c0_81, %c0_82] : memref<2x4096xf32, #tpu.memory_space<vmem>>, vector<2x4096xf32>
    tpu.vector_store %arg19[%c0_81, %c0_82], %240 {strides = array<i32>} : memref<2x4096xf32, #tpu.memory_space<vmem>>, vector<2x4096xf32>,
    %c0_83 = arith.constant 0 : index
    %c0_84 = arith.constant 0 : index
    %242 = vector.load %arg15[%c0_83, %c0_84] : memref<64x256xf32, #tpu.memory_space<vmem>>, vector<64x256xf32>
    %cst_85 = arith.constant dense<0.000000e+00> : vector<2x256xf32>
    %243 = tpu.matmul %221, %242, %cst_85 {dimension_numbers = #tpu.dot_dimension_numbers<[1], [0], [0], [1], [0, 0, 1, 1], [], []>} : vector<2x64xf32>, vector<64x256xf32>, vector<2x256xf32> -> vector<2x256xf32>
    %c0_86 = arith.constant 0 : index
    %c0_87 = arith.constant 0 : index
    %244 = vector.load %arg16[%c0_86, %c0_87] : memref<1x256xf32, #tpu.memory_space<vmem>>, vector<1x256xf32>
    %245 = vector.broadcast %244 : vector<1x256xf32> to vector<2x256xf32>
    %246 = arith.addf %243, %245 : vector<2x256xf32>
    %cst_88 = arith.constant 0.000000e+00 : f32
    %247 = vector.broadcast %cst_88 : f32 to vector<2x256xf32>
    %248 = arith.maximumf %246, %247 : vector<2x256xf32>
    %c0_89 = arith.constant 0 : index
    %c0_90 = arith.constant 0 : index
    %249 = vector.load %arg17[%c0_89, %c0_90] : memref<256x1xf32, #tpu.memory_space<vmem>>, vector<256x1xf32>
    %cst_91 = arith.constant dense<0.000000e+00> : vector<2x1xf32>
    %250 = tpu.matmul %248, %249, %cst_91 {dimension_numbers = #tpu.dot_dimension_numbers<[1], [0], [0], [1], [0, 0, 1, 1], [], []>} : vector<2x256xf32>, vector<256x1xf32>, vector<2x1xf32> -> vector<2x1xf32>
    %c0_92 = arith.constant 0 : index
    %c0_93 = arith.constant 0 : index
    %251 = vector.load %arg18[%c0_92, %c0_93] : memref<1x1xf32, #tpu.memory_space<vmem>>, vector<1x1xf32>
    %252 = vector.broadcast %251 : vector<1x1xf32> to vector<2x1xf32>
    %253 = arith.addf %250, %252 : vector<2x1xf32>
    %254 = math.tanh %253 : vector<2x1xf32>
    %c0_94 = arith.constant 0 : index
    %c0_95 = arith.constant 0 : index
    %255 = vector.load %arg20[%c0_94, %c0_95] : memref<2x1xf32, #tpu.memory_space<vmem>>, vector<2x1xf32>
    tpu.vector_store %arg20[%c0_94, %c0_95], %254 {strides = array<i32>} : memref<2x1xf32, #tpu.memory_space<vmem>>, vector<2x1xf32>,
    return
  }
}

</mosaic_0001>

<bundles_post_ra>
// kernel: chess_network_forward.1
= control target key start
LH: loop header
LB: loop body
LE: loop exit
PB: predicated region body
PF: predicated region fallthrough
CT: control target
= control target key end

     0   :  { %s18161_s0 = inlined_call_operand.vmem [shape: bf16[128,108], index: 0, kind: input, shape index: {}]   ;;  %s18162_s1 = inlined_call_operand.vmem [shape: f32[128,9], index: 1, kind: input, shape index: {}]   ;;  %s18163_s2 = inlined_call_operand.vmem [shape: f32[2,128], index: 2, kind: input, shape index: {}]   ;;  %s18164_s3 = inlined_call_operand.vmem [shape: f32[128,64], index: 3, kind: input, shape index: {}]   ;;  %s18165_s4 = inlined_call_operand.vmem [shape: bf16[108,64], index: 4, kind: input, shape index: {}]   ;;  %s18166_s5 = inlined_call_operand.vmem [shape: f32[3,64], index: 5, kind: input, shape index: {}]   ;;  %s18167_s6 = inlined_call_operand.vmem [shape: bf16[576,64], index: 6, kind: input, shape index: {}]   ;;  %s18168_s7 = inlined_call_operand.vmem [shape: f32[3,64], index: 7, kind: input, shape index: {}]   ;;  %s18169_s8 = inlined_call_operand.vmem [shape: bf16[576,64], index: 8, kind: input, shape index: {}]   ;;  %s18170_s9 = inlined_call_operand.vmem [shape: f32[3,64], index: 9, kind: input, shape index: {}]   ;;  %s18171_s10 = inlined_call_operand.vmem [shape: f32[64,3], index: 10, kind: input, shape index: {}]   ;;  %s18172_s11 = inlined_call_operand.vmem [shape: f32[3,3], index: 11, kind: input, shape index: {}]   ;;  %s18173_s12 = inlined_call_operand.vmem [shape: bf16[64,4096], index: 12, kind: input, shape index: {}]   ;;  %s18174_s13 = inlined_call_operand.vmem [shape: bf16[64,4096], index: 13, kind: input, shape index: {}]   ;;  %s18175_s14 = inlined_call_operand.vmem [shape: f32[1,4096], index: 14, kind: input, shape index: {}]   ;;  %s18176_s15 = inlined_call_operand.vmem [shape: f32[64,256], index: 15, kind: input, shape index: {}]   ;;  %s18177_s16 = inlined_call_operand.vmem [shape: f32[1,256], index: 16, kind: input, shape index: {}]   ;;  %s18178_s17 = inlined_call_operand.vmem [shape: f32[256,1], index: 17, kind: input, shape index: {}]   ;;  %s18179_s18 = inlined_call_operand.<no memory space> [shape: f32[1,1], index: 18, kind: input, shape index: {}]   ;;  %s18180_s19 = inlined_call_operand.hbm [shape: f32[2,4096], index: 19, kind: output, shape index: {0}]   ;;  %s18181_s20 = inlined_call_operand.vmem [shape: f32[2,1], index: 20, kind: output, shape index: {1}]  }
   0x1   :  { %18441 = sst [smem:[#allocation154_spill]] %s18161_s0  ;;  %v26_v0 = vstv %s18179_s18 }
   0x2   :  { %18442 = sst [smem:[#allocation155_spill]] %s18162_s1  ;;  %27 = vst [vmem:[#allocation2] sm:$0x1] %v26_v0 }
   0x3   :  { %18443 = sst [smem:[#allocation156_spill]] %s18163_s2 }
   0x4   :  { %18444 = sst [smem:[#allocation157_spill]] %s18164_s3 }
   0x5   :  { %18445 = sst [smem:[#allocation158_spill]] %s18165_s4 }
   0x6   :  { %s18446_s2 = sld [smem:[#allocation155_spill]]  ;;  %v11606_v3 = vmov 3   ;;  %s18447_s28 = sld [smem:[#allocation158_spill]]  ;;  %v18186_v11 = vmov 1   ;;  %vm696_vm0 = vcmask 883712   ;;  %vm721_vm1 = vcmask 1045504  }
   0x7   :  { %10934 = vset.pattern.permute.xlu1 %v11606_v3  ;;  %10933 = vset.pattern.permute.xlu0 %v11606_v3  ;;  %s18448_s29 = sld [smem:[#allocation154_spill]]  ;;  %v11608_v33 = vmov 5  }
   0xc   :  { %v11730_v1 = vld [vmem:[%s18446_s2 + $0x10] sm:$0xff]  ;;  %v11735_v2 = vld [vmem:[%s18446_s2] sm:$0xff]  ;;  %v11745_v5 = vld [vmem:[%s18446_s2 + $0x18] sm:$0xff] }
   0xd   :  { %v11402_v4 = vld [vmem:[%s18447_s28] sm:$0xff]   ;;  %267 = vperm.xlu1 %10934, %v11730_v1   ;;  %261 = vperm.xlu0 %10933, %v11735_v2   ;;  %v11752_v6 = vld [vmem:[%s18446_s2 + $0x8] sm:$0xff]  ;;  %v11404_v8 = vld [vmem:[%s18447_s28 + $0x10] sm:$0xff]  }
   0xe   :  { %10705 = vmatprep.subr.bf16.mxu0 %v11402_v4  ;;  %v11403_v7 = vld [vmem:[%s18447_s28 + $0x8] sm:$0xff]   ;;  %v11405_v10 = vld [vmem:[%s18447_s28 + $0x18] sm:$0xff]   ;;  %v11775_v12 = vld [vmem:[%s18446_s2 + $0x30] sm:$0xff] }
   0xf   :  { %10706 = vmatpush3.bf16.msra.mxu0 %v11402_v4  ;;  %v11765_v9 = vld [vmem:[%s18446_s2 + $0x28] sm:$0xff]  ;;  %v11409_v13 = vld [vmem:[%s18448_s29] sm:$0xff]   ;;  %v11408_v16 = vld [vmem:[%s18447_s28 + $0x30] sm:$0x3f]  }
  0x10   :  { %10707 = vmatprep.subr.bf16.mxu0 %v11403_v7  ;;  %v11406_v14 = vld [vmem:[%s18447_s28 + $0x20] sm:$0xff]   ;;  %10719 = vmatprep.mubr.msk.bf16.mxu0 %vm696_vm0, %v11409_v13  ;;  %v11790_v15 = vld [vmem:[%s18446_s2 + $0x48] sm:$0xff]  ;;  %v11808_v19 = vld [vmem:[%s18446_s2 + $0x58] sm:$0xff]  ;;  %v723_v20 = vsel %vm721_vm1, %v11408_v16, 0 }
  0x11   :  { %270 = vperm.xlu1 %10934, %v11745_v5   ;;  %264 = vperm.xlu0 %10933, %v11752_v6   ;;  %v11798_v17 = vld [vmem:[%s18446_s2 + $0x20] sm:$0xff]  ;;  %v11407_v18 = vld [vmem:[%s18447_s28 + $0x28] sm:$0xff]   ;;  %v11827_v23 = vld [vmem:[%s18446_s2 + $0x78] sm:$0xff] }
  0x12   :  { %v11815_v21 = vld [vmem:[%s18446_s2 + $0x60] sm:$0xff]  ;;  %v11410_v22 = vld [vmem:[%s18448_s29 + $0x8] sm:$0xff]   ;;  %v11411_v24 = vld [vmem:[%s18448_s29 + $0x10] sm:$0xff]  }
  0x13   :  { %10708 = vmatpush3.bf16.msra.mxu0 %v11403_v7  ;;  %v11837_v25 = vld [vmem:[%s18446_s2 + $0x38] sm:$0xff]  ;;  %v11413_v27 = vld [vmem:[%s18448_s29 + $0x20] sm:$0xff]   ;;  %v11414_v29 = vld [vmem:[%s18448_s29 + $0x28] sm:$0xff]  }
  0x14   :  { %10709 = vmatprep.subr.bf16.mxu0 %v11404_v8  ;;  %v11412_v26 = vld [vmem:[%s18448_s29 + $0x18] sm:$0xff]   ;;  %v11858_v28 = vld [vmem:[%s18446_s2 + $0x40] sm:$0xff]  ;;  %v11415_v30 = vld [vmem:[%s18448_s29 + $0x30] sm:$0xff]  }
  0x15   :  { %10935 = vset.pattern.permute.xlu1 %v18186_v11  ;;  %276 = vperm.xlu0 %10933, %v11765_v9   ;;  %v11875_v31 = vld [vmem:[%s18446_s2 + $0x70] sm:$0xff]  ;;  %v11416_v32 = vld [vmem:[%s18448_s29 + $0x38] sm:$0xff]  }
  0x16   :  { %153 = vperm.xlu1 %10935, %v11752_v6   ;;  %v11896_v34 = vld [vmem:[%s18446_s2 + $0x50] sm:$0xff] }
  0x17   :  { %10710 = vmatpush3.bf16.msra.mxu0 %v11404_v8 }
  0x18   :  { %10711 = vmatprep.subr.bf16.mxu0 %v11405_v10 }
  0x19   :  { %279 = vperm.xlu0 %10933, %v11775_v12  }
  0x1a   :  { %157 = vperm.xlu1 %10935, %v11730_v1  }
  0x1b   :  { %10712 = vmatpush3.bf16.msra.mxu0 %v11405_v10 }
  0x1c   :  { %10713 = vmatprep.subr.bf16.mxu0 %v11406_v14 }
  0x1d   :  { %288 = vperm.xlu0 %10933, %v11790_v15  }
  0x1e   :  { %10936 = vset.pattern.permute.xlu1 %v11606_v3 }
  0x1f   :  { %10714 = vmatpush3.bf16.msra.mxu0 %v11406_v14  ;;  %273 = vperm.xlu1 %10936, %v11798_v17  }
  0x20   :  { %10715 = vmatprep.subr.bf16.mxu0 %v11407_v18 }
  0x21   :  { %294 = vperm.xlu0 %10933, %v11808_v19  }
  0x23   :  { %10716 = vmatpush3.bf16.msra.mxu0 %v11407_v18  ;;  %10937 = vset.pattern.permute.xlu1 %v18186_v11 }
  0x24   :  { %165 = vperm.xlu1 %10937, %v11798_v17   ;;  %10919 = vmatprep.subr.msk.bf16.mxu0 %vm721_vm1, %v11408_v16 }
  0x25   :  { %297 = vperm.xlu0 %10933, %v11815_v21  }
  0x27   :  { %10718 = vmatpush3.bf16.msra.mxu0 %v723_v20 }
  0x28   :  { %169 = vperm.xlu1 %10937, %v11765_v9  }
  0x29   :  { %306 = vperm.xlu0 %10933, %v11827_v23  }
  0x2a   :  { %10720 = vmatmul.mubr.msk.bf16.vlgmr.msra.gmra.mrb[0].mxu0 %vm696_vm0, %v11410_v22 }
  0x2b   :  { %10723 = vmatprep.mubr.msk.bf16.mxu0 %vm696_vm0, %v11411_v24 }
  0x2c   :  { %10938 = vset.pattern.permute.xlu1 %v11606_v3 }
  0x2d   :  { %282 = vperm.xlu1 %10938, %v11837_v25   ;;  %10952 = vset.pattern.permute.xlu0 %v18186_v11 }
  0x2e   :  { %149 = vperm.xlu0 %10952, %v11735_v2  }
  0x31   :  { %10939 = vset.pattern.permute.xlu1 %v18186_v11 }
  0x32   :  { %10724 = vmatmul.mubr.msk.bf16.gmra.mrb[4].mxu0 %vm696_vm0, %v11412_v26  ;;  %177 = vperm.xlu1 %10939, %v11837_v25  }
  0x33   :  { %161 = vperm.xlu0 %10952, %v11745_v5   ;;  %10727 = vmatprep.mubr.msk.bf16.mxu0 %vm696_vm0, %v11413_v27 }
  0x36   :  { %10940 = vset.pattern.permute.xlu1 %v11606_v3 }
  0x37   :  { %285 = vperm.xlu1 %10940, %v11858_v28   ;;  %173 = vperm.xlu0 %10952, %v11775_v12  }
  0x3a   :  { %10728 = vmatmul.mubr.msk.bf16.gmra.mrb[8].mxu0 %vm696_vm0, %v11414_v29 }
  0x3b   :  { %10941 = vset.pattern.permute.xlu1 %v18186_v11  ;;  %193 = vperm.xlu0 %10952, %v11808_v19  }
  0x3c   :  { %181 = vperm.xlu1 %10941, %v11858_v28   ;;  %10731 = vmatprep.mubr.msk.bf16.mxu0 %vm696_vm0, %v11415_v30 }
  0x3f   :  { %205 = vperm.xlu0 %10952, %v11875_v31  }
  0x40   :  { %185 = vperm.xlu1 %10941, %v11790_v15  }
  0x42   :  { %10732 = vmatmul.mubr.msk.bf16.gmra.mrb[12].mxu0 %vm696_vm0, %v11416_v32 }
  0x43   :  { %10954 = vset.pattern.permute.xlu0 %v11608_v33 }
  0x44   :  { %10942 = vset.pattern.permute.xlu1 %v11608_v33  ;;  %373 = vperm.xlu0 %10954, %v11735_v2  }
  0x45   :  { %376 = vperm.xlu1 %10942, %v11752_v6  }
  0x48   :  { %382 = vperm.xlu0 %10954, %v11745_v5  }
  0x49   :  { %379 = vperm.xlu1 %10942, %v11730_v1  }
  0x4c   :  { %391 = vperm.xlu0 %10954, %v11775_v12  }
  0x4d   :  { %10943 = vset.pattern.permute.xlu1 %v11606_v3 }
  0x4e   :  { %291 = vperm.xlu1 %10943, %v11896_v34  }
  0x50   :  { %400 = vperm.xlu0 %10954, %v11790_v15  }
  0x51   :  { %28 = vsyncpa [#allocation4], 0  ;;  %v11609_v35 = vmov 7   ;;  %v11921_v36 = vld [vmem:[%s18446_s2 + $0x68] sm:$0xff]  ;;  %v18192_v37 = vmov 6   ;;  %v18196_v38 = vmov 2  }
  0x52   :  { %10944 = vset.pattern.permute.xlu1 %v11609_v35  ;;  %v18190_v42 = vmov 0   ;;  %vm822_vm2 = vcmask 523264   ;;  %vm1011_vm3 = vcmask 1046528   ;;  %vm1093_vm4 = vcmask 1040384   ;;  %s11615_s30 = smov 64   ;;  %s19139_s28 = sld [smem:[#allocation157_spill]] }
  0x53   :  { %469 = vperm.xlu1 %10944, %v11735_v2   ;;  %vm2204_vm5 = vsmask.f32 4352  ;;  %vm5574_vm6 = vcmask 23552   ;;  %s19140_s29 = sld [smem:[#allocation156_spill]]  ;;  %vm9244_vm7 = vcmask 1041408   ;;  %vm9902_vm8 = vcmask 1024  }
  0x54   :  { %406 = vperm.xlu0 %10954, %v11808_v19  }
  0x57   :  { %473 = vperm.xlu1 %10944, %v11752_v6  }
  0x58   :  { %415 = vperm.xlu0 %10954, %v11875_v31  }
  0x5b   :  { %481 = vperm.xlu1 %10944, %v11745_v5  }
  0x5c   :  { %10968 = vset.pattern.permute.xlu0 %v11609_v35 }
  0x5d   :  { %477 = vperm.xlu0 %10968, %v11730_v1  }
  0x5f   :  { %10945 = vset.pattern.permute.xlu1 %v18186_v11 }
  0x60   :  { %189 = vperm.xlu1 %10945, %v11896_v34  }
  0x61   :  { %489 = vperm.xlu0 %10968, %v11765_v9  }
  0x64   :  { %10946 = vset.pattern.permute.xlu1 %v11608_v33 }
  0x65   :  { %385 = vperm.xlu1 %10946, %v11798_v17   ;;  %505 = vperm.xlu0 %10968, %v11790_v15  }
  0x69   :  { %388 = vperm.xlu1 %10946, %v11765_v9   ;;  %509 = vperm.xlu0 %10968, %v11896_v34  }
  0x6d   :  { %10947 = vset.pattern.permute.xlu1 %v11606_v3  ;;  %521 = vperm.xlu0 %10968, %v11921_v36  }
  0x6e   :  { %300 = vperm.xlu1 %10947, %v11921_v36  }
  0x71   :  { %525 = vperm.xlu0 %10968, %v11875_v31  }
  0x72   :  { %10948 = vset.pattern.permute.xlu1 %v11609_v35 }
  0x73   :  { %485 = vperm.xlu1 %10948, %v11798_v17  }
  0x75   :  { %10975 = vset.pattern.permute.xlu0 %v18192_v37 }
  0x76   :  { %424 = vperm.xlu0 %10975, %v11752_v6  }
  0x77   :  { %10949 = vset.pattern.permute.xlu1 %v18186_v11 }
  0x78   :  { %197 = vperm.xlu1 %10949, %v11815_v21  }
  0x7a   :  { %436 = vperm.xlu0 %10975, %v11765_v9  }
  0x7c   :  { %201 = vperm.xlu1 %10949, %v11921_v36  }
  0x7e   :  { %10980 = vset.pattern.permute.xlu0 %v18196_v38 }
  0x7f   :  { %219 = vperm.xlu0 %10980, %v11730_v1  }
  0x80   :  { %10950 = vset.pattern.permute.xlu1 %v11608_v33 }
  0x81   :  { %394 = vperm.xlu1 %10950, %v11837_v25  }
  0x83   :  { %231 = vperm.xlu0 %10980, %v11775_v12  }
  0x85   :  { %10951 = vset.pattern.permute.xlu1 %v11606_v3 }
  0x86   :  { %303 = vperm.xlu1 %10951, %v11875_v31  }
  0x87   :  { %237 = vperm.xlu0 %10980, %v11858_v28  }
  0x8a   :  { %10953 = vset.pattern.permute.xlu1 %v11609_v35 }
  0x8b   :  { %493 = vperm.xlu1 %10953, %v11775_v12   ;;  %246 = vperm.xlu0 %10980, %v11808_v19  }
  0x8c   :  { %v11946_v39 = vpop.permute.xlu1 %267  ;;  %v12021_v59 = vpop.permute.xlu0 %261 }
  0x8f   :  { %497 = vperm.xlu1 %10953, %v11837_v25   ;;  %252 = vperm.xlu0 %10980, %v11921_v36  }
  0x90   :  { %v11950_v40 = vpop.permute.xlu1 %270  ;;  %v12028_v61 = vpop.permute.xlu0 %264 }
  0x93   :  { %10955 = vset.pattern.permute.xlu1 %v18186_v11  ;;  %255 = vperm.xlu0 %10980, %v11875_v31  }
  0x94   :  { %209 = vperm.xlu1 %10955, %v11827_v23   ;;  %v12033_v63 = vpop.permute.xlu0 %276 }
  0x95   :  { %v11955_v41 = vpop.permute.xlu1 %153 }
  0x96   :  { %18449 = vst [vmem:[#allocation6_spill] sm:$0xff] %v11955_v41 }
  0x97   :  { %10983 = vset.pattern.permute.xlu0 %v18190_v42 }
  0x98   :  { %10956 = vset.pattern.permute.xlu1 %v11608_v33  ;;  %94 = vperm.xlu0 %10983, %v11730_v1   ;;  %v12040_v3 = vpop.permute.xlu0 %279 }
  0x99   :  { %v11960_v43 = vpop.permute.xlu1 %157  ;;  %397 = vperm.xlu1 %10956, %v11858_v28  }
  0x9a   :  { %18450 = vst [vmem:[#allocation7_spill] sm:$0xff] %v11960_v43 }
  0x9c   :  { %106 = vperm.xlu0 %10983, %v11765_v9   ;;  %v12048_v7 = vpop.permute.xlu0 %288 }
  0x9d   :  { %10957 = vset.pattern.permute.xlu1 %v18196_v38 }
  0x9e   :  { %v11965_v44 = vpop.permute.xlu1 %273  ;;  %213 = vperm.xlu1 %10957, %v11735_v2  }
  0xa0   :  { %122 = vperm.xlu0 %10983, %v11790_v15   ;;  %v12060_v13 = vpop.permute.xlu0 %294 }
  0xa2   :  { %216 = vperm.xlu1 %10957, %v11752_v6  }
  0xa3   :  { %v11970_v45 = vpop.permute.xlu1 %165 }
  0xa4   :  { %18451 = vst [vmem:[#allocation8_spill] sm:$0xff] %v11970_v45  ;;  %126 = vperm.xlu0 %10983, %v11896_v34  }
  0xa6   :  { %222 = vperm.xlu1 %10957, %v11745_v5  }
  0xa7   :  { %v11974_v46 = vpop.permute.xlu1 %169 }
  0xa8   :  { %18452 = vst [vmem:[#allocation9_spill] sm:$0xff] %v11974_v46  ;;  %146 = vperm.xlu0 %10983, %v11827_v23  }
  0xaa   :  { %10958 = vset.pattern.permute.xlu1 %v11609_v35 }
  0xab   :  { %501 = vperm.xlu1 %10958, %v11858_v28  }
  0xac   :  { %v11979_v47 = vpop.permute.xlu1 %282 }
  0xaf   :  { %10959 = vset.pattern.permute.xlu1 %v18190_v42 }
  0xb0   :  { %86 = vperm.xlu1 %10959, %v11735_v2  }
  0xb1   :  { %v11983_v48 = vpop.permute.xlu1 %177 }
  0xb2   :  { %18453 = vst [vmem:[#allocation10_spill] sm:$0xff] %v11983_v48  ;;  %v18473_v48 = vmov 0  }
  0xb4   :  { %90 = vperm.xlu1 %10959, %v11752_v6  }
  0xb6   :  { %v11986_v49 = vpop.permute.xlu1 %285 }
  0xb8   :  { %98 = vperm.xlu1 %10959, %v11745_v5  }
  0xbb   :  { %v11989_v50 = vpop.permute.xlu1 %181 }
  0xbc   :  { %18454 = vst [vmem:[#allocation11_spill] sm:$0xff] %v11989_v50  ;;  %10960 = vset.pattern.permute.xlu1 %v11608_v33 }
  0xbd   :  { %403 = vperm.xlu1 %10960, %v11896_v34  }
  0xbf   :  { %v11993_v51 = vpop.permute.xlu1 %185 }
  0xc0   :  { %18455 = vst [vmem:[#allocation12_spill] sm:$0xff] %v11993_v51 }
  0xc1   :  { %10961 = vset.pattern.permute.xlu1 %v18196_v38 }
  0xc2   :  { %225 = vperm.xlu1 %10961, %v11798_v17  }
  0xc4   :  { %v11997_v52 = vpop.permute.xlu1 %376 }
  0xc6   :  { %228 = vperm.xlu1 %10961, %v11765_v9   ;;  %v12057_v9 = vld [vmem:[%s18166_s5] ss:$0 sm:$0xff] }
  0xc8   :  { %v12000_v53 = vpop.permute.xlu1 %379 }
  0xc9   :  { %18456 = vst [vmem:[#allocation13_spill] sm:$0xff] %v12000_v53 }
  0xca   :  { %10962 = vset.pattern.permute.xlu1 %v11609_v35 }
  0xcb   :  { %513 = vperm.xlu1 %10962, %v11808_v19  }
  0xcd   :  { %v12004_v54 = vpop.permute.xlu1 %291 }
  0xcf   :  { %10963 = vset.pattern.permute.xlu1 %v18190_v42 }
  0xd0   :  { %102 = vperm.xlu1 %10963, %v11798_v17  }
  0xd2   :  { %v12008_v55 = vpop.permute.xlu1 %469 }
  0xd3   :  { %18457 = vst [vmem:[#allocation14_spill] sm:$0xff] %v12008_v55 }
  0xd4   :  { %10964 = vset.pattern.permute.xlu1 %v11608_v33 }
  0xd5   :  { %409 = vperm.xlu1 %10964, %v11815_v21  }
  0xd6   :  { %v12012_v56 = vpop.permute.xlu1 %473 }
  0xd7   :  { %18458 = vst [vmem:[#allocation15_spill] sm:$0xff] %v12012_v56 }
  0xd9   :  { %412 = vperm.xlu1 %10964, %v11921_v36  }
  0xda   :  { %v12015_v57 = vpop.permute.xlu1 %481 }
  0xdb   :  { %18459 = vst [vmem:[#allocation16_spill] sm:$0xff] %v12015_v57 }
  0xdd   :  { %10965 = vset.pattern.permute.xlu1 %v18196_v38 }
  0xde   :  { %234 = vperm.xlu1 %10965, %v11837_v25  }
  0xdf   :  { %v12019_v58 = vpop.permute.xlu1 %189 }
  0xe0   :  { %18460 = vst [vmem:[#allocation17_spill] sm:$0xff] %v12019_v58 }
  0xe2   :  { %10966 = vset.pattern.permute.xlu1 %v11609_v35 }
  0xe3   :  { %517 = vperm.xlu1 %10966, %v11815_v21  }
  0xe4   :  { %v12025_v60 = vpop.permute.xlu1 %385 }
  0xe5   :  { %18461 = vst [vmem:[#allocation18_spill] sm:$0xff] %v12025_v60 }
  0xe7   :  { %10967 = vset.pattern.permute.xlu1 %v18190_v42 }
  0xe8   :  { %110 = vperm.xlu1 %10967, %v11775_v12   ;;  %v12031_v62 = vpop.permute.xlu1 %388  ;;  %v18188_v12 = vmov 8  }
  0xe9   :  { %18462 = vst [vmem:[#allocation19_spill] sm:$0xff] %v12031_v62  ;;  %11110 = vset.pattern.permute.xlu0 %v18188_v12 }
  0xec   :  { %114 = vperm.xlu1 %10967, %v11837_v25  }
  0xed   :  { %v12036_v0 = vpop.permute.xlu1 %300 }
  0xf0   :  { %10969 = vset.pattern.permute.xlu1 %v11608_v33 }
  0xf1   :  { %418 = vperm.xlu1 %10969, %v11827_v23  }
  0xf2   :  { %v12042_v4 = vpop.permute.xlu1 %485 }
  0xf3   :  { %18463 = vst [vmem:[#allocation20_spill] sm:$0xff] %v12042_v4 }
  0xf5   :  { %10970 = vset.pattern.permute.xlu1 %v18196_v38 }
  0xf6   :  { %240 = vperm.xlu1 %10970, %v11790_v15  }
  0xf7   :  { %v12046_v6 = vpop.permute.xlu1 %197 }
  0xf8   :  { %18464 = vst [vmem:[#allocation21_spill] sm:$0xff] %v12046_v6 }
  0xfa   :  { %10971 = vset.pattern.permute.xlu1 %v11609_v35 }
  0xfb   :  { %529 = vperm.xlu1 %10971, %v11827_v23   ;;  %v12052_v8 = vpop.permute.xlu1 %201 }
  0xfc   :  { %18465 = vst [vmem:[#allocation22_spill] sm:$0xff] %v12052_v8 }
  0xfd   :  { %v10721_v10 = vpop.f32.mrb[0].mxu0 }
  0xfe   :  { %v12063_v14 = vadd.f32 %v10721_v10, %v12057_v9  ;;  %v759_v15 = vpop.f32.mrb[1].mxu0 }
  0xff   :  { %v12066_v16 = vadd.f32 %v12057_v9, %v759_v15  ;;  %v10722_v18 = vpop.f32.mrb[2].mxu0  ;;  %10972 = vset.pattern.permute.xlu1 %v18190_v42  ;;  %v12093_v15 = vpop.permute.xlu0 %297 }
 0x100   :  { %v12070_v20 = vadd.f32 %v10722_v18, %v12057_v9  ;;  %v762_v22 = vpop.f32.mrb[3].mxu0  ;;  %118 = vperm.xlu1 %10972, %v11858_v28   ;;  %v12073_v24 = vpop.permute.xlu1 %394  ;;  %v864_v26 = vmul.f32 %v12063_v14, %v12063_v14  ;;  %v826_v32 = vsel %vm822_vm2, %v12063_v14, 0.0 }
 0x101   :  { %18466 = vst [vmem:[#allocation23_spill] sm:$0xff] %v12073_v24  ;;  %v823_v27 = vsel %vm822_vm2, %v12066_v16, 0.0  ;;  %v862_v29 = vmul.f32 %v12066_v16, %v12066_v16  ;;  %v12082_v30 = vadd.f32 %v12057_v9, %v762_v22 }
 0x102   :  { %v865_v28 = vmul.f32 %v12070_v20, %v12070_v20  ;;  %v881_v22 = vsel %vm822_vm2, %v864_v26, 0.0  ;;  %v828_v42 = vsel %vm822_vm2, %v12070_v20, 0.0 }
 0x103   :  { %v878_v33 = vsel %vm822_vm2, %v862_v29, 0.0  ;;  %v824_v35 = vsel %vm822_vm2, %v12082_v30, 0.0  ;;  %v863_v10 = vmul.f32 %v12082_v30, %v12082_v30 }
 0x104   :  { %v825_v18 = vadd.f32 %v824_v35, %v823_v27  ;;  %10973 = vset.pattern.permute.xlu1 %v18196_v38  ;;  %v883_v62 = vsel %vm822_vm2, %v865_v28, 0.0 }
 0x105   :  { %v879_v11 = vsel %vm822_vm2, %v863_v10, 0.0  ;;  %v10725_v12 = vpop.f32.mrb[4].mxu0  ;;  %243 = vperm.xlu1 %10973, %v11896_v34   ;;  %v12099_v29 = vpop.permute.xlu1 %303 }
 0x106   :  { %18467 = vst [vmem:[#allocation24_spill] sm:$0xff] %v12099_v29  ;;  %v827_v37 = vadd.f32 %v826_v32, %v825_v18  ;;  %v880_v24 = vadd.f32 %v879_v11, %v878_v33  ;;  %v775_v4 = vpop.f32.mrb[5].mxu0  ;;  %v12105_v27 = vadd.f32 %v10725_v12, %v12057_v9  ;;  %v18468_v11 = vmov 6  }
 0x107   :  { %v12108_v26 = vadd.f32 %v12057_v9, %v775_v4  ;;  %v10726_v35 = vpop.f32.mrb[6].mxu0 }
 0x108   :  { %v882_v10 = vadd.f32 %v881_v22, %v880_v24  ;;  %v778_v38 = vpop.f32.mrb[7].mxu0  ;;  %v829_v34 = vadd.f32 %v828_v42, %v827_v37  ;;  %v12116_v28 = vadd.f32 %v10726_v35, %v12057_v9  ;;  %v12124_v37 = vpop.permute.xlu0 %306  ;;  %v868_v42 = vmul.f32 %v12105_v27, %v12105_v27 }
 0x109   :  { %v830_v29 = vsel %vm822_vm2, %v12108_v26, 0.0  ;;  %v866_v32 = vmul.f32 %v12108_v26, %v12108_v26  ;;  %10974 = vset.pattern.permute.xlu1 %v18468_v11  ;;  %v12119_v12 = vadd.f32 %v12057_v9, %v778_v38  ;;  %18470 = vst [vmem:[#allocation26_spill] sm:$0xff] %v12124_v37 }
 0x10a   :  { %v884_v33 = vadd.f32 %v883_v62, %v882_v10  ;;  %421 = vperm.xlu1 %10974, %v11735_v2   ;;  %v12122_v4 = vpop.permute.xlu1 %493  ;;  %v831_v24 = vadd.f32 %v830_v29, %v829_v34  ;;  %v834_v62 = vsel %vm822_vm2, %v12105_v27, 0.0  ;;  %v869_v38 = vmul.f32 %v12116_v28, %v12116_v28 }
 0x10b   :  { %18469 = vst [vmem:[#allocation25_spill] sm:$0xff] %v12122_v4  ;;  %v885_v18 = vsel %vm822_vm2, %v866_v32, 0.0  ;;  %v832_v2 = vsel %vm822_vm2, %v12119_v12, 0.0  ;;  %v867_v10 = vmul.f32 %v12119_v12, %v12119_v12  ;;  %v836_v29 = vsel %vm822_vm2, %v12116_v28, 0.0 }
 0x10c   :  { %v886_v22 = vadd.f32 %v885_v18, %v884_v33  ;;  %v833_v35 = vadd.f32 %v832_v2, %v831_v24  ;;  %v889_v18 = vsel %vm822_vm2, %v868_v42, 0.0  ;;  %v891_v58 = vsel %vm822_vm2, %v869_v38, 0.0  ;;  %v12154_v51 = vpop.permute.xlu0 %149 }
 0x10d   :  { %v10729_v4 = vpop.f32.mrb[8].mxu0  ;;  %v887_v24 = vsel %vm822_vm2, %v867_v10, 0.0 }
 0x10e   :  { %v12140_v34 = vadd.f32 %v10729_v4, %v12057_v9  ;;  %v791_v32 = vpop.f32.mrb[9].mxu0  ;;  %427 = vperm.xlu1 %10974, %v11730_v1   ;;  %v12143_v33 = vpop.permute.xlu1 %497  ;;  %v835_v37 = vadd.f32 %v834_v62, %v833_v35  ;;  %v888_v53 = vadd.f32 %v887_v24, %v886_v22 }
 0x10f   :  { %18471 = vst [vmem:[#allocation27_spill] sm:$0xff] %v12143_v33  ;;  %v12148_v2 = vadd.f32 %v12057_v9, %v791_v32  ;;  %v10730_v60 = vpop.f32.mrb[10].mxu0 }
 0x110   :  { %v12152_v4 = vadd.f32 %v10730_v60, %v12057_v9  ;;  %v794_v57 = vpop.f32.mrb[11].mxu0  ;;  %v837_v1 = vadd.f32 %v836_v29, %v835_v37  ;;  %v890_v10 = vadd.f32 %v889_v18, %v888_v53  ;;  %v872_v22 = vmul.f32 %v12140_v34, %v12140_v34  ;;  %v12184_v46 = vpop.permute.xlu0 %161 }
 0x111   :  { %v838_v42 = vsel %vm822_vm2, %v12148_v2, 0.0  ;;  %v870_v62 = vmul.f32 %v12148_v2, %v12148_v2  ;;  %v12161_v35 = vadd.f32 %v12057_v9, %v794_v57  ;;  %v842_v57 = vsel %vm822_vm2, %v12140_v34, 0.0  ;;  %18474 = vst [vmem:[#allocation29_spill] sm:$0xff] %v12184_v46 }
 0x112   :  { %430 = vperm.xlu1 %10974, %v11745_v5   ;;  %v839_v60 = vadd.f32 %v838_v42, %v837_v1  ;;  %v892_v53 = vadd.f32 %v891_v58, %v890_v10  ;;  %v873_v18 = vmul.f32 %v12152_v4, %v12152_v4  ;;  %v897_v58 = vsel %vm822_vm2, %v872_v22, 0.0 }
 0x113   :  { %v893_v38 = vsel %vm822_vm2, %v870_v62, 0.0  ;;  %v840_v37 = vsel %vm822_vm2, %v12161_v35, 0.0  ;;  %v871_v29 = vmul.f32 %v12161_v35, %v12161_v35  ;;  %v12171_v32 = vpop.permute.xlu1 %209  ;;  %v844_v62 = vsel %vm822_vm2, %v12152_v4, 0.0 }
 0x114   :  { %18472 = vst [vmem:[#allocation28_spill] sm:$0xff] %v12171_v32  ;;  %v841_v24 = vadd.f32 %v840_v37, %v839_v60  ;;  %v894_v42 = vadd.f32 %v893_v38, %v892_v53  ;;  %v899_v38 = vsel %vm822_vm2, %v873_v18, 0.0 }
 0x115   :  { %v895_v5 = vsel %vm822_vm2, %v871_v29, 0.0  ;;  %v10733_v1 = vpop.f32.mrb[12].mxu0 }
 0x116   :  { %v12181_v33 = vadd.f32 %v10733_v1, %v12057_v9  ;;  %v807_v50 = vpop.f32.mrb[13].mxu0  ;;  %10976 = vset.pattern.permute.xlu1 %v18473_v48  ;;  %v843_v10 = vadd.f32 %v842_v57, %v841_v24  ;;  %v896_v29 = vadd.f32 %v895_v5, %v894_v42 }
 0x117   :  { %v12188_v60 = vadd.f32 %v12057_v9, %v807_v50  ;;  %v10734_v37 = vpop.f32.mrb[14].mxu0  ;;  %130 = vperm.xlu1 %10976, %v11808_v19  }
 0x118   :  { %v12193_v53 = vadd.f32 %v10734_v37, %v12057_v9  ;;  %v810_v1 = vpop.f32.mrb[15].mxu0  ;;  %v12195_v45 = vpop.permute.xlu1 %397  ;;  %v845_v32 = vadd.f32 %v844_v62, %v843_v10  ;;  %v898_v19 = vadd.f32 %v897_v58, %v896_v29  ;;  %v876_v18 = vmul.f32 %v12181_v33, %v12181_v33  ;;  %v12217_v58 = vld [vmem:[%s18446_s2] sm:$0xff] }
 0x119   :  { %18475 = vst [vmem:[#allocation30_spill] sm:$0xff] %v12195_v45  ;;  %v846_v22 = vsel %vm822_vm2, %v12188_v60, 0.0  ;;  %v874_v50 = vmul.f32 %v12188_v60, %v12188_v60  ;;  %v12202_v57 = vadd.f32 %v12057_v9, %v810_v1  ;;  %v18208_v10 = vmov 4   ;;  %18476 = vst [vmem:[#allocation31_spill] sm:$0xff] %v12217_v58 }
 0x11a   :  { %v847_v24 = vadd.f32 %v846_v22, %v845_v32  ;;  %v850_v9 = vsel %vm822_vm2, %v12181_v33, 0.0  ;;  %v900_v37 = vadd.f32 %v899_v38, %v898_v19  ;;  %v12220_v32 = vpop.permute.xlu0 %173  ;;  %v877_v29 = vmul.f32 %v12193_v53, %v12193_v53 }
 0x11b   :  { %v901_v5 = vsel %vm822_vm2, %v874_v50, 0.0  ;;  %v848_v42 = vsel %vm822_vm2, %v12202_v57, 0.0  ;;  %v875_v62 = vmul.f32 %v12202_v57, %v12202_v57  ;;  %10977 = vset.pattern.permute.xlu1 %v18208_v10  ;;  %18477 = vst [vmem:[#allocation32_spill] sm:$0xff] %v12220_v32  ;;  %v852_v38 = vsel %vm822_vm2, %v12193_v53, 0.0 }
 0x11c   :  { %309 = vperm.xlu1 %10977, %v12217_v58   ;;  %v849_v1 = vadd.f32 %v848_v42, %v847_v24  ;;  %v902_v10 = vadd.f32 %v901_v5, %v900_v37  ;;  %v905_v19 = vsel %vm822_vm2, %v876_v18, 0.0  ;;  %v12233_v58 = vld [vmem:[%s18446_s2 + $0x10] sm:$0xff]  ;;  %v907_v24 = vsel %vm822_vm2, %v877_v29, 0.0  ;;  %v12244_v18 = vld [vmem:[%s18446_s2 + $0x18] sm:$0xff] }
 0x11d   :  { %v903_v22 = vsel %vm822_vm2, %v875_v62, 0.0  ;;  %v12225_v50 = vpop.permute.xlu1 %213  ;;  %18479 = vst [vmem:[#allocation34_spill] sm:$0xff] %v12233_v58 }
 0x11e   :  { %18478 = vst [vmem:[#allocation33_spill] sm:$0xff] %v12225_v50  ;;  %v851_v45 = vadd.f32 %v850_v9, %v849_v1  ;;  %v904_v8 = vadd.f32 %v903_v22, %v902_v10  ;;  %v12239_v37 = vpop.permute.xlu0 %193  ;;  %v18483_v22 = vmov 2  }
 0x11f   :  { %18481 = vst [vmem:[#allocation36_spill] sm:$0xff] %v12239_v37 }
 0x120   :  { %317 = vperm.xlu1 %10977, %v12233_v58   ;;  %v853_v42 = vadd.f32 %v852_v38, %v851_v45  ;;  %v906_v5 = vadd.f32 %v905_v19, %v904_v8 }
 0x121   :  { %v12237_v62 = vpop.permute.xlu1 %216 }
 0x122   :  { %18480 = vst [vmem:[#allocation35_spill] sm:$0xff] %v12237_v62  ;;  %v854_v50 = vrot.slane %v853_v42, 4  ;;  %v908_v32 = vadd.f32 %v907_v24, %v906_v5  ;;  %v12250_v8 = vpop.permute.xlu0 %205 }
 0x123   :  { %18484 = vst [vmem:[#allocation38_spill] sm:$0xff] %v12250_v8 }
 0x124   :  { %321 = vperm.xlu1 %10977, %v12244_v18   ;;  %v855_v10 = vadd.f32 %v854_v50, %v853_v42  ;;  %v909_v1 = vrot.slane %v908_v32, 4 }
 0x125   :  { %v12247_v9 = vpop.permute.xlu1 %222 }
 0x126   :  { %18482 = vst [vmem:[#allocation37_spill] sm:$0xff] %v12247_v9  ;;  %v856_v29 = vrot.slane %v855_v10, 2  ;;  %v910_v45 = vadd.f32 %v909_v1, %v908_v32  ;;  %v12257_v42 = vpop.permute.xlu0 %373 }
 0x128   :  { %10978 = vset.pattern.permute.xlu1 %v18483_v22  ;;  %v857_v38 = vadd.f32 %v856_v29, %v855_v10  ;;  %v911_v19 = vrot.slane %v910_v45, 2 }
 0x129   :  { %249 = vperm.xlu1 %10978, %v11815_v21  }
 0x12a   :  { %v12253_v24 = vpop.permute.xlu1 %501  ;;  %v858_v5 = vrot.slane %v857_v38, 1  ;;  %v912_v58 = vadd.f32 %v911_v19, %v910_v45 }
 0x12b   :  { %18485 = vst [vmem:[#allocation39_spill] sm:$0xff] %v12253_v24 }
 0x12c   :  { %v859_v62 = vadd.f32 %v858_v5, %v857_v38  ;;  %v913_v50 = vrot.slane %v912_v58, 1 }
 0x12d   :  { %10979 = vset.pattern.permute.xlu1 %v18468_v11 }
 0x12e   :  { %433 = vperm.xlu1 %10979, %v11798_v17   ;;  %v12259_v32 = vmul.f32 0.0078125, %v859_v62  ;;  %v914_v10 = vadd.f32 %v913_v50, %v912_v58  ;;  %v12291_v50 = vpop.permute.xlu0 %382 }
 0x12f   :  { %v12261_v1 = vpop.permute.xlu1 %86 }
 0x130   :  { %18486 = vst [vmem:[#allocation40_spill] sm:$0xff] %v12261_v1  ;;  %v916_v29 = vmul.f32 %v12259_v32, %v12259_v32  ;;  %v933_v9 = vsub.f32 %v12202_v57, %v12259_v32  ;;  %v928_v45 = vsub.f32 %v12148_v2, %v12259_v32  ;;  %v929_v38 = vsub.f32 %v12161_v35, %v12259_v32 }
 0x131   :  { %v915_v17 = vmul.f32 0.0078125, %v914_v10  ;;  %v920_v62 = vsub.f32 %v12066_v16, %v12259_v32  ;;  %v921_v19 = vsub.f32 %v12082_v30, %v12259_v32  ;;  %v922_v58 = vsub.f32 %v12063_v14, %v12259_v32 }
 0x132   :  { %10981 = vset.pattern.permute.xlu1 %v18473_v48  ;;  %v930_v2 = vsub.f32 %v12140_v34, %v12259_v32  ;;  %v931_v35 = vsub.f32 %v12152_v4, %v12259_v32  ;;  %v12306_v16 = vpop.permute.xlu0 %391  ;;  %v12312_v4 = vld [vmem:[%s18446_s2 + $0x28] sm:$0xff] }
 0x133   :  { %134 = vperm.xlu1 %10981, %v11815_v21   ;;  %v12279_v57 = vpop.permute.xlu1 %90  ;;  %v917_v5 = vsub.f32 %v915_v17, %v916_v29  ;;  %v18489_v21 = vmov 4  }
 0x134   :  { %18487 = vst [vmem:[#allocation41_spill] sm:$0xff] %v12279_v57 }
 0x135   :  { %v918_v29 = vmax.f32 %v917_v5, 0.0 }
 0x136   :  { %v12317_v17 = vpop.permute.xlu0 %400 }
 0x137   :  { %138 = vperm.xlu1 %10981, %v11921_v36   ;;  %v12304_v14 = vpop.permute.xlu1 %98  ;;  %v936_v30 = vadd.f32 1e-05, %v918_v29 }
 0x138   :  { %18488 = vst [vmem:[#allocation42_spill] sm:$0xff] %v12304_v14 }
 0x139   :  { %11489 = vrsqrt.f32 %v936_v30 }
 0x13a   :  { %v12323_v30 = vpop.permute.xlu0 %406 }
 0x13b   :  { %10982 = vset.pattern.permute.xlu1 %v18489_v21  ;;  %18492 = vst [vmem:[#allocation45_spill] sm:$0xff] %v12323_v30  ;;  %v18502_v30 = vsub.f32 %v12108_v26, %v12259_v32 }
 0x13c   :  { %329 = vperm.xlu1 %10982, %v12312_v4   ;;  %v12315_v5 = vpop.permute.xlu1 %403 }
 0x13d   :  { %18490 = vst [vmem:[#allocation43_spill] sm:$0xff] %v12315_v5 }
 0x140   :  { %10984 = vset.pattern.permute.xlu1 %v18483_v22 }
 0x141   :  { %258 = vperm.xlu1 %10984, %v11827_v23   ;;  %v12321_v36 = vpop.permute.xlu1 %225 }
 0x142   :  { %18491 = vst [vmem:[#allocation44_spill] sm:$0xff] %v12321_v36 }
 0x143   :  { %v12325_v29 = vpop.eup %11489 }
 0x144   :  { %v12328_v10 = vmul.f32 %v12325_v29, %v933_v9  ;;  %v946_v34 = vmul.f32 %v12325_v29, %v928_v45  ;;  %v12332_v14 = vmul.f32 %v12325_v29, %v929_v38  ;;  %v938_v5 = vmul.f32 %v12325_v29, %v920_v62  ;;  %v12348_v45 = vld [vmem:[%s18166_s5 + $0x1] ss:$0 sm:$0xff]  ;;  %v12350_v38 = vpop.permute.xlu0 %415 }
 0x145   :  { %10985 = vset.pattern.permute.xlu1 %v18468_v11  ;;  %v12336_v22 = vpop.permute.xlu1 %228  ;;  %v939_v23 = vmul.f32 %v12325_v29, %v921_v19  ;;  %v940_v36 = vmul.f32 %v12325_v29, %v922_v58  ;;  %v12341_v1 = vmul.f32 %v12325_v29, %v930_v2  ;;  %v949_v9 = vmul.f32 %v12325_v29, %v931_v35  ;;  %v12360_v2 = vld [vmem:[%s18166_s5 + $0x2] ss:$0 sm:$0xff] }
 0x146   :  { %18493 = vst [vmem:[#allocation46_spill] sm:$0xff] %v12336_v22  ;;  %442 = vperm.xlu1 %10985, %v11837_v25   ;;  %18494 = vst [vmem:[#allocation47_spill] sm:$0xff] %v12350_v38  ;;  %v958_v62 = vmul.f32 %v12348_v45, %v938_v5  ;;  %v1159_v58 = vrot.slane %v12021_v59, 1  ;;  %v1164_v25 = vrot.slane %v11950_v40, 1  ;;  %v1162_v35 = vrot.slane %v11946_v39, 1 }
 0x147   :  { %v1170_v40 = vrot.slane %v12040_v3, 1  ;;  %v1166_v39 = vrot.slane %v11965_v44, 1  ;;  %v960_v38 = vmul.f32 %v12348_v45, %v940_v36  ;;  %v18504_v36 = vsub.f32 %v12181_v33, %v12259_v32 }
 0x148   :  { %v979_v5 = vadd.f32 %v12360_v2, %v958_v62  ;;  %v12366_v22 = vmul.f32 0.0, %v1159_v58  ;;  %v12375_v57 = vsel %vm1011_vm3, %v1162_v35, %v1164_v25  ;;  %v12383_v62 = vld [vmem:[%s18446_s2 + $0x30] sm:$0xff] }
 0x149   :  { %18498 = vst [vmem:[#allocation51_spill] sm:$0xff] %v12375_v57  ;;  %18499 = vst [vmem:[#allocation52_spill] sm:$0xff] %v12383_v62 }
 0x14a   :  { %10986 = vset.pattern.permute.xlu1 %v18473_v48  ;;  %v12354_v19 = vpop.permute.xlu1 %513  ;;  %v1160_v48 = vrot.slane %v12028_v61, 1  ;;  %v966_v61 = vmul.f32 %v12348_v45, %v946_v34  ;;  %v12393_v44 = vmax.f32 %v979_v5, 0.0 }
 0x14b   :  { %18495 = vst [vmem:[#allocation48_spill] sm:$0xff] %v12354_v19  ;;  %142 = vperm.xlu1 %10986, %v11875_v31   ;;  %v12369_v19 = vpop.permute.xlu0 %477  ;;  %v1168_v31 = vrot.slane %v12033_v63, 1  ;;  %v18500_v63 = vsub.f32 %v12070_v20, %v12259_v32 }
 0x14c   :  { %18496 = vst [vmem:[#allocation49_spill] sm:$0xff] %v12369_v19  ;;  %18501 = vst [vmem:[#allocation53_spill] sm:$0xff] %v12393_v44  ;;  %v12410_v20 = vsel %vm1011_vm3, %v1159_v58, %v1160_v48  ;;  %v12413_v5 = vsel %vm1011_vm3, %v1160_v48, %v1162_v35  ;;  %v1182_v58 = vrot.slane %v12093_v15, 1  ;;  %v12431_v48 = vld [vmem:[%s18446_s2 + $0x38] sm:$0xff] }
 0x14d   :  { %v941_v3 = vmul.f32 %v12325_v29, %v18500_v63  ;;  %18505 = vst [vmem:[#allocation54_spill] sm:$0xff] %v12410_v20  ;;  %18506 = vst [vmem:[#allocation55_spill] sm:$0xff] %v12413_v5  ;;  %v12416_v26 = vsel %vm1011_vm3, %v1168_v31, %v1170_v40  ;;  %v981_v63 = vadd.f32 %v12360_v2, %v960_v38 }
 0x14e   :  { %18507 = vst [vmem:[#allocation56_spill] sm:$0xff] %v12416_v26  ;;  %18510 = vst [vmem:[#allocation58_spill] sm:$0xff] %v12431_v48  ;;  %v1208_v24 = vmul.f32 %v12410_v20, %v12393_v44  ;;  %v12462_v20 = vmul.f32 0.0, %v12154_v51 }
 0x14f   :  { %10987 = vset.pattern.permute.xlu1 %v18489_v21  ;;  %v12372_v59 = vpop.permute.xlu1 %102  ;;  %v942_v21 = vmul.f32 %v12325_v29, %v18502_v30  ;;  %v12478_v51 = vmax.f32 %v981_v63, 0.0 }
 0x150   :  { %18497 = vst [vmem:[#allocation50_spill] sm:$0xff] %v12372_v59  ;;  %333 = vperm.xlu1 %10987, %v12383_v62   ;;  %v959_v59 = vmul.f32 %v12348_v45, %v939_v23  ;;  %v18503_v62 = vsub.f32 %v12119_v12, %v12259_v32  ;;  %v12407_v23 = vmul.f32 %v12325_v29, %v18504_v36 }
 0x151   :  { %v18508_v12 = vsub.f32 %v12188_v60, %v12259_v32  ;;  %v12436_v60 = vpop.permute.xlu0 %489  ;;  %v969_v36 = vmul.f32 %v12348_v45, %v949_v9  ;;  %v1172_v9 = vrot.slane %v11979_v47, 1  ;;  %18521 = vst [vmem:[#allocation67_spill] sm:$0xff] %v12478_v51 }
 0x152   :  { %v943_v34 = vmul.f32 %v12325_v29, %v18503_v62  ;;  %v12423_v62 = vsel %vm1011_vm3, %v1164_v25, %v1166_v39  ;;  %18512 = vst [vmem:[#allocation60_spill] sm:$0xff] %v12436_v60  ;;  %v987_v25 = vadd.f32 %v12360_v2, %v966_v61  ;;  %v980_v15 = vadd.f32 %v12360_v2, %v959_v59 }
 0x153   :  { %v950_v30 = vmul.f32 %v12325_v29, %v18508_v12  ;;  %18509 = vst [vmem:[#allocation57_spill] sm:$0xff] %v12423_v62  ;;  %v961_v12 = vmul.f32 %v12348_v45, %v941_v3  ;;  %v12451_v61 = vsel %vm1011_vm3, %v1166_v39, %v1168_v31  ;;  %v1174_v3 = vrot.slane %v11986_v49, 1 }
 0x154   :  { %337 = vperm.xlu1 %10987, %v12431_v48   ;;  %v12434_v35 = vpop.permute.xlu1 %409  ;;  %18514 = vst [vmem:[#allocation61_spill] sm:$0xff] %v12451_v61  ;;  %v18515_v59 = vrot.slane %v12060_v13, 1  ;;  %v12471_v47 = vmax.f32 %v987_v25, 0.0  ;;  %v990_v49 = vadd.f32 %v12360_v2, %v969_v36  ;;  %v18228_v36 = vrot.slane %v12036_v0, 1 }
 0x155   :  { %18511 = vst [vmem:[#allocation59_spill] sm:$0xff] %v12434_v35  ;;  %v970_v33 = vmul.f32 %v12348_v45, %v950_v30  ;;  %v18513_v35 = vsub.f32 %v12116_v28, %v12259_v32  ;;  %v962_v30 = vmul.f32 %v12348_v45, %v942_v21  ;;  %v982_v21 = vadd.f32 %v12360_v2, %v961_v12 }
 0x156   :  { %v12459_v38 = vsel %vm1011_vm3, %v18515_v59, %v1182_v58  ;;  %18519 = vst [vmem:[#allocation65_spill] sm:$0xff] %v12471_v47  ;;  %v12476_v59 = vmax.f32 %v980_v15, 0.0  ;;  %v10988_v28 = vpack.i.bf16 %v1208_v24, %v12366_v22  ;;  %v12486_v25 = vsel %vm1011_vm3, %v1172_v9, %v1174_v3 }
 0x157   :  { %v945_v48 = vmul.f32 %v12325_v29, %v18513_v35  ;;  %18516 = vst [vmem:[#allocation62_spill] sm:$0xff] %v12459_v38  ;;  %v12466_v35 = vrot.slane %v12257_v42, 7  ;;  %v991_v39 = vadd.f32 %v12360_v2, %v970_v33  ;;  %18523 = vst [vmem:[#allocation69_spill] sm:$0xff] %v12486_v25  ;;  %v983_v33 = vadd.f32 %v12360_v2, %v962_v30 }
 0x158   :  { %v12468_v31 = vpop.permute.xlu1 %412  ;;  %11088 = vset.pattern.permute.xlu1 %v18468_v11  ;;  %18520 = vst [vmem:[#allocation66_spill] sm:$0xff] %v12476_v59  ;;  %v12489_v11 = vpop.permute.xlu0 %505  ;;  %v18525_v12 = vrot.slane %v12048_v7, 1  ;;  %v18527_v22 = vrot.slane %v11997_v52, 7  ;;  %10989 = vrot.lane.b32.xlu0 %v10988_v28, %s11615_s30  ;;  %v12507_v15 = vmax.f32 %v990_v49, 0.0  ;;  %v1209_v28 = vmul.f32 %v12413_v5, %v12476_v59 }
 0x159   :  { %18517 = vst [vmem:[#allocation63_spill] sm:$0xff] %v12466_v35  ;;  %18518 = vst [vmem:[#allocation64_spill] sm:$0xff] %v12468_v31  ;;  %v965_v42 = vmul.f32 %v12348_v45, %v945_v48  ;;  %v12483_v31 = vsel %vm1011_vm3, %v1170_v40, %v1172_v9  ;;  %v968_v40 = vmul.f32 %v12348_v45, %v12341_v1  ;;  %v12509_v9 = vmax.f32 %v982_v21, 0.0 }
 0x15a   :  { %18522 = vst [vmem:[#allocation68_spill] sm:$0xff] %v12483_v31  ;;  %18524 = vst [vmem:[#allocation70_spill] sm:$0xff] %v12489_v11  ;;  %v12495_v63 = vsel %vm1011_vm3, %v1174_v3, %v18525_v12  ;;  %v12501_v24 = vsel %vm1093_vm4, %v12466_v35, %v18527_v22  ;;  %v963_v3 = vmul.f32 %v12348_v45, %v943_v34  ;;  %v12512_v30 = vmax.f32 %v991_v39, 0.0 }
 0x15b   :  { %18526 = vst [vmem:[#allocation71_spill] sm:$0xff] %v12495_v63  ;;  %18528 = vst [vmem:[#allocation72_spill] sm:$0xff] %v12501_v24  ;;  %v986_v48 = vadd.f32 %v12360_v2, %v965_v42  ;;  %v1216_v1 = vmul.f32 %v12495_v63, %v12471_v47  ;;  %v1210_v49 = vmul.f32 %v12375_v57, %v12478_v51  ;;  %v12533_v42 = vmax.f32 %v983_v33, 0.0 }
 0x15c   :  { %18529 = vst [vmem:[#allocation73_spill] sm:$0xff] %v12507_v15  ;;  %18530 = vst [vmem:[#allocation74_spill] sm:$0xff] %v12509_v9  ;;  %v12527_v21 = vsel %vm1011_vm3, %v1182_v58, %v18228_v36  ;;  %v971_v34 = vmul.f32 %v12348_v45, %v12328_v10  ;;  %v967_v39 = vmul.f32 %v12348_v45, %v12332_v14 }
 0x15d   :  { %18531 = vst [vmem:[#allocation75_spill] sm:$0xff] %v12512_v30  ;;  %v12514_v12 = vpop.permute.xlu1 %234  ;;  %v12516_v22 = vmax.f32 %v986_v48, 0.0  ;;  %18534 = vst [vmem:[#allocation78_spill] sm:$0xff] %v12527_v21  ;;  %v989_v48 = vadd.f32 %v12360_v2, %v968_v40  ;;  %v972_v63 = vmul.f32 %v12348_v45, %v12407_v23  ;;  %v10993_v5 = vpack.i.bf16 %v1210_v49, %v1209_v28 }
 0x15e   :  { %18532 = vst [vmem:[#allocation76_spill] sm:$0xff] %v12514_v12  ;;  %18535 = vst [vmem:[#allocation79_spill] sm:$0xff] %v12533_v42  ;;  %v12540_v12 = vpop.permute.xlu0 %509  ;;  %v984_v58 = vadd.f32 %v12360_v2, %v963_v3  ;;  %v12545_v10 = vmul.f32 %v12393_v44, %v11955_v41  ;;  %v1079_v14 = vmul.f32 %v12476_v59, %v11960_v43 }
 0x15f   :  { %18533 = vst [vmem:[#allocation77_spill] sm:$0xff] %v12516_v22  ;;  %v1215_v57 = vmul.f32 %v12486_v25, %v12516_v22  ;;  %18536 = vst [vmem:[#allocation80_spill] sm:$0xff] %v12540_v12  ;;  %v12551_v33 = vmul.f32 %v12478_v51, %v12184_v46  ;;  %v1219_v40 = vmul.f32 %v12459_v38, %v12507_v15  ;;  %10994 = vrot.lane.b32.xlu1 %v10993_v5, %s11615_s30 }
 0x160   :  { %v1220_v28 = vmul.f32 %v12527_v21, %v12512_v30  ;;  %v1211_v3 = vmul.f32 %v12423_v62, %v12509_v9  ;;  %v1470_v25 = vrot.slane %v1079_v14, 1  ;;  %v18538_v5 = vsub.f32 %v12105_v27, %v12259_v32 }
 0x161   :  { %v11008_v23 = vpack.i.bf16 %v1216_v1, %v1215_v57  ;;  %v1212_v57 = vmul.f32 %v12451_v61, %v12533_v42  ;;  %v988_v1 = vadd.f32 %v12360_v2, %v967_v39  ;;  %v1370_v38 = vmul.f32 %v12476_v59, %v12008_v55  ;;  %v11417_v55 = vld [vmem:[%s18167_s6 + $0x40] sm:$0xff]  }
 0x162   :  { %v12560_v49 = vpop.permute.xlu1 %517  ;;  %v944_v21 = vmul.f32 %v12325_v29, %v18538_v5  ;;  %v12576_v14 = vmul.f32 %v12478_v51, %v12012_v56  ;;  %v1178_v46 = vrot.slane %v12004_v54, 1  ;;  %v992_v36 = vadd.f32 %v12360_v2, %v971_v34  ;;  %v11418_v54 = vld [vmem:[%s18167_s6] sm:$0xff]   ;;  %v12592_v56 = vpop.permute.xlu0 %521  ;;  %10366 = vmatprep.subr.bf16.mxu1 %v11417_v55 }
 0x163   :  { %18537 = vst [vmem:[#allocation81_spill] sm:$0xff] %v12560_v49  ;;  %11009 = vrot.lane.b32.xlu0 %v11008_v23, %s11615_s30  ;;  %v12580_v61 = vmax.f32 %v984_v58, 0.0  ;;  %v10998_v39 = vpack.i.bf16 %v1212_v57, %v1211_v3  ;;  %v12582_v23 = vmax.f32 %v989_v48, 0.0  ;;  %v993_v27 = vadd.f32 %v12360_v2, %v972_v63  ;;  %18541 = vst [vmem:[#allocation84_spill] sm:$0xff] %v12592_v56 }
 0x164   :  { %v11018_v62 = vpack.i.bf16 %v1220_v28, %v1219_v40  ;;  %v964_v5 = vmul.f32 %v12348_v45, %v944_v21  ;;  %v18542_v34 = vrot.slane %v12545_v10, 1  ;;  %v18543_v58 = vrot.slane %v12551_v33, 1  ;;  %10367 = vmatpush3.bf16.msra.mxu1 %v11418_v54 }
 0x165   :  { %18539 = vst [vmem:[#allocation82_spill] sm:$0xff] %v12580_v61  ;;  %18540 = vst [vmem:[#allocation83_spill] sm:$0xff] %v12582_v23  ;;  %10999 = vrot.lane.b32.xlu1 %v10998_v39, %s11615_s30  ;;  %v1865_v21 = vrot.slane %v1370_v38, 1  ;;  %v12604_v3 = vmax.f32 %v988_v1, 0.0  ;;  %v12612_v43 = vmul.f32 %v12501_v24, %v12476_v59  ;;  %v18547_v39 = vrot.slane %v12060_v13, 1 }
 0x166   :  { %v1471_v48 = vsel %vm1011_vm3, %v18542_v34, %v1470_v25  ;;  %v1473_v63 = vsel %vm1011_vm3, %v1470_v25, %v18543_v58  ;;  %v985_v57 = vadd.f32 %v12360_v2, %v964_v5  ;;  %v1288_v34 = vmul.f32 %v12466_v35, %v12393_v44  ;;  %v11419_v58 = vld [vmem:[%s18167_s6 + $0x48] sm:$0xff]   ;;  %v12659_v24 = vpop.permute.xlu0 %525 }
 0x167   :  { %v12602_v28 = vpop.permute.xlu1 %110  ;;  %18544 = vst [vmem:[#allocation85_spill] sm:$0xff] %v12604_v3  ;;  %11019 = vrot.lane.b32.xlu0 %v11018_v62, %s11615_s30  ;;  %v18545_v25 = vrot.slane %v12048_v7, 1  ;;  %v12622_v1 = vsel %vm1011_vm3, %v1178_v46, %v18547_v39  ;;  %v12624_v62 = vmax.f32 %v992_v36, 0.0  ;;  %v1213_v5 = vmul.f32 %v12416_v26, %v12580_v61  ;;  %10368 = vmatprep.subr.bf16.mxu1 %v11419_v58 }
 0x168   :  { %18548 = vst [vmem:[#allocation87_spill] sm:$0xff] %v12622_v1  ;;  %v11028_v40 = vpack.i.bf16 %v1473_v63, %v1471_v48  ;;  %v12631_v7 = vmax.f32 %v985_v57, 0.0  ;;  %v12637_v13 = vmax.f32 %v993_v27, 0.0  ;;  %v18552_v36 = vrot.slane %v12576_v14, 1  ;;  %18554 = vst [vmem:[#allocation91_spill] sm:$0xff] %v12659_v24 }
 0x169   :  { %v12617_v38 = vsel %vm1011_vm3, %v18545_v25, %v1178_v46  ;;  %18549 = vst [vmem:[#allocation88_spill] sm:$0xff] %v12624_v62  ;;  %v1765_v25 = vrot.slane %v1288_v34, 2  ;;  %v11420_v46 = vld [vmem:[%s18167_s6 + $0x8] sm:$0xff]   ;;  %v12644_v39 = vmul.f32 %v12582_v23, %v12239_v37  ;;  %v1089_v48 = vmul.f32 %v12507_v15, %v12046_v6 }
 0x16a   :  { %18546 = vst [vmem:[#allocation86_spill] sm:$0xff] %v12617_v38  ;;  %18550 = vst [vmem:[#allocation89_spill] sm:$0xff] %v12631_v7  ;;  %v1867_v55 = vsel %vm1011_vm3, %v1865_v21, %v18552_v36  ;;  %v1214_v27 = vmul.f32 %v12483_v31, %v12631_v7  ;;  %v1217_v54 = vmul.f32 %v12617_v38, %v12604_v3  ;;  %v18553_v34 = vld [vmem:[#allocation22_spill] sm:$0xff]  ;;  %v18555_v6 = vrot.slane %v12612_v43, 2 }
 0x16b   :  { %18551 = vst [vmem:[#allocation90_spill] sm:$0xff] %v12637_v13  ;;  %v12648_v63 = vpop.permute.xlu1 %114  ;;  %11029 = vrot.lane.b32.xlu0 %v11028_v40, %s11615_s30  ;;  %v1218_v57 = vmul.f32 %v12622_v1, %v12582_v23  ;;  %v1090_v36 = vmul.f32 %v12512_v30, %v18553_v34  ;;  %v18246_v40 = vrot.slane %v12644_v39, 1  ;;  %v1490_v35 = vrot.slane %v1089_v48, 1  ;;  %10369 = vmatpush3.bf16.msra.mxu1 %v11420_v46  ;;  %v11421_v1 = vld [vmem:[%s18167_s6 + $0x50] sm:$0xff]  }
 0x16c   :  { %v1767_v58 = vsel %vm721_vm1, %v1765_v25, %v18555_v6  ;;  %v11048_v37 = vpack.i.bf16 %v1867_v55, %v1865_v21  ;;  %v11003_v31 = vpack.i.bf16 %v1214_v27, %v1213_v5  ;;  %v11422_v34 = vld [vmem:[%s18167_s6 + $0x10] sm:$0xff]   ;;  %v12672_v38 = vrot.slane %v12462_v20, 1  ;;  %10370 = vmatprep.subr.bf16.mxu1 %v11421_v1  ;;  %v11424_v1 = vld [vmem:[%s18167_s6 + $0x18] sm:$0xff]  }
 0x16d   :  { %v1492_v26 = vrot.slane %v1090_v36, 1  ;;  %v1091_v6 = vmul.f32 %v12624_v62, %v12250_v8  ;;  %v11063_v21 = vpack.i.bf16 %v1767_v58, %v1765_v25  ;;  %v11013_v5 = vpack.i.bf16 %v1218_v57, %v1217_v54  ;;  %v18557_v46 = vld [vmem:[#allocation28_spill] sm:$0xff]  ;;  %v18560_v58 = vld [vmem:[#allocation9_spill] sm:$0xff] }
 0x16e   :  { %18556 = vst [vmem:[#allocation92_spill] sm:$0xff] %v12672_v38  ;;  %11004 = vrot.lane.b32.xlu1 %v11003_v31, %s11615_s30  ;;  %v12680_v55 = vmul.f32 %v12637_v13, %v18557_v46  ;;  %v1491_v20 = vsel %vm1011_vm3, %v18246_v40, %v1490_v35  ;;  %v18558_v36 = vrot.slane %v12545_v10, 1  ;;  %v18559_v31 = vld [vmem:[#allocation8_spill] sm:$0xff]  ;;  %v1082_v46 = vmul.f32 %v12533_v42, %v18560_v58 }
 0x16f   :  { %11049 = vrot.lane.b32.xlu0 %v11048_v37, %s11615_s30  ;;  %v1493_v27 = vsel %vm1011_vm3, %v1490_v35, %v1492_v26  ;;  %v1081_v25 = vmul.f32 %v12509_v9, %v18559_v31  ;;  %v1494_v54 = vrot.slane %v1091_v6, 1  ;;  %v18561_v40 = vsub.f32 %v12193_v53, %v12259_v32  ;;  %10371 = vmatpush3.bf16.msra.mxu1 %v11422_v34  ;;  %v11423_v10 = vld [vmem:[%s18167_s6 + $0x58] sm:$0xff]   ;;  %v12709_v6 = vpop.permute.xlu0 %424  ;;  %v11425_v53 = vld [vmem:[%s18167_s6 + $0x60] sm:$0xff]  }
 0x170   :  { %v12682_v48 = vpop.permute.xlu1 %418  ;;  %v1469_v37 = vsel %vm1011_vm3, %v12672_v38, %v18558_v36  ;;  %18562 = vst [vmem:[#allocation93_spill] sm:$0xff] %v12709_v6  ;;  %v18563_v57 = vld [vmem:[#allocation32_spill] sm:$0xff]  ;;  %v1476_v32 = vrot.slane %v1082_v46, 1  ;;  %10372 = vmatprep.subr.bf16.mxu1 %v11423_v10  ;;  %v18567_v10 = vld [vmem:[#allocation11_spill] sm:$0xff] }
 0x171   :  { %v12701_v35 = vmul.f32 %v12325_v29, %v18561_v40  ;;  %v1474_v36 = vrot.slane %v1081_v25, 1  ;;  %v1083_v8 = vmul.f32 %v12580_v61, %v18563_v57  ;;  %v18564_v29 = vld [vmem:[#allocation10_spill] sm:$0xff]  ;;  %v11078_v40 = vpack.i.bf16 %v1493_v27, %v1491_v20 }
 0x172   :  { %11014 = vrot.lane.b32.xlu1 %v11013_v5, %s11615_s30  ;;  %v1084_v34 = vmul.f32 %v12631_v7, %v18564_v29  ;;  %v11023_v58 = vpack.i.bf16 %v1469_v37, %v12672_v38  ;;  %v1495_v25 = vsel %vm1011_vm3, %v1492_v26, %v1494_v54  ;;  %v18565_v57 = vrot.slane %v12680_v55, 1  ;;  %v11426_v20 = vld [vmem:[%s18167_s6 + $0x20] sm:$0xff]   ;;  %v18568_v29 = vld [vmem:[#allocation12_spill] sm:$0xff] }
 0x173   :  { %11064 = vrot.lane.b32.xlu0 %v11063_v21, %s11615_s30  ;;  %v18566_v21 = vrot.slane %v12551_v33, 1  ;;  %v1478_v46 = vrot.slane %v1083_v8, 1  ;;  %10373 = vmatpush3.bf16.msra.mxu1 %v11424_v1  ;;  %v1477_v27 = vsel %vm1011_vm3, %v1474_v36, %v1476_v32  ;;  %v1085_v26 = vmul.f32 %v12516_v22, %v18567_v10  ;;  %v11427_v8 = vld [vmem:[%s18167_s6 + $0x68] sm:$0xff]   ;;  %v12745_v33 = vpop.permute.xlu0 %436 }
 0x174   :  { %v1497_v41 = vsel %vm1011_vm3, %v1494_v54, %v18565_v57  ;;  %v1480_v37 = vrot.slane %v1084_v34, 1  ;;  %v12738_v38 = vmul.f32 %v12471_v47, %v18568_v29  ;;  %10374 = vmatprep.subr.bf16.mxu1 %v11425_v53  ;;  %18569 = vst [vmem:[#allocation94_spill] sm:$0xff] %v12745_v33  ;;  %v11428_v53 = vld [vmem:[%s18167_s6 + $0x28] sm:$0xff]   ;;  %v18570_v29 = vld [vmem:[#allocation16_spill] sm:$0xff] }
 0x175   :  { %v12721_v31 = vpop.permute.xlu1 %240  ;;  %v1475_v5 = vsel %vm1011_vm3, %v18566_v21, %v1474_v36  ;;  %v11100_v54 = vpack.i.bf16 %v1497_v41, %v1495_v25  ;;  %v1479_v1 = vsel %vm1011_vm3, %v1476_v32, %v1478_v46  ;;  %v1482_v36 = vrot.slane %v1085_v26, 1  ;;  %v11429_v32 = vld [vmem:[%s18167_s6 + $0x70] sm:$0xff]   ;;  %v11430_v25 = vld [vmem:[%s18167_s6 + $0xc0] sm:$0xff]  }
 0x176   :  { %11024 = vrot.lane.b32.xlu1 %v11023_v58, %s11615_s30  ;;  %v11033_v57 = vpack.i.bf16 %v1477_v27, %v1475_v5  ;;  %v1481_v21 = vsel %vm1011_vm3, %v1478_v46, %v1480_v37  ;;  %v1372_v58 = vmul.f32 %v12509_v9, %v12369_v19  ;;  %v12759_v41 = vmul.f32 %v12533_v42, %v18570_v29  ;;  %v18571_v5 = vld [vmem:[#allocation13_spill] sm:$0xff]  ;;  %v18644_v33 = vld [vmem:[#allocation34_spill] sm:$0xff] }
 0x177   :  { %11079 = vrot.lane.b32.xlu0 %v11078_v40, %s11615_s30  ;;  %10375 = vmatpush3.bf16.msra.mxu1 %v11426_v20  ;;  %v1484_v40 = vrot.slane %v12738_v38, 1  ;;  %v11432_v38 = vld [vmem:[%s18167_s6 + $0x80] sm:$0xff]   ;;  %v1243_v46 = vrot.slane %v18571_v5, 7  ;;  %v1245_v20 = vrot.slane %v12291_v50, 7  ;;  %v11038_v27 = vpack.i.bf16 %v1481_v21, %v1479_v1 }
 0x178   :  { %10376 = vmatprep.subr.bf16.mxu1 %v11427_v8  ;;  %10430 = vmatprep.subr.bf16.mxu0 %v11430_v25  ;;  %v1483_v26 = vsel %vm1011_vm3, %v1480_v37, %v1482_v36  ;;  %v11431_v8 = vld [vmem:[%s18167_s6 + $0x30] sm:$0xff]   ;;  %v1868_v29 = vrot.slane %v1372_v58, 1  ;;  %v18250_v10 = vrot.slane %v12759_v41, 1  ;;  %v18572_v5 = vld [vmem:[#allocation17_spill] sm:$0xff]  ;;  %v18575_v1 = vrot.slane %v11997_v52, 7 }
 0x179   :  { %10431 = vmatpush3.bf16.msra.mxu0 %v11432_v38  ;;  %v1087_v50 = vmul.f32 %v12604_v3, %v18572_v5  ;;  %v18574_v37 = vld [vmem:[#allocation31_spill] sm:$0xff]  ;;  %v18581_v5 = vld [vmem:[#allocation20_spill] sm:$0xff] }
 0x17a   :  { %v12748_v34 = vpop.permute.xlu1 %529  ;;  %11034 = vrot.lane.b32.xlu1 %v11033_v57, %s11615_s30  ;;  %v1485_v57 = vsel %vm1011_vm3, %v1482_v36, %v1484_v40  ;;  %v12794_v36 = vsel %vm1093_vm4, %v1243_v46, %v1245_v20  ;;  %v1871_v52 = vsel %vm1011_vm3, %v1868_v29, %v18250_v10  ;;  %v1374_v19 = vmul.f32 %v12580_v61, %v18581_v5 }
 0x17b   :  { %11101 = vrot.lane.b32.xlu0 %v11100_v54, %s11615_s30  ;;  %10377 = vmatpush3.bf16.msra.mxu1 %v11428_v53  ;;  %v12778_v54 = vpop.permute.xlu0 %219  ;;  %v12791_v53 = vsel %vm1093_vm4, %v18575_v1, %v1243_v46  ;;  %18577 = vst [vmem:[#allocation95_spill] sm:$0xff] %v12794_v36  ;;  %v11043_v21 = vpack.i.bf16 %v1485_v57, %v1483_v26  ;;  %v11433_v26 = vld [vmem:[%s18167_s6 + $0x78] sm:$0xff]  }
 0x17c   :  { %10378 = vmatprep.subr.bf16.mxu1 %v11429_v32  ;;  %18576 = vst [vmem:[#allocation31_spill] sm:$0xff] %v12791_v53  ;;  %v1290_v58 = vmul.f32 %v12791_v53, %v12478_v51  ;;  %v12800_v38 = vmul.f32 %v12794_v36, %v12509_v9  ;;  %v18578_v32 = vrot.slane %v12576_v14, 1  ;;  %v11434_v14 = vld [vmem:[%s18167_s6 + $0xc8] sm:$0xff]  }
 0x17d   :  { %10432 = vmatprep.subr.bf16.mxu0 %v11434_v14  ;;  %v973_v14 = vmul.f32 %v12348_v45, %v12701_v35  ;;  %v1872_v45 = vrot.slane %v1374_v19, 1  ;;  %v18591_v19 = vmov 4  }
 0x17e   :  { %11039 = vrot.lane.b32.xlu1 %v11038_v27, %s11615_s30  ;;  %v1869_v27 = vsel %vm1011_vm3, %v18578_v32, %v1868_v29  ;;  %v18579_v29 = vld [vmem:[#allocation18_spill] sm:$0xff]  ;;  %v11437_v32 = vld [vmem:[%s18167_s6 + $0xd0] sm:$0xff]   ;;  %v1768_v36 = vrot.slane %v1290_v58, 2  ;;  %v18255_v53 = vrot.slane %v12800_v38, 2 }
 0x17f   :  { %v12784_v25 = vpop.permute.xlu1 %118  ;;  %533 = vperm.xlu0 %11110, %v18574_v37   ;;  %10379 = vmatpush3.bf16.msra.mxu1 %v11431_v8  ;;  %v1486_v37 = vrot.slane %v1087_v50, 1  ;;  %v11435_v8 = vld [vmem:[%s18167_s6 + $0x38] sm:$0xff]   ;;  %v1247_v57 = vrot.slane %v18579_v29, 7  ;;  %v18580_v50 = vld [vmem:[#allocation19_spill] sm:$0xff]  ;;  %v12823_v1 = vpop.permute.xlu0 %231  ;;  %v11053_v10 = vpack.i.bf16 %v1871_v52, %v1869_v27  ;;  %v994_v35 = vadd.f32 %v12360_v2, %v973_v14 }
 0x180   :  { %18573 = vst [vmem:[#allocation13_spill] sm:$0xff] %v12784_v25  ;;  %10380 = vmatprep.subr.bf16.mxu1 %v11433_v26  ;;  %v12840_v25 = vmul.f32 %v12631_v7, %v12436_v60  ;;  %v11438_v58 = vld [vmem:[%s18167_s6 + $0x90] sm:$0xff]   ;;  %v12901_v27 = vld [vmem:[%s18446_s2 + $0x8] sm:$0xff] }
 0x181   :  { %v1487_v29 = vsel %vm1011_vm3, %v1484_v40, %v1486_v37  ;;  %v18584_v40 = vrot.slane %v18580_v50, 7 }
 0x182   :  { %11044 = vrot.lane.b32.xlu1 %v11043_v21, %s11615_s30  ;;  %v11436_v21 = vld [vmem:[%s18167_s6 + $0x88] sm:$0xff]  }
 0x183   :  { %542 = vperm.xlu0 %11110, %v12244_v18   ;;  %v18582_v18 = vrot.slane %v12644_v39, 1  ;;  %10381 = vmatpush3.bf16.msra.mxu1 %v11435_v8  ;;  %v12849_v39 = vsel %vm1093_vm4, %v1245_v20, %v1247_v57  ;;  %v12854_v52 = vsel %vm1093_vm4, %v1247_v57, %v18584_v40  ;;  %v1771_v40 = vsel %vm721_vm1, %v1768_v36, %v18255_v53 }
 0x184   :  { %v12810_v46 = vpop.permute.xlu1 %243  ;;  %10433 = vmatpush3.bf16.msra.mxu0 %v11436_v21  ;;  %18583 = vst [vmem:[#allocation18_spill] sm:$0xff] %v12849_v39  ;;  %18585 = vst [vmem:[#allocation19_spill] sm:$0xff] %v12854_v52  ;;  %v18589_v21 = vrot.slane %v12612_v43, 2  ;;  %v11440_v43 = vld [vmem:[%s18167_s6 + $0x98] sm:$0xff]  }
 0x185   :  { %v1489_v12 = vsel %vm1011_vm3, %v1486_v37, %v18582_v18  ;;  %v18586_v37 = vld [vmem:[#allocation30_spill] sm:$0xff]  ;;  %10434 = vmatprep.subr.bf16.mxu0 %v11437_v32  ;;  %v1292_v32 = vmul.f32 %v12849_v39, %v12533_v42  ;;  %v18599_v39 = vrot.slane %v12759_v41, 1 }
 0x186   :  { %11054 = vrot.lane.b32.xlu1 %v11053_v10, %s11615_s30  ;;  %v1255_v26 = vrot.slane %v18586_v37, 7  ;;  %v18588_v10 = vld [vmem:[#allocation23_spill] sm:$0xff]  ;;  %v11058_v18 = vpack.i.bf16 %v1489_v12, %v1487_v29  ;;  %v1769_v57 = vsel %vm721_vm1, %v18589_v21, %v1768_v36  ;;  %v12871_v37 = vpop.permute.xlu0 %237 }
 0x187   :  { %548 = vperm.xlu0 %11110, %v12312_v4   ;;  %v11439_v4 = vld [vmem:[%s18167_s6 + $0xd8] sm:$0xff]   ;;  %v1253_v20 = vrot.slane %v18588_v10, 7  ;;  %v12878_v10 = vmul.f32 %v12854_v52, %v12580_v61  ;;  %v18590_v36 = vld [vmem:[#allocation39_spill] sm:$0xff]  ;;  %v11068_v14 = vpack.i.bf16 %v1771_v40, %v1769_v57  ;;  %v1873_v60 = vsel %vm1011_vm3, %v18599_v39, %v1872_v45 }
 0x188   :  { %10435 = vmatpush3.bf16.msra.mxu0 %v11438_v58  ;;  %v12886_v29 = vmul.f32 %v12604_v3, %v18590_v36  ;;  %v18592_v21 = vld [vmem:[#allocation27_spill] sm:$0xff]  ;;  %v12938_v40 = vmax.f32 %v994_v35, 0.0 }
 0x189   :  { %v12859_v8 = vpop.permute.xlu1 %421  ;;  %v12892_v53 = vmul.f32 %v12471_v47, %v18592_v21  ;;  %v12895_v58 = vsel %vm1093_vm4, %v1253_v20, %v1255_v26  ;;  %10436 = vmatprep.subr.bf16.mxu0 %v11439_v4  ;;  %v18597_v21 = vrot.slane %v12317_v17, 7  ;;  %v18600_v4 = vrot.slane %v12840_v25, 1 }
 0x18a   :  { %18587 = vst [vmem:[#allocation30_spill] sm:$0xff] %v12859_v8  ;;  %11059 = vrot.lane.b32.xlu1 %v11058_v18, %s11615_s30  ;;  %18593 = vst [vmem:[#allocation23_spill] sm:$0xff] %v12895_v58  ;;  %v18595_v18 = vrot.slane %v12306_v16, 7  ;;  %v1296_v2 = vmul.f32 %v12895_v58, %v12471_v47  ;;  %v12936_v57 = vpop.permute.xlu0 %246 }
 0x18b   :  { %11112 = vset.pattern.permute.xlu0 %v18591_v19  ;;  %v12914_v52 = vsel %vm1093_vm4, %v1255_v26, %v18597_v21  ;;  %v1875_v5 = vsel %vm1011_vm3, %v1872_v45, %v18600_v4  ;;  %18602 = vst [vmem:[#allocation100_spill] sm:$0xff] %v12938_v40  ;;  %v12943_v45 = vld [vmem:[%s18446_s2 + $0x20] sm:$0xff]  ;;  %v18606_v4 = vrot.slane %v12800_v38, 2  ;;  %v18607_v38 = vrot.slane %v12886_v29, 1 }
 0x18c   :  { %313 = vperm.xlu0 %11112, %v12901_v27   ;;  %v12909_v36 = vsel %vm1093_vm4, %v18595_v18, %v1253_v20  ;;  %18598 = vst [vmem:[#allocation98_spill] sm:$0xff] %v12914_v52  ;;  %v18260_v20 = vrot.slane %v12878_v10, 2  ;;  %10437 = vmatpush3.bf16.msra.mxu0 %v11440_v43  ;;  %v12927_v26 = vmul.f32 %v12914_v52, %v12604_v3  ;;  %v18604_v18 = vld [vmem:[#allocation26_spill] sm:$0xff] }
 0x18d   :  { %v12904_v12 = vpop.permute.xlu1 %427  ;;  %18596 = vst [vmem:[#allocation97_spill] sm:$0xff] %v12909_v36  ;;  %v12934_v39 = vmul.f32 %v12909_v36, %v12516_v22  ;;  %v11073_v43 = vpack.i.bf16 %v1875_v5, %v1873_v60  ;;  %v11441_v21 = vld [vmem:[%s18167_s6 + $0xe0] sm:$0xff]   ;;  %v1780_v60 = vrot.slane %v1296_v2, 2 }
 0x18e   :  { %18594 = vst [vmem:[#allocation96_spill] sm:$0xff] %v12904_v12  ;;  %v1772_v12 = vrot.slane %v1292_v32, 2  ;;  %18601 = vst [vmem:[#allocation99_spill] sm:$0xff] %v12927_v26  ;;  %11069 = vrot.lane.b32.xlu1 %v11068_v14, %s11615_s30  ;;  %v12949_v14 = vrot.slane %v18604_v18, 1  ;;  %v11442_v52 = vld [vmem:[%s18167_s6 + $0xa0] sm:$0xff]   ;;  %v18608_v18 = vrot.slane %v12892_v53, 1  ;;  %10438 = vmatprep.subr.bf16.mxu0 %v11441_v21  ;;  %v12981_v58 = vpop.permute.xlu0 %252 }
 0x18f   :  { %18611 = vst [vmem:[#allocation104_spill] sm:$0xff] %v12981_v58  ;;  %v18648_v3 = vld [vmem:[#allocation42_spill] sm:$0xff] }
 0x190   :  { %325 = vperm.xlu0 %11112, %v12943_v45   ;;  %18605 = vst [vmem:[#allocation26_spill] sm:$0xff] %v12949_v14  ;;  %v1773_v41 = vsel %vm721_vm1, %v18606_v4, %v1772_v12  ;;  %v1775_v35 = vsel %vm721_vm1, %v1772_v12, %v18260_v20  ;;  %v1881_v4 = vsel %vm1011_vm3, %v18608_v18, %v18607_v38  ;;  %v1778_v12 = vrot.slane %v12934_v39, 2  ;;  %v12974_v20 = vld [vmem:[%s18446_s2 + $0x48] sm:$0xff] }
 0x191   :  { %v12946_v32 = vpop.permute.xlu1 %430  ;;  %18609 = vst [vmem:[#allocation102_spill] sm:$0xff] %v12974_v20  ;;  %v1223_v2 = vmul.f32 %v12949_v14, %v12938_v40  ;;  %v11083_v5 = vpack.i.bf16 %v1775_v35, %v1773_v41  ;;  %10439 = vmatpush3.bf16.msra.mxu0 %v11442_v52  ;;  %v11443_v39 = vld [vmem:[%s18167_s6 + $0xe8] sm:$0xff]   ;;  %v18612_v41 = vrot.slane %v12927_v26, 2  ;;  %v11445_v52 = vld [vmem:[%s18167_s6 + $0xf0] sm:$0xff]  }
 0x192   :  { %18603 = vst [vmem:[#allocation101_spill] sm:$0xff] %v12946_v32  ;;  %11074 = vrot.lane.b32.xlu1 %v11073_v43, %s11615_s30  ;;  %v11444_v38 = vld [vmem:[%s18167_s6 + $0xa8] sm:$0xff]   ;;  %v1781_v18 = vsel %vm721_vm1, %v1778_v12, %v1780_v60  ;;  %v18613_v35 = vld [vmem:[#allocation24_spill] sm:$0xff]  ;;  %10440 = vmatprep.subr.bf16.mxu0 %v11443_v39  ;;  %v18617_v39 = vrot.slane %v12036_v0, 1  ;;  %v1017_v32 = vrot.slane %v18648_v3, 1 }
 0x193   :  { %v11115_v36 = vpack.i.bf16 %v1881_v4, %v1223_v2  ;;  %v1783_v21 = vsel %vm721_vm1, %v1780_v60, %v18612_v41  ;;  %v1186_v4 = vrot.slane %v18613_v35, 1  ;;  %v18615_v60 = vld [vmem:[#allocation25_spill] sm:$0xff]  ;;  %v13010_v35 = vpop.permute.xlu0 %255  ;;  %v18629_v26 = vld [vmem:[#allocation52_spill] sm:$0xff] }
 0x194   :  { %345 = vperm.xlu0 %11112, %v12974_v20   ;;  %v11125_v2 = vpack.i.bf16 %v1783_v21, %v1781_v18  ;;  %v1376_v41 = vmul.f32 %v12516_v22, %v18615_v60  ;;  %18616 = vst [vmem:[#allocation105_spill] sm:$0xff] %v13010_v35  ;;  %v18620_v21 = vrot.slane %v12306_v16, 7 }
 0x195   :  { %10441 = vmatpush3.bf16.msra.mxu0 %v11444_v38  ;;  %v13016_v38 = vsel %vm1011_vm3, %v18617_v39, %v1186_v4  ;;  %v13020_v18 = vsel %vm1011_vm3, %v1186_v4, %v12949_v14  ;;  %v11448_v4 = vld [vmem:[%s18167_s6 + $0xb8] sm:$0xff]   ;;  %v13044_v39 = vld [vmem:[%s18446_s2 + $0x68] sm:$0xff] }
 0x196   :  { %v12979_v43 = vpop.permute.xlu1 %130  ;;  %11084 = vrot.lane.b32.xlu1 %v11083_v5, %s11615_s30  ;;  %v11446_v5 = vld [vmem:[%s18167_s6 + $0xb0] sm:$0xff]   ;;  %10442 = vmatprep.subr.bf16.mxu0 %v11445_v52  ;;  %18618 = vst [vmem:[#allocation106_spill] sm:$0xff] %v13016_v38  ;;  %18619 = vst [vmem:[#allocation107_spill] sm:$0xff] %v13020_v18  ;;  %v18621_v52 = vrot.slane %v18580_v50, 7  ;;  %v1222_v0 = vmul.f32 %v13020_v18, %v12637_v13  ;;  %v1876_v16 = vrot.slane %v1376_v41, 1  ;;  %v18627_v18 = vrot.slane %v12892_v53, 1 }
 0x197   :  { %18610 = vst [vmem:[#allocation103_spill] sm:$0xff] %v12979_v43 }
 0x198   :  { %11116 = vrot.lane.b32.xlu0 %v11115_v36, %s11615_s30  ;;  %v11447_v36 = vld [vmem:[%s18167_s6 + $0xf8] sm:$0xff]   ;;  %v13027_v60 = vsel %vm1093_vm4, %v18621_v52, %v18620_v21  ;;  %v13053_v21 = vpop.permute.xlu0 %94 }
 0x199   :  { %18622 = vst [vmem:[#allocation108_spill] sm:$0xff] %v13027_v60  ;;  %10443 = vmatpush3.bf16.msra.mxu0 %v11446_v5  ;;  %v1294_v50 = vmul.f32 %v13027_v60, %v12631_v7  ;;  %v13050_v5 = vld [vmem:[%s18446_s2 + $0x40] sm:$0xff] }
 0x19a   :  { %448 = vperm.xlu1 %11088, %v12974_v20   ;;  %10444 = vmatprep.subr.bf16.mxu0 %v11447_v36  ;;  %18624 = vst [vmem:[#allocation110_spill] sm:$0xff] %v13050_v5  ;;  %v18626_v36 = vrot.slane %v12840_v25, 1  ;;  %v18630_v20 = vmov 8   ;;  %v18631_v25 = vrot.slane %v12878_v10, 2  ;;  %v13085_v10 = vld [vmem:[%s18446_s2 + $0x58] sm:$0xff] }
 0x19b   :  { %v12999_v43 = vpop.permute.xlu1 %309  ;;  %v1776_v60 = vrot.slane %v1294_v50, 2  ;;  %v18636_v50 = vld [vmem:[#allocation47_spill] sm:$0xff] }
 0x19c   :  { %18614 = vst [vmem:[#allocation24_spill] sm:$0xff] %v12999_v43  ;;  %11126 = vrot.lane.b32.xlu0 %v11125_v2, %s11615_s30  ;;  %v1221_v43 = vmul.f32 %v13016_v38, %v12624_v62  ;;  %v1877_v14 = vsel %vm1011_vm3, %v18626_v36, %v1876_v16  ;;  %v1879_v38 = vsel %vm1011_vm3, %v1876_v16, %v18627_v18 }
 0x19d   :  { %10445 = vmatpush3.bf16.msra.mxu0 %v11448_v4  ;;  %v1777_v4 = vsel %vm721_vm1, %v18631_v25, %v1776_v60  ;;  %v1779_v53 = vsel %vm721_vm1, %v1776_v60, %v1778_v12  ;;  %v18635_v60 = vld [vmem:[#allocation45_spill] sm:$0xff] }
 0x19e   :  { %11089 = vset.pattern.permute.xlu1 %v18591_v19  ;;  %v11090_v41 = vpack.i.bf16 %v1222_v0, %v1221_v43  ;;  %v13067_v43 = vpop.permute.xlu0 %106  ;;  %v11095_v0 = vpack.i.bf16 %v1879_v38, %v1877_v14  ;;  %v11105_v18 = vpack.i.bf16 %v1779_v53, %v1777_v4  ;;  %v18634_v14 = vld [vmem:[#allocation33_spill] sm:$0xff]  ;;  %v18640_v38 = vld [vmem:[#allocation35_spill] sm:$0xff] }
 0x19f   :  { %v13033_v2 = vpop.permute.xlu1 %317  ;;  %341 = vperm.xlu1 %11089, %v13050_v5   ;;  %v1094_v12 = vrot.slane %v18634_v14, 7  ;;  %v18637_v53 = vld [vmem:[#allocation41_spill] sm:$0xff]  ;;  %v1095_v25 = vrot.slane %v18640_v38, 7  ;;  %v18645_v38 = vrot.slane %v13010_v35, 7 }
 0x1a0   :  { %18623 = vst [vmem:[#allocation109_spill] sm:$0xff] %v13033_v2  ;;  %361 = vperm.xlu0 %11112, %v13044_v39   ;;  %v18628_v2 = vmov 6   ;;  %v18642_v4 = vld [vmem:[#allocation37_spill] sm:$0xff] }
 0x1a2   :  { %v13077_v16 = vpop.permute.xlu0 %122 }
 0x1a3   :  { %v13055_v52 = vpop.permute.xlu1 %321  ;;  %11091 = vrot.lane.b32.xlu1 %v11090_v41, %s11615_s30  ;;  %v13131_v41 = vld [vmem:[%s18446_s2 + $0x78] sm:$0xff] }
 0x1a4   :  { %18625 = vst [vmem:[#allocation111_spill] sm:$0xff] %v13055_v52  ;;  %11133 = vset.pattern.permute.xlu0 %v18628_v2  ;;  %11111 = vset.pattern.permute.xlu1 %v18630_v20  ;;  %18650 = vst [vmem:[#allocation35_spill] sm:$0xff] %v13131_v41 }
 0x1a5   :  { %439 = vperm.xlu0 %11133, %v18629_v26  }
 0x1a6   :  { %v13107_v52 = vpop.permute.xlu0 %126 }
 0x1a7   :  { %11096 = vrot.lane.b32.xlu1 %v11095_v0, %s11615_s30  ;;  %v1142_v0 = vmul.f32 0.0, %v1094_v12  ;;  %18641 = vst [vmem:[#allocation47_spill] sm:$0xff] %v13107_v52 }
 0x1a8   :  { %v13073_v36 = vpop.permute.xlu1 %249 }
 0x1a9   :  { %18632 = vst [vmem:[#allocation52_spill] sm:$0xff] %v13073_v36  ;;  %445 = vperm.xlu0 %11133, %v13050_v5   ;;  %v18643_v36 = vld [vmem:[#allocation40_spill] sm:$0xff] }
 0x1aa   :  { %v1012_v5 = vrot.slane %v18643_v36, 1 }
 0x1ab   :  { %11106 = vrot.lane.b32.xlu1 %v11105_v18, %s11615_s30  ;;  %v1013_v18 = vrot.slane %v18637_v53, 1  ;;  %v1099_v53 = vrot.slane %v18642_v4, 7  ;;  %v18646_v4 = vrot.slane %v12981_v58, 7 }
 0x1ad   :  { %v13080_v26 = vpop.permute.xlu1 %433  ;;  %454 = vperm.xlu0 %11133, %v13085_v10   ;;  %v13123_v36 = vsel %vm1093_vm4, %v18646_v4, %v18645_v38  ;;  %v1014_v6 = vsel %vm1011_vm3, %v1012_v5, %v1013_v18  ;;  %v13139_v38 = vsel %vm1093_vm4, %v1094_v12, %v1095_v25 }
 0x1ae   :  { %18633 = vst [vmem:[#allocation112_spill] sm:$0xff] %v13080_v26  ;;  %v13099_v26 = vld [vmem:[%s18446_s2 + $0x60] sm:$0xff]  ;;  %18647 = vst [vmem:[#allocation41_spill] sm:$0xff] %v13123_v36  ;;  %v13148_v36 = vmul.f32 %v13139_v38, %v12393_v44  ;;  %v13166_v4 = vmul.f32 0.0, %v1014_v6  ;;  %v1382_v6 = vmul.f32 %v12624_v62, %v12560_v49 }
 0x1af   :  { %536 = vperm.xlu1 %11111, %v12901_v27   ;;  %18638 = vst [vmem:[#allocation33_spill] sm:$0xff] %v13099_v26  ;;  %v1097_v27 = vrot.slane %v12778_v54, 7  ;;  %v1015_v54 = vrot.slane %v13053_v21, 1  ;;  %v13136_v21 = vrot.slane %v1142_v0, 2  ;;  %18653 = vst [vmem:[#allocation34_spill] sm:$0xff] %v13139_v38  ;;  %v18657_v0 = vrot.slane %v13107_v52, 1 }
 0x1b0   :  { %18661 = vst [vmem:[#allocation114_spill] sm:$0xff] %v13166_v4 }
 0x1b1   :  { %457 = vperm.xlu0 %11133, %v13099_v26   ;;  %v18649_v26 = vld [vmem:[#allocation43_spill] sm:$0xff]  ;;  %18652 = vst [vmem:[#allocation40_spill] sm:$0xff] %v13136_v21  ;;  %v13151_v35 = vsel %vm1093_vm4, %v1097_v27, %v1099_v53  ;;  %v13169_v38 = vsel %vm1011_vm3, %v1013_v18, %v1015_v54 }
 0x1b2   :  { %v13102_v14 = vpop.permute.xlu1 %134  ;;  %v1259_v8 = vrot.slane %v18649_v26, 7  ;;  %v13144_v26 = vsel %vm1093_vm4, %v1095_v25, %v1097_v27  ;;  %18656 = vst [vmem:[#allocation43_spill] sm:$0xff] %v13151_v35  ;;  %v13164_v25 = vmul.f32 0.0, %v1012_v5  ;;  %18662 = vst [vmem:[#allocation115_spill] sm:$0xff] %v13169_v38  ;;  %v13174_v27 = vmul.f32 %v13151_v35, %v12478_v51 }
 0x1b3   :  { %18639 = vst [vmem:[#allocation45_spill] sm:$0xff] %v13102_v14  ;;  %539 = vperm.xlu1 %11111, %v18644_v33   ;;  %v18654_v14 = vld [vmem:[#allocation44_spill] sm:$0xff]  ;;  %18655 = vst [vmem:[#allocation42_spill] sm:$0xff] %v13144_v26  ;;  %v18667_v5 = vrot.slane %v18635_v60, 7 }
 0x1b4   :  { %v1101_v3 = vrot.slane %v18654_v14, 7  ;;  %v13162_v14 = vmul.f32 %v13144_v26, %v12476_v59  ;;  %18660 = vst [vmem:[#allocation113_spill] sm:$0xff] %v13164_v25  ;;  %v18673_v25 = vld [vmem:[#allocation50_spill] sm:$0xff] }
 0x1b5   :  { %466 = vperm.xlu0 %11133, %v13131_v41   ;;  %v18658_v41 = vrot.slane %v13077_v16, 1  ;;  %v13194_v18 = vsel %vm1093_vm4, %v1259_v8, %v18667_v5  ;;  %v1019_v4 = vrot.slane %v18673_v25, 1 }
 0x1b6   :  { %v13134_v33 = vpop.permute.xlu1 %138  ;;  %18668 = vst [vmem:[#allocation119_spill] sm:$0xff] %v13194_v18 }
 0x1b7   :  { %18651 = vst [vmem:[#allocation37_spill] sm:$0xff] %v13134_v33  ;;  %v13158_v12 = vsel %vm1011_vm3, %v18658_v41, %v18657_v0  ;;  %545 = vperm.xlu1 %11111, %v12943_v45   ;;  %v13177_v41 = vsel %vm1011_vm3, %v1015_v54, %v1017_v32  ;;  %v18664_v0 = vrot.slane %v12317_v17, 7  ;;  %v13189_v45 = vmul.f32 %v13169_v38, %v12393_v44  ;;  %v18672_v33 = vld [vmem:[#allocation48_spill] sm:$0xff] }
 0x1b8   :  { %18659 = vst [vmem:[#allocation44_spill] sm:$0xff] %v13158_v12  ;;  %18663 = vst [vmem:[#allocation116_spill] sm:$0xff] %v13177_v41  ;;  %v13197_v54 = vsel %vm1093_vm4, %v1099_v53, %v1101_v3  ;;  %v13206_v38 = vmul.f32 %v12512_v30, %v18672_v33  ;;  %v13224_v25 = vmul.f32 %v13177_v41, %v12476_v59  ;;  %v11579_v53 = vld [vmem:[%s18446_s2 + $0x50] sm:$0xff] }
 0x1b9   :  { %v13182_v26 = vsel %vm1093_vm4, %v18664_v0, %v1259_v8  ;;  %11146 = vset.pattern.permute.xlu0 %v18630_v20  ;;  %18666 = vst [vmem:[#allocation118_spill] sm:$0xff] %v13189_v45  ;;  %18669 = vst [vmem:[#allocation120_spill] sm:$0xff] %v13197_v54  ;;  %v18670_v0 = vld [vmem:[#allocation58_spill] sm:$0xff]  ;;  %v13211_v8 = vmul.f32 %v12637_v13, %v12592_v56  ;;  %v1888_v56 = vrot.slane %v1382_v6, 1  ;;  %v18678_v33 = vld [vmem:[#allocation59_spill] sm:$0xff]  ;;  %v18679_v6 = vrot.slane %v12682_v48, 7 }
 0x1ba   :  { %18665 = vst [vmem:[#allocation117_spill] sm:$0xff] %v13182_v26  ;;  %554 = vperm.xlu0 %11146, %v18670_v0   ;;  %v13216_v5 = vmul.f32 %v13182_v26, %v12582_v23  ;;  %v18674_v0 = vld [vmem:[#allocation46_spill] sm:$0xff]  ;;  %18676 = vst [vmem:[#allocation50_spill] sm:$0xff] %v13224_v25  ;;  %v13231_v26 = vmul.f32 %v12582_v23, %v12489_v11  ;;  %v1263_v41 = vrot.slane %v18678_v33, 7  ;;  %v18680_v45 = vrot.slane %v18636_v50, 7 }
 0x1bb   :  { %v13201_v35 = vpop.permute.xlu1 %329  ;;  %v1103_v17 = vrot.slane %v18674_v0, 7  ;;  %11113 = vset.pattern.permute.xlu1 %v18628_v2  ;;  %v13239_v0 = vmul.f32 %v13158_v12, %v12471_v47  ;;  %v13251_v52 = vsel %vm1011_vm3, %v1017_v32, %v1019_v4  ;;  %v18307_v12 = vrot.slane %v13211_v8, 1 }
 0x1bc   :  { %18671 = vst [vmem:[#allocation58_spill] sm:$0xff] %v13201_v35  ;;  %v18675_v35 = vld [vmem:[#allocation64_spill] sm:$0xff]  ;;  %451 = vperm.xlu1 %11113, %v11579_v53   ;;  %v13247_v25 = vsel %vm1093_vm4, %v18680_v45, %v18679_v6  ;;  %18682 = vst [vmem:[#allocation59_spill] sm:$0xff] %v13251_v52  ;;  %v18687_v6 = vrot.slane %v18636_v50, 7 }
 0x1bd   :  { %v1265_v49 = vrot.slane %v18675_v35, 7  ;;  %v13235_v35 = vmul.f32 %v13194_v18, %v12507_v15  ;;  %18677 = vst [vmem:[#allocation46_spill] sm:$0xff] %v13239_v0  ;;  %18681 = vst [vmem:[#allocation64_spill] sm:$0xff] %v13247_v25  ;;  %v18683_v18 = vld [vmem:[#allocation76_spill] sm:$0xff]  ;;  %v13259_v2 = vsel %vm1093_vm4, %v1101_v3, %v1103_v17  ;;  %v13271_v32 = vmul.f32 %v13247_v25, %v12938_v40 }
 0x1be   :  { %563 = vperm.xlu0 %11146, %v11579_v53   ;;  %v1107_v58 = vrot.slane %v18683_v18, 7  ;;  %18685 = vst [vmem:[#allocation121_spill] sm:$0xff] %v13259_v2  ;;  %v18689_v18 = vrot.slane %v13206_v38, 1  ;;  %v1891_v3 = vsel %vm1011_vm3, %v1888_v56, %v18307_v12  ;;  %v18692_v25 = vrot.slane %v13067_v43, 1 }
 0x1bf   :  { %v13262_v45 = vsel %vm1093_vm4, %v1263_v41, %v1265_v49  ;;  %v13267_v11 = vsel %vm1093_vm4, %v1265_v49, %v18687_v6  ;;  %v18690_v49 = vrot.slane %v12823_v1, 7 }
 0x1c0   :  { %v13255_v0 = vpop.permute.xlu1 %258  ;;  %18686 = vst [vmem:[#allocation122_spill] sm:$0xff] %v13262_v45  ;;  %18688 = vst [vmem:[#allocation123_spill] sm:$0xff] %v13267_v11  ;;  %11114 = vset.pattern.permute.xlu1 %v18591_v19  ;;  %v1889_v33 = vsel %vm1011_vm3, %v18689_v18, %v1888_v56  ;;  %v13290_v19 = vsel %vm1011_vm3, %v1019_v4, %v18692_v25  ;;  %v13294_v18 = vmul.f32 %v13251_v52, %v12478_v51 }
 0x1c1   :  { %18684 = vst [vmem:[#allocation76_spill] sm:$0xff] %v13255_v0  ;;  %v13285_v6 = vsel %vm1093_vm4, %v1103_v17, %v18690_v49  ;;  %18693 = vst [vmem:[#allocation125_spill] sm:$0xff] %v13290_v19  ;;  %349 = vperm.xlu1 %11114, %v11579_v53   ;;  %v18694_v56 = vrot.slane %v18635_v60, 7  ;;  %v13304_v17 = vmul.f32 %v13262_v45, %v12624_v62  ;;  %v18696_v25 = vrot.slane %v12871_v37, 7  ;;  %v18731_v62 = vld [vmem:[#allocation93_spill] sm:$0xff] }
 0x1c2   :  { %18691 = vst [vmem:[#allocation124_spill] sm:$0xff] %v13285_v6  ;;  %572 = vperm.xlu0 %11146, %v13044_v39   ;;  %v1302_v4 = vmul.f32 %v13267_v11, %v12637_v13  ;;  %v13315_v53 = vmul.f32 %v13197_v54, %v12509_v9  ;;  %v18698_v60 = vrot.slane %v12823_v1, 7  ;;  %v11148_v50 = vpack.i.bf16 %v1891_v3, %v1889_v33  ;;  %v18714_v11 = vld [vmem:[#allocation13_spill] sm:$0xff] }
 0x1c3   :  { %v13300_v12 = vsel %vm1093_vm4, %v18694_v56, %v1263_v41  ;;  %v13311_v49 = vsel %vm1093_vm4, %v1107_v58, %v18696_v25  ;;  %v1111_v56 = vrot.slane %v12721_v31, 7  ;;  %v13327_v52 = vmul.f32 %v13259_v2, %v12533_v42 }
 0x1c4   :  { %18695 = vst [vmem:[#allocation126_spill] sm:$0xff] %v13300_v12  ;;  %18697 = vst [vmem:[#allocation127_spill] sm:$0xff] %v13311_v49  ;;  %v13320_v41 = vsel %vm1093_vm4, %v18698_v60, %v1107_v58  ;;  %v13331_v25 = vmul.f32 %v13290_v19, %v12509_v9  ;;  %v1794_v54 = vrot.slane %v13271_v32, 2  ;;  %v18701_v1 = vrot.slane %v13231_v26, 1 }
 0x1c5   :  { %18699 = vst [vmem:[#allocation128_spill] sm:$0xff] %v13320_v41  ;;  %v13323_v0 = vpop.permute.xlu1 %442  ;;  %v18702_v58 = vrot.slane %v12886_v29, 1  ;;  %v13341_v31 = vmul.f32 %v13285_v6, %v12580_v61  ;;  %v13345_v33 = vmul.f32 %v13300_v12, %v12512_v30  ;;  %v13349_v3 = vmul.f32 %v13311_v49, %v12516_v22  ;;  %353 = vperm.xlu1 %11114, %v13085_v10  }
 0x1c6   :  { %18700 = vst [vmem:[#allocation129_spill] sm:$0xff] %v13323_v0  ;;  %v1023_v32 = vrot.slane %v12602_v28, 1  ;;  %11149 = vrot.lane.b32.xlu0 %v11148_v50, %s11615_s30  ;;  %v18703_v19 = vrot.slane %v12682_v48, 7  ;;  %v1025_v2 = vrot.slane %v12648_v63, 1  ;;  %v18705_v28 = vrot.slane %v12871_v37, 7 }
 0x1c7   :  { %v1883_v60 = vsel %vm1011_vm3, %v18702_v58, %v18701_v1  ;;  %v1792_v1 = vrot.slane %v1302_v4, 2  ;;  %v13357_v58 = vmul.f32 %v13320_v41, %v12631_v7  ;;  %v18707_v29 = vrot.slane %v12680_v55, 1  ;;  %v13373_v41 = vpop.permute.xlu0 %146 }
 0x1c8   :  { %v13361_v6 = vmul.f32 0.0, %v18703_v19  ;;  %v13368_v50 = vsel %vm1093_vm4, %v18705_v28, %v1111_v56  ;;  %18708 = vst [vmem:[#allocation132_spill] sm:$0xff] %v13373_v41  ;;  %v1385_v48 = vmul.f32 0.0, %v12748_v34  ;;  %v1113_v19 = vrot.slane %v12810_v46, 7  ;;  %v13391_v34 = vld [vmem:[%s18446_s2 + $0x70] sm:$0xff]  ;;  %v13398_v46 = vld [vmem:[%s18167_s6 + $0x100] sm:$0xff]  }
 0x1c9   :  { %18706 = vst [vmem:[#allocation131_spill] sm:$0xff] %v13368_v50  ;;  %v11120_v4 = vpack.i.bf16 %v18707_v29, %v1883_v60  ;;  %v1795_v49 = vsel %vm721_vm1, %v1792_v1, %v1794_v54  ;;  %v1581_v28 = vrot.slane %v13349_v3, 2  ;;  %v18710_v55 = vrot.slane %v13067_v43, 1  ;;  %11130 = vset.pattern.permute.xlu1 %v18630_v20  ;;  %10735 = vmatprep.subr.bf16.mxu1 %v13398_v46 }
 0x1ca   :  { %18704 = vst [vmem:[#allocation130_spill] sm:$0xff] %v13361_v6  ;;  %v13378_v45 = vpop.permute.xlu1 %142  ;;  %575 = vperm.xlu0 %11146, %v13391_v34   ;;  %v13404_v29 = vmul.f32 %v13368_v50, %v12471_v47  ;;  %v13415_v63 = vmul.f32 %v12938_v40, %v12659_v24  ;;  %v1027_v3 = vrot.slane %v18714_v11, 1  ;;  %v13419_v50 = vrot.slane %v1385_v48, 1 }
 0x1cb   :  { %18709 = vst [vmem:[#allocation133_spill] sm:$0xff] %v13378_v45  ;;  %v13386_v60 = vsel %vm1011_vm3, %v18710_v55, %v1023_v32  ;;  %11121 = vrot.lane.b32.xlu1 %v11120_v4, %s11615_s30  ;;  %v18712_v55 = vrot.slane %v13304_v17, 2  ;;  %v13411_v4 = vsel %vm1011_vm3, %v1023_v32, %v1025_v2  ;;  %v13422_v12 = vsel %vm1093_vm4, %v1111_v56, %v1113_v19  ;;  %v18719_v32 = vld [vmem:[#allocation30_spill] sm:$0xff]  ;;  %v10990_v24 = vpop.permute.xlu0 %10989  ;;  %v11581_v56 = vld [vmem:[%s18446_s2 + $0x30] sm:$0xff] }
 0x1cc   :  { %18711 = vst [vmem:[#allocation134_spill] sm:$0xff] %v13386_v60  ;;  %18713 = vst [vmem:[#allocation135_spill] sm:$0xff] %v13411_v4  ;;  %v18717_v47 = vrot.slane %v12936_v57, 7  ;;  %v13434_v11 = vmul.f32 %v13386_v60, %v12533_v42  ;;  %v10992_v48 = vunpack.i.h.bf16 %v10990_v24  ;;  %v1583_v60 = vrot.slane %v13404_v29, 2  ;;  %v18740_v45 = vld [vmem:[#allocation80_spill] sm:$0xff] }
 0x1cd   :  { %v1793_v37 = vsel %vm721_vm1, %v18712_v55, %v1792_v1  ;;  %18715 = vst [vmem:[#allocation13_spill] sm:$0xff] %v13419_v50  ;;  %18716 = vst [vmem:[#allocation136_spill] sm:$0xff] %v13422_v12  ;;  %v13430_v55 = vrot.slane %v18719_v32, 1  ;;  %v13445_v32 = vmul.f32 %v13411_v4, %v12580_v61  ;;  %v18723_v0 = vrot.slane %v13361_v6, 2  ;;  %v18730_v4 = vld [vmem:[#allocation85_spill] sm:$0xff] }
 0x1ce   :  { %v11164_v43 = vpack.i.bf16 %v1795_v49, %v1793_v37  ;;  %v13427_v1 = vsel %vm1093_vm4, %v1113_v19, %v18717_v47  ;;  %v18721_v49 = vld [vmem:[#allocation96_spill] sm:$0xff]  ;;  %v10991_v47 = vunpack.i.l.bf16 %v10990_v24  ;;  %v18726_v41 = vmov 1  }
 0x1cf   :  { %18718 = vst [vmem:[#allocation137_spill] sm:$0xff] %v13427_v1  ;;  %18720 = vst [vmem:[#allocation30_spill] sm:$0xff] %v13430_v55  ;;  %v1308_v37 = vrot.slane %v18721_v49, 1  ;;  %551 = vperm.xlu1 %11130, %v11581_v56   ;;  %v13441_v19 = vpop.permute.xlu1 %333  ;;  %v13451_v49 = vsel %vm721_vm1, %v1794_v54, %v18723_v0  ;;  %11335 = vset.pattern.permute.xlu0 %v18726_v41  ;;  %v13456_v56 = vsel %vm1011_vm3, %v1025_v2, %v1027_v3 }
 0x1d0   :  { %11165 = vrot.lane.b32.xlu0 %v11164_v43, %s11615_s30  ;;  %18722 = vst [vmem:[#allocation96_spill] sm:$0xff] %v13441_v19  ;;  %18724 = vst [vmem:[#allocation138_spill] sm:$0xff] %v13451_v49  ;;  %v18725_v43 = vld [vmem:[#allocation101_spill] sm:$0xff]  ;;  %v18728_v24 = vrot.slane %v13077_v16, 1  ;;  %v1152_v29 = vmul.f32 %v13422_v12, %v18730_v4  ;;  %v13467_v6 = vmul.f32 %v13427_v1, %v12582_v23  ;;  %v18732_v2 = vrot.slane %v18731_v62, 1  ;;  %v18738_v49 = vld [vmem:[#allocation110_spill] sm:$0xff] }
 0x1d1   :  { %18727 = vst [vmem:[#allocation101_spill] sm:$0xff] %v13456_v56  ;;  %v13490_v0 = vsel %vm822_vm2, %v13136_v21, %v10991_v47  ;;  %v1380_v13 = vmul.f32 %v12507_v15, %v18740_v45  ;;  %v18743_v47 = vrot.slane %v18725_v43, 1  ;;  %v18746_v45 = vrot.slane %v13357_v58, 2 }
 0x1d2   :  { %v13461_v19 = vsel %vm1011_vm3, %v1027_v3, %v18728_v24  ;;  %v13476_v16 = vsel %vm1011_vm3, %v13430_v55, %v18732_v2  ;;  %v18734_v3 = vrot.slane %v13148_v36, 2  ;;  %v18735_v12 = vmov %v18732_v2  ;;  %18737 = vst [vmem:[#allocation141_spill] sm:$0xff] %v13490_v0 }
 0x1d3   :  { %18729 = vst [vmem:[#allocation139_spill] sm:$0xff] %v13461_v19  ;;  %18733 = vst [vmem:[#allocation93_spill] sm:$0xff] %v13476_v16  ;;  %v13485_v1 = vsel %vm1011_vm3, %v18735_v12, %v1308_v37  ;;  %557 = vperm.xlu1 %11130, %v18738_v49   ;;  %v13493_v2 = vpop.permute.xlu1 %337  ;;  %v13505_v12 = vmul.f32 %v13456_v56, %v12631_v7  ;;  %v13514_v49 = vsel %vm1011_vm3, %v1308_v37, %v18743_v47 }
 0x1d4   :  { %v1568_v24 = vsel %vm721_vm1, %v13136_v21, %v18734_v3  ;;  %18736 = vst [vmem:[#allocation140_spill] sm:$0xff] %v13485_v1  ;;  %18739 = vst [vmem:[#allocation110_spill] sm:$0xff] %v13493_v2  ;;  %v18741_v3 = vrot.slane %v13415_v63, 1  ;;  %v13523_v56 = vmul.f32 %v13476_v16, %v12476_v59  ;;  %v13532_v37 = vsel %vm721_vm1, %v18746_v45, %v1581_v28 }
 0x1d5   :  { %v2032_v54 = vsel %vm822_vm2, %v1568_v24, %v10992_v48  ;;  %v13509_v48 = vmul.f32 %v13461_v19, %v12516_v22  ;;  %18744 = vst [vmem:[#allocation143_spill] sm:$0xff] %v13514_v49  ;;  %v1585_v24 = vrot.slane %v1152_v29, 2  ;;  %v13527_v19 = vmul.f32 %v13485_v1, %v12478_v51  ;;  %v13537_v47 = vpop.permute.xlu0 %11009 }
 0x1d6   :  { %v13501_v62 = vsel %vm1011_vm3, %v18741_v3, %v13419_v50  ;;  %v13519_v3 = vmul.f32 %v13430_v55, %v12393_v44  ;;  %v13535_v29 = vsel %vm721_vm1, %v1581_v28, %v1583_v60  ;;  %v2083_v21 = vpack.c.bf16 %v2032_v54, %v13490_v0  ;;  %v18748_v55 = vld [vmem:[#allocation102_spill] sm:$0xff]  ;;  %v18752_v50 = vld [vmem:[#allocation99_spill] sm:$0xff]  ;;  %v18754_v0 = vld [vmem:[#allocation52_spill] sm:$0xff] }
 0x1d7   :  { %18742 = vst [vmem:[#allocation142_spill] sm:$0xff] %v13509_v48  ;;  %18745 = vst [vmem:[#allocation144_spill] sm:$0xff] %v13527_v19  ;;  %v13542_v16 = vmul.f32 %v13514_v49, %v12509_v9  ;;  %560 = vperm.xlu1 %11130, %v18748_v55   ;;  %v1884_v1 = vrot.slane %v1380_v13, 1  ;;  %v10995_v22 = vpop.permute.xlu1 %10994  ;;  %v18749_v2 = vrot.slane %v13162_v14, 2  ;;  %v18750_v45 = vrot.slane %v13148_v36, 2  ;;  %v18757_v36 = vld [vmem:[#allocation103_spill] sm:$0xff] }
 0x1d8   :  { %v18751_v28 = vrot.slane %v13216_v5, 2  ;;  %v18753_v59 = vrot.slane %v18752_v50, 2  ;;  %v1117_v49 = vrot.slane %v18754_v0, 7  ;;  %v10997_v41 = vunpack.i.h.bf16 %v10995_v22 }
 0x1d9   :  { %18747 = vst [vmem:[#allocation145_spill] sm:$0xff] %v13542_v16  ;;  %v1570_v7 = vsel %vm721_vm1, %v18750_v45, %v18749_v2  ;;  %v10996_v40 = vunpack.i.l.bf16 %v10995_v22  ;;  %v18755_v13 = vrot.slane %v13235_v35, 2  ;;  %v18758_v45 = vrot.slane %v13174_v27, 2 }
 0x1da   :  { %v13555_v54 = vsel %vm721_vm1, %v18753_v59, %v18751_v28  ;;  %v18756_v55 = vmov %v18751_v28  ;;  %v18759_v50 = vmov %v18749_v2  ;;  %v18760_v28 = vrot.slane %v13327_v52, 2 }
 0x1db   :  { %v13563_v23 = vsel %vm721_vm1, %v18756_v55, %v18755_v13  ;;  %v1572_v59 = vsel %vm721_vm1, %v18759_v50, %v18758_v45  ;;  %v18761_v0 = vrot.slane %v13315_v53, 2  ;;  %v18763_v5 = vmov %v18758_v45  ;;  %v13581_v55 = vpop.permute.xlu0 %11019 }
 0x1dc   :  { %v2033_v2 = vsel %vm822_vm2, %v1570_v7, %v10996_v40  ;;  %v2034_v14 = vsel %vm822_vm2, %v1572_v59, %v10997_v41  ;;  %v2223_v45 = vshrl.u32 %v2083_v21, 16  ;;  %v2226_v50 = vshll.u32 %v2083_v21, 16  ;;  %v11000_v21 = vpop.permute.xlu1 %10999  ;;  %v18773_v59 = vld [vmem:[#allocation104_spill] sm:$0xff] }
 0x1dd   :  { %v1576_v22 = vsel %vm721_vm1, %v18761_v0, %v18760_v28  ;;  %v18762_v19 = vmov %v18761_v0  ;;  %v18764_v16 = vmov 6   ;;  %v18765_v48 = vrot.slane %v13231_v26, 1 }
 0x1de   :  { %v1574_v13 = vsel %vm721_vm1, %v18763_v5, %v18762_v19  ;;  %11131 = vset.pattern.permute.xlu1 %v18764_v16  ;;  %v18766_v53 = vrot.slane %v13206_v38, 1  ;;  %v2088_v0 = vpack.c.bf16 %v2034_v14, %v2033_v2  ;;  %v18767_v7 = vrot.slane %v12936_v57, 7 }
 0x1df   :  { %v1885_v28 = vsel %vm1011_vm3, %v18765_v48, %v1884_v1  ;;  %460 = vperm.xlu1 %11131, %v13044_v39   ;;  %v18769_v26 = vrot.slane %v13341_v31, 2  ;;  %v18770_v41 = vrot.slane %v13327_v52, 2  ;;  %v13615_v57 = vsel %vm721_vm1, %v1583_v60, %v1585_v24  ;;  %v11030_v60 = vpop.permute.xlu0 %11029 }
 0x1e0   :  { %v1887_v27 = vsel %vm1011_vm3, %v1884_v1, %v18766_v53  ;;  %v13597_v40 = vsel %vm1093_vm4, %v18767_v7, %v1117_v49  ;;  %v18771_v1 = vrot.slane %v13357_v58, 2  ;;  %v18774_v39 = vrot.slane %v18773_v59, 7  ;;  %v18778_v7 = vld [vmem:[#allocation47_spill] sm:$0xff] }
 0x1e1   :  { %18768 = vst [vmem:[#allocation102_spill] sm:$0xff] %v13597_v40  ;;  %v13605_v38 = vsel %vm721_vm1, %v18770_v41, %v18769_v26  ;;  %v18772_v48 = vmov %v18769_v26  ;;  %v18776_v52 = vrot.slane %v13467_v6, 2  ;;  %v2231_v53 = vshrl.u32 %v2088_v0, 16 }
 0x1e2   :  { %v13612_v2 = vsel %vm721_vm1, %v18772_v48, %v18771_v1  ;;  %v13620_v5 = vsel %vm1093_vm4, %v1117_v49, %v18774_v39  ;;  %v2234_v58 = vshll.u32 %v2088_v0, 16  ;;  %v18777_v31 = vrot.slane %v18757_v36, 1  ;;  %v18781_v49 = vld [vmem:[#allocation111_spill] sm:$0xff] }
 0x1e3   :  { %18775 = vst [vmem:[#allocation99_spill] sm:$0xff] %v13620_v5  ;;  %v13625_v14 = vsel %vm721_vm1, %v1585_v24, %v18776_v52  ;;  %v18779_v26 = vrot.slane %v18778_v7, 1  ;;  %v11134_v1 = vpack.i.bf16 %v1887_v27, %v1885_v28  ;;  %v2225_v48 = vrot.slane %v2223_v45, 3 }
 0x1e4   :  { %v2228_v59 = vrot.slane %v2226_v50, 4  ;;  %v13636_v39 = vmul.f32 %v12509_v9, %v18781_v49  ;;  %v1154_v24 = vmul.f32 %v13597_v40, %v12507_v15  ;;  %v2233_v52 = vrot.slane %v2231_v53, 3  ;;  %v18785_v40 = vld [vmem:[#allocation33_spill] sm:$0xff] }
 0x1e5   :  { %v13632_v41 = vsel %vm1011_vm3, %v18779_v26, %v18777_v31  ;;  %v18782_v0 = vrot.slane %v13304_v17, 2  ;;  %v18783_v19 = vrot.slane %v13345_v33, 2  ;;  %v13649_v28 = vmul.f32 %v13620_v5, %v12512_v30  ;;  %v18787_v49 = vld [vmem:[#allocation109_spill] sm:$0xff] }
 0x1e6   :  { %18780 = vst [vmem:[#allocation52_spill] sm:$0xff] %v13632_v41  ;;  %v18784_v45 = vmov 4   ;;  %v11002_v50 = vunpack.i.h.bf16 %v11000_v21  ;;  %v11001_v27 = vunpack.i.l.bf16 %v11000_v21  ;;  %v2236_v31 = vrot.slane %v2234_v58, 4  ;;  %v11005_v21 = vpop.permute.xlu1 %11004 }
 0x1e7   :  { %v13645_v7 = vsel %vm721_vm1, %v18783_v19, %v18782_v0  ;;  %11132 = vset.pattern.permute.xlu1 %v18784_v45  ;;  %v13654_v26 = vmul.f32 %v13632_v41, %v18730_v4  ;;  %v11032_v53 = vunpack.i.h.bf16 %v11030_v60  ;;  %v11031_v17 = vunpack.i.l.bf16 %v11030_v60  ;;  %v18788_v41 = vld [vmem:[#allocation24_spill] sm:$0xff]  ;;  %v18790_v60 = vld [vmem:[#allocation50_spill] sm:$0xff] }
 0x1e8   :  { %357 = vperm.xlu1 %11132, %v18785_v40   ;;  %v18786_v0 = vrot.slane %v13235_v35, 2  ;;  %v13666_v9 = vmul.f32 %v12478_v51, %v18787_v49  ;;  %v2229_v58 = vor.u32 %v2228_v59, %v2225_v48  ;;  %v13668_v30 = vor.u32 %v2236_v31, %v2233_v52  ;;  %v18791_v35 = vld [vmem:[#allocation118_spill] sm:$0xff] }
 0x1e9   :  { %v13674_v4 = vmul.f32 %v12393_v44, %v18788_v41  ;;  %v1589_v33 = vrot.slane %v1154_v24, 2  ;;  %v18366_v15 = vrot.slane %v13649_v28, 2  ;;  %v2036_v49 = vsel %vm822_vm2, %v1576_v22, %v11002_v50 }
 0x1ea   :  { %v13662_v5 = vsel %vm721_vm1, %v18786_v0, %v18783_v19  ;;  %v18789_v19 = vld [vmem:[#allocation112_spill] sm:$0xff]  ;;  %v2035_v48 = vsel %vm822_vm2, %v1574_v13, %v11001_v27  ;;  %v2238_v59 = vsel %vm2204_vm5, %v2229_v58, %v13668_v30  ;;  %v11012_v52 = vunpack.i.h.bf16 %v13537_v47  ;;  %v13692_v50 = vpop.permute.xlu1 %11014  ;;  %v18796_v58 = vld [vmem:[#allocation94_spill] sm:$0xff] }
 0x1eb   :  { %v1312_v0 = vrot.slane %v18789_v19, 1  ;;  %v11011_v31 = vunpack.i.l.bf16 %v13537_v47  ;;  %v2017_v44 = vsel %vm822_vm2, %v18790_v60, %v11032_v53  ;;  %v2016_v24 = vsel %vm822_vm2, %v18791_v35, %v11031_v17  ;;  %2909 = vmatprep.mubr.bf16.mxu1 %v2238_v59 }
 0x1ec   :  { %11135 = vrot.lane.b32.xlu1 %v11134_v1, %s11615_s30  ;;  %v18367_v19 = vrot.slane %v13666_v9, 1  ;;  %v11007_v22 = vunpack.i.h.bf16 %v11005_v21  ;;  %v11006_v13 = vunpack.i.l.bf16 %v11005_v21  ;;  %v18792_v27 = vrot.slane %v13415_v63, 1 }
 0x1ed   :  { %11144 = vset.pattern.permute.xlu1 %v18630_v20  ;;  %v18793_v47 = vrot.slane %v13211_v8, 1  ;;  %v18794_v17 = vrot.slane %v18725_v43, 1  ;;  %v18797_v60 = vrot.slane %v18796_v58, 1  ;;  %v2093_v21 = vpack.c.bf16 %v2036_v49, %v2035_v48 }
 0x1ee   :  { %v18799_v8 = vrot.slane %v13636_v39, 1  ;;  %v2039_v49 = vsel %vm822_vm2, %v13532_v37, %v11011_v31  ;;  %v18801_v48 = vrot.slane %v13467_v6, 2  ;;  %v13734_v63 = vsel %vm721_vm1, %v1589_v33, %v18366_v15 }
 0x1ef   :  { %v13699_v53 = vsel %vm1011_vm3, %v18793_v47, %v18792_v27  ;;  %v13704_v1 = vsel %vm1011_vm3, %v18794_v17, %v1312_v0  ;;  %v13709_v35 = vsel %vm1011_vm3, %v1312_v0, %v18797_v60  ;;  %v18800_v27 = vld [vmem:[#allocation45_spill] sm:$0xff]  ;;  %v2087_v17 = vpack.c.bf16 %v2017_v44, %v2016_v24 }
 0x1f0   :  { %18795 = vst [vmem:[#allocation103_spill] sm:$0xff] %v13704_v1  ;;  %18798 = vst [vmem:[#allocation104_spill] sm:$0xff] %v13709_v35  ;;  %v13719_v43 = vsel %vm1011_vm3, %v18367_v19, %v18799_v8  ;;  %v18368_v47 = vrot.slane %v18800_v27, 1  ;;  %v2040_v0 = vsel %vm822_vm2, %v13535_v29, %v11012_v52  ;;  %v13729_v60 = vsel %vm721_vm1, %v18801_v48, %v1589_v33  ;;  %v11050_v8 = vpop.permute.xlu0 %11049  ;;  %v11025_v52 = vpop.permute.xlu1 %11024 }
 0x1f1   :  { %v18802_v44 = vpack.i.bf16 %v13563_v23, %v13555_v54  ;;  %v13742_v29 = vmul.f32 %v13704_v1, %v12533_v42  ;;  %v13746_v6 = vmul.f32 %v13709_v35, %v12580_v61  ;;  %v2037_v37 = vsel %vm822_vm2, %v13605_v38, %v11006_v13 }
 0x1f2   :  { %v2038_v33 = vsel %vm822_vm2, %v13612_v2, %v11007_v22  ;;  %v11027_v31 = vunpack.i.h.bf16 %v11025_v52  ;;  %v11026_v24 = vunpack.i.l.bf16 %v11025_v52  ;;  %v2300_v48 = vshrl.u32 %v2093_v21, 16  ;;  %v18804_v22 = vld [vmem:[#allocation114_spill] sm:$0xff]  ;;  %v18805_v52 = vld [vmem:[#allocation113_spill] sm:$0xff] }
 0x1f3   :  { %11140 = vrot.lane.b32.xlu1 %v18802_v44, %s11615_s30  ;;  %v2303_v23 = vshll.u32 %v2093_v21, 16  ;;  %v18803_v54 = vrot.slane %v18757_v36, 1  ;;  %v13759_v15 = vpack.c.bf16 %v2040_v0, %v2039_v49  ;;  %v2214_v19 = vshrl.u32 %v2087_v17, 16 }
 0x1f4   :  { %v2217_v59 = vshll.u32 %v2087_v17, 16  ;;  %v11052_v38 = vunpack.i.h.bf16 %v11050_v8  ;;  %v2098_v2 = vpack.c.bf16 %v2038_v33, %v2037_v37  ;;  %v2015_v13 = vsel %vm822_vm2, %v18804_v22, %v11027_v31  ;;  %v11035_v49 = vpop.permute.xlu1 %11034  ;;  %v13771_v17 = vpop.permute.xlu0 %11064 }
 0x1f5   :  { %v13757_v44 = vsel %vm1011_vm3, %v18803_v54, %v18368_v47  ;;  %v13766_v21 = vsel %vm822_vm2, %v18805_v52, %v11026_v24  ;;  %v11051_v47 = vunpack.i.l.bf16 %v11050_v8  ;;  %v11037_v35 = vunpack.i.h.bf16 %v11035_v49 }
 0x1f6   :  { %18806 = vst [vmem:[#allocation47_spill] sm:$0xff] %v13766_v21  ;;  %v2082_v0 = vpack.c.bf16 %v2015_v13, %v13766_v21  ;;  %v2302_v37 = vrot.slane %v2300_v48, 3  ;;  %v2305_v33 = vrot.slane %v2303_v23, 4  ;;  %v2216_v22 = vrot.slane %v2214_v19, 3 }
 0x1f7   :  { %566 = vperm.xlu1 %11144, %v13085_v10   ;;  %v11036_v10 = vunpack.i.l.bf16 %v11035_v49  ;;  %v2219_v41 = vrot.slane %v2217_v59, 4  ;;  %v2066_v24 = vsel %vm822_vm2, %v13523_v56, %v11052_v38  ;;  %v2019_v13 = vsel %vm822_vm2, %v13331_v25, %v11037_v35 }
 0x1f8   :  { %v2206_v1 = vshrl.u32 %v2082_v0, 16  ;;  %v2209_v31 = vshll.u32 %v2082_v0, 16  ;;  %v2345_v52 = vshrl.u32 %v2098_v2, 16  ;;  %v2065_v48 = vsel %vm822_vm2, %v13519_v3, %v11051_v47  ;;  %v11040_v49 = vpop.permute.xlu1 %11039  ;;  %v11450_v47 = vld [vmem:[%s18167_s6 + $0x108] sm:$0xff]  }
 0x1f9   :  { %v2018_v8 = vsel %vm822_vm2, %v13294_v18, %v11036_v10  ;;  %v11042_v59 = vunpack.i.h.bf16 %v11040_v49  ;;  %v11041_v54 = vunpack.i.l.bf16 %v11040_v49  ;;  %v13782_v36 = vor.u32 %v2305_v33, %v2302_v37  ;;  %v13784_v10 = vpop.permute.xlu0 %11079  ;;  %v18808_v49 = vld [vmem:[#allocation142_spill] sm:$0xff] }
 0x1fa   :  { %v2092_v23 = vpack.c.bf16 %v2019_v13, %v2018_v8  ;;  %v2208_v0 = vrot.slane %v2206_v1, 3  ;;  %v2211_v19 = vrot.slane %v2209_v31, 4  ;;  %v2348_v56 = vshll.u32 %v2098_v2, 16 }
 0x1fb   :  { %569 = vperm.xlu1 %11144, %v18785_v40   ;;  %v2220_v38 = vor.u32 %v2219_v41, %v2216_v22  ;;  %v11016_v25 = vunpack.i.l.bf16 %v13692_v50  ;;  %v2021_v3 = vsel %vm822_vm2, %v13445_v32, %v11042_v59  ;;  %v2020_v1 = vsel %vm822_vm2, %v13434_v11, %v11041_v54  ;;  %v18807_v54 = vld [vmem:[#allocation37_spill] sm:$0xff] }
 0x1fc   :  { %v2212_v40 = vor.u32 %v2211_v19, %v2208_v0  ;;  %v2291_v21 = vshrl.u32 %v2092_v23, 16  ;;  %v2294_v18 = vshll.u32 %v2092_v23, 16  ;;  %v2347_v35 = vrot.slane %v2345_v52, 3  ;;  %v11045_v2 = vpop.permute.xlu1 %11044 }
 0x1fd   :  { %v2097_v41 = vpack.c.bf16 %v2021_v3, %v2020_v1  ;;  %v11046_v31 = vunpack.i.l.bf16 %v11045_v2  ;;  %v2307_v11 = vsel %vm2204_vm5, %v13668_v30, %v13782_v36  ;;  %v2350_v32 = vrot.slane %v2348_v56, 4  ;;  %v11451_v30 = vld [vmem:[%s18167_s6 + $0x110] sm:$0xff]  }
 0x1fe   :  { %v2221_v22 = vsel %vm2204_vm5, %v2212_v40, %v2220_v38  ;;  %v2293_v37 = vrot.slane %v2291_v21, 3  ;;  %v2296_v33 = vrot.slane %v2294_v18, 4  ;;  %v1037_v8 = vrot.slane %v18807_v54, 1  ;;  %v13823_v18 = vpop.permute.xlu0 %11101 }
 0x1ff   :  { %11145 = vset.pattern.permute.xlu1 %v18764_v16  ;;  %v11047_v16 = vunpack.i.h.bf16 %v11045_v2  ;;  %2910 = vmatmul.mubr.bf16.vlgmr.msra.gmra.mrb[0].mxu1 %v2221_v22  ;;  %v2085_v13 = vpack.c.bf16 %v2066_v24, %v2065_v48  ;;  %v11017_v52 = vunpack.i.h.bf16 %v13692_v50  ;;  %v2390_v23 = vshrl.u32 %v13759_v15, 16  ;;  %v18811_v22 = vld [vmem:[#allocation145_spill] sm:$0xff] }
 0x200   :  { %463 = vperm.xlu1 %11145, %v13391_v34   ;;  %2917 = vmatprep.mubr.bf16.mxu1 %v2307_v11  ;;  %v2022_v21 = vsel %vm822_vm2, %v13505_v12, %v11046_v31  ;;  %v2336_v19 = vshrl.u32 %v2097_v41, 16  ;;  %v2339_v59 = vshll.u32 %v2097_v41, 16  ;;  %v18809_v50 = vunpack.i.h.bf16 %v13581_v55  ;;  %v11055_v48 = vpop.permute.xlu1 %11054 }
 0x201   :  { %10736 = vmatpush3.bf16.msra.mxu1 %v13398_v46  ;;  %v2023_v0 = vsel %vm822_vm2, %v18808_v49, %v11047_v16  ;;  %v18810_v46 = vunpack.i.l.bf16 %v13581_v55  ;;  %v13820_v56 = vor.u32 %v2296_v33, %v2293_v37  ;;  %v2393_v40 = vshll.u32 %v13759_v15, 16  ;;  %v18812_v37 = vld [vmem:[#allocation144_spill] sm:$0xff] }
 0x202   :  { %10737 = vmatprep.subr.bf16.mxu1 %v11450_v47  ;;  %v2044_v24 = vsel %vm822_vm2, %v13734_v63, %v18809_v50  ;;  %v2041_v3 = vsel %vm822_vm2, %v13615_v57, %v11016_v25  ;;  %v11057_v63 = vunpack.i.h.bf16 %v11055_v48  ;;  %v11056_v1 = vunpack.i.l.bf16 %v11055_v48 }
 0x203   :  { %v2043_v12 = vsel %vm822_vm2, %v13729_v60, %v18810_v46  ;;  %v2351_v55 = vor.u32 %v2350_v32, %v2347_v35  ;;  %v2042_v60 = vsel %vm822_vm2, %v13625_v14, %v11017_v52  ;;  %v2102_v41 = vpack.c.bf16 %v2023_v0, %v2022_v21  ;;  %v13839_v32 = vpop.permute.xlu0 %533 }
 0x204   :  { %11147 = vset.pattern.permute.xlu1 %v18784_v45  ;;  %v2257_v45 = vshrl.u32 %v2085_v13, 16  ;;  %v2260_v2 = vshll.u32 %v2085_v13, 16  ;;  %v2068_v15 = vsel %vm822_vm2, %v18811_v22, %v11057_v63  ;;  %v2067_v33 = vsel %vm822_vm2, %v18812_v37, %v11056_v1  ;;  %v11060_v35 = vpop.permute.xlu1 %11059  ;;  %v18813_v13 = vld [vmem:[#allocation35_spill] sm:$0xff]  ;;  %v18817_v22 = vld [vmem:[#allocation58_spill] sm:$0xff]  ;;  %v18818_v37 = vld [vmem:[#allocation76_spill] sm:$0xff] }
 0x205   :  { %365 = vperm.xlu1 %11147, %v13391_v34   ;;  %10738 = vmatpush3.bf16.msra.mxu1 %v11450_v47  ;;  %v2338_v16 = vrot.slane %v2336_v19, 3  ;;  %v2341_v57 = vrot.slane %v2339_v59, 4  ;;  %v11452_v34 = vld [vmem:[%s18167_s6 + $0x118] sm:$0xff]   ;;  %v2090_v25 = vpack.c.bf16 %v2068_v15, %v2067_v33  ;;  %v2298_v14 = vsel %vm2204_vm5, %v2220_v38, %v13820_v56 }
 0x206   :  { %10739 = vmatprep.subr.bf16.mxu1 %v11451_v30  ;;  %v2392_v31 = vrot.slane %v2390_v23, 3  ;;  %v2395_v47 = vrot.slane %v2393_v40, 4  ;;  %v2108_v11 = vpack.c.bf16 %v2042_v60, %v2041_v3  ;;  %v11062_v52 = vunpack.i.h.bf16 %v11060_v35  ;;  %v18814_v40 = vld [vmem:[#allocation46_spill] sm:$0xff] }
 0x207   :  { %v11061_v21 = vunpack.i.l.bf16 %v11060_v35  ;;  %2918 = vmatmul.mubr.bf16.gmra.mrb[4].mxu1 %v2298_v14  ;;  %v2352_v49 = vsel %vm2204_vm5, %v13782_v36, %v2351_v55  ;;  %v2259_v0 = vrot.slane %v2257_v45, 3  ;;  %v2262_v19 = vrot.slane %v2260_v2, 4 }
 0x208   :  { %2925 = vmatprep.mubr.bf16.mxu1 %v2352_v49  ;;  %v2265_v59 = vshrl.u32 %v2090_v25, 16  ;;  %v2268_v50 = vshll.u32 %v2090_v25, 16  ;;  %v2113_v38 = vpack.c.bf16 %v2044_v24, %v2043_v12  ;;  %v13844_v23 = vor.u32 %v2341_v57, %v2338_v16  ;;  %v13850_v1 = vpop.permute.xlu1 %11069  ;;  %v18820_v49 = vld [vmem:[#allocation83_spill] sm:$0xff] }
 0x209   :  { %369 = vperm.xlu1 %11147, %v18813_v13   ;;  %10740 = vmatpush3.bf16.msra.mxu1 %v11451_v30  ;;  %v2381_v46 = vshrl.u32 %v2102_v41, 16  ;;  %v2384_v48 = vshll.u32 %v2102_v41, 16  ;;  %v2024_v3 = vsel %vm822_vm2, %v18814_v40, %v11061_v21  ;;  %v2025_v63 = vsel %vm822_vm2, %v13654_v26, %v11062_v52  ;;  %v13863_v41 = vpop.permute.xlu0 %542 }
 0x20a   :  { %10741 = vmatprep.subr.bf16.mxu1 %v11452_v34  ;;  %v2267_v36 = vrot.slane %v2265_v59, 3  ;;  %v2270_v60 = vrot.slane %v2268_v50, 4  ;;  %v18815_v30 = vrot.slane %v18800_v27, 1  ;;  %v18816_v12 = vpack.i.bf16 %v13645_v7, %v13662_v5 }
 0x20b   :  { %v13865_v45 = vor.u32 %v2395_v47, %v2392_v31  ;;  %v2435_v26 = vshrl.u32 %v2108_v11, 16  ;;  %v2438_v2 = vshll.u32 %v2108_v11, 16  ;;  %v13869_v15 = vmul.f32 %v12580_v61, %v18817_v22 }
 0x20c   :  { %v13857_v24 = vsel %vm1011_vm3, %v18815_v30, %v1037_v8  ;;  %v13872_v27 = vrot.slane %v18818_v37, 7  ;;  %v2263_v33 = vor.u32 %v2262_v19, %v2259_v0  ;;  %v13875_v16 = vor.u32 %v2270_v60, %v2267_v36  ;;  %v11075_v35 = vpop.permute.xlu1 %11074  ;;  %v18821_v19 = vld [vmem:[#allocation73_spill] sm:$0xff] }
 0x20d   :  { %11154 = vrot.lane.b32.xlu1 %v18816_v12, %s11615_s30  ;;  %10742 = vmatpush3.bf16.msra.mxu1 %v11452_v34  ;;  %v11082_v5 = vunpack.i.h.bf16 %v13784_v10  ;;  %v2107_v7 = vpack.c.bf16 %v2025_v63, %v2024_v3  ;;  %v2397_v57 = vsel %vm2204_vm5, %v2351_v55, %v13865_v45  ;;  %v2480_v25 = vshrl.u32 %v2113_v38, 16  ;;  %v13886_v34 = vpop.permute.xlu0 %548  ;;  %v18822_v63 = vld [vmem:[#allocation105_spill] sm:$0xff] }
 0x20e   :  { %18819 = vst [vmem:[#allocation33_spill] sm:$0xff] %v13872_v27  ;;  %11158 = vset.pattern.permute.xlu1 %v18630_v20  ;;  %v2343_v14 = vsel %vm2204_vm5, %v13820_v56, %v13844_v23  ;;  %v2272_v31 = vsel %vm2204_vm5, %v2263_v33, %v13875_v16  ;;  %v2383_v20 = vrot.slane %v2381_v46, 3  ;;  %v2386_v47 = vrot.slane %v2384_v48, 4 }
 0x20f   :  { %v11077_v11 = vunpack.i.h.bf16 %v11075_v35  ;;  %v11076_v52 = vunpack.i.l.bf16 %v11075_v35  ;;  %2926 = vmatmul.mubr.bf16.gmra.mrb[8].mxu1 %v2343_v14  ;;  %v2437_v21 = vrot.slane %v2435_v26, 3  ;;  %v2440_v55 = vrot.slane %v2438_v2, 4  ;;  %3006 = vmatprep.mubr.bf16.mxu0 %v2272_v31  ;;  %v18827_v31 = vld [vmem:[#allocation90_spill] sm:$0xff] }
 0x210   :  { %v1072_v0 = vmul.f32 %v13757_v44, %v18820_v49  ;;  %v1073_v56 = vmul.f32 %v13857_v24, %v18821_v19  ;;  %v11081_v59 = vunpack.i.l.bf16 %v13784_v10  ;;  %2933 = vmatprep.mubr.bf16.mxu1 %v2397_v57  ;;  %v2483_v50 = vshll.u32 %v2113_v38, 16  ;;  %v18824_v10 = vld [vmem:[#allocation100_spill] sm:$0xff] }
 0x211   :  { %578 = vperm.xlu1 %11158, %v18813_v13   ;;  %v2069_v13 = vsel %vm822_vm2, %v13742_v29, %v11076_v52  ;;  %v2070_v46 = vsel %vm822_vm2, %v13746_v6, %v11077_v11  ;;  %v2426_v48 = vshrl.u32 %v2107_v7, 16  ;;  %v2429_v40 = vshll.u32 %v2107_v7, 16  ;;  %v13915_v33 = vpop.permute.xlu0 %313 }
 0x212   :  { %v18372_v3 = vrot.slane %v13869_v15, 1  ;;  %v18823_v36 = vrot.slane %v18822_v63, 7  ;;  %v13906_v30 = vmul.f32 %v13872_v27, %v18824_v10  ;;  %v2387_v38 = vor.u32 %v2386_v47, %v2383_v20  ;;  %v18828_v20 = vld [vmem:[#allocation66_spill] sm:$0xff] }
 0x213   :  { %v11066_v29 = vunpack.i.l.bf16 %v13771_v17  ;;  %v2027_v12 = vsel %vm822_vm2, %v1073_v56, %v11082_v5  ;;  %v18825_v6 = vpack.i.bf16 %v13501_v62, %v13699_v53  ;;  %v2441_v26 = vor.u32 %v2440_v55, %v2437_v21 }
 0x214   :  { %v13902_v60 = vsel %vm1093_vm4, %v18823_v36, %v13872_v27  ;;  %v2482_v2 = vrot.slane %v2480_v25, 3  ;;  %v2026_v37 = vsel %vm822_vm2, %v1072_v0, %v11081_v59  ;;  %v11072_v7 = vunpack.i.h.bf16 %v13850_v1  ;;  %v18829_v25 = vld [vmem:[#allocation133_spill] sm:$0xff] }
 0x215   :  { %11160 = vrot.lane.b32.xlu1 %v18825_v6, %s11615_s30  ;;  %v2095_v57 = vpack.c.bf16 %v2070_v46, %v2069_v13  ;;  %v2485_v35 = vrot.slane %v2483_v50, 4  ;;  %v18826_v14 = vmov 1   ;;  %v13921_v5 = vmul.f32 %v13902_v60, %v18827_v31  ;;  %v18831_v13 = vld [vmem:[#allocation138_spill] sm:$0xff]  ;;  %v18832_v46 = vld [vmem:[#allocation13_spill] sm:$0xff] }
 0x216   :  { %11334 = vset.pattern.permute.xlu1 %v18826_v14  ;;  %v1225_v62 = vmul.f32 %v18828_v20, %v13915_v33  ;;  %v2428_v53 = vrot.slane %v2426_v48, 3  ;;  %v2431_v47 = vrot.slane %v2429_v40, 4  ;;  %v1039_v11 = vrot.slane %v18829_v25, 1  ;;  %v11085_v40 = vpop.permute.xlu1 %11084 }
 0x217   :  { %v11067_v52 = vunpack.i.h.bf16 %v13771_v17  ;;  %v11071_v21 = vunpack.i.l.bf16 %v13850_v1  ;;  %v2388_v55 = vsel %vm2204_vm5, %v13844_v23, %v2387_v38  ;;  %v18830_v0 = vrot.slane %v13674_v4, 1  ;;  %v13941_v23 = vpop.permute.xlu0 %325 }
 0x218   :  { %v2112_v59 = vpack.c.bf16 %v2027_v12, %v2026_v37  ;;  %v1701_v50 = vrot.slane %v1225_v62, 1  ;;  %v18833_v48 = vpack.i.bf16 %v18831_v13, %v18832_v46  ;;  %2934 = vmatmul.mubr.bf16.gmra.mrb[12].mxu1 %v2388_v55  ;;  %v2442_v17 = vsel %vm2204_vm5, %v13865_v45, %v2441_v26 }
 0x219   :  { %v2048_v56 = vsel %vm822_vm2, %v18830_v0, %v11066_v29  ;;  %v2051_v1 = vsel %vm822_vm2, %v13719_v43, %v11072_v7  ;;  %2941 = vmatprep.mubr.bf16.mxu1 %v2442_v17  ;;  %v2318_v63 = vshrl.u32 %v2095_v57, 16  ;;  %v2321_v36 = vshll.u32 %v2095_v57, 16 }
 0x21a   :  { %11170 = vrot.lane.b32.xlu1 %v18833_v48, %s11615_s30  ;;  %v13943_v29 = vor.u32 %v2485_v35, %v2482_v2  ;;  %v18834_v12 = vmov %v18830_v0  ;;  %v18835_v37 = vrot.slane %v13666_v9, 1  ;;  %v1228_v45 = vmul.f32 %v12533_v42, %v13941_v23 }
 0x21b   :  { %v1702_v6 = vsel %vm1011_vm3, %v18834_v12, %v1701_v50  ;;  %v2432_v62 = vor.u32 %v2431_v47, %v2428_v53  ;;  %v11087_v25 = vunpack.i.h.bf16 %v11085_v40  ;;  %v11086_v57 = vunpack.i.l.bf16 %v11085_v40  ;;  %v13955_v0 = vpop.permute.xlu0 %345 }
 0x21c   :  { %v1704_v14 = vsel %vm1011_vm3, %v1701_v50, %v18835_v37  ;;  %v2049_v43 = vsel %vm822_vm2, %v1702_v6, %v11067_v52  ;;  %v1707_v55 = vrot.slane %v1228_v45, 1  ;;  %v2471_v4 = vshrl.u32 %v2112_v59, 16  ;;  %18836 = vst [vmem:[#allocation112_spill] sm:$0xff] %v13955_v0 }
 0x21d   :  { %v2050_v7 = vsel %vm822_vm2, %v1704_v14, %v11071_v21  ;;  %v2084_v2 = vpack.c.bf16 %v2049_v43, %v2048_v56  ;;  %v2320_v13 = vrot.slane %v2318_v63, 3  ;;  %v2323_v9 = vrot.slane %v2321_v36, 4  ;;  %v18838_v43 = vld [vmem:[#allocation132_spill] sm:$0xff] }
 0x21e   :  { %v2089_v35 = vpack.c.bf16 %v2051_v1, %v2050_v7  ;;  %v2487_v50 = vsel %vm2204_vm5, %v2441_v26, %v13943_v29  ;;  %v2474_v48 = vshll.u32 %v2112_v59, 16  ;;  %v18837_v47 = vrot.slane %v13636_v39, 1 }
 0x21f   :  { %v1710_v21 = vsel %vm1011_vm3, %v1707_v55, %v18372_v3  ;;  %v2240_v1 = vshrl.u32 %v2084_v2, 16  ;;  %v2433_v63 = vsel %vm2204_vm5, %v2387_v38, %v2432_v62  ;;  %v2243_v12 = vshll.u32 %v2084_v2, 16  ;;  %v13968_v6 = vpop.permute.xlu0 %11116 }
 0x220   :  { %v2248_v17 = vshrl.u32 %v2089_v35, 16  ;;  %v2251_v53 = vshll.u32 %v2089_v35, 16  ;;  %v1708_v52 = vsel %vm1011_vm3, %v18837_v47, %v1707_v55  ;;  %v2053_v40 = vsel %vm822_vm2, %v1710_v21, %v11087_v25  ;;  %2942 = vmatmul.mubr.bf16.gmra.mrb[16].mxu1 %v2433_v63  ;;  %v18843_v21 = vld [vmem:[#allocation88_spill] sm:$0xff] }
 0x221   :  { %v2052_v56 = vsel %vm822_vm2, %v1708_v52, %v11086_v57  ;;  %v2242_v39 = vrot.slane %v2240_v1, 3  ;;  %v13970_v37 = vor.u32 %v2323_v9, %v2320_v13  ;;  %2949 = vmatprep.mubr.bf16.mxu1 %v2487_v50  ;;  %v2473_v14 = vrot.slane %v2471_v4, 3  ;;  %v18842_v52 = vld [vmem:[#allocation75_spill] sm:$0xff] }
 0x222   :  { %v2250_v36 = vrot.slane %v2248_v17, 3  ;;  %v2253_v26 = vrot.slane %v2251_v53, 4  ;;  %v2094_v59 = vpack.c.bf16 %v2053_v40, %v2052_v56  ;;  %v2476_v45 = vrot.slane %v2474_v48, 4 }
 0x223   :  { %v13973_v7 = vrot.slane %v18838_v43, 1  ;;  %v1597_v25 = vrot.slane %v13906_v30, 2  ;;  %v2245_v57 = vrot.slane %v2243_v12, 4  ;;  %v1595_v35 = vrot.slane %v13921_v5, 2  ;;  %v13988_v30 = vpop.permute.xlu1 %448  ;;  %v13990_v17 = vpop.permute.xlu0 %11126 }
 0x224   :  { %v2254_v38 = vor.u32 %v2253_v26, %v2250_v36  ;;  %v13980_v2 = vsel %vm1011_vm3, %v1037_v8, %v1039_v11  ;;  %v2309_v55 = vshrl.u32 %v2094_v59, 16  ;;  %v2312_v13 = vshll.u32 %v2094_v59, 16 }
 0x225   :  { %18839 = vst [vmem:[#allocation50_spill] sm:$0xff] %v13973_v7  ;;  %18840 = vst [vmem:[#allocation118_spill] sm:$0xff] %v13980_v2  ;;  %v13984_v4 = vsel %vm1011_vm3, %v1039_v11, %v13973_v7  ;;  %v11104_v9 = vunpack.i.h.bf16 %v13823_v18  ;;  %v11103_v50 = vunpack.i.l.bf16 %v13823_v18  ;;  %v2246_v48 = vor.u32 %v2245_v57, %v2242_v39  ;;  %v18849_v57 = vld [vmem:[#allocation110_spill] sm:$0xff] }
 0x226   :  { %18841 = vst [vmem:[#allocation94_spill] sm:$0xff] %v13984_v4  ;;  %v2325_v54 = vsel %vm2204_vm5, %v13875_v16, %v13970_v37  ;;  %v2311_v8 = vrot.slane %v2309_v55, 3  ;;  %v2314_v5 = vrot.slane %v2312_v13, 4  ;;  %v13995_v53 = vor.u32 %v2476_v45, %v2473_v14  ;;  %v18844_v16 = vld [vmem:[#allocation41_spill] sm:$0xff] }
 0x227   :  { %v11118_v11 = vunpack.i.l.bf16 %v13968_v6  ;;  %v2255_v47 = vsel %vm2204_vm5, %v2246_v48, %v2254_v38  ;;  %v1074_v18 = vmul.f32 %v13980_v2, %v18842_v52  ;;  %v1075_v56 = vmul.f32 %v13984_v4, %v18843_v21  ;;  %v14012_v12 = vpop.permute.xlu0 %361  ;;  %v14014_v39 = vpop.permute.xlu1 %341  ;;  %v18848_v45 = vld [vmem:[#allocation89_spill] sm:$0xff] }
 0x228   :  { %3007 = vmatmul.mubr.bf16.vlgmr.msra.gmra.mrb[16].mxu0 %v2255_v47  ;;  %v2478_v40 = vsel %vm2204_vm5, %v2432_v62, %v13995_v53  ;;  %v1156_v1 = vmul.f32 %v18844_v16, %v18843_v21  ;;  %v14007_v63 = vor.u32 %v2314_v5, %v2311_v8  ;;  %v1598_v59 = vsel %vm721_vm1, %v1595_v35, %v1597_v25  ;;  %v18847_v62 = vld [vmem:[#allocation96_spill] sm:$0xff]  ;;  %v18850_v55 = vld [vmem:[#allocation77_spill] sm:$0xff] }
 0x229   :  { %3014 = vmatprep.mubr.bf16.mxu0 %v2325_v54  ;;  %2950 = vmatmul.mubr.bf16.gmra.mrb[20].mxu1 %v2478_v40  ;;  %v2029_v36 = vsel %vm822_vm2, %v1075_v56, %v11104_v9  ;;  %v2028_v26 = vsel %vm822_vm2, %v1074_v18, %v11103_v50  ;;  %18845 = vst [vmem:[#allocation45_spill] sm:$0xff] %v14012_v12  ;;  %18846 = vst [vmem:[#allocation113_spill] sm:$0xff] %v14014_v39  ;;  %v18851_v8 = vld [vmem:[#allocation129_spill] sm:$0xff] }
 0x22a   :  { %v2047_v14 = vsel %vm822_vm2, %v1598_v59, %v11118_v11  ;;  %v1230_v43 = vmul.f32 %v18848_v45, %v18847_v62  ;;  %v14021_v13 = vmul.f32 %v18850_v55, %v18849_v57  ;;  %v1593_v48 = vrot.slane %v1156_v1, 2 }
 0x22b   :  { %v2117_v54 = vpack.c.bf16 %v2029_v36, %v2028_v26  ;;  %v2316_v9 = vsel %vm2204_vm5, %v2254_v38, %v14007_v63  ;;  %v2123_v50 = vpack.c.bf16 %v2047_v14, %v2047_v14  ;;  %v11092_v25 = vpop.permute.xlu1 %11091  ;;  %v18852_v11 = vrot.slane %v13649_v28, 2  ;;  %v440_v40 = vpop.permute.xlu0 %439 }
 0x22c   :  { %v11094_v47 = vunpack.i.h.bf16 %v11092_v25  ;;  %v11093_v18 = vunpack.i.l.bf16 %v11092_v25  ;;  %v1711_v59 = vrot.slane %v1230_v43, 1  ;;  %v1596_v1 = vsel %vm721_vm1, %v1593_v48, %v1595_v35 }
 0x22d   :  { %v1594_v56 = vsel %vm721_vm1, %v18852_v11, %v1593_v48  ;;  %v1316_v36 = vrot.slane %v440_v40, 1  ;;  %v2516_v14 = vshrl.u32 %v2117_v54, 16  ;;  %v2519_v5 = vshll.u32 %v2117_v54, 16 }
 0x22e   :  { %v2045_v38 = vsel %vm822_vm2, %v1594_v56, %v11093_v18  ;;  %v2046_v26 = vsel %vm822_vm2, %v1596_v1, %v11094_v47  ;;  %v18853_v25 = vrot.slane %v18796_v58, 1  ;;  %v18855_v43 = vrot.slane %v18851_v8, 1 }
 0x22f   :  { %v2118_v27 = vpack.c.bf16 %v2046_v26, %v2045_v38  ;;  %v11097_v35 = vpop.permute.xlu1 %11096  ;;  %v2570_v48 = vshrl.u32 %v2123_v50, 16  ;;  %v2573_v40 = vshll.u32 %v2123_v50, 16  ;;  %v2518_v26 = vrot.slane %v2516_v14, 3 }
 0x230   :  { %3015 = vmatmul.mubr.bf16.gmra.mrb[20].mxu0 %v2316_v9  ;;  %v14036_v28 = vsel %vm1011_vm3, %v18853_v25, %v1316_v36  ;;  %v14041_v11 = vsel %vm1011_vm3, %v1316_v36, %v18855_v43  ;;  %v11099_v54 = vunpack.i.h.bf16 %v11097_v35  ;;  %v11098_v18 = vunpack.i.l.bf16 %v11097_v35 }
 0x231   :  { %18854 = vst [vmem:[#allocation37_spill] sm:$0xff] %v14036_v28  ;;  %18856 = vst [vmem:[#allocation142_spill] sm:$0xff] %v14041_v11  ;;  %v1359_v9 = vmul.f32 %v14036_v28, %v18848_v45  ;;  %v1360_v47 = vmul.f32 %v14041_v11, %v18850_v55  ;;  %v2525_v56 = vshrl.u32 %v2118_v27, 16  ;;  %v2528_v58 = vshll.u32 %v2118_v27, 16 }
 0x232   :  { %v2521_v36 = vrot.slane %v2519_v5, 4  ;;  %v18857_v25 = vrot.slane %v13869_v15, 1  ;;  %v18858_v11 = vrot.slane %v14021_v13, 1  ;;  %v2572_v50 = vrot.slane %v2570_v48, 3  ;;  %v18859_v48 = vld [vmem:[#allocation65_spill] sm:$0xff] }
 0x233   :  { %v2071_v1 = vsel %vm822_vm2, %v1359_v9, %v11098_v18  ;;  %v2072_v38 = vsel %vm822_vm2, %v1360_v47, %v11099_v54  ;;  %v11107_v4 = vpop.permute.xlu1 %11106  ;;  %v2527_v2 = vrot.slane %v2525_v56, 3  ;;  %v2530_v57 = vrot.slane %v2528_v58, 4 }
 0x234   :  { %v1712_v43 = vsel %vm1011_vm3, %v18857_v25, %v1711_v59  ;;  %v2100_v3 = vpack.c.bf16 %v2072_v38, %v2071_v1  ;;  %v1714_v35 = vsel %vm1011_vm3, %v1711_v59, %v18858_v11  ;;  %v11109_v28 = vunpack.i.h.bf16 %v11107_v4 }
 0x235   :  { %v11108_v27 = vunpack.i.l.bf16 %v11107_v4  ;;  %v2575_v9 = vrot.slane %v2573_v40, 4  ;;  %v14057_v14 = vor.u32 %v2521_v36, %v2518_v26  ;;  %v2531_v56 = vor.u32 %v2530_v57, %v2527_v2  ;;  %v446_v57 = vpop.permute.xlu0 %445 }
 0x236   :  { %v2363_v18 = vshrl.u32 %v2100_v3, 16  ;;  %v2366_v47 = vshll.u32 %v2100_v3, 16  ;;  %v2055_v5 = vsel %vm822_vm2, %v1714_v35, %v11109_v28  ;;  %v1232_v3 = vmul.f32 %v18859_v48, %v14014_v39  ;;  %v18860_v35 = vld [vmem:[#allocation85_spill] sm:$0xff] }
 0x237   :  { %v2054_v15 = vsel %vm822_vm2, %v1712_v43, %v11108_v27  ;;  %v537_v1 = vpop.permute.xlu1 %536  ;;  %v2532_v59 = vsel %vm2204_vm5, %v13943_v29, %v2531_v56  ;;  %v2576_v4 = vor.u32 %v2575_v9, %v2572_v50  ;;  %v2523_v28 = vsel %vm2204_vm5, %v13995_v53, %v14057_v14 }
 0x238   :  { %v2099_v54 = vpack.c.bf16 %v2055_v5, %v2054_v15  ;;  %v2365_v38 = vrot.slane %v2363_v18, 3  ;;  %v2368_v25 = vrot.slane %v2366_v47, 4  ;;  %2957 = vmatprep.mubr.bf16.mxu1 %v2532_v59  ;;  %v1391_v2 = vrot.slane %v13863_v41, 7 }
 0x239   :  { %v1387_v26 = vrot.slane %v537_v1, 7  ;;  %2958 = vmatmul.mubr.bf16.gmra.mrb[24].mxu1 %v2523_v28  ;;  %v2577_v29 = vsel %vm2204_vm5, %v2531_v56, %v2576_v4  ;;  %v14075_v27 = vmul.f32 %v18860_v35, %v13955_v0  ;;  %v14078_v41 = vrot.slane %v13839_v32, 7 }
 0x23a   :  { %v14061_v11 = vor.u32 %v2368_v25, %v2365_v38  ;;  %v2354_v58 = vshrl.u32 %v2099_v54, 16  ;;  %v2357_v40 = vshll.u32 %v2099_v54, 16  ;;  %2965 = vmatprep.mubr.bf16.mxu1 %v2577_v29  ;;  %v1715_v18 = vrot.slane %v1232_v3, 1  ;;  %v14097_v38 = vpop.permute.xlu0 %454 }
 0x23b   :  { %v540_v36 = vpop.permute.xlu1 %539  ;;  %v14084_v5 = vsel %vm1093_vm4, %v14078_v41, %v1387_v26  ;;  %v18378_v15 = vrot.slane %v14075_v27, 1  ;;  %v18379_v56 = vrot.slane %v13886_v34, 7  ;;  %v18864_v59 = vrot.slane %v14021_v13, 1 }
 0x23c   :  { %v2370_v43 = vsel %vm2204_vm5, %v13970_v37, %v14061_v11  ;;  %v1389_v50 = vrot.slane %v540_v36, 7  ;;  %v2356_v53 = vrot.slane %v2354_v58, 3  ;;  %v2359_v9 = vrot.slane %v2357_v40, 4  ;;  %18861 = vst [vmem:[#allocation145_spill] sm:$0xff] %v14084_v5  ;;  %v18865_v40 = vld [vmem:[#allocation74_spill] sm:$0xff] }
 0x23d   :  { %3022 = vmatprep.mubr.bf16.mxu0 %v2370_v43  ;;  %v1716_v4 = vsel %vm1011_vm3, %v18864_v59, %v1715_v18  ;;  %v1718_v3 = vsel %vm1011_vm3, %v1715_v18, %v18378_v15  ;;  %v1435_v28 = vmul.f32 %v14084_v5, %v12478_v51  ;;  %v11129_v58 = vunpack.i.h.bf16 %v13990_v17 }
 0x23e   :  { %v14080_v47 = vor.u32 %v2359_v9, %v2356_v53  ;;  %v14088_v54 = vsel %vm1093_vm4, %v1387_v26, %v1389_v50  ;;  %v14091_v1 = vsel %vm1093_vm4, %v1389_v50, %v1391_v2  ;;  %v1434_v13 = vmul.f32 %v14078_v41, %v18828_v20  ;;  %v14127_v18 = vpop.permute.xlu0 %457 }
 0x23f   :  { %v546_v37 = vpop.permute.xlu1 %545  ;;  %18862 = vst [vmem:[#allocation144_spill] sm:$0xff] %v14088_v54  ;;  %18863 = vst [vmem:[#allocation35_spill] sm:$0xff] %v14091_v1  ;;  %v1436_v26 = vmul.f32 %v14088_v54, %v18865_v40  ;;  %v1437_v36 = vmul.f32 %v14091_v1, %v12533_v42  ;;  %v2057_v50 = vsel %vm822_vm2, %v1718_v3, %v11129_v58  ;;  %v1965_v9 = vrot.slane %v1435_v28, 2 }
 0x240   :  { %v2361_v32 = vsel %vm2204_vm5, %v14007_v63, %v14080_v47  ;;  %v1393_v25 = vrot.slane %v546_v37, 7  ;;  %v11128_v63 = vunpack.i.l.bf16 %v13990_v17  ;;  %v1964_v59 = vrot.slane %v1434_v13, 2 }
 0x241   :  { %3023 = vmatmul.mubr.bf16.gmra.mrb[24].mxu0 %v2361_v32  ;;  %v1967_v37 = vrot.slane %v1436_v26, 2  ;;  %v1969_v32 = vrot.slane %v1437_v36, 2  ;;  %v1320_v3 = vrot.slane %v446_v57, 1  ;;  %v18383_v28 = vrot.slane %v13988_v30, 1 }
 0x242   :  { %v2056_v43 = vsel %vm822_vm2, %v1716_v4, %v11128_v63  ;;  %v14120_v53 = vsel %vm1093_vm4, %v1391_v2, %v1393_v25  ;;  %v14125_v17 = vsel %vm1093_vm4, %v1393_v25, %v18379_v56  ;;  %v1966_v25 = vsel %vm721_vm1, %v1964_v59, %v1965_v9 }
 0x243   :  { %v14115_v29 = vpop.permute.xlu1 %451  ;;  %18866 = vst [vmem:[#allocation46_spill] sm:$0xff] %v14120_v53  ;;  %18867 = vst [vmem:[#allocation58_spill] sm:$0xff] %v14125_v17  ;;  %v1438_v15 = vmul.f32 %v14120_v53, %v12580_v61  ;;  %v14133_v4 = vmul.f32 %v14125_v17, %v18848_v45  ;;  %v2104_v2 = vpack.c.bf16 %v2057_v50, %v2056_v43  ;;  %v18868_v61 = vrot.slane %v18851_v8, 1  ;;  %v14152_v43 = vpop.permute.xlu0 %466 }
 0x244   :  { %v1968_v63 = vsel %vm721_vm1, %v1965_v9, %v1967_v37  ;;  %v1970_v26 = vsel %vm721_vm1, %v1967_v37, %v1969_v32  ;;  %v14150_v57 = vsel %vm1011_vm3, %v1320_v3, %v18383_v28  ;;  %v2086_v37 = vpack.c.bf16 %v1966_v25, %v1964_v59 }
 0x245   :  { %v1971_v36 = vrot.slane %v1438_v15, 2  ;;  %v2399_v56 = vshrl.u32 %v2104_v2, 16  ;;  %v14145_v45 = vsel %vm1011_vm3, %v18868_v61, %v1320_v3  ;;  %18870 = vst [vmem:[#allocation105_spill] sm:$0xff] %v14150_v57  ;;  %v2402_v9 = vshll.u32 %v2104_v2, 16 }
 0x246   :  { %18869 = vst [vmem:[#allocation76_spill] sm:$0xff] %v14145_v45  ;;  %v2091_v15 = vpack.c.bf16 %v1970_v26, %v1968_v63  ;;  %v1076_v13 = vmul.f32 %v13973_v7, %v18827_v31  ;;  %v11119_v8 = vunpack.i.h.bf16 %v13968_v6  ;;  %v1361_v61 = vmul.f32 %v14145_v45, %v18859_v48 }
 0x247   :  { %v14135_v58 = vpop.permute.xlu1 %349  ;;  %v1362_v42 = vmul.f32 %v14150_v57, %v18860_v35  ;;  %v1972_v3 = vsel %vm721_vm1, %v1969_v32, %v1971_v36  ;;  %v18871_v28 = vrot.slane %v14133_v4, 2  ;;  %v2401_v59 = vrot.slane %v2399_v56, 3  ;;  %v555_v53 = vpop.permute.xlu0 %554 }
 0x248   :  { %v2404_v25 = vrot.slane %v2402_v9, 4  ;;  %v2274_v63 = vshrl.u32 %v2086_v37, 16  ;;  %v2277_v26 = vshll.u32 %v2086_v37, 16  ;;  %v2282_v6 = vshrl.u32 %v2091_v15, 16 }
 0x249   :  { %v1974_v40 = vsel %vm721_vm1, %v1971_v36, %v18871_v28  ;;  %v2285_v0 = vshll.u32 %v2091_v15, 16  ;;  %v1399_v7 = vrot.slane %v555_v53, 7  ;;  %v2073_v32 = vsel %vm822_vm2, %v1361_v61, %v11119_v8 }
 0x24a   :  { %v2096_v17 = vpack.c.bf16 %v1974_v40, %v1972_v3  ;;  %v14170_v56 = vor.u32 %v2404_v25, %v2401_v59  ;;  %v2276_v9 = vrot.slane %v2274_v63, 3  ;;  %v2279_v1 = vrot.slane %v2277_v26, 4 }
 0x24b   :  { %v14154_v50 = vpop.permute.xlu1 %353  ;;  %v2287_v54 = vrot.slane %v2285_v0, 4  ;;  %v14184_v59 = vpop.permute.xlu0 %563 }
 0x24c   :  { %v2327_v15 = vshrl.u32 %v2096_v17, 16  ;;  %v2330_v5 = vshll.u32 %v2096_v17, 16 }
 0x24f   :  { %v11122_v2 = vpop.permute.xlu1 %11121 }
 0x250   :  { %v11124_v51 = vunpack.i.h.bf16 %v11122_v2  ;;  %v11123_v20 = vunpack.i.l.bf16 %v11122_v2  ;;  %v2284_v2 = vrot.slane %v2282_v6, 3 }
 0x252   :  { %v2030_v57 = vsel %vm822_vm2, %v1076_v13, %v11124_v51  ;;  %v2074_v39 = vsel %vm822_vm2, %v1362_v42, %v11123_v20  ;;  %v18872_v51 = vrot.slane %v13886_v34, 7  ;;  %v2288_v63 = vor.u32 %v2287_v54, %v2284_v2 }
 0x253   :  { %v2105_v45 = vpack.c.bf16 %v2074_v39, %v2073_v32  ;;  %v2122_v28 = vpack.c.bf16 %v2030_v57, %v2030_v57  ;;  %v552_v36 = vpop.permute.xlu1 %551 }
 0x254   :  { %v1397_v37 = vrot.slane %v552_v36, 7 }
 0x255   :  { %v2561_v40 = vshrl.u32 %v2122_v28, 16  ;;  %v2564_v3 = vshll.u32 %v2122_v28, 16  ;;  %v2408_v53 = vshrl.u32 %v2105_v45, 16  ;;  %v2411_v20 = vshll.u32 %v2105_v45, 16 }
 0x256   :  { %v14175_v13 = vsel %vm1093_vm4, %v18872_v51, %v1397_v37  ;;  %v14178_v42 = vsel %vm1093_vm4, %v1397_v37, %v1399_v7  ;;  %v2280_v28 = vor.u32 %v2279_v1, %v2276_v9  ;;  %v2329_v37 = vrot.slane %v2327_v15, 3 }
 0x257   :  { %v1440_v39 = vmul.f32 %v14175_v13, %v18850_v55  ;;  %v1441_v0 = vmul.f32 %v14178_v42, %v18859_v48  ;;  %v558_v57 = vpop.permute.xlu1 %557  ;;  %v2563_v8 = vrot.slane %v2561_v40, 3  ;;  %v2566_v61 = vrot.slane %v2564_v3, 4 }
 0x258   :  { %v1401_v17 = vrot.slane %v558_v57, 7  ;;  %v2410_v34 = vrot.slane %v2408_v53, 3  ;;  %v2413_v25 = vrot.slane %v2411_v20, 4  ;;  %v2332_v51 = vrot.slane %v2330_v5, 4  ;;  %v14210_v53 = vpop.permute.xlu0 %572 }
 0x259   :  { %v1975_v26 = vrot.slane %v1440_v39, 2  ;;  %v1977_v6 = vrot.slane %v1441_v0, 2  ;;  %v2567_v32 = vor.u32 %v2566_v61, %v2563_v8  ;;  %v18874_v40 = vrot.slane %v14133_v4, 2 }
 0x25a   :  { %v14187_v45 = vsel %vm1093_vm4, %v1399_v7, %v1401_v17  ;;  %v14189_v36 = vor.u32 %v2413_v25, %v2410_v34  ;;  %v2289_v4 = vsel %vm2204_vm5, %v2280_v28, %v2288_v63  ;;  %v2406_v15 = vsel %vm2204_vm5, %v14080_v47, %v14170_v56 }
 0x25b   :  { %18873 = vst [vmem:[#allocation133_spill] sm:$0xff] %v14187_v45  ;;  %v1976_v3 = vsel %vm721_vm1, %v18874_v40, %v1975_v26  ;;  %v1978_v57 = vsel %vm721_vm1, %v1975_v26, %v1977_v6  ;;  %v1442_v54 = vmul.f32 %v14187_v45, %v18860_v35  ;;  %v14197_v2 = vpop.permute.xlu1 %560  ;;  %v2568_v1 = vsel %vm2204_vm5, %v14057_v14, %v2567_v32 }
 0x25c   :  { %v1403_v7 = vrot.slane %v14197_v2, 7  ;;  %2966 = vmatmul.mubr.bf16.gmra.mrb[28].mxu1 %v2568_v1  ;;  %v2415_v5 = vsel %vm2204_vm5, %v14061_v11, %v14189_v36  ;;  %v2101_v9 = vpack.c.bf16 %v1978_v57, %v1976_v3  ;;  %v2333_v8 = vor.u32 %v2332_v51, %v2329_v37 }
 0x25d   :  { %3030 = vmatprep.mubr.bf16.mxu0 %v2415_v5  ;;  %10743 = vmatprep.mubr.msk.bf16.mxu1 %vm822_vm2, %v2289_v4  ;;  %v1979_v0 = vrot.slane %v1442_v54, 2  ;;  %v1326_v25 = vrot.slane %v14097_v38, 1  ;;  %v1328_v26 = vrot.slane %v14127_v18, 1  ;;  %v1324_v28 = vrot.slane %v14115_v29, 1  ;;  %v11150_v18 = vpop.permute.xlu0 %11149 }
 0x25e   :  { %v14213_v14 = vsel %vm1093_vm4, %v1401_v17, %v1403_v7  ;;  %3031 = vmatmul.mubr.bf16.gmra.mrb[28].mxu0 %v2406_v15  ;;  %v2372_v20 = vshrl.u32 %v2101_v9, 16  ;;  %v2375_v39 = vshll.u32 %v2101_v9, 16  ;;  %v2334_v38 = vsel %vm2204_vm5, %v2288_v63, %v2333_v8 }
 0x25f   :  { %18875 = vst [vmem:[#allocation138_spill] sm:$0xff] %v14213_v14  ;;  %v14217_v11 = vmul.f32 %v14213_v14, %v18820_v49  ;;  %v14219_v61 = vpop.permute.xlu1 %460  ;;  %v1980_v3 = vsel %vm721_vm1, %v1977_v6, %v1979_v0  ;;  %v14239_v54 = vsel %vm1011_vm3, %v1326_v25, %v1328_v26  ;;  %v18877_v1 = vrot.slane %v13988_v30, 1 }
 0x260   :  { %v2374_v34 = vrot.slane %v2372_v20, 3  ;;  %v2377_v47 = vrot.slane %v2375_v39, 4  ;;  %v18396_v32 = vrot.slane %v14219_v61, 1  ;;  %v1234_v5 = vmul.f32 %v18820_v49, %v14135_v58 }
 0x261   :  { %v18397_v17 = vrot.slane %v14217_v11, 2  ;;  %v14249_v63 = vsel %vm1011_vm3, %v18877_v1, %v1324_v28  ;;  %v14254_v15 = vsel %vm1011_vm3, %v1324_v28, %v1326_v25  ;;  %v11152_v20 = vunpack.i.h.bf16 %v11150_v18 }
 0x262   :  { %v2378_v40 = vor.u32 %v2377_v47, %v2374_v34  ;;  %v14233_v51 = vsel %vm1011_vm3, %v1328_v26, %v18396_v32  ;;  %v11151_v39 = vunpack.i.l.bf16 %v11150_v18  ;;  %v1365_v47 = vmul.f32 %v14239_v54, %v18842_v52 }
 0x263   :  { %v1982_v37 = vsel %vm721_vm1, %v1979_v0, %v18397_v17  ;;  %v1366_v6 = vmul.f32 %v14233_v51, %v18843_v21  ;;  %v14258_v0 = vmul.f32 %v18821_v19, %v14154_v50  ;;  %v1363_v26 = vmul.f32 %v14249_v63, %v18820_v49 }
 0x264   :  { %10744 = vmatmul.mubr.msk.bf16.vlgmr.msra.gmra.mrb[32].mxu1 %vm822_vm2, %v2334_v38  ;;  %v2379_v57 = vsel %vm2204_vm5, %v2333_v8, %v2378_v40  ;;  %v2106_v29 = vpack.c.bf16 %v1982_v37, %v1980_v3  ;;  %v1405_v8 = vrot.slane %v14184_v59, 7  ;;  %v1364_v28 = vmul.f32 %v14254_v15, %v18821_v19 }
 0x265   :  { %10747 = vmatprep.mubr.msk.bf16.mxu1 %vm822_vm2, %v2379_v57  ;;  %v2078_v25 = vsel %vm822_vm2, %v1366_v6, %v11152_v20  ;;  %v1719_v37 = vrot.slane %v1234_v5, 1  ;;  %v2077_v57 = vsel %vm822_vm2, %v1365_v47, %v11151_v39  ;;  %v18398_v59 = vrot.slane %v14258_v0, 1 }
 0x266   :  { %v2417_v4 = vshrl.u32 %v2106_v29, 16  ;;  %v2420_v9 = vshll.u32 %v2106_v29, 16  ;;  %v14273_v1 = vsel %vm1093_vm4, %v1403_v7, %v1405_v8  ;;  %v2115_v6 = vpack.c.bf16 %v2078_v25, %v2077_v57 }
 0x267   :  { %v14243_v2 = vpop.permute.xlu1 %357  ;;  %18878 = vst [vmem:[#allocation132_spill] sm:$0xff] %v14273_v1  ;;  %v1722_v7 = vsel %vm1011_vm3, %v1719_v37, %v18398_v59 }
 0x268   :  { %18876 = vst [vmem:[#allocation13_spill] sm:$0xff] %v14243_v2  ;;  %v2419_v30 = vrot.slane %v2417_v4, 3  ;;  %v2422_v34 = vrot.slane %v2420_v9, 4 }
 0x26a   :  { %v14270_v29 = vor.u32 %v2422_v34, %v2419_v30  ;;  %v1444_v34 = vmul.f32 %v14273_v1, %v18821_v19 }
 0x26b   :  { %v11136_v3 = vpop.permute.xlu1 %11135 }
 0x26c   :  { %v11138_v38 = vunpack.i.h.bf16 %v11136_v3  ;;  %v11137_v18 = vunpack.i.l.bf16 %v11136_v3  ;;  %v2424_v5 = vsel %vm2204_vm5, %v2378_v40, %v14270_v29  ;;  %v18879_v3 = vrot.slane %v14075_v27, 1 }
 0x26d   :  { %10748 = vmatmul.mubr.msk.bf16.gmra.mrb[36].mxu1 %vm822_vm2, %v2424_v5  ;;  %v2498_v27 = vshrl.u32 %v2115_v6, 16 }
 0x26e   :  { %v2075_v4 = vsel %vm822_vm2, %v1363_v26, %v11137_v18  ;;  %v2076_v9 = vsel %vm822_vm2, %v1364_v28, %v11138_v38  ;;  %v1720_v39 = vsel %vm1011_vm3, %v18879_v3, %v1719_v37  ;;  %v2501_v38 = vshll.u32 %v2115_v6, 16 }
 0x26f   :  { %v2110_v20 = vpack.c.bf16 %v2076_v9, %v2075_v4  ;;  %v11141_v32 = vpop.permute.xlu1 %11140  ;;  %v1983_v37 = vrot.slane %v1444_v34, 2  ;;  %v2500_v19 = vrot.slane %v2498_v27, 3 }
 0x270   :  { %v11143_v47 = vunpack.i.h.bf16 %v11141_v32  ;;  %v11142_v30 = vunpack.i.l.bf16 %v11141_v32 }
 0x271   :  { %v2453_v26 = vshrl.u32 %v2110_v20, 16  ;;  %v2456_v25 = vshll.u32 %v2110_v20, 16  ;;  %v2503_v20 = vrot.slane %v2501_v38, 4 }
 0x272   :  { %v2059_v28 = vsel %vm822_vm2, %v1722_v7, %v11143_v47  ;;  %v2058_v40 = vsel %vm822_vm2, %v1720_v39, %v11142_v30 }
 0x273   :  { %v2109_v18 = vpack.c.bf16 %v2059_v28, %v2058_v40  ;;  %v2455_v32 = vrot.slane %v2453_v26, 3  ;;  %v2458_v4 = vrot.slane %v2456_v25, 4  ;;  %v1411_v26 = vrot.slane %v14210_v53, 7 }
 0x275   :  { %v2459_v5 = vor.u32 %v2458_v4, %v2455_v32  ;;  %v2444_v3 = vshrl.u32 %v2109_v18, 16  ;;  %v2447_v17 = vshll.u32 %v2109_v18, 16 }
 0x276   :  { %v567_v57 = vpop.permute.xlu1 %566 }
 0x277   :  { %v1407_v9 = vrot.slane %v567_v57, 7  ;;  %v2460_v6 = vsel %vm2204_vm5, %v14189_v36, %v2459_v5  ;;  %v2446_v30 = vrot.slane %v2444_v3, 3  ;;  %v2449_v7 = vrot.slane %v2447_v17, 4 }
 0x278   :  { %3038 = vmatprep.mubr.bf16.mxu0 %v2460_v6  ;;  %v14309_v36 = vor.u32 %v2503_v20, %v2500_v19 }
 0x279   :  { %v14291_v59 = vsel %vm1093_vm4, %v1405_v8, %v1407_v9  ;;  %v14298_v34 = vor.u32 %v2449_v7, %v2446_v30  ;;  %v18881_v8 = vrot.slane %v14217_v11, 2 }
 0x27a   :  { %18880 = vst [vmem:[#allocation41_spill] sm:$0xff] %v14291_v59  ;;  %v1445_v47 = vmul.f32 %v14291_v59, %v18842_v52  ;;  %v570_v39 = vpop.permute.xlu1 %569  ;;  %v2505_v32 = vsel %vm2204_vm5, %v2459_v5, %v14309_v36  ;;  %v1237_v5 = vmul.f32 %v18843_v21, %v14012_v12 }
 0x27b   :  { %v1409_v25 = vrot.slane %v570_v39, 7  ;;  %v1984_v40 = vsel %vm721_vm1, %v18881_v8, %v1983_v37  ;;  %v2451_v11 = vsel %vm2204_vm5, %v14170_v56, %v14298_v34  ;;  %v576_v39 = vpop.permute.xlu0 %575 }
 0x27c   :  { %v1985_v28 = vrot.slane %v1445_v47, 2  ;;  %3039 = vmatmul.mubr.bf16.gmra.mrb[32].mxu0 %v2451_v11 }
 0x27d   :  { %v14304_v27 = vsel %vm1093_vm4, %v1407_v9, %v1409_v25  ;;  %v14307_v38 = vsel %vm1093_vm4, %v1409_v25, %v1411_v26  ;;  %3046 = vmatprep.mubr.bf16.mxu0 %v2505_v32  ;;  %v1413_v32 = vrot.slane %v576_v39, 7 }
 0x27e   :  { %18882 = vst [vmem:[#allocation96_spill] sm:$0xff] %v14304_v27  ;;  %18883 = vst [vmem:[#allocation129_spill] sm:$0xff] %v14307_v38  ;;  %v1986_v17 = vsel %vm721_vm1, %v1983_v37, %v1985_v28  ;;  %v1446_v53 = vmul.f32 %v14304_v27, %v18843_v21  ;;  %v14316_v18 = vmul.f32 %v14307_v38, %v18827_v31 }
 0x27f   :  { %v464_v57 = vpop.permute.xlu1 %463  ;;  %v2111_v19 = vpack.c.bf16 %v1986_v17, %v1984_v40 }
 0x280   :  { %v1987_v4 = vrot.slane %v1446_v53, 2  ;;  %v18400_v9 = vrot.slane %v14316_v18, 2 }
 0x281   :  { %v2462_v3 = vshrl.u32 %v2111_v19, 16  ;;  %v2465_v37 = vshll.u32 %v2111_v19, 16 }
 0x282   :  { %v1988_v20 = vsel %vm721_vm1, %v1985_v28, %v1987_v4  ;;  %v1990_v47 = vsel %vm721_vm1, %v1987_v4, %v18400_v9  ;;  %v1236_v28 = vmul.f32 %v18842_v52, %v14243_v2  ;;  %v1332_v9 = vrot.slane %v464_v57, 1 }
 0x283   :  { %v2464_v56 = vrot.slane %v2462_v3, 3  ;;  %v2467_v6 = vrot.slane %v2465_v37, 4  ;;  %v2116_v7 = vpack.c.bf16 %v1990_v47, %v1988_v20  ;;  %v1725_v37 = vrot.slane %v1237_v5, 1  ;;  %v11166_v20 = vpop.permute.xlu0 %11165 }
 0x284   :  { %v14328_v30 = vpop.permute.xlu1 %365 }
 0x285   :  { %18884 = vst [vmem:[#allocation146_spill] sm:$0xff] %v14328_v30  ;;  %v1238_v25 = vmul.f32 %v18827_v31, %v14328_v30  ;;  %v2468_v8 = vor.u32 %v2467_v6, %v2464_v56  ;;  %v2507_v40 = vshrl.u32 %v2116_v7, 16  ;;  %v2510_v17 = vshll.u32 %v2116_v7, 16 }
 0x286   :  { %v1723_v56 = vrot.slane %v1236_v28, 1  ;;  %v1334_v7 = vrot.slane %v14152_v43, 1  ;;  %v18887_v43 = vrot.slane %v14258_v0, 1  ;;  %v18888_v0 = vrot.slane %v14219_v61, 1 }
 0x287   :  { %v1727_v53 = vrot.slane %v1238_v25, 1  ;;  %v2469_v11 = vsel %vm2204_vm5, %v14270_v29, %v2468_v8  ;;  %v2509_v4 = vrot.slane %v2507_v40, 3  ;;  %v2512_v3 = vrot.slane %v2510_v17, 4 }
 0x288   :  { %v14338_v19 = vpop.permute.xlu1 %369  ;;  %10751 = vmatprep.mubr.msk.bf16.mxu1 %vm822_vm2, %v2469_v11  ;;  %v14351_v25 = vsel %vm1093_vm4, %v1411_v26, %v1413_v32  ;;  %v11168_v40 = vunpack.i.h.bf16 %v11166_v20  ;;  %v11167_v17 = vunpack.i.l.bf16 %v11166_v20  ;;  %v1726_v26 = vsel %vm1011_vm3, %v1723_v56, %v1725_v37 }
 0x289   :  { %18885 = vst [vmem:[#allocation147_spill] sm:$0xff] %v14338_v19  ;;  %v14343_v47 = vmul.f32 %v18824_v10, %v14338_v19  ;;  %v14345_v6 = vor.u32 %v2512_v3, %v2509_v4  ;;  %v1728_v29 = vsel %vm1011_vm3, %v1725_v37, %v1727_v53  ;;  %18886 = vst [vmem:[#allocation148_spill] sm:$0xff] %v14351_v25  ;;  %v18906_v19 = vld [vmem:[#allocation32_spill] sm:$0xff] }
 0x28a   :  { %v2062_v21 = vsel %vm822_vm2, %v1728_v29, %v11167_v17  ;;  %v14373_v37 = vsel %vm1011_vm3, %v1332_v9, %v1334_v7 }
 0x28b   :  { %v1729_v39 = vrot.slane %v14343_v47, 1  ;;  %v2514_v11 = vsel %vm2204_vm5, %v2468_v8, %v14345_v6  ;;  %v1724_v47 = vsel %vm1011_vm3, %v18887_v43, %v1723_v56  ;;  %v1448_v8 = vmul.f32 %v14351_v25, %v18824_v10  ;;  %18890 = vst [vmem:[#allocation150_spill] sm:$0xff] %v14373_v37 }
 0x28c   :  { %v11155_v5 = vpop.permute.xlu1 %11154  ;;  %10752 = vmatmul.mubr.msk.bf16.gmra.mrb[40].mxu1 %vm822_vm2, %v2514_v11  ;;  %v14370_v43 = vsel %vm1011_vm3, %v18888_v0, %v1332_v9  ;;  %v1368_v9 = vmul.f32 %v14373_v37, %v18824_v10 }
 0x28d   :  { %v1730_v28 = vsel %vm1011_vm3, %v1727_v53, %v1729_v39  ;;  %v11157_v4 = vunpack.i.h.bf16 %v11155_v5  ;;  %v11156_v3 = vunpack.i.l.bf16 %v11155_v5  ;;  %18889 = vst [vmem:[#allocation149_spill] sm:$0xff] %v14370_v43  ;;  %v1991_v49 = vrot.slane %v1448_v8, 2 }
 0x28e   :  { %v2063_v20 = vsel %vm822_vm2, %v1730_v28, %v11168_v40 }
 0x28f   :  { %v2060_v57 = vsel %vm822_vm2, %v1724_v47, %v11156_v3  ;;  %v2061_v53 = vsel %vm822_vm2, %v1726_v26, %v11157_v4  ;;  %v2119_v5 = vpack.c.bf16 %v2063_v20, %v2062_v21  ;;  %v1367_v21 = vmul.f32 %v14370_v43, %v18827_v31 }
 0x290   :  { %v2114_v52 = vpack.c.bf16 %v2061_v53, %v2060_v57  ;;  %v579_v11 = vpop.permute.xlu1 %578 }
 0x291   :  { %v1415_v56 = vrot.slane %v579_v11, 7  ;;  %v2534_v17 = vshrl.u32 %v2119_v5, 16  ;;  %v2537_v28 = vshll.u32 %v2119_v5, 16 }
 0x292   :  { %v2489_v29 = vshrl.u32 %v2114_v52, 16  ;;  %v2492_v40 = vshll.u32 %v2114_v52, 16 }
 0x293   :  { %v1416_v3 = vsel %vm1093_vm4, %v1413_v32, %v1415_v56  ;;  %v1450_v4 = vmul.f32 0.0, %v1415_v56  ;;  %v2536_v8 = vrot.slane %v2534_v17, 3  ;;  %v2539_v0 = vrot.slane %v2537_v28, 4 }
 0x294   :  { %v1449_v47 = vmul.f32 0.0, %v1416_v3  ;;  %v11161_v61 = vpop.permute.xlu1 %11160  ;;  %v2491_v26 = vrot.slane %v2489_v29, 3  ;;  %v2494_v20 = vrot.slane %v2492_v40, 4  ;;  %v1369_v32 = vmul.f32 0.0, %v1334_v7 }
 0x295   :  { %v1995_v57 = vrot.slane %v1450_v4, 2  ;;  %v11163_v53 = vunpack.i.h.bf16 %v11161_v61  ;;  %v11162_v11 = vunpack.i.l.bf16 %v11161_v61  ;;  %v18892_v61 = vrot.slane %v14316_v18, 2 }
 0x296   :  { %v14380_v52 = vrot.slane %v1449_v47, 2  ;;  %v2495_v5 = vor.u32 %v2494_v20, %v2491_v26 }
 0x297   :  { %v2079_v56 = vsel %vm822_vm2, %v1367_v21, %v11162_v11  ;;  %v2080_v31 = vsel %vm822_vm2, %v1368_v9, %v11163_v53  ;;  %v1992_v17 = vsel %vm721_vm1, %v18892_v61, %v1991_v49  ;;  %v2540_v9 = vor.u32 %v2539_v0, %v2536_v8 }
 0x298   :  { %18891 = vst [vmem:[#allocation151_spill] sm:$0xff] %v14380_v52  ;;  %v1994_v29 = vsel %vm721_vm1, %v1991_v49, %v14380_v52  ;;  %v1996_v40 = vsel %vm721_vm1, %v14380_v52, %v1995_v57  ;;  %v2120_v3 = vpack.c.bf16 %v2080_v31, %v2079_v56  ;;  %v11171_v4 = vpop.permute.xlu1 %11170  ;;  %v2496_v47 = vsel %vm2204_vm5, %v14298_v34, %v2495_v5 }
 0x299   :  { %v2126_v7 = vpack.c.bf16 %v1996_v40, %v1996_v40  ;;  %v11173_v28 = vunpack.i.h.bf16 %v11171_v4  ;;  %v11172_v21 = vunpack.i.l.bf16 %v11171_v4  ;;  %3047 = vmatmul.mubr.bf16.gmra.mrb[36].mxu0 %v2496_v47  ;;  %v2121_v53 = vpack.c.bf16 %v1994_v29, %v1992_v17 }
 0x29a   :  { %v2543_v26 = vshrl.u32 %v2120_v3, 16  ;;  %v2546_v20 = vshll.u32 %v2120_v3, 16 }
 0x29b   :  { %v2064_v11 = vsel %vm822_vm2, %v1729_v39, %v11173_v28  ;;  %v2081_v31 = vsel %vm822_vm2, %v1369_v32, %v11172_v21  ;;  %v2597_v57 = vshrl.u32 %v2126_v7, 16  ;;  %v2600_v56 = vshll.u32 %v2126_v7, 16 }
 0x29c   :  { %v2124_v10 = vpack.c.bf16 %v2064_v11, %v2064_v11  ;;  %v2125_v34 = vpack.c.bf16 %v2081_v31, %v2081_v31  ;;  %v2545_v35 = vrot.slane %v2543_v26, 3  ;;  %v2548_v18 = vrot.slane %v2546_v20, 4 }
 0x29d   :  { %v2552_v48 = vshrl.u32 %v2121_v53, 16  ;;  %v2555_v49 = vshll.u32 %v2121_v53, 16  ;;  %v2599_v40 = vrot.slane %v2597_v57, 3  ;;  %v2602_v61 = vrot.slane %v2600_v56, 4 }
 0x29e   :  { %v2549_v4 = vor.u32 %v2548_v18, %v2545_v35  ;;  %v2588_v47 = vshrl.u32 %v2125_v34, 16  ;;  %v2591_v55 = vshll.u32 %v2125_v34, 16  ;;  %v2579_v3 = vshrl.u32 %v2124_v10, 16 }
 0x29f   :  { %v2554_v8 = vrot.slane %v2552_v48, 3  ;;  %v2557_v0 = vrot.slane %v2555_v49, 4  ;;  %v14395_v29 = vor.u32 %v2602_v61, %v2599_v40  ;;  %v2582_v39 = vshll.u32 %v2124_v10, 16 }
 0x2a0   :  { %v2550_v32 = vsel %vm2204_vm5, %v14309_v36, %v2549_v4  ;;  %v2590_v17 = vrot.slane %v2588_v47, 3  ;;  %v2593_v7 = vrot.slane %v2591_v55, 4  ;;  %v2541_v28 = vsel %vm2204_vm5, %v2495_v5, %v2540_v9 }
 0x2a1   :  { %18893 = vst [vmem:[#allocation152_spill] sm:$0xff] %v14395_v29  ;;  %3054 = vmatprep.mubr.bf16.mxu0 %v2550_v32  ;;  %v2558_v21 = vor.u32 %v2557_v0, %v2554_v8  ;;  %v2581_v26 = vrot.slane %v2579_v3, 3  ;;  %v2584_v20 = vrot.slane %v2582_v39, 4 }
 0x2a2   :  { %3055 = vmatmul.mubr.bf16.gmra.mrb[40].mxu0 %v2541_v28  ;;  %v14400_v35 = vor.u32 %v2593_v7, %v2590_v17 }
 0x2a3   :  { %v2559_v48 = vsel %vm2204_vm5, %v14345_v6, %v2558_v21  ;;  %v2604_v10 = vsel %vm2204_vm5, %v2558_v21, %v14395_v29  ;;  %v2585_v36 = vor.u32 %v2584_v20, %v2581_v26 }
 0x2a4   :  { %18894 = vst [vmem:[#allocation153_spill] sm:$0xff] %v14400_v35  ;;  %10755 = vmatprep.mubr.msk.bf16.mxu1 %vm822_vm2, %v2559_v48  ;;  %v2595_v55 = vsel %vm2204_vm5, %v2549_v4, %v14400_v35 }
 0x2a5   :  { %10756 = vmatmul.mubr.msk.bf16.gmra.mrb[44].mxu1 %vm822_vm2, %v2604_v10  ;;  %3062 = vmatprep.mubr.bf16.mxu0 %v2595_v55  ;;  %v2586_v5 = vsel %vm2204_vm5, %v2540_v9, %v2585_v36 }
 0x2aa   :  { %3063 = vmatmul.mubr.bf16.gmra.mrb[44].mxu0 %v2586_v5 }
 0x2d2   :  { %v10382_v53 = vpop.f32.mrb[0].mxu1 }
 0x2d3   :  { %v10383_v11 = vpop.f32.mrb[1].mxu1 }
 0x2d4   :  { %v10384_v31 = vadd.f32 %v10383_v11, %v10382_v53  ;;  %v10385_v57 = vpop.f32.mrb[2].mxu1  ;;  %v14418_v53 = vld [vmem:[%s18168_s7] ss:$0 sm:$0xff] }
 0x2d5   :  { %v10386_v6 = vpop.f32.mrb[3].mxu1 }
 0x2d6   :  { %v10387_v56 = vadd.f32 %v10386_v6, %v10385_v57 }
 0x2da   :  { %v10388_v34 = vpop.f32.mrb[4].mxu1 }
 0x2db   :  { %v10389_v18 = vpop.f32.mrb[5].mxu1 }
 0x2dc   :  { %v10390_v49 = vadd.f32 %v10389_v18, %v10388_v34  ;;  %v10391_v40 = vpop.f32.mrb[6].mxu1  ;;  %v2912_v34 = vadd.f32 %v10384_v31, %v14418_v53 }
 0x2dd   :  { %v10392_v61 = vpop.f32.mrb[7].mxu1 }
 0x2de   :  { %v10393_v47 = vadd.f32 %v10392_v61, %v10391_v40 }
 0x2e0   :  { %v2923_v29 = vadd.f32 %v10393_v47, %v14418_v53 }
 0x2e2   :  { %v10394_v4 = vpop.f32.mrb[8].mxu1 }
 0x2e3   :  { %v10395_v3 = vpop.f32.mrb[9].mxu1 }
 0x2e4   :  { %v10396_v8 = vadd.f32 %v10395_v3, %v10394_v4  ;;  %v10397_v0 = vpop.f32.mrb[10].mxu1 }
 0x2e5   :  { %v10398_v39 = vpop.f32.mrb[11].mxu1 }
 0x2e6   :  { %v10399_v32 = vadd.f32 %v10398_v39, %v10397_v0  ;;  %v2915_v39 = vadd.f32 %v10387_v56, %v14418_v53 }
 0x2e8   :  { %v2931_v47 = vadd.f32 %v10399_v32, %v14418_v53 }
 0x2eb   :  { %v10400_v9 = vpop.f32.mrb[12].mxu1 }
 0x2ec   :  { %v10401_v17 = vpop.f32.mrb[13].mxu1 }
 0x2ed   :  { %v10402_v7 = vadd.f32 %v10401_v17, %v10400_v9  ;;  %v10403_v28 = vpop.f32.mrb[14].mxu1 }
 0x2ee   :  { %v10404_v21 = vpop.f32.mrb[15].mxu1 }
 0x2ef   :  { %v10405_v26 = vadd.f32 %v10404_v21, %v10403_v28 }
 0x2f1   :  { %v2939_v32 = vadd.f32 %v10405_v26, %v14418_v53 }
 0x2f3   :  { %v10406_v20 = vpop.f32.mrb[16].mxu1 }
 0x2f4   :  { %v10407_v48 = vpop.f32.mrb[17].mxu1 }
 0x2f5   :  { %v14411_v10 = vadd.f32 %v10407_v48, %v10406_v20  ;;  %v10409_v55 = vpop.f32.mrb[18].mxu1 }
 0x2f6   :  { %v10410_v36 = vpop.f32.mrb[19].mxu1 }
 0x2f7   :  { %v14413_v5 = vadd.f32 %v10410_v36, %v10409_v55  ;;  %v2920_v36 = vadd.f32 %v10390_v49, %v14418_v53  ;;  %v2928_v49 = vadd.f32 %v10396_v8, %v14418_v53 }
 0x2fb   :  { %v10446_v11 = vpop.f32.mrb[16].mxu0 }
 0x2fc   :  { %v10447_v57 = vpop.f32.mrb[17].mxu0  ;;  %v10412_v6 = vpop.f32.mrb[20].mxu1 }
 0x2fd   :  { %v10448_v18 = vadd.f32 %v10447_v57, %v10446_v11  ;;  %v10449_v40 = vpop.f32.mrb[18].mxu0  ;;  %v10413_v61 = vpop.f32.mrb[21].mxu1 }
 0x2fe   :  { %v10450_v4 = vpop.f32.mrb[19].mxu0  ;;  %v14421_v3 = vadd.f32 %v10413_v61, %v10412_v6  ;;  %v10415_v0 = vpop.f32.mrb[22].mxu1 }
 0x2ff   :  { %v10451_v9 = vadd.f32 %v10450_v4, %v10449_v40  ;;  %v10416_v17 = vpop.f32.mrb[23].mxu1  ;;  %v3009_v28 = vadd.f32 %v10448_v18, %v2912_v34 }
 0x300   :  { %v14424_v21 = vadd.f32 %v10416_v17, %v10415_v0 }
 0x301   :  { %v3012_v20 = vadd.f32 %v10451_v9, %v2915_v39 }
 0x303   :  { %v10452_v48 = vpop.f32.mrb[20].mxu0 }
 0x304   :  { %v10453_v55 = vpop.f32.mrb[21].mxu0 }
 0x305   :  { %v10454_v31 = vadd.f32 %v10453_v55, %v10452_v48  ;;  %v10455_v11 = vpop.f32.mrb[22].mxu0 }
 0x306   :  { %v10456_v57 = vpop.f32.mrb[23].mxu0 }
 0x307   :  { %v10457_v6 = vadd.f32 %v10456_v57, %v10455_v11  ;;  %v3017_v61 = vadd.f32 %v10454_v31, %v2920_v36 }
 0x309   :  { %v3020_v35 = vadd.f32 %v10457_v6, %v2923_v29 }
 0x30c   :  { %v10418_v52 = vpop.f32.mrb[24].mxu1 }
 0x30d   :  { %v10419_v56 = vpop.f32.mrb[25].mxu1 }
 0x30e   :  { %v14428_v40 = vadd.f32 %v10419_v56, %v10418_v52  ;;  %v10421_v34 = vpop.f32.mrb[26].mxu1 }
 0x30f   :  { %v10422_v18 = vpop.f32.mrb[27].mxu1 }
 0x310   :  { %v14430_v4 = vadd.f32 %v10422_v18, %v10421_v34  ;;  %v2936_v18 = vadd.f32 %v10402_v7, %v14418_v53 }
 0x314   :  { %v10458_v0 = vpop.f32.mrb[24].mxu0 }
 0x315   :  { %v10459_v39 = vpop.f32.mrb[25].mxu0 }
 0x316   :  { %v10460_v9 = vadd.f32 %v10459_v39, %v10458_v0  ;;  %v10461_v17 = vpop.f32.mrb[26].mxu0 }
 0x317   :  { %v10462_v48 = vpop.f32.mrb[27].mxu0 }
 0x318   :  { %v10463_v55 = vadd.f32 %v10462_v48, %v10461_v17  ;;  %v3025_v36 = vadd.f32 %v10460_v9, %v2928_v49 }
 0x31a   :  { %v3028_v29 = vadd.f32 %v10463_v55, %v2931_v47 }
 0x32f   :  { %v10424_v31 = vpop.f32.mrb[28].mxu1 }
 0x330   :  { %v10425_v11 = vpop.f32.mrb[29].mxu1 }
 0x331   :  { %v14434_v52 = vadd.f32 %v10425_v11, %v10424_v31  ;;  %v10464_v57 = vpop.f32.mrb[28].mxu0  ;;  %v10427_v6 = vpop.f32.mrb[30].mxu1 }
 0x332   :  { %v10465_v56 = vpop.f32.mrb[29].mxu0  ;;  %v10428_v34 = vpop.f32.mrb[31].mxu1 }
 0x333   :  { %v10466_v25 = vadd.f32 %v10465_v56, %v10464_v57  ;;  %v14437_v8 = vadd.f32 %v10428_v34, %v10427_v6  ;;  %v10467_v0 = vpop.f32.mrb[30].mxu0 }
 0x334   :  { %v10468_v39 = vpop.f32.mrb[31].mxu0 }
 0x335   :  { %v10469_v17 = vadd.f32 %v10468_v39, %v10467_v0  ;;  %v3033_v49 = vadd.f32 %v10466_v25, %v2936_v18 }
 0x337   :  { %v10745_v9 = vpop.f32.mrb[32].mxu1  ;;  %v3036_v48 = vadd.f32 %v10469_v17, %v2939_v32 }
 0x338   :  { %v14440_v47 = vadd.f32 %v10745_v9, %v3017_v61  ;;  %v3105_v55 = vpop.f32.mrb[33].mxu1 }
 0x339   :  { %v14442_v31 = vadd.f32 %v3105_v55, %v3009_v28  ;;  %v10746_v11 = vpop.f32.mrb[34].mxu1 }
 0x33a   :  { %v14444_v38 = vadd.f32 %v10746_v11, %v3020_v35  ;;  %v3108_v7 = vpop.f32.mrb[35].mxu1  ;;  %v3208_v26 = vmul.f32 %v14440_v47, %v14440_v47  ;;  %v3171_v56 = vsel %vm822_vm2, %v14440_v47, 0.0 }
 0x33b   :  { %v3206_v57 = vmul.f32 %v14442_v31, %v14442_v31  ;;  %v14448_v6 = vadd.f32 %v3108_v7, %v3012_v20  ;;  %v3168_v25 = vsel %vm822_vm2, %v14442_v31, 0.0 }
 0x33c   :  { %v3209_v20 = vmul.f32 %v14444_v38, %v14444_v38  ;;  %v3225_v32 = vsel %vm822_vm2, %v3208_v26, 0.0  ;;  %v3173_v17 = vsel %vm822_vm2, %v14444_v38, 0.0 }
 0x33d   :  { %v3169_v61 = vsel %vm822_vm2, %v14448_v6, 0.0  ;;  %v3207_v28 = vmul.f32 %v14448_v6, %v14448_v6  ;;  %v3222_v34 = vsel %vm822_vm2, %v3206_v57, 0.0 }
 0x33e   :  { %v3170_v35 = vadd.f32 %v3169_v61, %v3168_v25  ;;  %v3227_v57 = vsel %vm822_vm2, %v3209_v20, 0.0 }
 0x33f   :  { %v3223_v18 = vsel %vm822_vm2, %v3207_v28, 0.0 }
 0x340   :  { %v3172_v0 = vadd.f32 %v3171_v56, %v3170_v35  ;;  %v3224_v39 = vadd.f32 %v3223_v18, %v3222_v34  ;;  %v10749_v9 = vpop.f32.mrb[36].mxu1 }
 0x341   :  { %v14467_v11 = vadd.f32 %v10749_v9, %v3033_v49  ;;  %v3121_v7 = vpop.f32.mrb[37].mxu1 }
 0x342   :  { %v3226_v55 = vadd.f32 %v3225_v32, %v3224_v39  ;;  %v3174_v25 = vadd.f32 %v3173_v17, %v3172_v0  ;;  %v14470_v61 = vadd.f32 %v3121_v7, %v3025_v36  ;;  %v10750_v27 = vpop.f32.mrb[38].mxu1 }
 0x343   :  { %v14472_v28 = vadd.f32 %v10750_v27, %v3036_v48  ;;  %v3124_v35 = vpop.f32.mrb[39].mxu1  ;;  %v3212_v18 = vmul.f32 %v14467_v11, %v14467_v11  ;;  %v3179_v39 = vsel %vm822_vm2, %v14467_v11, 0.0 }
 0x344   :  { %v3228_v59 = vadd.f32 %v3227_v57, %v3226_v55  ;;  %v3175_v26 = vsel %vm822_vm2, %v14470_v61, 0.0  ;;  %v3210_v56 = vmul.f32 %v14470_v61, %v14470_v61  ;;  %v14478_v34 = vadd.f32 %v3124_v35, %v3028_v29 }
 0x345   :  { %v3176_v49 = vadd.f32 %v3175_v26, %v3174_v25  ;;  %v3233_v9 = vsel %vm822_vm2, %v3212_v18, 0.0  ;;  %v2944_v57 = vadd.f32 %v14411_v10, %v14418_v53 }
 0x346   :  { %v3229_v36 = vsel %vm822_vm2, %v3210_v56, 0.0  ;;  %v3177_v20 = vsel %vm822_vm2, %v14478_v34, 0.0  ;;  %v3211_v27 = vmul.f32 %v14478_v34, %v14478_v34 }
 0x347   :  { %v3230_v48 = vadd.f32 %v3229_v36, %v3228_v59  ;;  %v3178_v0 = vadd.f32 %v3177_v20, %v3176_v49  ;;  %v2947_v59 = vadd.f32 %v14413_v5, %v14418_v53 }
 0x348   :  { %v3231_v29 = vsel %vm822_vm2, %v3211_v27, 0.0  ;;  %v3213_v27 = vmul.f32 %v14472_v28, %v14472_v28 }
 0x349   :  { %v3180_v32 = vadd.f32 %v3179_v39, %v3178_v0  ;;  %v3232_v17 = vadd.f32 %v3231_v29, %v3230_v48  ;;  %v3181_v0 = vsel %vm822_vm2, %v14472_v28, 0.0 }
 0x34b   :  { %v3234_v55 = vadd.f32 %v3233_v9, %v3232_v17  ;;  %v3182_v29 = vadd.f32 %v3181_v0, %v3180_v32  ;;  %v3235_v9 = vsel %vm822_vm2, %v3213_v27, 0.0 }
 0x34f   :  { %v10470_v7 = vpop.f32.mrb[32].mxu0 }
 0x350   :  { %v10471_v25 = vpop.f32.mrb[33].mxu0 }
 0x351   :  { %v10472_v35 = vadd.f32 %v10471_v25, %v10470_v7  ;;  %v10473_v26 = vpop.f32.mrb[34].mxu0 }
 0x352   :  { %v10474_v56 = vpop.f32.mrb[35].mxu0 }
 0x353   :  { %v10475_v49 = vadd.f32 %v10474_v56, %v10473_v26  ;;  %v3041_v36 = vadd.f32 %v10472_v35, %v2944_v57  ;;  %v3236_v35 = vadd.f32 %v3235_v9, %v3234_v55  ;;  %v2955_v9 = vadd.f32 %v14424_v21, %v14418_v53 }
 0x355   :  { %v3044_v20 = vadd.f32 %v10475_v49, %v2947_v59 }
 0x35f   :  { %v10753_v48 = vpop.f32.mrb[40].mxu1 }
 0x360   :  { %v3137_v18 = vpop.f32.mrb[41].mxu1 }
 0x361   :  { %v14499_v39 = vadd.f32 %v3137_v18, %v3041_v36  ;;  %v10754_v10 = vpop.f32.mrb[42].mxu1 }
 0x362   :  { %v3140_v17 = vpop.f32.mrb[43].mxu1 }
 0x363   :  { %v3183_v5 = vsel %vm822_vm2, %v14499_v39, 0.0  ;;  %v3214_v7 = vmul.f32 %v14499_v39, %v14499_v39  ;;  %v14506_v25 = vadd.f32 %v3140_v17, %v3044_v20  ;;  %v2952_v20 = vadd.f32 %v14421_v3, %v14418_v53 }
 0x364   :  { %v3184_v57 = vadd.f32 %v3183_v5, %v3182_v29 }
 0x365   :  { %v3237_v26 = vsel %vm822_vm2, %v3214_v7, 0.0  ;;  %v3185_v56 = vsel %vm822_vm2, %v14506_v25, 0.0  ;;  %v3215_v32 = vmul.f32 %v14506_v25, %v14506_v25 }
 0x366   :  { %v3238_v59 = vadd.f32 %v3237_v26, %v3236_v35  ;;  %v3186_v49 = vadd.f32 %v3185_v56, %v3184_v57 }
 0x367   :  { %v3239_v36 = vsel %vm822_vm2, %v3215_v32, 0.0 }
 0x368   :  { %v3240_v27 = vadd.f32 %v3239_v36, %v3238_v59 }
 0x36c   :  { %v10476_v18 = vpop.f32.mrb[36].mxu0 }
 0x36d   :  { %v10477_v0 = vpop.f32.mrb[37].mxu0 }
 0x36e   :  { %v10478_v29 = vadd.f32 %v10477_v0, %v10476_v18  ;;  %v10479_v55 = vpop.f32.mrb[38].mxu0  ;;  %v2960_v18 = vadd.f32 %v14428_v40, %v14418_v53  ;;  %v11453_v40 = vld [vmem:[%s18169_s8 + $0x40] sm:$0xff]  }
 0x36f   :  { %v10480_v17 = vpop.f32.mrb[39].mxu0  ;;  %10506 = vmatprep.subr.bf16.mxu0 %v11453_v40 }
 0x370   :  { %v3049_v5 = vadd.f32 %v10478_v29, %v2952_v20  ;;  %v10481_v7 = vadd.f32 %v10480_v17, %v10479_v55 }
 0x372   :  { %v14518_v1 = vadd.f32 %v10753_v48, %v3049_v5  ;;  %v3052_v35 = vadd.f32 %v10481_v7, %v2955_v9  ;;  %v2963_v9 = vadd.f32 %v14430_v4, %v14418_v53 }
 0x374   :  { %v3187_v57 = vsel %vm822_vm2, %v14518_v1, 0.0  ;;  %v3216_v26 = vmul.f32 %v14518_v1, %v14518_v1  ;;  %v14524_v56 = vadd.f32 %v10754_v10, %v3052_v35 }
 0x375   :  { %v10482_v3 = vpop.f32.mrb[40].mxu0  ;;  %v3188_v32 = vadd.f32 %v3187_v57, %v3186_v49 }
 0x376   :  { %v3241_v59 = vsel %vm822_vm2, %v3216_v26, 0.0  ;;  %v3217_v21 = vmul.f32 %v14524_v56, %v14524_v56  ;;  %v10483_v36 = vpop.f32.mrb[41].mxu0  ;;  %v3189_v48 = vsel %vm822_vm2, %v14524_v56, 0.0 }
 0x377   :  { %v10484_v0 = vadd.f32 %v10483_v36, %v10482_v3  ;;  %v10485_v20 = vpop.f32.mrb[42].mxu0  ;;  %v3190_v29 = vadd.f32 %v3189_v48, %v3188_v32  ;;  %v3242_v55 = vadd.f32 %v3241_v59, %v3240_v27  ;;  %v11454_v27 = vld [vmem:[%s18169_s8] sm:$0xff]   ;;  %v11455_v3 = vld [vmem:[%s18169_s8 + $0x48] sm:$0xff]  }
 0x378   :  { %v10757_v10 = vpop.f32.mrb[44].mxu1  ;;  %v3243_v17 = vsel %vm822_vm2, %v3217_v21, 0.0  ;;  %v10486_v49 = vpop.f32.mrb[43].mxu0  ;;  %10507 = vmatpush3.bf16.msra.mxu0 %v11454_v27 }
 0x379   :  { %v3057_v5 = vadd.f32 %v10484_v0, %v2960_v18  ;;  %v3153_v7 = vpop.f32.mrb[45].mxu1  ;;  %v3244_v35 = vadd.f32 %v3243_v17, %v3242_v55  ;;  %v10487_v57 = vadd.f32 %v10486_v49, %v10485_v20  ;;  %v11456_v0 = vld [vmem:[%s18169_s8 + $0x8] sm:$0xff]   ;;  %v2968_v20 = vadd.f32 %v14434_v52, %v14418_v53  ;;  %10508 = vmatprep.subr.bf16.mxu0 %v11455_v3  ;;  %v11457_v49 = vld [vmem:[%s18169_s8 + $0x50] sm:$0xff]  }
 0x37a   :  { %v10758_v26 = vpop.f32.mrb[46].mxu1 }
 0x37b   :  { %v14545_v32 = vadd.f32 %v3153_v7, %v3057_v5  ;;  %v3060_v4 = vadd.f32 %v10487_v57, %v2963_v9  ;;  %v3156_v59 = vpop.f32.mrb[47].mxu1 }
 0x37c   :  { %10509 = vmatpush3.bf16.msra.mxu0 %v11456_v0 }
 0x37d   :  { %v3191_v21 = vsel %vm822_vm2, %v14545_v32, 0.0  ;;  %v3218_v36 = vmul.f32 %v14545_v32, %v14545_v32  ;;  %v14551_v48 = vadd.f32 %v3156_v59, %v3060_v4  ;;  %v10488_v18 = vpop.f32.mrb[44].mxu0  ;;  %10510 = vmatprep.subr.bf16.mxu0 %v11457_v49 }
 0x37e   :  { %v3192_v55 = vadd.f32 %v3191_v21, %v3190_v29  ;;  %v10489_v17 = vpop.f32.mrb[45].mxu0  ;;  %v2971_v29 = vadd.f32 %v14437_v8, %v14418_v53 }
 0x37f   :  { %v3245_v9 = vsel %vm822_vm2, %v3218_v36, 0.0  ;;  %v3193_v5 = vsel %vm822_vm2, %v14551_v48, 0.0  ;;  %v3219_v7 = vmul.f32 %v14551_v48, %v14551_v48  ;;  %v10490_v57 = vadd.f32 %v10489_v17, %v10488_v18  ;;  %v10491_v40 = vpop.f32.mrb[46].mxu0  ;;  %v11458_v36 = vld [vmem:[%s18169_s8 + $0x10] sm:$0xff]  }
 0x380   :  { %v3246_v27 = vadd.f32 %v3245_v9, %v3244_v35  ;;  %v3194_v4 = vadd.f32 %v3193_v5, %v3192_v55  ;;  %v10492_v52 = vpop.f32.mrb[47].mxu0  ;;  %v11459_v35 = vld [vmem:[%s18169_s8 + $0x58] sm:$0xff]   ;;  %10511 = vmatpush3.bf16.msra.mxu0 %v11458_v36 }
 0x381   :  { %v3247_v3 = vsel %vm822_vm2, %v3219_v7, 0.0  ;;  %v3065_v59 = vadd.f32 %v10490_v57, %v2968_v20  ;;  %v10493_v21 = vadd.f32 %v10492_v52, %v10491_v40  ;;  %v11460_v20 = vld [vmem:[%s18169_s8 + $0x18] sm:$0xff]   ;;  %10512 = vmatprep.subr.bf16.mxu0 %v11459_v35  ;;  %v11462_v40 = vld [vmem:[%s18169_s8 + $0x20] sm:$0xff]   ;;  %v11463_v52 = vld [vmem:[%s18169_s8 + $0x68] sm:$0xff]  }
 0x382   :  { %v3248_v37 = vadd.f32 %v3247_v3, %v3246_v27 }
 0x383   :  { %v14575_v18 = vadd.f32 %v10757_v10, %v3065_v59  ;;  %v3068_v55 = vadd.f32 %v10493_v21, %v2971_v29  ;;  %v11461_v10 = vld [vmem:[%s18169_s8 + $0x60] sm:$0xff]  }
 0x384   :  { %10513 = vmatpush3.bf16.msra.mxu0 %v11460_v20 }
 0x385   :  { %v3195_v53 = vsel %vm822_vm2, %v14575_v18, 0.0  ;;  %v3220_v8 = vmul.f32 %v14575_v18, %v14575_v18  ;;  %v3165_v0 = vadd.f32 %v10758_v26, %v3068_v55  ;;  %10514 = vmatprep.subr.bf16.mxu0 %v11461_v10 }
 0x386   :  { %v3196_v17 = vadd.f32 %v3195_v53, %v3194_v4 }
 0x387   :  { %v3249_v49 = vsel %vm822_vm2, %v3220_v8, 0.0  ;;  %v3197_v9 = vsel %vm822_vm2, %v3165_v0, 0.0  ;;  %v3221_v5 = vmul.f32 %v3165_v0, %v3165_v0 }
 0x388   :  { %v3250_v7 = vadd.f32 %v3249_v49, %v3248_v37  ;;  %v3198_v57 = vadd.f32 %v3197_v9, %v3196_v17  ;;  %10515 = vmatpush3.bf16.msra.mxu0 %v11462_v40  ;;  %v11464_v37 = vld [vmem:[%s18169_s8 + $0x28] sm:$0xff]  }
 0x389   :  { %v3251_v26 = vsel %vm822_vm2, %v3221_v5, 0.0  ;;  %10516 = vmatprep.subr.bf16.mxu0 %v11463_v52 }
 0x38a   :  { %v3199_v27 = vrot.slane %v3198_v57, 4  ;;  %v3252_v4 = vadd.f32 %v3251_v26, %v3250_v7 }
 0x38c   :  { %v3200_v29 = vadd.f32 %v3199_v27, %v3198_v57  ;;  %v3253_v3 = vrot.slane %v3252_v4, 4  ;;  %10517 = vmatpush3.bf16.msra.mxu0 %v11464_v37 }
 0x38e   :  { %v3201_v59 = vrot.slane %v3200_v29, 2  ;;  %v3254_v21 = vadd.f32 %v3253_v3, %v3252_v4 }
 0x390   :  { %v3202_v36 = vadd.f32 %v3201_v59, %v3200_v29  ;;  %v3255_v35 = vrot.slane %v3254_v21, 2  ;;  %v14637_v59 = vld [vmem:[%s18168_s7 + $0x1] ss:$0 sm:$0xff]  ;;  %v18900_v29 = vld [vmem:[#allocation8_spill] sm:$0xff] }
 0x392   :  { %v3203_v55 = vrot.slane %v3202_v36, 1  ;;  %v3256_v53 = vadd.f32 %v3255_v35, %v3254_v21 }
 0x394   :  { %v3204_v8 = vadd.f32 %v3203_v55, %v3202_v36  ;;  %v3257_v20 = vrot.slane %v3256_v53, 1 }
 0x396   :  { %v14599_v17 = vmul.f32 0.0078125, %v3204_v8  ;;  %v3258_v10 = vadd.f32 %v3257_v20, %v3256_v53  ;;  %v14648_v53 = vld [vmem:[%s18168_s7 + $0x2] ss:$0 sm:$0xff] }
 0x398   :  { %v3259_v49 = vmul.f32 0.0078125, %v3258_v10  ;;  %v3260_v9 = vmul.f32 %v14599_v17, %v14599_v17  ;;  %v3279_v5 = vsub.f32 %v3165_v0, %v14599_v17  ;;  %v3264_v7 = vsub.f32 %v14442_v31, %v14599_v17  ;;  %v18903_v31 = vld [vmem:[#allocation57_spill] sm:$0xff] }
 0x399   :  { %v3265_v57 = vsub.f32 %v14448_v6, %v14599_v17  ;;  %v3266_v26 = vsub.f32 %v14440_v47, %v14599_v17  ;;  %v3267_v40 = vsub.f32 %v14444_v38, %v14599_v17  ;;  %v3268_v27 = vsub.f32 %v14470_v61, %v14599_v17  ;;  %v18901_v38 = vld [vmem:[#allocation9_spill] sm:$0xff]  ;;  %v18902_v47 = vld [vmem:[#allocation51_spill] sm:$0xff] }
 0x39a   :  { %v3261_v4 = vsub.f32 %v3259_v49, %v3260_v9  ;;  %v3269_v52 = vsub.f32 %v14478_v34, %v14599_v17  ;;  %v3270_v0 = vsub.f32 %v14467_v11, %v14599_v17 }
 0x39c   :  { %v3262_v61 = vmax.f32 %v3261_v4, 0.0 }
 0x39e   :  { %v3280_v3 = vadd.f32 1e-05, %v3262_v61 }
 0x3a0   :  { %11491 = vrsqrt.f32 %v3280_v3 }
 0x3aa   :  { %v14632_v37 = vpop.eup %11491 }
 0x3ab   :  { %v14640_v21 = vmul.f32 %v14632_v37, %v3279_v5  ;;  %v3282_v36 = vmul.f32 %v14632_v37, %v3264_v7  ;;  %v3283_v35 = vmul.f32 %v14632_v37, %v3265_v57  ;;  %v3284_v55 = vmul.f32 %v14632_v37, %v3266_v26  ;;  %v11465_v57 = vld [vmem:[%s18169_s8 + $0x70] sm:$0xff]  }
 0x3ac   :  { %v3285_v8 = vmul.f32 %v14632_v37, %v3267_v40  ;;  %v3286_v20 = vmul.f32 %v14632_v37, %v3268_v27  ;;  %v3287_v10 = vmul.f32 %v14632_v37, %v3269_v52  ;;  %v3288_v49 = vmul.f32 %v14632_v37, %v3270_v0  ;;  %v11466_v26 = vld [vmem:[%s18169_s8 + $0x30] sm:$0xff]   ;;  %10518 = vmatprep.subr.bf16.mxu0 %v11465_v57 }
 0x3ad   :  { %v3302_v9 = vmul.f32 %v14637_v59, %v3282_v36  ;;  %v3303_v5 = vmul.f32 %v14637_v59, %v3283_v35  ;;  %v3304_v7 = vmul.f32 %v14637_v59, %v3284_v55  ;;  %10519 = vmatpush3.bf16.msra.mxu0 %v11466_v26  ;;  %v3271_v26 = vsub.f32 %v14472_v28, %v14599_v17 }
 0x3ae   :  { %v3305_v40 = vmul.f32 %v14637_v59, %v3285_v8  ;;  %v3306_v27 = vmul.f32 %v14637_v59, %v3286_v20  ;;  %v3307_v4 = vmul.f32 %v14637_v59, %v3287_v10  ;;  %v3308_v52 = vmul.f32 %v14637_v59, %v3288_v49 }
 0x3af   :  { %v3323_v0 = vadd.f32 %v14648_v53, %v3302_v9  ;;  %v3324_v61 = vadd.f32 %v14648_v53, %v3303_v5  ;;  %v3325_v3 = vadd.f32 %v14648_v53, %v3304_v7  ;;  %v18895_v7 = vld [vmem:[#allocation54_spill] sm:$0xff] }
 0x3b0   :  { %v3326_v36 = vadd.f32 %v14648_v53, %v3305_v40  ;;  %v3327_v35 = vadd.f32 %v14648_v53, %v3306_v27  ;;  %v3328_v55 = vadd.f32 %v14648_v53, %v3307_v4  ;;  %v3329_v8 = vadd.f32 %v14648_v53, %v3308_v52  ;;  %v18896_v40 = vld [vmem:[#allocation55_spill] sm:$0xff]  ;;  %v18897_v4 = vld [vmem:[#allocation6_spill] sm:$0xff] }
 0x3b1   :  { %v14674_v20 = vmax.f32 %v3323_v0, 0.0  ;;  %v14676_v10 = vmax.f32 %v3324_v61, 0.0  ;;  %v14678_v49 = vmax.f32 %v3325_v3, 0.0  ;;  %v18898_v0 = vld [vmem:[#allocation7_spill] sm:$0xff]  ;;  %v18899_v3 = vld [vmem:[#allocation29_spill] sm:$0xff] }
 0x3b2   :  { %v14680_v9 = vmax.f32 %v3326_v36, 0.0  ;;  %v14682_v5 = vmax.f32 %v3327_v35, 0.0  ;;  %v14696_v35 = vmax.f32 %v3328_v55, 0.0  ;;  %v14698_v11 = vmax.f32 %v3329_v8, 0.0  ;;  %v11467_v55 = vld [vmem:[%s18169_s8 + $0x78] sm:$0xff]   ;;  %v11468_v8 = vld [vmem:[%s18169_s8 + $0xc0] sm:$0xff]  }
 0x3b3   :  { %v3401_v57 = vmul.f32 %v14674_v20, %v18895_v7  ;;  %v3402_v27 = vmul.f32 %v14676_v10, %v18896_v40  ;;  %v3370_v52 = vmul.f32 %v14674_v20, %v18897_v4  ;;  %v3371_v61 = vmul.f32 %v14676_v10, %v18898_v0  ;;  %10520 = vmatprep.subr.bf16.mxu0 %v11467_v55 }
 0x3b4   :  { %v3372_v36 = vmul.f32 %v14678_v49, %v18899_v3  ;;  %v3373_v40 = vmul.f32 %v14680_v9, %v18900_v29  ;;  %v3374_v4 = vmul.f32 %v14682_v5, %v18901_v38  ;;  %v3403_v28 = vmul.f32 %v14678_v49, %v18902_v47  ;;  %v11469_v38 = vld [vmem:[%s18169_s8 + $0x38] sm:$0xff]   ;;  %10570 = vmatprep.subr.bf16.mxu1 %v11468_v8 }
 0x3b5   :  { %v11174_v7 = vpack.i.bf16 %v3402_v27, %v3401_v57  ;;  %v3510_v34 = vrot.slane %v3370_v52, 1  ;;  %v3512_v6 = vrot.slane %v3371_v61, 1  ;;  %v3404_v3 = vmul.f32 %v14680_v9, %v18903_v31  ;;  %v18904_v47 = vld [vmem:[#allocation92_spill] sm:$0xff]  ;;  %v18905_v57 = vld [vmem:[#allocation61_spill] sm:$0xff]  ;;  %10521 = vmatpush3.bf16.msra.mxu0 %v11469_v38 }
 0x3b6   :  { %v3514_v0 = vrot.slane %v3372_v36, 1  ;;  %v3405_v31 = vmul.f32 %v14682_v5, %v18905_v57  ;;  %v3516_v27 = vrot.slane %v3373_v40, 1  ;;  %v3518_v52 = vrot.slane %v3374_v4, 1  ;;  %v11471_v40 = vld [vmem:[%s18169_s8 + $0xc8] sm:$0xff]  }
 0x3b7   :  { %11175 = vrot.lane.b32.xlu0 %v11174_v7, %s11615_s30  ;;  %v3511_v29 = vsel %vm1011_vm3, %v18904_v47, %v3510_v34  ;;  %v3513_v36 = vsel %vm1011_vm3, %v3510_v34, %v3512_v6  ;;  %v3375_v30 = vmul.f32 %v14696_v35, %v18906_v19  ;;  %v11470_v7 = vld [vmem:[%s18169_s8 + $0x80] sm:$0xff]   ;;  %v18909_v8 = vsub.f32 %v14506_v25, %v14599_v17  ;;  %v11472_v25 = vld [vmem:[%s18169_s8 + $0x88] sm:$0xff]  }
 0x3b8   :  { %v11179_v61 = vpack.i.bf16 %v3511_v29, %v3403_v28  ;;  %v3515_v43 = vsel %vm1011_vm3, %v3512_v6, %v3514_v0  ;;  %v3517_v47 = vsel %vm1011_vm3, %v3514_v0, %v3516_v27  ;;  %v3519_v6 = vsel %vm1011_vm3, %v3516_v27, %v3518_v52  ;;  %v18907_v34 = vld [vmem:[#allocation10_spill] sm:$0xff]  ;;  %10571 = vmatpush3.bf16.msra.mxu1 %v11470_v7 }
 0x3b9   :  { %v11184_v14 = vpack.i.bf16 %v3515_v43, %v3513_v36  ;;  %v14737_v19 = vmul.f32 %v14698_v11, %v18907_v34  ;;  %v3520_v4 = vrot.slane %v3375_v30, 1  ;;  %v3289_v28 = vmul.f32 %v14632_v37, %v3271_v26  ;;  %v18911_v26 = vld [vmem:[#allocation56_spill] sm:$0xff]  ;;  %10572 = vmatprep.subr.bf16.mxu1 %v11471_v40 }
 0x3ba   :  { %11180 = vrot.lane.b32.xlu1 %v11179_v61, %s11615_s30  ;;  %v11189_v43 = vpack.i.bf16 %v3405_v31, %v3404_v3  ;;  %v18908_v0 = vsub.f32 %v14499_v39, %v14599_v17  ;;  %v3291_v29 = vmul.f32 %v14632_v37, %v18909_v8  ;;  %v18910_v57 = vsub.f32 %v14518_v1, %v14599_v17 }
 0x3bb   :  { %11185 = vrot.lane.b32.xlu0 %v11184_v14, %s11615_s30  ;;  %v3406_v38 = vmul.f32 %v14696_v35, %v18911_v26  ;;  %v18912_v14 = vld [vmem:[#allocation68_spill] sm:$0xff]  ;;  %v3522_v39 = vrot.slane %v14737_v19, 1  ;;  %v3309_v31 = vmul.f32 %v14637_v59, %v3289_v28  ;;  %v11194_v27 = vpack.i.bf16 %v3519_v6, %v3517_v47  ;;  %v18913_v28 = vld [vmem:[#allocation14_spill] sm:$0xff] }
 0x3bc   :  { %v3290_v55 = vmul.f32 %v14632_v37, %v18908_v0  ;;  %v3292_v30 = vmul.f32 %v14632_v37, %v18910_v57  ;;  %v3407_v3 = vmul.f32 %v14698_v11, %v18912_v14  ;;  %v3311_v61 = vmul.f32 %v14637_v59, %v3291_v29  ;;  %10573 = vmatpush3.bf16.msra.mxu1 %v11472_v25  ;;  %v11473_v57 = vld [vmem:[%s18169_s8 + $0xd0] sm:$0xff]   ;;  %v18917_v25 = vld [vmem:[#allocation69_spill] sm:$0xff] }
 0x3bd   :  { %v3521_v34 = vsel %vm1011_vm3, %v3518_v52, %v3520_v4  ;;  %v3523_v19 = vsel %vm1011_vm3, %v3520_v4, %v3522_v39  ;;  %v3330_v7 = vadd.f32 %v14648_v53, %v3309_v31  ;;  %v14771_v0 = vmul.f32 %v14676_v10, %v18913_v28  ;;  %v18915_v4 = vld [vmem:[#allocation49_spill] sm:$0xff]  ;;  %v11475_v26 = vld [vmem:[%s18169_s8 + $0x90] sm:$0xff]   ;;  %10574 = vmatprep.subr.bf16.mxu1 %v11473_v57 }
 0x3be   :  { %v3310_v1 = vmul.f32 %v14637_v59, %v3290_v55  ;;  %v3312_v36 = vmul.f32 %v14637_v59, %v3292_v30  ;;  %11190 = vrot.lane.b32.xlu1 %v11189_v43, %s11615_s30  ;;  %v3332_v6 = vadd.f32 %v14648_v53, %v3311_v61  ;;  %v18914_v55 = vld [vmem:[#allocation15_spill] sm:$0xff]  ;;  %v11199_v52 = vpack.i.bf16 %v3407_v3, %v3406_v38  ;;  %v14789_v30 = vld [vmem:[%s18169_s8 + $0x100] sm:$0xff]   ;;  %v18921_v28 = vld [vmem:[#allocation12_spill] sm:$0xff] }
 0x3bf   :  { %11195 = vrot.lane.b32.xlu0 %v11194_v27, %s11615_s30  ;;  %v3466_v43 = vmul.f32 %v14678_v49, %v18914_v55  ;;  %v14779_v8 = vmax.f32 %v3330_v7, 0.0  ;;  %v3467_v29 = vmul.f32 %v14680_v9, %v18915_v4  ;;  %18916 = vst [vmem:[#allocation54_spill] sm:$0xff] %v14789_v30  ;;  %v11214_v38 = vpack.i.bf16 %v3523_v19, %v3521_v34  ;;  %v18920_v34 = vld [vmem:[#allocation71_spill] sm:$0xff]  ;;  %v18922_v4 = vld [vmem:[#allocation17_spill] sm:$0xff] }
 0x3c0   :  { %v3331_v47 = vadd.f32 %v14648_v53, %v3310_v1  ;;  %v3333_v40 = vadd.f32 %v14648_v53, %v3312_v36  ;;  %v14796_v3 = vmax.f32 %v3332_v6, 0.0  ;;  %v18918_v1 = vld [vmem:[#allocation11_spill] sm:$0xff]  ;;  %v18919_v36 = vld [vmem:[#allocation16_spill] sm:$0xff]  ;;  %v3894_v6 = vrot.slane %v14771_v0, 1  ;;  %10759 = vmatprep.subr.bf16.mxu0 %v14789_v30  ;;  %10575 = vmatpush3.bf16.msra.mxu1 %v11475_v26 }
 0x3c1   :  { %v3408_v27 = vmul.f32 %v14779_v8, %v18917_v25  ;;  %v3377_v61 = vmul.f32 %v14779_v8, %v18918_v1  ;;  %v14807_v7 = vmul.f32 %v14682_v5, %v18919_v36  ;;  %v18923_v1 = vld [vmem:[#allocation36_spill] sm:$0xff]  ;;  %v18926_v30 = vld [vmem:[#allocation63_spill] sm:$0xff] }
 0x3c2   :  { %v14794_v14 = vmax.f32 %v3331_v47, 0.0  ;;  %v14798_v31 = vmax.f32 %v3333_v40, 0.0  ;;  %11200 = vrot.lane.b32.xlu1 %v11199_v52, %s11615_s30  ;;  %v3895_v40 = vrot.slane %v3466_v43, 1  ;;  %v3897_v52 = vrot.slane %v3467_v29, 1  ;;  %v11476_v57 = vld [vmem:[%s18169_s8 + $0xd8] sm:$0xff]  }
 0x3c3   :  { %11215 = vrot.lane.b32.xlu0 %v11214_v38, %s11615_s30  ;;  %v3524_v55 = vrot.slane %v3377_v61, 1  ;;  %v3379_v25 = vmul.f32 %v14796_v3, %v18922_v4  ;;  %v11477_v0 = vld [vmem:[%s18169_s8 + $0x98] sm:$0xff]   ;;  %v18924_v38 = vld [vmem:[#allocation86_spill] sm:$0xff]  ;;  %v3433_v45 = vmul.f32 %v14674_v20, %v18926_v30  ;;  %10576 = vmatprep.subr.bf16.mxu1 %v11476_v57 }
 0x3c4   :  { %v3409_v19 = vmul.f32 %v14794_v14, %v18920_v34  ;;  %v3378_v47 = vmul.f32 %v14794_v14, %v18921_v28  ;;  %v14819_v36 = vmul.f32 %v14798_v31, %v18923_v1  ;;  %v3410_v61 = vmul.f32 %v14796_v3, %v18924_v38  ;;  %v18925_v34 = vld [vmem:[#allocation87_spill] sm:$0xff]  ;;  %10577 = vmatpush3.bf16.msra.mxu1 %v11477_v0 }
 0x3c5   :  { %v3411_v28 = vmul.f32 %v14798_v31, %v18925_v34  ;;  %v3525_v4 = vsel %vm1011_vm3, %v3522_v39, %v3524_v55  ;;  %v3528_v1 = vrot.slane %v3379_v25, 1  ;;  %v18928_v38 = vld [vmem:[#allocation31_spill] sm:$0xff]  ;;  %v3896_v25 = vsel %vm1011_vm3, %v3894_v6, %v3895_v40 }
 0x3c6   :  { %v11204_v43 = vpack.i.bf16 %v3409_v19, %v3408_v27  ;;  %v3526_v29 = vrot.slane %v3378_v47, 1  ;;  %v18927_v19 = vld [vmem:[#allocation72_spill] sm:$0xff]  ;;  %v3435_v12 = vmul.f32 %v14678_v49, %v18928_v38  ;;  %v18929_v34 = vld [vmem:[#allocation95_spill] sm:$0xff]  ;;  %v3530_v30 = vrot.slane %v14819_v36, 1  ;;  %v18948_v36 = vld [vmem:[#allocation97_spill] sm:$0xff] }
 0x3c7   :  { %v3434_v47 = vmul.f32 %v14676_v10, %v18927_v19  ;;  %v14844_v39 = vmul.f32 %v14680_v9, %v18929_v34  ;;  %v3796_v57 = vrot.slane %v3433_v45, 2  ;;  %v3898_v34 = vsel %vm1011_vm3, %v3895_v40, %v3897_v52 }
 0x3c8   :  { %11205 = vrot.lane.b32.xlu1 %v11204_v43, %s11615_s30  ;;  %v3527_v27 = vsel %vm1011_vm3, %v3524_v55, %v3526_v29  ;;  %v11478_v55 = vld [vmem:[%s18169_s8 + $0xe0] sm:$0xff]   ;;  %v11209_v43 = vpack.i.bf16 %v3411_v28, %v3410_v61  ;;  %v3799_v2 = vrot.slane %v3435_v12, 2  ;;  %v18931_v45 = vsub.f32 %v14524_v56, %v14599_v17  ;;  %v18933_v56 = vld [vmem:[#allocation20_spill] sm:$0xff] }
 0x3c9   :  { %v11219_v26 = vpack.i.bf16 %v3527_v27, %v3525_v4  ;;  %v3797_v19 = vrot.slane %v3434_v47, 2  ;;  %v18426_v38 = vrot.slane %v14844_v39, 2  ;;  %v18930_v4 = vrot.slane %v14807_v7, 1  ;;  %v11479_v28 = vld [vmem:[%s18169_s8 + $0xa0] sm:$0xff]   ;;  %10578 = vmatprep.subr.bf16.mxu1 %v11478_v55 }
 0x3ca   :  { %v3293_v0 = vmul.f32 %v14632_v37, %v18931_v45  ;;  %v18932_v61 = vsub.f32 %v14545_v32, %v14599_v17  ;;  %v3317_v40 = vmul.f32 %v14637_v59, %v14640_v21  ;;  %v3469_v47 = vmul.f32 %v14696_v35, %v18933_v56  ;;  %10579 = vmatpush3.bf16.msra.mxu1 %v11479_v28 }
 0x3cb   :  { %11220 = vrot.lane.b32.xlu0 %v11219_v26, %s11615_s30  ;;  %v3900_v27 = vsel %vm1011_vm3, %v3897_v52, %v18930_v4  ;;  %v11224_v52 = vpack.i.bf16 %v3896_v25, %v3894_v6  ;;  %v3529_v26 = vsel %vm1011_vm3, %v3526_v29, %v3528_v1  ;;  %v3531_v32 = vsel %vm1011_vm3, %v3528_v1, %v3530_v30  ;;  %v18934_v29 = vld [vmem:[#allocation60_spill] sm:$0xff] }
 0x3cc   :  { %v3294_v12 = vmul.f32 %v14632_v37, %v18932_v61  ;;  %11210 = vrot.lane.b32.xlu1 %v11209_v43, %s11615_s30  ;;  %v3798_v4 = vsel %vm721_vm1, %v3796_v57, %v3797_v19  ;;  %v3313_v45 = vmul.f32 %v14637_v59, %v3293_v0  ;;  %v11229_v21 = vpack.i.bf16 %v3900_v27, %v3898_v34 }
 0x3cd   :  { %v3800_v43 = vsel %vm721_vm1, %v3797_v19, %v3799_v2  ;;  %v3802_v6 = vsel %vm721_vm1, %v3799_v2, %v18426_v38  ;;  %v14886_v25 = vmul.f32 %v14698_v11, %v18934_v29  ;;  %v18935_v55 = vsub.f32 %v14551_v48, %v14599_v17  ;;  %v18938_v48 = vld [vmem:[#allocation19_spill] sm:$0xff] }
 0x3ce   :  { %v3314_v61 = vmul.f32 %v14637_v59, %v3294_v12  ;;  %v3334_v1 = vadd.f32 %v14648_v53, %v3313_v45  ;;  %v18936_v34 = vsub.f32 %v14575_v18, %v14599_v17  ;;  %v11234_v27 = vpack.i.bf16 %v3531_v32, %v3529_v26  ;;  %v11480_v17 = vld [vmem:[%s18169_s8 + $0xe8] sm:$0xff]   ;;  %v18939_v32 = vld [vmem:[#allocation25_spill] sm:$0xff] }
 0x3cf   :  { %11225 = vrot.lane.b32.xlu0 %v11224_v52, %s11615_s30  ;;  %v3295_v19 = vmul.f32 %v14632_v37, %v18935_v55  ;;  %v11239_v12 = vpack.i.bf16 %v3798_v4, %v3796_v57  ;;  %v3901_v28 = vrot.slane %v3469_v47, 1  ;;  %v18937_v52 = vld [vmem:[#allocation18_spill] sm:$0xff]  ;;  %v14908_v29 = vmul.f32 %v14696_v35, %v18938_v48  ;;  %10580 = vmatprep.subr.bf16.mxu1 %v11480_v17 }
 0x3d0   :  { %v3335_v0 = vadd.f32 %v14648_v53, %v3314_v61  ;;  %v3296_v2 = vmul.f32 %v14632_v37, %v18936_v34  ;;  %11230 = vrot.lane.b32.xlu1 %v11229_v21, %s11615_s30  ;;  %v3437_v56 = vmul.f32 %v14682_v5, %v18937_v52  ;;  %v14902_v45 = vmax.f32 %v3334_v1, 0.0  ;;  %v11481_v37 = vld [vmem:[%s18169_s8 + $0xa8] sm:$0xff]   ;;  %v11482_v21 = vld [vmem:[%s18169_s8 + $0xf0] sm:$0xff]  }
 0x3d1   :  { %v3315_v18 = vmul.f32 %v14637_v59, %v3295_v19  ;;  %v11249_v57 = vpack.i.bf16 %v3802_v6, %v3800_v43  ;;  %v3903_v26 = vrot.slane %v14886_v25, 1  ;;  %v3471_v4 = vmul.f32 %v14779_v8, %v18939_v32  ;;  %v18940_v1 = vld [vmem:[#allocation62_spill] sm:$0xff]  ;;  %v18942_v43 = vld [vmem:[#allocation21_spill] sm:$0xff]  ;;  %10581 = vmatpush3.bf16.msra.mxu1 %v11481_v37 }
 0x3d2   :  { %v14904_v61 = vmax.f32 %v3335_v0, 0.0  ;;  %v3316_v47 = vmul.f32 %v14637_v59, %v3296_v2  ;;  %v3412_v0 = vmul.f32 %v14902_v45, %v18940_v1  ;;  %v18941_v55 = vld [vmem:[#allocation78_spill] sm:$0xff]  ;;  %v3381_v6 = vmul.f32 %v14902_v45, %v18942_v43  ;;  %10582 = vmatprep.subr.bf16.mxu1 %v11482_v21 }
 0x3d3   :  { %11235 = vrot.lane.b32.xlu0 %v11234_v27, %s11615_s30  ;;  %v18943_v25 = vld [vmem:[#allocation22_spill] sm:$0xff]  ;;  %v3803_v34 = vrot.slane %v3437_v56, 2  ;;  %v3336_v2 = vadd.f32 %v14648_v53, %v3315_v18  ;;  %v18944_v27 = vld [vmem:[#allocation27_spill] sm:$0xff]  ;;  %v18945_v32 = vrot.slane %v14807_v7, 1  ;;  %v3805_v38 = vrot.slane %v14908_v29, 2 }
 0x3d4   :  { %v3413_v19 = vmul.f32 %v14904_v61, %v18941_v55  ;;  %v3382_v59 = vmul.f32 %v14904_v61, %v18943_v25  ;;  %11240 = vrot.lane.b32.xlu1 %v11239_v12, %s11615_s30  ;;  %v3337_v52 = vadd.f32 %v14648_v53, %v3316_v47  ;;  %v3472_v48 = vmul.f32 %v14794_v14, %v18944_v27 }
 0x3d5   :  { %v3902_v1 = vsel %vm1011_vm3, %v18945_v32, %v3901_v28  ;;  %v3532_v55 = vrot.slane %v3381_v6, 1  ;;  %v3904_v12 = vsel %vm1011_vm3, %v3901_v28, %v3903_v26  ;;  %v14943_v56 = vmax.f32 %v3336_v2, 0.0  ;;  %v11484_v28 = vld [vmem:[%s18169_s8 + $0xb0] sm:$0xff]  }
 0x3d6   :  { %v3534_v43 = vrot.slane %v3382_v59, 1  ;;  %v11244_v25 = vpack.i.bf16 %v3413_v19, %v3412_v0  ;;  %v14945_v18 = vmax.f32 %v3337_v52, 0.0  ;;  %v3338_v47 = vadd.f32 %v14648_v53, %v3317_v40  ;;  %v18947_v40 = vld [vmem:[#allocation108_spill] sm:$0xff]  ;;  %v18949_v19 = vld [vmem:[#allocation38_spill] sm:$0xff]  ;;  %10583 = vmatpush3.bf16.msra.mxu1 %v11484_v28 }
 0x3d7   :  { %11250 = vrot.lane.b32.xlu0 %v11249_v57, %s11615_s30  ;;  %v3533_v7 = vsel %vm1011_vm3, %v3530_v30, %v3532_v55  ;;  %v3905_v29 = vrot.slane %v3471_v4, 1  ;;  %v18946_v37 = vrot.slane %v14844_v39, 2  ;;  %v3907_v53 = vrot.slane %v3472_v48, 1  ;;  %v18950_v59 = vld [vmem:[#allocation28_spill] sm:$0xff]  ;;  %v18951_v52 = vld [vmem:[#allocation106_spill] sm:$0xff]  ;;  %v18952_v48 = vld [vmem:[#allocation107_spill] sm:$0xff] }
 0x3d8   :  { %v3535_v17 = vsel %vm1011_vm3, %v3532_v55, %v3534_v43  ;;  %11245 = vrot.lane.b32.xlu1 %v11244_v25, %s11615_s30  ;;  %v3439_v57 = vmul.f32 %v14698_v11, %v18947_v40  ;;  %v3440_v30 = vmul.f32 %v14779_v8, %v18948_v36  ;;  %v11254_v0 = vpack.i.bf16 %v3904_v12, %v3902_v1  ;;  %v18953_v55 = vld [vmem:[#allocation39_spill] sm:$0xff]  ;;  %v18955_v40 = vld [vmem:[#allocation70_spill] sm:$0xff] }
 0x3d9   :  { %v3804_v21 = vsel %vm721_vm1, %v18946_v37, %v3803_v34  ;;  %v3806_v4 = vsel %vm721_vm1, %v3803_v34, %v3805_v38  ;;  %v3383_v6 = vmul.f32 %v14943_v56, %v18949_v19  ;;  %v3384_v2 = vmul.f32 %v14945_v18, %v18950_v59 }
 0x3da   :  { %v11259_v39 = vpack.i.bf16 %v3535_v17, %v3533_v7  ;;  %v3414_v27 = vmul.f32 %v14943_v56, %v18951_v52  ;;  %v3415_v32 = vmul.f32 %v14945_v18, %v18952_v48  ;;  %v3473_v25 = vmul.f32 %v14796_v3, %v18953_v55  ;;  %v18958_v48 = vld [vmem:[#allocation26_spill] sm:$0xff] }
 0x3db   :  { %v14975_v1 = vmax.f32 %v3338_v47, 0.0  ;;  %11255 = vrot.lane.b32.xlu0 %v11254_v0, %s11615_s30  ;;  %v3906_v34 = vsel %vm1011_vm3, %v3903_v26, %v3905_v29  ;;  %v3536_v12 = vrot.slane %v3383_v6, 1  ;;  %v3538_v37 = vrot.slane %v3384_v2, 1  ;;  %v11485_v47 = vld [vmem:[%s18169_s8 + $0xf8] sm:$0xff]   ;;  %v18956_v6 = vld [vmem:[#allocation23_spill] sm:$0xff] }
 0x3dc   :  { %11260 = vrot.lane.b32.xlu1 %v11259_v39, %s11615_s30  ;;  %v3908_v7 = vsel %vm1011_vm3, %v3905_v29, %v3907_v53  ;;  %v3807_v17 = vrot.slane %v3439_v57, 2  ;;  %v3809_v28 = vrot.slane %v3440_v30, 2  ;;  %v3474_v36 = vmul.f32 %v14798_v31, %v18955_v40  ;;  %v11486_v0 = vld [vmem:[%s18169_s8 + $0xb8] sm:$0xff]   ;;  %v18957_v29 = vld [vmem:[#allocation98_spill] sm:$0xff]  ;;  %10584 = vmatprep.subr.bf16.mxu1 %v11485_v47 }
 0x3dd   :  { %18954 = vst [vmem:[#allocation55_spill] sm:$0xff] %v14975_v1  ;;  %v11269_v26 = vpack.i.bf16 %v3806_v4, %v3804_v21  ;;  %v3909_v19 = vrot.slane %v3473_v25, 1  ;;  %v3441_v59 = vmul.f32 %v14794_v14, %v18956_v6  ;;  %v11264_v2 = vpack.i.bf16 %v3415_v32, %v3414_v27  ;;  %10585 = vmatpush3.bf16.msra.mxu1 %v11486_v0  ;;  %v18959_v40 = vld [vmem:[#allocation80_spill] sm:$0xff]  ;;  %v18961_v0 = vld [vmem:[#allocation117_spill] sm:$0xff] }
 0x3de   :  { %v3442_v57 = vmul.f32 %v14796_v3, %v18957_v29  ;;  %v11274_v30 = vpack.i.bf16 %v3908_v7, %v3906_v34  ;;  %v3537_v39 = vsel %vm1011_vm3, %v3534_v43, %v3536_v12  ;;  %v3539_v52 = vsel %vm1011_vm3, %v3536_v12, %v3538_v37  ;;  %v18960_v43 = vld [vmem:[#allocation48_spill] sm:$0xff] }
 0x3df   :  { %11270 = vrot.lane.b32.xlu0 %v11269_v26, %s11615_s30  ;;  %v3808_v21 = vsel %vm721_vm1, %v3805_v38, %v3807_v17  ;;  %v3810_v4 = vsel %vm721_vm1, %v3807_v17, %v3809_v28  ;;  %v3416_v27 = vmul.f32 %v14975_v1, %v18958_v48  ;;  %v3911_v32 = vrot.slane %v3474_v36, 1  ;;  %v18962_v26 = vld [vmem:[#allocation119_spill] sm:$0xff] }
 0x3e0   :  { %11265 = vrot.lane.b32.xlu1 %v11264_v2, %s11615_s30  ;;  %v3910_v55 = vsel %vm1011_vm3, %v3907_v53, %v3909_v19  ;;  %v3811_v25 = vrot.slane %v3441_v59, 2  ;;  %v3475_v34 = vmul.f32 %v14902_v45, %v18959_v40  ;;  %v3476_v12 = vmul.f32 %v14904_v61, %v18960_v43  ;;  %v18964_v43 = vld [vmem:[#allocation84_spill] sm:$0xff] }
 0x3e1   :  { %v11279_v7 = vpack.i.bf16 %v3539_v52, %v3537_v39  ;;  %v3813_v47 = vrot.slane %v3442_v57, 2  ;;  %v3443_v38 = vmul.f32 %v14798_v31, %v18961_v0  ;;  %v3444_v17 = vmul.f32 %v14902_v45, %v18962_v26  ;;  %v18963_v39 = vld [vmem:[#allocation81_spill] sm:$0xff]  ;;  %v18967_v26 = vld [vmem:[#allocation91_spill] sm:$0xff] }
 0x3e2   :  { %v11284_v53 = vpack.i.bf16 %v3810_v4, %v3808_v21  ;;  %v11289_v36 = vpack.i.bf16 %v3910_v55, %v3416_v27  ;;  %v3912_v6 = vsel %vm1011_vm3, %v3909_v19, %v3911_v32  ;;  %v3812_v59 = vsel %vm721_vm1, %v3809_v28, %v3811_v25  ;;  %v18965_v21 = vld [vmem:[#allocation126_spill] sm:$0xff] }
 0x3e3   :  { %11275 = vrot.lane.b32.xlu0 %v11274_v30, %s11615_s30  ;;  %v3913_v2 = vrot.slane %v3475_v34, 1  ;;  %v3915_v29 = vrot.slane %v3476_v12, 1  ;;  %v3477_v57 = vmul.f32 %v14943_v56, %v18963_v39  ;;  %v3814_v52 = vsel %vm721_vm1, %v3811_v25, %v3813_v47  ;;  %v18966_v19 = vld [vmem:[#allocation122_spill] sm:$0xff] }
 0x3e4   :  { %11280 = vrot.lane.b32.xlu1 %v11279_v7, %s11615_s30  ;;  %v3815_v48 = vrot.slane %v3443_v38, 2  ;;  %v3817_v40 = vrot.slane %v3444_v17, 2  ;;  %v3478_v30 = vmul.f32 %v14945_v18, %v18964_v43  ;;  %v3445_v4 = vmul.f32 %v14904_v61, %v18965_v21 }
 0x3e5   :  { %v3446_v28 = vmul.f32 %v14943_v56, %v18966_v19  ;;  %v11294_v27 = vpack.i.bf16 %v3538_v37, %v3912_v6  ;;  %v11299_v55 = vpack.i.bf16 %v3814_v52, %v3812_v59  ;;  %v3914_v34 = vsel %vm1011_vm3, %v3911_v32, %v3913_v2  ;;  %v18969_v6 = vld [vmem:[#allocation64_spill] sm:$0xff] }
 0x3e6   :  { %v3916_v25 = vsel %vm1011_vm3, %v3913_v2, %v3915_v29  ;;  %v3917_v12 = vrot.slane %v3477_v57, 1  ;;  %v3816_v7 = vsel %vm721_vm1, %v3813_v47, %v3815_v48  ;;  %v3818_v0 = vsel %vm721_vm1, %v3815_v48, %v3817_v40 }
 0x3e7   :  { %11285 = vrot.lane.b32.xlu0 %v11284_v53, %s11615_s30  ;;  %v3919_v38 = vrot.slane %v3478_v30, 1  ;;  %v3479_v17 = vmul.f32 %v14975_v1, %v18967_v26  ;;  %v3819_v53 = vrot.slane %v3445_v4, 2  ;;  %v3821_v39 = vrot.slane %v3446_v28, 2 }
 0x3e8   :  { %11290 = vrot.lane.b32.xlu1 %v11289_v36, %s11615_s30  ;;  %v18968_v36 = vld [vmem:[#allocation123_spill] sm:$0xff]  ;;  %v3448_v32 = vmul.f32 %v14975_v1, %v18969_v6  ;;  %v11304_v59 = vpack.i.bf16 %v3916_v25, %v3914_v34  ;;  %v11309_v47 = vpack.i.bf16 %v3818_v0, %v3816_v7  ;;  %v3918_v2 = vsel %vm1011_vm3, %v3915_v29, %v3917_v12  ;;  %v18970_v25 = vld [vmem:[#allocation130_spill] sm:$0xff] }
 0x3e9   :  { %v3447_v37 = vmul.f32 %v14945_v18, %v18968_v36  ;;  %v3920_v57 = vsel %vm1011_vm3, %v3917_v12, %v3919_v38  ;;  %v3921_v52 = vrot.slane %v3479_v17, 1  ;;  %v3820_v48 = vsel %vm721_vm1, %v3817_v40, %v3819_v53  ;;  %v18974_v17 = vld [vmem:[#allocation43_spill] sm:$0xff] }
 0x3ea   :  { %v3822_v43 = vsel %vm721_vm1, %v3819_v53, %v3821_v39  ;;  %v3825_v21 = vrot.slane %v3448_v32, 2  ;;  %v11314_v4 = vpack.i.bf16 %v3920_v57, %v3918_v2  ;;  %v18971_v12 = vrot.slane %v18970_v25, 2  ;;  %v18977_v2 = vld [vmem:[#allocation124_spill] sm:$0xff]  ;;  %v18983_v25 = vld [vmem:[#allocation115_spill] sm:$0xff] }
 0x3eb   :  { %11295 = vrot.lane.b32.xlu0 %v11294_v27, %s11615_s30  ;;  %v3823_v30 = vrot.slane %v3447_v37, 2  ;;  %v11319_v19 = vpack.i.bf16 %v3822_v43, %v3820_v48  ;;  %v3922_v28 = vsel %vm1011_vm3, %v3919_v38, %v3921_v52  ;;  %v3923_v29 = vsel %vm1011_vm3, %v3921_v52, %v18832_v46  ;;  %v18972_v46 = vld [vmem:[#allocation42_spill] sm:$0xff]  ;;  %v18975_v37 = vld [vmem:[#allocation120_spill] sm:$0xff]  ;;  %v18979_v43 = vld [vmem:[#allocation127_spill] sm:$0xff] }
 0x3ec   :  { %11300 = vrot.lane.b32.xlu1 %v11299_v55, %s11615_s30  ;;  %v11324_v40 = vpack.i.bf16 %v3923_v29, %v3922_v28  ;;  %v3827_v7 = vsel %vm721_vm1, %v3825_v21, %v18971_v12  ;;  %v3386_v0 = vmul.f32 %v14676_v10, %v18972_v46  ;;  %v18973_v38 = vld [vmem:[#allocation34_spill] sm:$0xff]  ;;  %v3387_v53 = vmul.f32 %v14678_v49, %v18974_v17  ;;  %v18978_v52 = vld [vmem:[#allocation128_spill] sm:$0xff]  ;;  %v18981_v29 = vld [vmem:[#allocation131_spill] sm:$0xff] }
 0x3ed   :  { %v3824_v27 = vsel %vm721_vm1, %v3821_v39, %v3823_v30  ;;  %v3826_v55 = vsel %vm721_vm1, %v3823_v30, %v3825_v21  ;;  %v3385_v26 = vmul.f32 %v14674_v20, %v18973_v38  ;;  %v3388_v6 = vmul.f32 %v14680_v9, %v18975_v37  ;;  %v18980_v21 = vld [vmem:[#allocation40_spill] sm:$0xff]  ;;  %v18984_v46 = vld [vmem:[#allocation59_spill] sm:$0xff]  ;;  %v18985_v38 = vld [vmem:[#allocation125_spill] sm:$0xff] }
 0x3ee   :  { %v11329_v34 = vpack.i.bf16 %v3826_v55, %v3824_v27  ;;  %v3606_v39 = vrot.slane %v3386_v0, 2  ;;  %v3608_v32 = vrot.slane %v3387_v53, 2  ;;  %v3390_v57 = vmul.f32 %v14696_v35, %v18977_v2  ;;  %v18986_v53 = vld [vmem:[#allocation134_spill] sm:$0xff]  ;;  %v18988_v37 = vld [vmem:[#allocation135_spill] sm:$0xff] }
 0x3ef   :  { %11305 = vrot.lane.b32.xlu0 %v11304_v59, %s11615_s30  ;;  %v3604_v36 = vrot.slane %v3385_v26, 2  ;;  %v18976_v59 = vld [vmem:[#allocation121_spill] sm:$0xff]  ;;  %v3391_v48 = vmul.f32 %v14698_v11, %v18978_v52  ;;  %v3392_v30 = vmul.f32 %v14779_v8, %v18979_v43  ;;  %v3610_v28 = vrot.slane %v3388_v6, 2 }
 0x3f0   :  { %11310 = vrot.lane.b32.xlu1 %v11309_v47, %s11615_s30  ;;  %v3389_v47 = vmul.f32 %v14682_v5, %v18976_v59  ;;  %v3393_v27 = vmul.f32 %v14794_v14, %v18981_v29  ;;  %v15082_v55 = vsel %vm721_vm1, %v3606_v39, %v3608_v32  ;;  %v15090_v12 = vmul.f32 %v14674_v20, %v18983_v25  ;;  %v18993_v29 = vld [vmem:[#allocation137_spill] sm:$0xff]  ;;  %v18994_v25 = vld [vmem:[#allocation139_spill] sm:$0xff] }
 0x3f1   :  { %v15094_v0 = vmul.f32 %v14678_v49, %v18984_v46  ;;  %v15098_v26 = vmul.f32 %v14680_v9, %v18985_v38  ;;  %v3614_v17 = vrot.slane %v3390_v57, 2  ;;  %v15106_v6 = vmul.f32 %v14696_v35, %v18988_v37  ;;  %v18996_v46 = vld [vmem:[#allocation24_spill] sm:$0xff] }
 0x3f2   :  { %v3618_v59 = vrot.slane %v3392_v30, 2  ;;  %v15111_v52 = vsel %vm721_vm1, %v3608_v32, %v3610_v28  ;;  %v3620_v43 = vrot.slane %v3393_v27, 2  ;;  %v15124_v30 = vmul.f32 %v14779_v8, %v18994_v25 }
 0x3f3   :  { %11315 = vrot.lane.b32.xlu0 %v11314_v4, %s11615_s30  ;;  %v15074_v4 = vsel %vm721_vm1, %v18980_v21, %v3604_v36  ;;  %18989 = vst [vmem:[#allocation7_spill] sm:$0xff] %v15106_v6  ;;  %v18991_v21 = vld [vmem:[#allocation101_spill] sm:$0xff]  ;;  %v15128_v38 = vmul.f32 %v14674_v20, %v18996_v46  ;;  %v3418_v32 = vmul.f32 %v14676_v10, %v13915_v33  ;;  %v19001_v33 = vld [vmem:[#allocation30_spill] sm:$0xff]  ;;  %v19007_v6 = vld [vmem:[#allocation140_spill] sm:$0xff] }
 0x3f4   :  { %11320 = vrot.lane.b32.xlu1 %v11319_v19, %s11615_s30  ;;  %v15077_v19 = vsel %vm721_vm1, %v3604_v36, %v3606_v39  ;;  %v15102_v39 = vmul.f32 %v14682_v5, %v18986_v53  ;;  %v3616_v36 = vrot.slane %v3391_v48, 2  ;;  %v15115_v57 = vmul.f32 %v14698_v11, %v18991_v21  ;;  %18995 = vst [vmem:[#allocation8_spill] sm:$0xff] %v15124_v30  ;;  %v18997_v53 = vld [vmem:[#allocation109_spill] sm:$0xff]  ;;  %v18999_v21 = vld [vmem:[#allocation102_spill] sm:$0xff] }
 0x3f5   :  { %v3419_v37 = vmul.f32 %v14678_v49, %v18997_v53  ;;  %v15152_v30 = vsel %vm721_vm1, %v3618_v59, %v3620_v43 }
 0x3f6   :  { %18987 = vst [vmem:[#allocation6_spill] sm:$0xff] %v15102_v39  ;;  %18992 = vst [vmem:[#allocation29_spill] sm:$0xff] %v15115_v57  ;;  %v15142_v25 = vsel %vm721_vm1, %v3614_v17, %v3616_v36  ;;  %v15145_v46 = vsel %vm721_vm1, %v3616_v36, %v3618_v59  ;;  %v19004_v39 = vld [vmem:[#allocation93_spill] sm:$0xff]  ;;  %v15162_v36 = vmul.f32 %v14678_v49, %v19007_v6  ;;  %v3733_v59 = vrot.slane %v3418_v32, 1 }
 0x3f7   :  { %11325 = vrot.lane.b32.xlu0 %v11324_v40, %s11615_s30  ;;  %v18982_v40 = vld [vmem:[#allocation116_spill] sm:$0xff]  ;;  %19000 = vst [vmem:[#allocation9_spill] sm:$0xff] %v15145_v46  ;;  %19003 = vst [vmem:[#allocation57_spill] sm:$0xff] %v15152_v30  ;;  %v3422_v32 = vmul.f32 %v14696_v35, %v18817_v22  ;;  %v15202_v22 = vmul.f32 %v14798_v31, %v13757_v44 }
 0x3f8   :  { %11330 = vrot.lane.b32.xlu1 %v11329_v34, %s11615_s30  ;;  %v15086_v34 = vmul.f32 %v14676_v10, %v18982_v40  ;;  %v3395_v40 = vmul.f32 %v14798_v31, %v18993_v29  ;;  %v3396_v29 = vmul.f32 %v14902_v45, %v18999_v21  ;;  %v19006_v21 = vld [vmem:[#allocation99_spill] sm:$0xff]  ;;  %v19011_v30 = vld [vmem:[#allocation52_spill] sm:$0xff] }
 0x3f9   :  { %v15178_v6 = vmul.f32 %v14796_v3, %v19011_v30  ;;  %v19016_v30 = vrot.slane %v15128_v38, 1  ;;  %19017 = vst [vmem:[#allocation56_spill] sm:$0xff] %v15202_v22  ;;  %v3741_v22 = vrot.slane %v3422_v32, 1 }
 0x3fa   :  { %v3624_v53 = vrot.slane %v3395_v40, 2 }
 0x3fb   :  { %3860 = vrot.lane.b32.xlu0 %v3827_v7, %s11615_s30  ;;  %v3612_v7 = vrot.slane %v3389_v47, 2  ;;  %v18990_v47 = vld [vmem:[#allocation136_spill] sm:$0xff] }
 0x3fc   :  { %v3394_v2 = vmul.f32 %v14796_v3, %v18990_v47  ;;  %v18998_v47 = vld [vmem:[#allocation111_spill] sm:$0xff] }
 0x3fd   :  { %v15120_v48 = vsel %vm721_vm1, %v3610_v28, %v3612_v7  ;;  %v15133_v27 = vsel %vm721_vm1, %v3612_v7, %v3614_v17  ;;  %v3420_v28 = vmul.f32 %v14680_v9, %v18998_v47  ;;  %v15149_v7 = vmul.f32 %v14674_v20, %v19001_v33  ;;  %v19009_v33 = vld [vmem:[#allocation44_spill] sm:$0xff] }
 0x3fe   :  { %v3622_v57 = vrot.slane %v3394_v2, 2  ;;  %v15156_v47 = vmul.f32 %v14676_v10, %v19004_v39  ;;  %v3397_v17 = vmul.f32 %v14904_v61, %v19006_v21  ;;  %v19008_v2 = vld [vmem:[#allocation143_spill] sm:$0xff]  ;;  %v15171_v40 = vmul.f32 %v14794_v14, %v19009_v33 }
 0x3ff   :  { %19002 = vst [vmem:[#allocation51_spill] sm:$0xff] %v15149_v7  ;;  %v15166_v46 = vmul.f32 %v14680_v9, %v19008_v2  ;;  %v3735_v39 = vrot.slane %v3419_v37, 1  ;;  %v3737_v7 = vrot.slane %v3420_v28, 1  ;;  %v3421_v2 = vmul.f32 %v14682_v5, %v13941_v23  ;;  %v19012_v37 = vld [vmem:[#allocation103_spill] sm:$0xff] }
 0x400   :  { %19005 = vst [vmem:[#allocation92_spill] sm:$0xff] %v15156_v47  ;;  %19010 = vst [vmem:[#allocation61_spill] sm:$0xff] %v15171_v40  ;;  %v3626_v47 = vrot.slane %v3396_v29, 2  ;;  %v15174_v21 = vsel %vm721_vm1, %v3620_v43, %v3622_v57  ;;  %v15185_v20 = vsel %vm721_vm1, %v3622_v57, %v3624_v53  ;;  %v3628_v33 = vrot.slane %v3397_v17, 2  ;;  %v19014_v43 = vld [vmem:[#allocation104_spill] sm:$0xff] }
 0x401   :  { %v15189_v28 = vmul.f32 %v14682_v5, %v19012_v37  ;;  %v15193_v29 = vmul.f32 %v14696_v35, %v19014_v43  ;;  %v15198_v40 = vsel %vm1011_vm3, %v19016_v30, %v3733_v59  ;;  %v3398_v23 = vmul.f32 %v14943_v56, %v18844_v16 }
 0x402   :  { %v3399_v57 = vmul.f32 %v14945_v18, %v13902_v60  ;;  %v15209_v17 = vsel %vm1011_vm3, %v3733_v59, %v3735_v39  ;;  %v15212_v37 = vsel %vm1011_vm3, %v3735_v39, %v3737_v7  ;;  %v15215_v43 = vsel %vm721_vm1, %v3624_v53, %v3626_v47  ;;  %v19023_v39 = vld [vmem:[#allocation37_spill] sm:$0xff] }
 0x403   :  { %19013 = vst [vmem:[#allocation32_spill] sm:$0xff] %v15189_v28  ;;  %19015 = vst [vmem:[#allocation10_spill] sm:$0xff] %v15193_v29  ;;  %v15219_v30 = vmul.f32 %v14902_v45, %v13857_v24  ;;  %v3739_v44 = vrot.slane %v3421_v2, 1  ;;  %v3423_v16 = vmul.f32 %v14698_v11, %v18847_v62  ;;  %v19021_v28 = vld [vmem:[#allocation110_spill] sm:$0xff]  ;;  %v15226_v59 = vsel %vm721_vm1, %v3626_v47, %v3628_v33  ;;  %v19025_v24 = vld [vmem:[#allocation145_spill] sm:$0xff] }
 0x404   :  { %19018 = vst [vmem:[#allocation68_spill] sm:$0xff] %v15209_v17  ;;  %19019 = vst [vmem:[#allocation14_spill] sm:$0xff] %v15215_v43  ;;  %v3424_v60 = vmul.f32 %v14779_v8, %v19021_v28  ;;  %v15230_v29 = vmul.f32 %v14698_v11, %v19023_v39  ;;  %v3480_v53 = vmul.f32 %v14676_v10, %v14078_v41  ;;  %v3630_v32 = vrot.slane %v3398_v23, 2  ;;  %v19026_v43 = vld [vmem:[#allocation144_spill] sm:$0xff]  ;;  %v19027_v17 = vld [vmem:[#allocation35_spill] sm:$0xff] }
 0x405   :  { %19020 = vst [vmem:[#allocation15_spill] sm:$0xff] %v15219_v30  ;;  %19022 = vst [vmem:[#allocation49_spill] sm:$0xff] %v15226_v59  ;;  %v3481_v2 = vmul.f32 %v14678_v49, %v19025_v24  ;;  %v3632_v30 = vrot.slane %v3399_v57, 2  ;;  %v3482_v62 = vmul.f32 %v14680_v9, %v19026_v43  ;;  %v3483_v28 = vmul.f32 %v14682_v5, %v19027_v17  ;;  %v19028_v47 = vld [vmem:[#allocation142_spill] sm:$0xff]  ;;  %v19034_v49 = vld [vmem:[#allocation33_spill] sm:$0xff] }
 0x406   :  { %19024 = vst [vmem:[#allocation69_spill] sm:$0xff] %v15230_v29  ;;  %v15242_v59 = vmul.f32 %v14779_v8, %v19028_v47  ;;  %v19030_v39 = vld [vmem:[#allocation118_spill] sm:$0xff]  ;;  %v3400_v23 = vmul.f32 %v14975_v1, %v19034_v49  ;;  %v15255_v9 = vsel %vm1011_vm3, %v3737_v7, %v3739_v44  ;;  %v15258_v5 = vsel %vm1011_vm3, %v3739_v44, %v3741_v22  ;;  %v19036_v43 = vld [vmem:[#allocation76_spill] sm:$0xff]  ;;  %v19038_v47 = vld [vmem:[#allocation113_spill] sm:$0xff] }
 0x407   :  { %v15246_v29 = vmul.f32 %v14904_v61, %v19030_v39  ;;  %v19032_v41 = vld [vmem:[#allocation94_spill] sm:$0xff]  ;;  %19035 = vst [vmem:[#allocation12_spill] sm:$0xff] %v15255_v9  ;;  %v3743_v57 = vrot.slane %v3423_v16, 1  ;;  %v3745_v17 = vrot.slane %v3424_v60, 1  ;;  %v15262_v24 = vmul.f32 %v14794_v14, %v19036_v43 }
 0x408   :  { %19029 = vst [vmem:[#allocation11_spill] sm:$0xff] %v15242_v59  ;;  %v15250_v10 = vmul.f32 %v14943_v56, %v19032_v41  ;;  %v3425_v39 = vmul.f32 %v14794_v14, %v19038_v47  ;;  %v3987_v41 = vrot.slane %v3480_v53, 2  ;;  %v15270_v7 = vsel %vm721_vm1, %v3630_v32, %v3632_v30  ;;  %v19039_v16 = vld [vmem:[#allocation50_spill] sm:$0xff] }
 0x409   :  { %19031 = vst [vmem:[#allocation16_spill] sm:$0xff] %v15246_v29  ;;  %19037 = vst [vmem:[#allocation17_spill] sm:$0xff] %v15262_v24  ;;  %v3988_v29 = vrot.slane %v3481_v2, 2  ;;  %v3990_v49 = vrot.slane %v3482_v62, 2  ;;  %v3992_v44 = vrot.slane %v3483_v28, 2  ;;  %v3634_v59 = vrot.slane %v3400_v23, 2 }
 0x40a   :  { %19033 = vst [vmem:[#allocation71_spill] sm:$0xff] %v15250_v10  ;;  %v15267_v10 = vsel %vm721_vm1, %v3628_v33, %v3630_v32  ;;  %v15274_v60 = vmul.f32 %v14945_v18, %v19039_v16  ;;  %v19040_v43 = vld [vmem:[#allocation46_spill] sm:$0xff]  ;;  %v15281_v2 = vsel %vm1011_vm3, %v3741_v22, %v3743_v57  ;;  %v15284_v33 = vsel %vm1011_vm3, %v3743_v57, %v3745_v17  ;;  %v19042_v32 = vld [vmem:[#allocation105_spill] sm:$0xff]  ;;  %v19043_v28 = vld [vmem:[#allocation112_spill] sm:$0xff] }
 0x40b   :  { %v3484_v24 = vmul.f32 %v14696_v35, %v19040_v43  ;;  %v19041_v9 = vld [vmem:[#allocation58_spill] sm:$0xff]  ;;  %v15288_v62 = vmul.f32 %v14796_v3, %v19042_v32  ;;  %v3426_v23 = vmul.f32 %v14796_v3, %v19043_v28  ;;  %v3747_v47 = vrot.slane %v3425_v39, 1 }
 0x40c   :  { %v3485_v53 = vmul.f32 %v14698_v11, %v19041_v9  ;;  %v15294_v35 = vmul.f32 %v14798_v31, %v14249_v63  ;;  %v3427_v11 = vmul.f32 %v14798_v31, %v14135_v58  ;;  %v3989_v22 = vsel %vm721_vm1, %v3987_v41, %v3988_v29 }
 0x40d   :  { %v3991_v9 = vsel %vm721_vm1, %v3988_v29, %v3990_v49  ;;  %v3993_v57 = vsel %vm721_vm1, %v3990_v49, %v3992_v44  ;;  %v3486_v16 = vmul.f32 %v14779_v8, %v14175_v13  ;;  %v3487_v43 = vmul.f32 %v14794_v14, %v14178_v42 }
 0x40e   :  { %19044 = vst [vmem:[#allocation36_spill] sm:$0xff] %v15294_v35  ;;  %v15306_v39 = vsel %vm721_vm1, %v3632_v30, %v3634_v59  ;;  %v15310_v63 = vmul.f32 %v14902_v45, %v14254_v15  ;;  %v3994_v58 = vrot.slane %v3484_v24, 2  ;;  %v3996_v32 = vrot.slane %v3485_v53, 2  ;;  %v19049_v30 = vld [vmem:[#allocation13_spill] sm:$0xff] }
 0x40f   :  { %v3749_v28 = vrot.slane %v3426_v23, 1  ;;  %v3428_v29 = vmul.f32 %v14902_v45, %v14154_v50  ;;  %v15316_v49 = vmul.f32 %v14904_v61, %v14239_v54  ;;  %v4102_v13 = vpack.c.bf16 %v3989_v22, %v3987_v41  ;;  %v19050_v24 = vld [vmem:[#allocation45_spill] sm:$0xff]  ;;  %v19052_v22 = vld [vmem:[#allocation138_spill] sm:$0xff] }
 0x410   :  { %19045 = vst [vmem:[#allocation86_spill] sm:$0xff] %v15310_v63  ;;  %v15319_v42 = vsel %vm1011_vm3, %v3745_v17, %v3747_v47  ;;  %v3751_v8 = vrot.slane %v3427_v11, 1  ;;  %v15323_v14 = vmul.f32 %v14943_v56, %v14233_v51  ;;  %v4107_v15 = vpack.c.bf16 %v3993_v57, %v3991_v9  ;;  %v19051_v17 = vld [vmem:[#allocation133_spill] sm:$0xff]  ;;  %v19054_v9 = vld [vmem:[#allocation146_spill] sm:$0xff] }
 0x411   :  { %19046 = vst [vmem:[#allocation87_spill] sm:$0xff] %v15316_v49  ;;  %19047 = vst [vmem:[#allocation63_spill] sm:$0xff] %v15319_v42  ;;  %v3429_v59 = vmul.f32 %v14904_v61, %v19049_v30  ;;  %v3430_v50 = vmul.f32 %v14943_v56, %v19050_v24  ;;  %v3998_v53 = vrot.slane %v3486_v16, 2  ;;  %v4000_v23 = vrot.slane %v3487_v43, 2  ;;  %v19055_v30 = vld [vmem:[#allocation147_spill] sm:$0xff] }
 0x412   :  { %19048 = vst [vmem:[#allocation72_spill] sm:$0xff] %v15323_v14  ;;  %v3995_v54 = vsel %vm721_vm1, %v3992_v44, %v3994_v58  ;;  %v3997_v41 = vsel %vm721_vm1, %v3994_v58, %v3996_v32  ;;  %v3488_v11 = vmul.f32 %v14796_v3, %v19051_v17  ;;  %v15335_v51 = vmul.f32 %v14798_v31, %v19052_v22 }
 0x413   :  { %v3431_v57 = vmul.f32 %v14945_v18, %v19054_v9  ;;  %v15341_v49 = vmul.f32 %v14975_v1, %v19055_v30  ;;  %v4287_v16 = vshrl.u32 %v4102_v13, 16  ;;  %v4290_v43 = vshll.u32 %v4102_v13, 16  ;;  %v19057_v9 = vld [vmem:[#allocation149_spill] sm:$0xff] }
 0x414   :  { %19053 = vst [vmem:[#allocation31_spill] sm:$0xff] %v15335_v51  ;;  %v15344_v44 = vsel %vm1011_vm3, %v3747_v47, %v3749_v28  ;;  %v3753_v58 = vrot.slane %v3428_v29, 1  ;;  %v4295_v24 = vshrl.u32 %v4107_v15, 16  ;;  %v4298_v14 = vshll.u32 %v4107_v15, 16 }
 0x415   :  { %19056 = vst [vmem:[#allocation95_spill] sm:$0xff] %v15341_v49  ;;  %v3755_v3 = vrot.slane %v3429_v59, 1  ;;  %v4112_v17 = vpack.c.bf16 %v3997_v41, %v3995_v54  ;;  %v3999_v31 = vsel %vm721_vm1, %v3996_v32, %v3998_v53  ;;  %v4001_v22 = vsel %vm721_vm1, %v3998_v53, %v4000_v23  ;;  %v19058_v59 = vld [vmem:[#allocation150_spill] sm:$0xff] }
 0x416   :  { %v3757_v35 = vrot.slane %v3430_v50, 1  ;;  %v15350_v63 = vmul.f32 %v14945_v18, %v19057_v9  ;;  %v4002_v30 = vrot.slane %v3488_v11, 2  ;;  %v18427_v13 = vrot.slane %v15335_v51, 2 }
 0x417   :  { %v3759_v42 = vrot.slane %v3431_v57, 1  ;;  %v15354_v29 = vrot.slane %v4287_v16, 3  ;;  %v15356_v15 = vrot.slane %v4290_v43, 4  ;;  %v15360_v32 = vmul.f32 %v14975_v1, %v19058_v59 }
 0x418   :  { %v4297_v53 = vrot.slane %v4295_v24, 3  ;;  %v4300_v50 = vrot.slane %v4298_v14, 4  ;;  %v15362_v54 = vpack.c.bf16 %v4001_v22, %v3999_v31  ;;  %v15365_v11 = vsel %vm1011_vm3, %v3749_v28, %v3751_v8 }
 0x419   :  { %v15368_v57 = vsel %vm1011_vm3, %v3751_v8, %v3753_v58  ;;  %v15371_v16 = vsel %vm1011_vm3, %v3753_v58, %v3755_v3  ;;  %v4340_v43 = vshrl.u32 %v4112_v17, 16  ;;  %v4343_v47 = vshll.u32 %v4112_v17, 16 }
 0x41a   :  { %v4003_v59 = vsel %vm721_vm1, %v4000_v23, %v4002_v30  ;;  %v4005_v14 = vsel %vm721_vm1, %v4002_v30, %v18427_v13  ;;  %v15378_v24 = vsel %vm1011_vm3, %v3755_v3, %v3757_v35  ;;  %v15381_v28 = vsel %vm1011_vm3, %v3757_v35, %v3759_v42 }
 0x41b   :  { %19059 = vst [vmem:[#allocation20_spill] sm:$0xff] %v15381_v28  ;;  %v19060_v8 = vrot.slane %v15341_v49, 1  ;;  %v4293_v17 = vor.u32 %v15356_v15, %v15354_v29  ;;  %v15392_v22 = vor.u32 %v4300_v50, %v4297_v53  ;;  %v15396_v51 = vpack.c.bf16 %v4005_v14, %v4003_v59  ;;  %v19065_v53 = vld [vmem:[#allocation114_spill] sm:$0xff]  ;;  %v19068_v59 = vld [vmem:[#allocation47_spill] sm:$0xff] }
 0x41c   :  { %v15398_v28 = vrot.slane %v4340_v43, 3  ;;  %v15400_v29 = vrot.slane %v4343_v47, 4 }
 0x41d   :  { %v15386_v58 = vsel %vm1011_vm3, %v3759_v42, %v19060_v8  ;;  %19061 = vst [vmem:[#allocation60_spill] sm:$0xff] %v15392_v22 }
 0x41e   :  { %19062 = vst [vmem:[#allocation18_spill] sm:$0xff] %v15398_v28  ;;  %19063 = vst [vmem:[#allocation19_spill] sm:$0xff] %v15400_v29 }
 0x429   :  { %v11176_v41 = vpop.permute.xlu0 %11175 }
 0x42a   :  { %v11177_v9 = vunpack.i.l.bf16 %v11176_v41  ;;  %v11178_v35 = vunpack.i.h.bf16 %v11176_v41  ;;  %v19067_v41 = vld [vmem:[#allocation41_spill] sm:$0xff] }
 0x42c   :  { %v4049_v23 = vsel %vm822_vm2, %v15074_v4, %v11177_v9  ;;  %v11181_v31 = vpop.permute.xlu1 %11180  ;;  %v19064_v4 = vld [vmem:[#allocation141_spill] sm:$0xff]  ;;  %v19066_v9 = vld [vmem:[#allocation132_spill] sm:$0xff] }
 0x42d   :  { %v11183_v13 = vunpack.i.h.bf16 %v11181_v31  ;;  %v11182_v1 = vunpack.i.l.bf16 %v11181_v31  ;;  %v11186_v49 = vpop.permute.xlu0 %11185  ;;  %v4099_v15 = vpack.c.bf16 %v4049_v23, %v19064_v4  ;;  %v15407_v30 = vmul.f32 %v14902_v45, %v19066_v9 }
 0x42e   :  { %v11188_v42 = vunpack.i.h.bf16 %v11186_v49  ;;  %v11187_v8 = vunpack.i.l.bf16 %v11186_v49  ;;  %v15411_v31 = vmul.f32 %v14904_v61, %v19067_v41  ;;  %v4050_v45 = vsel %vm822_vm2, %v15077_v19, %v11178_v35 }
 0x42f   :  { %v4033_v50 = vsel %vm822_vm2, %v19065_v53, %v11183_v13  ;;  %v4051_v49 = vsel %vm822_vm2, %v15082_v55, %v11182_v1  ;;  %v4236_v29 = vshrl.u32 %v4099_v15, 16 }
 0x430   :  { %v4098_v14 = vpack.c.bf16 %v4033_v50, %v19068_v59  ;;  %v4035_v47 = vsel %vm822_vm2, %v15086_v34, %v11188_v42  ;;  %v4034_v43 = vsel %vm822_vm2, %v15090_v12, %v11187_v8  ;;  %v11191_v13 = vpop.permute.xlu1 %11190  ;;  %v4104_v3 = vpack.c.bf16 %v4051_v49, %v4050_v45 }
 0x431   :  { %v4103_v23 = vpack.c.bf16 %v4035_v47, %v4034_v43  ;;  %v11193_v4 = vunpack.i.h.bf16 %v11191_v13  ;;  %v11192_v53 = vunpack.i.l.bf16 %v11191_v13  ;;  %v11196_v61 = vpop.permute.xlu0 %11195  ;;  %v4239_v42 = vshll.u32 %v4099_v15, 16 }
 0x432   :  { %v4219_v9 = vshrl.u32 %v4098_v14, 16  ;;  %v4222_v41 = vshll.u32 %v4098_v14, 16  ;;  %v11198_v50 = vunpack.i.h.bf16 %v11196_v61  ;;  %v11197_v59 = vunpack.i.l.bf16 %v11196_v61 }
 0x433   :  { %v4227_v1 = vshrl.u32 %v4103_v23, 16  ;;  %v4230_v55 = vshll.u32 %v4103_v23, 16  ;;  %v4053_v34 = vsel %vm822_vm2, %v15120_v48, %v11193_v4  ;;  %v4052_v12 = vsel %vm822_vm2, %v15111_v52, %v11192_v53 }
 0x434   :  { %v4037_v19 = vsel %vm822_vm2, %v15098_v26, %v11198_v50  ;;  %v11201_v35 = vpop.permute.xlu1 %11200  ;;  %v4221_v8 = vrot.slane %v4219_v9, 3  ;;  %v4224_v47 = vrot.slane %v4222_v41, 4  ;;  %v4036_v14 = vsel %vm822_vm2, %v15094_v0, %v11197_v59 }
 0x435   :  { %v11203_v49 = vunpack.i.h.bf16 %v11201_v35  ;;  %v11216_v43 = vpop.permute.xlu0 %11215  ;;  %v4229_v13 = vrot.slane %v4227_v1, 3  ;;  %v4232_v45 = vrot.slane %v4230_v55, 4  ;;  %v11202_v23 = vunpack.i.l.bf16 %v11201_v35 }
 0x436   :  { %v15432_v48 = vsel %vm2204_vm5, %v4293_v17, %v15392_v22  ;;  %v4109_v52 = vpack.c.bf16 %v4053_v34, %v4052_v12  ;;  %v4108_v4 = vpack.c.bf16 %v4037_v19, %v4036_v14  ;;  %v4244_v53 = vshrl.u32 %v4104_v3, 16 }
 0x437   :  { %v4247_v26 = vshll.u32 %v4104_v3, 16  ;;  %v11218_v61 = vunpack.i.h.bf16 %v11216_v43  ;;  %v11217_v15 = vunpack.i.l.bf16 %v11216_v43  ;;  %v4238_v9 = vrot.slane %v4236_v29, 3  ;;  %v19069_v29 = vld [vmem:[#allocation7_spill] sm:$0xff] }
 0x438   :  { %v4241_v41 = vrot.slane %v4239_v42, 4  ;;  %v4055_v0 = vsel %vm822_vm2, %v15142_v25, %v11203_v49  ;;  %v4054_v50 = vsel %vm822_vm2, %v15133_v27, %v11202_v23  ;;  %v4246_v1 = vrot.slane %v4244_v53, 3 }
 0x439   :  { %v4225_v55 = vor.u32 %v4224_v47, %v4221_v8  ;;  %v4249_v22 = vrot.slane %v4247_v26, 4  ;;  %v15438_v34 = vor.u32 %v4232_v45, %v4229_v13  ;;  %v4313_v12 = vshrl.u32 %v4109_v52, 16  ;;  %v19072_v47 = vld [vmem:[#allocation6_spill] sm:$0xff] }
 0x43a   :  { %v11206_v59 = vpop.permute.xlu1 %11205  ;;  %v4316_v3 = vshll.u32 %v4109_v52, 16  ;;  %v4304_v19 = vshrl.u32 %v4108_v4, 16  ;;  %v4307_v14 = vshll.u32 %v4108_v4, 16  ;;  %v4039_v42 = vsel %vm822_vm2, %v19069_v29, %v11218_v61  ;;  %v19073_v4 = vld [vmem:[#allocation57_spill] sm:$0xff] }
 0x43b   :  { %v11208_v35 = vunpack.i.h.bf16 %v11206_v59  ;;  %v11207_v17 = vunpack.i.l.bf16 %v11206_v59  ;;  %v4242_v25 = vor.u32 %v4241_v41, %v4238_v9  ;;  %v4250_v49 = vor.u32 %v4249_v22, %v4246_v1  ;;  %v19074_v61 = vld [vmem:[#allocation9_spill] sm:$0xff] }
 0x43c   :  { %v19070_v27 = vshrl.u32 %v15362_v54, 16  ;;  %v4114_v8 = vpack.c.bf16 %v4055_v0, %v4054_v50  ;;  %v4038_v53 = vsel %vm822_vm2, %v19072_v47, %v11217_v15  ;;  %v4234_v13 = vsel %vm2204_vm5, %v4225_v55, %v15438_v34  ;;  %v11483_v0 = vld [vmem:[%s18169_s8 + $0x108] sm:$0xff]  }
 0x43d   :  { %v11221_v43 = vpop.permute.xlu0 %11220  ;;  %v4315_v52 = vrot.slane %v4313_v12, 3  ;;  %v4057_v26 = vsel %vm822_vm2, %v19073_v4, %v11208_v35  ;;  %v4056_v9 = vsel %vm822_vm2, %v19074_v61, %v11207_v17  ;;  %v4251_v22 = vsel %vm2204_vm5, %v4242_v25, %v4250_v49  ;;  %v19075_v25 = vld [vmem:[#allocation54_spill] sm:$0xff]  ;;  %v19076_v61 = vld [vmem:[#allocation96_spill] sm:$0xff] }
 0x43e   :  { %v15444_v23 = vrot.slane %v19070_v27, 3  ;;  %v11211_v45 = vpop.permute.xlu1 %11210  ;;  %v4318_v41 = vrot.slane %v4316_v3, 4  ;;  %v11223_v50 = vunpack.i.h.bf16 %v11221_v43  ;;  %v11222_v15 = vunpack.i.l.bf16 %v11221_v43  ;;  %4906 = vmatprep.mubr.bf16.mxu0 %v4251_v22  ;;  %v19079_v17 = vld [vmem:[#allocation92_spill] sm:$0xff] }
 0x43f   :  { %v4306_v59 = vrot.slane %v4304_v19, 3  ;;  %v4309_v1 = vrot.slane %v4307_v14, 4  ;;  %4907 = vmatmul.mubr.bf16.vlgmr.msra.gmra.mrb[48].mxu0 %v4234_v13  ;;  %v11213_v55 = vunpack.i.h.bf16 %v11211_v45  ;;  %v4113_v27 = vpack.c.bf16 %v4039_v42, %v4038_v53  ;;  %v11487_v42 = vld [vmem:[%s18169_s8 + $0x110] sm:$0xff]  }
 0x440   :  { %19071 = vst [vmem:[#allocation25_spill] sm:$0xff] %v15444_v23  ;;  %v4319_v29 = vor.u32 %v4318_v41, %v4315_v52  ;;  %10760 = vmatpush3.bf16.msra.mxu0 %v19075_v25  ;;  %v15463_v43 = vmul.f32 %v14943_v56, %v19076_v61  ;;  %v15465_v19 = vpack.c.bf16 %v4057_v26, %v4056_v9  ;;  %v11212_v14 = vunpack.i.l.bf16 %v11211_v45  ;;  %v19077_v53 = vld [vmem:[#allocation8_spill] sm:$0xff]  ;;  %v19078_v41 = vld [vmem:[#allocation29_spill] sm:$0xff]  ;;  %v19080_v23 = vld [vmem:[#allocation51_spill] sm:$0xff] }
 0x441   :  { %v11226_v12 = vpop.permute.xlu0 %11225  ;;  %v4358_v52 = vshrl.u32 %v4114_v8, 16  ;;  %10761 = vmatprep.subr.bf16.mxu0 %v11483_v0  ;;  %v4041_v22 = vsel %vm822_vm2, %v19077_v53, %v11223_v50  ;;  %v15475_v56 = vor.u32 %v4309_v1, %v4306_v59  ;;  %v4361_v26 = vshll.u32 %v4114_v8, 16 }
 0x442   :  { %v11228_v3 = vunpack.i.h.bf16 %v11226_v12  ;;  %v11227_v47 = vunpack.i.l.bf16 %v11226_v12  ;;  %v11231_v4 = vpop.permute.xlu1 %11230  ;;  %v4320_v13 = vsel %vm2204_vm5, %v4250_v49, %v4319_v29  ;;  %v4040_v12 = vsel %vm822_vm2, %v19078_v41, %v11222_v15 }
 0x443   :  { %4914 = vmatprep.mubr.bf16.mxu0 %v4320_v13  ;;  %v4059_v45 = vsel %vm822_vm2, %v15185_v20, %v11213_v55  ;;  %v11233_v49 = vunpack.i.h.bf16 %v11231_v4  ;;  %v11232_v9 = vunpack.i.l.bf16 %v11231_v4  ;;  %v4360_v61 = vrot.slane %v4358_v52, 3  ;;  %v11488_v20 = vld [vmem:[%s18169_s8 + $0x118] sm:$0xff]  }
 0x444   :  { %v4083_v35 = vsel %vm822_vm2, %v19079_v17, %v11228_v3  ;;  %v4082_v50 = vsel %vm822_vm2, %v19080_v23, %v11227_v47  ;;  %v4363_v28 = vrot.slane %v4361_v26, 4  ;;  %10762 = vmatpush3.bf16.msra.mxu0 %v11483_v0  ;;  %v4349_v8 = vshrl.u32 %v4113_v27, 16 }
 0x445   :  { %v11236_v25 = vpop.permute.xlu0 %11235  ;;  %v4352_v13 = vshll.u32 %v4113_v27, 16  ;;  %10763 = vmatprep.subr.bf16.mxu0 %v11487_v42  ;;  %v4058_v55 = vsel %vm822_vm2, %v15174_v21, %v11212_v14  ;;  %v4311_v23 = vsel %vm2204_vm5, %v15438_v34, %v15475_v56  ;;  %v15493_v0 = vpack.c.bf16 %v4083_v35, %v4082_v50  ;;  %v19083_v50 = vld [vmem:[#allocation68_spill] sm:$0xff] }
 0x446   :  { %v11238_v53 = vunpack.i.h.bf16 %v11236_v25  ;;  %v11241_v15 = vpop.permute.xlu1 %11240  ;;  %v11237_v17 = vunpack.i.l.bf16 %v11236_v25  ;;  %v15491_v3 = vor.u32 %v4363_v28, %v4360_v61  ;;  %v19081_v47 = vrot.slane %v15128_v38, 1  ;;  %v19082_v61 = vld [vmem:[#allocation61_spill] sm:$0xff] }
 0x447   :  { %v11243_v59 = vunpack.i.h.bf16 %v11241_v15  ;;  %v11242_v1 = vunpack.i.l.bf16 %v11241_v15  ;;  %4915 = vmatmul.mubr.bf16.gmra.mrb[52].mxu0 %v4311_v23  ;;  %v4351_v41 = vrot.slane %v4349_v8, 3  ;;  %v4085_v21 = vsel %vm822_vm2, %v15166_v46, %v11233_v49 }
 0x448   :  { %v4365_v34 = vsel %vm2204_vm5, %v4319_v29, %v15491_v3  ;;  %10764 = vmatpush3.bf16.msra.mxu0 %v11487_v42  ;;  %v4084_v26 = vsel %vm822_vm2, %v15162_v36, %v11232_v9  ;;  %v4043_v38 = vsel %vm822_vm2, %v15178_v6, %v11238_v53  ;;  %v4403_v25 = vshrl.u32 %v15465_v19, 16 }
 0x449   :  { %v4066_v27 = vsel %vm822_vm2, %v15198_v40, %v11243_v59  ;;  %v4065_v4 = vsel %vm822_vm2, %v19081_v47, %v11242_v1  ;;  %v11251_v52 = vpop.permute.xlu0 %11250  ;;  %4922 = vmatprep.mubr.bf16.mxu0 %v4365_v34  ;;  %v4354_v40 = vrot.slane %v4352_v13, 4  ;;  %10765 = vmatprep.subr.bf16.mxu0 %v11488_v20  ;;  %v4042_v46 = vsel %vm822_vm2, %v19082_v61, %v11237_v17  ;;  %v19084_v17 = vld [vmem:[#allocation129_spill] sm:$0xff] }
 0x44a   :  { %v11253_v28 = vunpack.i.h.bf16 %v11251_v52  ;;  %v11252_v14 = vunpack.i.l.bf16 %v11251_v52  ;;  %v11246_v35 = vpop.permute.xlu1 %11245  ;;  %v4100_v49 = vpack.c.bf16 %v4066_v27, %v4065_v4  ;;  %v15517_v53 = vpack.c.bf16 %v4041_v22, %v4040_v12 }
 0x44b   :  { %v11248_v36 = vunpack.i.h.bf16 %v11246_v35  ;;  %v11247_v9 = vunpack.i.l.bf16 %v11246_v35  ;;  %v15515_v6 = vor.u32 %v4354_v40, %v4351_v41  ;;  %v15519_v1 = vpack.c.bf16 %v4059_v45, %v4058_v55  ;;  %v19085_v55 = vld [vmem:[#allocation49_spill] sm:$0xff]  ;;  %v19086_v41 = vld [vmem:[#allocation14_spill] sm:$0xff] }
 0x44c   :  { %v4068_v29 = vsel %vm822_vm2, %v15212_v37, %v11253_v28  ;;  %v4067_v42 = vsel %vm822_vm2, %v19083_v50, %v11252_v14  ;;  %10766 = vmatpush3.bf16.msra.mxu0 %v11488_v20  ;;  %v15523_v23 = vmul.f32 %v14945_v18, %v19084_v17  ;;  %v4106_v37 = vpack.c.bf16 %v4085_v21, %v4084_v26  ;;  %v19087_v35 = vld [vmem:[#allocation10_spill] sm:$0xff] }
 0x44d   :  { %v4105_v15 = vpack.c.bf16 %v4068_v29, %v4067_v42  ;;  %v11256_v59 = vpop.permute.xlu0 %11255  ;;  %v15525_v27 = vpack.c.bf16 %v4043_v38, %v4042_v46  ;;  %v4405_v4 = vrot.slane %v4403_v25, 3  ;;  %v4253_v52 = vshrl.u32 %v4100_v49, 16  ;;  %v19088_v25 = vld [vmem:[#allocation32_spill] sm:$0xff] }
 0x44e   :  { %v11258_v8 = vunpack.i.h.bf16 %v11256_v59  ;;  %v11261_v13 = vpop.permute.xlu1 %11260  ;;  %v11257_v47 = vunpack.i.l.bf16 %v11256_v59  ;;  %v4256_v34 = vshll.u32 %v4100_v49, 16  ;;  %v4356_v22 = vsel %vm2204_vm5, %v15475_v56, %v15515_v6 }
 0x44f   :  { %v4406_v12 = vshll.u32 %v15465_v19, 16  ;;  %v4261_v45 = vshrl.u32 %v4105_v15, 16  ;;  %v4061_v20 = vsel %vm822_vm2, %v19085_v55, %v11248_v36  ;;  %v4060_v18 = vsel %vm822_vm2, %v19086_v41, %v11247_v9  ;;  %4923 = vmatmul.mubr.bf16.gmra.mrb[56].mxu0 %v4356_v22  ;;  %v19089_v41 = vld [vmem:[#allocation15_spill] sm:$0xff] }
 0x450   :  { %v4270_v28 = vshrl.u32 %v15493_v0, 16  ;;  %v4264_v14 = vshll.u32 %v4105_v15, 16  ;;  %v4087_v26 = vsel %vm822_vm2, %v19087_v35, %v11258_v8  ;;  %v11263_v40 = vunpack.i.h.bf16 %v11261_v13 }
 0x451   :  { %v11271_v21 = vpop.permute.xlu0 %11270  ;;  %v4408_v38 = vrot.slane %v4406_v12, 4  ;;  %v4086_v19 = vsel %vm822_vm2, %v19088_v25, %v11257_v47  ;;  %v11262_v61 = vunpack.i.l.bf16 %v11261_v13  ;;  %v4273_v50 = vshll.u32 %v15493_v0, 16  ;;  %v19090_v0 = vld [vmem:[#allocation56_spill] sm:$0xff] }
 0x452   :  { %v11266_v56 = vpop.permute.xlu1 %11265  ;;  %v11273_v46 = vunpack.i.h.bf16 %v11271_v21  ;;  %v11272_v49 = vunpack.i.l.bf16 %v11271_v21  ;;  %v4278_v42 = vshrl.u32 %v4106_v37, 16  ;;  %v4281_v36 = vshll.u32 %v4106_v37, 16 }
 0x453   :  { %v4409_v29 = vor.u32 %v4408_v38, %v4405_v4  ;;  %v4255_v9 = vrot.slane %v4253_v52, 3  ;;  %v4258_v59 = vrot.slane %v4256_v34, 4  ;;  %v4263_v15 = vrot.slane %v4261_v45, 3  ;;  %v19091_v45 = vld [vmem:[#allocation12_spill] sm:$0xff] }
 0x454   :  { %v4272_v17 = vrot.slane %v4270_v28, 3  ;;  %v4266_v8 = vrot.slane %v4264_v14, 4  ;;  %v4275_v55 = vrot.slane %v4273_v50, 4  ;;  %v4280_v47 = vrot.slane %v4278_v42, 3 }
 0x455   :  { %v15541_v22 = vpop.permute.xlu0 %11275  ;;  %v4410_v12 = vsel %vm2204_vm5, %v15491_v3, %v4409_v29  ;;  %v4111_v13 = vpack.c.bf16 %v4087_v26, %v4086_v19  ;;  %v4045_v4 = vsel %vm822_vm2, %v19089_v41, %v11263_v40  ;;  %v4044_v37 = vsel %vm822_vm2, %v19090_v0, %v11262_v61 }
 0x456   :  { %4930 = vmatprep.mubr.bf16.mxu0 %v4410_v12  ;;  %v4283_v52 = vrot.slane %v4281_v36, 4  ;;  %v4070_v34 = vsel %vm822_vm2, %v15258_v5, %v11273_v46  ;;  %v4069_v21 = vsel %vm822_vm2, %v19091_v45, %v11272_v49  ;;  %v11268_v28 = vunpack.i.h.bf16 %v11266_v56  ;;  %v11281_v14 = vpop.permute.xlu1 %11280 }
 0x457   :  { %v4394_v3 = vshrl.u32 %v15517_v53, 16  ;;  %v4276_v35 = vor.u32 %v4275_v55, %v4272_v17  ;;  %v4397_v38 = vshll.u32 %v15517_v53, 16  ;;  %v4259_v25 = vor.u32 %v4258_v59, %v4255_v9 }
 0x458   :  { %v4284_v26 = vor.u32 %v4283_v52, %v4280_v47  ;;  %v11267_v19 = vunpack.i.l.bf16 %v11266_v56  ;;  %v15555_v61 = vor.u32 %v4266_v8, %v4263_v15  ;;  %v4448_v42 = vshrl.u32 %v15519_v1, 16 }
 0x459   :  { %v11286_v40 = vpop.permute.xlu0 %11285  ;;  %v4396_v50 = vrot.slane %v4394_v3, 3  ;;  %v11278_v46 = vunpack.i.h.bf16 %v15541_v22  ;;  %v4399_v49 = vrot.slane %v4397_v38, 4  ;;  %v4451_v36 = vshll.u32 %v15519_v1, 16 }
 0x45a   :  { %v4285_v5 = vsel %vm2204_vm5, %v4276_v35, %v4284_v26  ;;  %v15561_v12 = vpack.c.bf16 %v4061_v20, %v4060_v18  ;;  %v15563_v17 = vpack.c.bf16 %v4045_v4, %v4044_v37  ;;  %v4268_v53 = vsel %vm2204_vm5, %v4259_v25, %v15555_v61  ;;  %v11291_v47 = vpop.permute.xlu1 %11290  ;;  %v19092_v4 = vld [vmem:[#allocation11_spill] sm:$0xff] }
 0x45b   :  { %5003 = vmatprep.mubr.bf16.mxu1 %v4285_v5  ;;  %v4450_v56 = vrot.slane %v4448_v42, 3  ;;  %v4110_v9 = vpack.c.bf16 %v4070_v34, %v4069_v21  ;;  %v4063_v59 = vsel %vm822_vm2, %v15270_v7, %v11268_v28  ;;  %v4400_v15 = vor.u32 %v4399_v49, %v4396_v50 }
 0x45c   :  { %5004 = vmatmul.mubr.bf16.vlgmr.msra.gmra.mrb[48].mxu1 %v4268_v53  ;;  %v4453_v8 = vrot.slane %v4451_v36, 4  ;;  %v4062_v55 = vsel %vm822_vm2, %v15267_v10, %v11267_v19  ;;  %v11277_v1 = vunpack.i.l.bf16 %v15541_v22  ;;  %v4331_v20 = vshrl.u32 %v4111_v13, 16  ;;  %v19093_v19 = vld [vmem:[#allocation69_spill] sm:$0xff] }
 0x45d   :  { %v4334_v18 = vshll.u32 %v4111_v13, 16  ;;  %v11296_v41 = vpop.permute.xlu0 %11295  ;;  %v4089_v0 = vsel %vm822_vm2, %v19092_v4, %v11278_v46  ;;  %v4401_v37 = vsel %vm2204_vm5, %v15515_v6, %v4400_v15  ;;  %v11283_v7 = vunpack.i.h.bf16 %v11281_v14  ;;  %v19095_v46 = vld [vmem:[#allocation16_spill] sm:$0xff] }
 0x45e   :  { %v15576_v52 = vor.u32 %v4453_v8, %v4450_v56  ;;  %4931 = vmatmul.mubr.bf16.gmra.mrb[60].mxu0 %v4401_v37  ;;  %v11282_v34 = vunpack.i.l.bf16 %v11281_v14  ;;  %v11288_v45 = vunpack.i.h.bf16 %v11286_v40  ;;  %v4333_v21 = vrot.slane %v4331_v20, 3  ;;  %v19096_v20 = vld [vmem:[#allocation17_spill] sm:$0xff] }
 0x45f   :  { %v4336_v10 = vrot.slane %v4334_v18, 4  ;;  %v11287_v13 = vunpack.i.l.bf16 %v11286_v40  ;;  %v11292_v28 = vunpack.i.l.bf16 %v11291_v47  ;;  %v11298_v3 = vunpack.i.h.bf16 %v11296_v41 }
 0x460   :  { %v4455_v22 = vsel %vm2204_vm5, %v4409_v29, %v15576_v52  ;;  %v11293_v38 = vunpack.i.h.bf16 %v11291_v47  ;;  %v11297_v25 = vunpack.i.l.bf16 %v11296_v41  ;;  %v4439_v6 = vshrl.u32 %v15525_v27, 16  ;;  %v19094_v29 = vld [vmem:[#allocation71_spill] sm:$0xff] }
 0x461   :  { %4938 = vmatprep.mubr.bf16.mxu0 %v4455_v22  ;;  %v15580_v35 = vor.u32 %v4336_v10, %v4333_v21  ;;  %v4088_v50 = vsel %vm822_vm2, %v19093_v19, %v11277_v1  ;;  %v4064_v14 = vsel %vm822_vm2, %v15306_v39, %v11292_v28  ;;  %v4442_v42 = vshll.u32 %v15525_v27, 16  ;;  %v11301_v1 = vpop.permute.xlu1 %11300 }
 0x462   :  { %v4322_v5 = vshrl.u32 %v4110_v9, 16  ;;  %v4047_v40 = vsel %vm822_vm2, %v19094_v29, %v11283_v7  ;;  %v4046_v49 = vsel %vm822_vm2, %v19095_v46, %v11282_v34  ;;  %v4072_v36 = vsel %vm822_vm2, %v15284_v33, %v11288_v45 }
 0x463   :  { %v4338_v53 = vsel %vm2204_vm5, %v4284_v26, %v15580_v35  ;;  %v4071_v56 = vsel %vm822_vm2, %v15281_v2, %v11287_v13  ;;  %v4048_v39 = vsel %vm822_vm2, %v15274_v60, %v11298_v3  ;;  %v4441_v27 = vrot.slane %v4439_v6, 3  ;;  %v11306_v60 = vpop.permute.xlu0 %11305 }
 0x464   :  { %5011 = vmatprep.mubr.bf16.mxu1 %v4338_v53  ;;  %v4444_v8 = vrot.slane %v4442_v42, 4  ;;  %v4090_v18 = vsel %vm822_vm2, %v19096_v20, %v11293_v38  ;;  %v15602_v47 = vpack.c.bf16 %v4064_v14, %v4064_v14  ;;  %v4091_v33 = vsel %vm822_vm2, %v15288_v62, %v11297_v25 }
 0x465   :  { %v4324_v41 = vrot.slane %v4322_v5, 3  ;;  %v4325_v4 = vshll.u32 %v4110_v9, 16  ;;  %v4493_v2 = vshrl.u32 %v15561_v12, 16  ;;  %v4496_v37 = vshll.u32 %v15561_v12, 16  ;;  %v11311_v25 = vpop.permute.xlu1 %11310 }
 0x466   :  { %v15606_v26 = vor.u32 %v4444_v8, %v4441_v27  ;;  %v4134_v7 = vpack.c.bf16 %v4063_v59, %v4062_v55  ;;  %v4116_v34 = vpack.c.bf16 %v4089_v0, %v4088_v50  ;;  %v15610_v45 = vpack.c.bf16 %v4047_v40, %v4046_v49  ;;  %v19097_v49 = vld [vmem:[#allocation63_spill] sm:$0xff] }
 0x467   :  { %v15612_v21 = vpack.c.bf16 %v4048_v39, %v4048_v39  ;;  %v4327_v22 = vrot.slane %v4325_v4, 4  ;;  %v4495_v62 = vrot.slane %v4493_v2, 3  ;;  %v4498_v13 = vrot.slane %v4496_v37, 4  ;;  %v11316_v40 = vpop.permute.xlu0 %11315  ;;  %v19098_v39 = vld [vmem:[#allocation86_spill] sm:$0xff] }
 0x468   :  { %v4446_v10 = vsel %vm2204_vm5, %v4400_v15, %v15606_v26  ;;  %v4115_v28 = vpack.c.bf16 %v4072_v36, %v4071_v56  ;;  %v15616_v3 = vpack.c.bf16 %v4091_v33, %v4090_v18  ;;  %v11303_v9 = vunpack.i.h.bf16 %v11301_v1 }
 0x469   :  { %4939 = vmatmul.mubr.bf16.gmra.mrb[64].mxu0 %v4446_v10  ;;  %v11302_v38 = vunpack.i.l.bf16 %v11301_v1  ;;  %v4583_v12 = vshrl.u32 %v15602_v47, 16  ;;  %v4328_v59 = vor.u32 %v4327_v22, %v4324_v41  ;;  %v4499_v55 = vor.u32 %v4498_v13, %v4495_v62  ;;  %v11321_v37 = vpop.permute.xlu1 %11320  ;;  %v19099_v62 = vld [vmem:[#allocation36_spill] sm:$0xff] }
 0x46a   :  { %v11308_v0 = vunpack.i.h.bf16 %v11306_v60  ;;  %v4586_v6 = vshll.u32 %v15602_v47, 16  ;;  %v4574_v19 = vshrl.u32 %v15612_v21, 16  ;;  %v4376_v15 = vshrl.u32 %v4116_v34, 16 }
 0x46b   :  { %v4379_v50 = vshll.u32 %v4116_v34, 16  ;;  %v4577_v14 = vshll.u32 %v15612_v21, 16  ;;  %v4329_v42 = vsel %vm2204_vm5, %v15555_v61, %v4328_v59  ;;  %v4500_v5 = vsel %vm2204_vm5, %v15576_v52, %v4499_v55 }
 0x46c   :  { %v11307_v29 = vunpack.i.l.bf16 %v11306_v60  ;;  %5012 = vmatmul.mubr.bf16.gmra.mrb[52].mxu1 %v4329_v42  ;;  %4946 = vmatprep.mubr.bf16.mxu0 %v4500_v5  ;;  %v4074_v46 = vsel %vm822_vm2, %v15344_v44, %v11303_v9  ;;  %v4073_v36 = vsel %vm822_vm2, %v19097_v49, %v11302_v38  ;;  %v4378_v53 = vrot.slane %v4376_v15, 3 }
 0x46d   :  { %v4381_v56 = vrot.slane %v4379_v50, 4  ;;  %v4093_v27 = vsel %vm822_vm2, %v19098_v39, %v11308_v0  ;;  %v11313_v8 = vunpack.i.h.bf16 %v11311_v25  ;;  %v11312_v61 = vunpack.i.l.bf16 %v11311_v25 }
 0x46e   :  { %v4484_v1 = vshrl.u32 %v15563_v17, 16  ;;  %v11318_v20 = vunpack.i.h.bf16 %v11316_v40  ;;  %v4487_v18 = vshll.u32 %v15563_v17, 16  ;;  %v4367_v33 = vshrl.u32 %v4115_v28, 16 }
 0x46f   :  { %v15633_v52 = vor.u32 %v4381_v56, %v4378_v53  ;;  %v4370_v44 = vshll.u32 %v4115_v28, 16  ;;  %v4538_v4 = vshrl.u32 %v4134_v7, 16  ;;  %v4541_v2 = vshll.u32 %v4134_v7, 16  ;;  %v11326_v7 = vpop.permute.xlu0 %11325  ;;  %v19101_v53 = vld [vmem:[#allocation87_spill] sm:$0xff] }
 0x470   :  { %v4486_v41 = vrot.slane %v4484_v1, 3  ;;  %v11317_v34 = vunpack.i.l.bf16 %v11316_v40  ;;  %v4489_v10 = vrot.slane %v4487_v18, 4  ;;  %v4369_v22 = vrot.slane %v4367_v33, 3 }
 0x471   :  { %v4383_v60 = vsel %vm2204_vm5, %v15580_v35, %v15633_v52  ;;  %v4092_v13 = vsel %vm822_vm2, %v19099_v62, %v11307_v29  ;;  %v4372_v9 = vrot.slane %v4370_v44, 4  ;;  %v4540_v38 = vrot.slane %v4538_v4, 3  ;;  %v19100_v29 = vld [vmem:[#allocation72_spill] sm:$0xff]  ;;  %v11331_v4 = vpop.permute.xlu1 %11330 }
 0x472   :  { %5019 = vmatprep.mubr.bf16.mxu1 %v4383_v60  ;;  %v4543_v17 = vrot.slane %v4541_v2, 4  ;;  %v4120_v0 = vpack.c.bf16 %v4074_v46, %v4073_v36  ;;  %v4490_v25 = vor.u32 %v4489_v10, %v4486_v41  ;;  %v11323_v28 = vunpack.i.h.bf16 %v11321_v37 }
 0x473   :  { %v11322_v15 = vunpack.i.l.bf16 %v11321_v37  ;;  %v4076_v50 = vsel %vm822_vm2, %v15368_v57, %v11313_v8  ;;  %v4373_v42 = vor.u32 %v4372_v9, %v4369_v22  ;;  %v4421_v5 = vshrl.u32 %v15616_v3, 16 }
 0x474   :  { %v4544_v35 = vor.u32 %v4543_v17, %v4540_v38  ;;  %v4075_v40 = vsel %vm822_vm2, %v15365_v11, %v11312_v61  ;;  %v4095_v49 = vsel %vm822_vm2, %v19100_v29, %v11318_v20  ;;  %v4094_v46 = vsel %vm822_vm2, %v19101_v53, %v11317_v34 }
 0x475   :  { %v4491_v36 = vsel %vm2204_vm5, %v15606_v26, %v4490_v25  ;;  %v4374_v56 = vsel %vm2204_vm5, %v4328_v59, %v4373_v42  ;;  %v11328_v39 = vunpack.i.h.bf16 %v11326_v7  ;;  %v11327_v8 = vunpack.i.l.bf16 %v11326_v7 }
 0x476   :  { %4947 = vmatmul.mubr.bf16.gmra.mrb[68].mxu0 %v4491_v36  ;;  %v4545_v57 = vsel %vm2204_vm5, %v4499_v55, %v4544_v35  ;;  %5020 = vmatmul.mubr.bf16.gmra.mrb[56].mxu1 %v4374_v56  ;;  %v4078_v11 = vsel %vm822_vm2, %v15378_v24, %v11323_v28  ;;  %v4077_v61 = vsel %vm822_vm2, %v15371_v16, %v11322_v15  ;;  %v4423_v1 = vrot.slane %v4421_v5, 3 }
 0x477   :  { %4954 = vmatprep.mubr.bf16.mxu0 %v4545_v57  ;;  %v4424_v20 = vshll.u32 %v15616_v3, 16  ;;  %v4126_v18 = vpack.c.bf16 %v4093_v27, %v4092_v13  ;;  %v4529_v26 = vshrl.u32 %v15610_v45, 16  ;;  %v4532_v59 = vshll.u32 %v15610_v45, 16 }
 0x478   :  { %v4412_v33 = vshrl.u32 %v4120_v0, 16  ;;  %v4125_v55 = vpack.c.bf16 %v4076_v50, %v4075_v40  ;;  %v4131_v41 = vpack.c.bf16 %v4095_v49, %v4094_v46  ;;  %v4415_v2 = vshll.u32 %v4120_v0, 16  ;;  %v19102_v49 = vld [vmem:[#allocation20_spill] sm:$0xff] }
 0x479   :  { %v4426_v44 = vrot.slane %v4424_v20, 4  ;;  %v4130_v37 = vpack.c.bf16 %v4078_v11, %v4077_v61  ;;  %v4097_v24 = vsel %vm822_vm2, %v15360_v32, %v11328_v39  ;;  %v4096_v16 = vsel %vm822_vm2, %v15350_v63, %v11327_v8  ;;  %v19104_v20 = vld [vmem:[#allocation31_spill] sm:$0xff] }
 0x47a   :  { %v4531_v60 = vrot.slane %v4529_v26, 3  ;;  %v4534_v27 = vrot.slane %v4532_v59, 4  ;;  %v4414_v34 = vrot.slane %v4412_v33, 3  ;;  %v4417_v10 = vrot.slane %v4415_v2, 4 }
 0x47b   :  { %v4427_v3 = vor.u32 %v4426_v44, %v4423_v1  ;;  %v11333_v22 = vunpack.i.h.bf16 %v11331_v4  ;;  %v11332_v45 = vunpack.i.l.bf16 %v11331_v4  ;;  %v4585_v62 = vrot.slane %v4583_v12, 3  ;;  %v19109_v44 = vld [vmem:[#allocation55_spill] sm:$0xff] }
 0x47c   :  { %v4588_v13 = vrot.slane %v4586_v6, 4  ;;  %v4535_v32 = vor.u32 %v4534_v27, %v4531_v60  ;;  %v4418_v38 = vor.u32 %v4417_v10, %v4414_v34  ;;  %v4466_v17 = vshrl.u32 %v4126_v18, 16 }
 0x47d   :  { %v4428_v9 = vsel %vm2204_vm5, %v15633_v52, %v4427_v3  ;;  %v4469_v0 = vshll.u32 %v4126_v18, 16  ;;  %v4576_v28 = vrot.slane %v4574_v19, 3  ;;  %v4579_v15 = vrot.slane %v4577_v14, 4 }
 0x47e   :  { %5027 = vmatprep.mubr.bf16.mxu1 %v4428_v9  ;;  %v4589_v63 = vor.u32 %v4588_v13, %v4585_v62  ;;  %v4536_v12 = vsel %vm2204_vm5, %v4490_v25, %v4535_v32  ;;  %v4419_v47 = vsel %vm2204_vm5, %v4373_v42, %v4418_v38  ;;  %v4468_v6 = vrot.slane %v4466_v17, 3  ;;  %v3861_v13 = vpop.permute.xlu0 %3860  ;;  %v19112_v9 = vld [vmem:[#allocation19_spill] sm:$0xff] }
 0x47f   :  { %v4457_v7 = vshrl.u32 %v4125_v55, 16  ;;  %v4136_v50 = vpack.c.bf16 %v4097_v24, %v4096_v16  ;;  %4955 = vmatmul.mubr.bf16.gmra.mrb[72].mxu0 %v4536_v12  ;;  %5028 = vmatmul.mubr.bf16.gmra.mrb[60].mxu1 %v4419_v47  ;;  %v4471_v5 = vrot.slane %v4469_v0, 4  ;;  %v4460_v40 = vshll.u32 %v4125_v55, 16 }
 0x480   :  { %v4590_v52 = vsel %vm2204_vm5, %v4544_v35, %v4589_v63  ;;  %v4080_v29 = vsel %vm822_vm2, %v15386_v58, %v11333_v22  ;;  %v4511_v21 = vshrl.u32 %v4131_v41, 16  ;;  %v4514_v14 = vshll.u32 %v4131_v41, 16  ;;  %v19108_v41 = vld [vmem:[#allocation148_spill] sm:$0xff] }
 0x481   :  { %4962 = vmatprep.mubr.bf16.mxu0 %v4590_v52  ;;  %v4459_v19 = vrot.slane %v4457_v7, 3  ;;  %v4079_v25 = vsel %vm822_vm2, %v19102_v49, %v11332_v45  ;;  %v4472_v42 = vor.u32 %v4471_v5, %v4468_v6  ;;  %v4580_v53 = vor.u32 %v4579_v15, %v4576_v28 }
 0x482   :  { %v4462_v46 = vrot.slane %v4460_v40, 4  ;;  %v4513_v36 = vrot.slane %v4511_v21, 3  ;;  %v4516_v56 = vrot.slane %v4514_v14, 4  ;;  %v4502_v57 = vshrl.u32 %v4130_v37, 16  ;;  %v19118_v21 = vld [vmem:[#allocation60_spill] sm:$0xff] }
 0x483   :  { %v4505_v39 = vshll.u32 %v4130_v37, 16  ;;  %v4473_v35 = vsel %vm2204_vm5, %v4427_v3, %v4472_v42  ;;  %v4556_v11 = vshrl.u32 %v4136_v50, 16  ;;  %v4559_v61 = vshll.u32 %v4136_v50, 16 }
 0x484   :  { %v4463_v8 = vor.u32 %v4462_v46, %v4459_v19  ;;  %5035 = vmatprep.mubr.bf16.mxu1 %v4473_v35  ;;  %v4517_v58 = vor.u32 %v4516_v56, %v4513_v36  ;;  %v19103_v1 = vrot.slane %v15407_v30, 2  ;;  %v19105_v18 = vrot.slane %v19104_v20, 2 }
 0x485   :  { %v19106_v59 = vrot.slane %v15411_v31, 2  ;;  %v3494_v4 = vmul.f32 %v19109_v44, %v19108_v41  ;;  %v4135_v2 = vpack.c.bf16 %v4080_v29, %v4079_v25  ;;  %v19110_v37 = vshll.u32 %v15362_v54, 16 }
 0x486   :  { %v4007_v26 = vsel %vm721_vm1, %v19105_v18, %v19103_v1  ;;  %v19107_v33 = vmov %v19103_v1  ;;  %v4010_v16 = vrot.slane %v15463_v43, 2  ;;  %v4012_v60 = vrot.slane %v15523_v23, 2  ;;  %v19111_v23 = vld [vmem:[#allocation18_spill] sm:$0xff] }
 0x487   :  { %v4009_v55 = vsel %vm721_vm1, %v19107_v33, %v19106_v59  ;;  %v4390_v24 = vrot.slane %v19110_v37, 4  ;;  %v4581_v3 = vsel %vm2204_vm5, %v4535_v32, %v4580_v53  ;;  %v4464_v27 = vsel %vm2204_vm5, %v4418_v38, %v4463_v8  ;;  %v19113_v38 = vld [vmem:[#allocation25_spill] sm:$0xff] }
 0x488   :  { %v4504_v34 = vrot.slane %v4502_v57, 3  ;;  %v4507_v10 = vrot.slane %v4505_v39, 4  ;;  %4963 = vmatmul.mubr.bf16.gmra.mrb[76].mxu0 %v4581_v3  ;;  %5036 = vmatmul.mubr.bf16.gmra.mrb[64].mxu1 %v4464_v27  ;;  %v4518_v30 = vsel %vm2204_vm5, %v4472_v42, %v4517_v58  ;;  %v4558_v22 = vrot.slane %v4556_v11, 3 }
 0x489   :  { %v4561_v45 = vrot.slane %v4559_v61, 4  ;;  %v4127_v62 = vpack.c.bf16 %v4009_v55, %v4007_v26  ;;  %5043 = vmatprep.mubr.bf16.mxu1 %v4518_v30  ;;  %10767 = vmatprep.mubr.msk.bf16.mxu0 %vm822_vm2, %v15432_v48  ;;  %v4430_v54 = vshrl.u32 %v15396_v51, 16  ;;  %v4014_v43 = vrot.slane %v3494_v4, 2  ;;  %v19115_v48 = vld [vmem:[#allocation95_spill] sm:$0xff] }
 0x48a   :  { %v4346_v32 = vor.u32 %v19112_v9, %v19111_v23  ;;  %v4391_v17 = vor.u32 %v4390_v24, %v19113_v38  ;;  %v4433_v63 = vshll.u32 %v15396_v51, 16  ;;  %v19114_v0 = vmov %v19106_v59  ;;  %v19117_v51 = vld [vmem:[#allocation151_spill] sm:$0xff]  ;;  %v19119_v24 = vld [vmem:[#allocation153_spill] sm:$0xff] }
 0x48b   :  { %v4011_v28 = vsel %vm721_vm1, %v19114_v0, %v4010_v16  ;;  %v4508_v15 = vor.u32 %v4507_v10, %v4504_v34  ;;  %v4547_v12 = vshrl.u32 %v4135_v2, 16  ;;  %v4550_v47 = vshll.u32 %v4135_v2, 16  ;;  %v5368_v23 = vld [vmem:[%s18171_s10] sm:$0xff]  ;;  %v5369_v9 = vld [vmem:[%s18171_s10 + $0x8] sm:$0xff] }
 0x48c   :  { %v4013_v6 = vsel %vm721_vm1, %v4010_v16, %v4012_v60  ;;  %v19116_v7 = vrot.slane %v19115_v48, 1  ;;  %v4562_v52 = vor.u32 %v4561_v45, %v4558_v22  ;;  %v4475_v5 = vshrl.u32 %v4127_v62, 16 }
 0x48d   :  { %v4478_v40 = vshll.u32 %v4127_v62, 16  ;;  %v4432_v29 = vrot.slane %v4430_v54, 3  ;;  %v4015_v19 = vsel %vm721_vm1, %v4012_v60, %v4014_v43  ;;  %v4016_v31 = vsel %vm721_vm1, %v4014_v43, %v19117_v51 }
 0x48e   :  { %v4081_v50 = vsel %vm822_vm2, %v19116_v7, %v3861_v13  ;;  %v4347_v14 = vsel %vm2204_vm5, %v19118_v21, %v4346_v32  ;;  %v4392_v49 = vsel %vm2204_vm5, %v4346_v32, %v4391_v17  ;;  %v4435_v25 = vrot.slane %v4433_v63, 4  ;;  %v19120_v13 = vld [vmem:[#allocation152_spill] sm:$0xff] }
 0x48f   :  { %v4132_v42 = vpack.c.bf16 %v4013_v6, %v4011_v28  ;;  %v4140_v53 = vpack.c.bf16 %v4081_v50, %v4081_v50  ;;  %v4509_v46 = vsel %vm2204_vm5, %v4463_v8, %v4508_v15  ;;  %v4549_v36 = vrot.slane %v4547_v12, 3  ;;  %v5371_v21 = vld [vmem:[%s18171_s10 + $0x18] sm:$0xff] }
 0x490   :  { %v4552_v56 = vrot.slane %v4550_v47, 4  ;;  %5044 = vmatmul.mubr.bf16.gmra.mrb[68].mxu1 %v4509_v46  ;;  %10768 = vmatmul.mubr.msk.bf16.vlgmr.msra.gmra.mrb[80].mxu0 %vm822_vm2, %v4347_v14  ;;  %v4563_v57 = vsel %vm2204_vm5, %v4517_v58, %v4562_v52  ;;  %v4477_v39 = vrot.slane %v4475_v5, 3  ;;  %v4480_v35 = vrot.slane %v4478_v40, 4  ;;  %v5372_v14 = vld [vmem:[%s18171_s10 + $0x20] sm:$0xff] }
 0x491   :  { %v4137_v11 = vpack.c.bf16 %v4016_v31, %v4015_v19  ;;  %5051 = vmatprep.mubr.bf16.mxu1 %v4563_v57  ;;  %10771 = vmatprep.mubr.msk.bf16.mxu0 %vm822_vm2, %v4392_v49  ;;  %v4436_v61 = vor.u32 %v4435_v25, %v4432_v29  ;;  %v4520_v1 = vshrl.u32 %v4132_v42, 16  ;;  %v4592_v20 = vshrl.u32 %v4140_v53, 16  ;;  %v5370_v31 = vld [vmem:[%s18171_s10 + $0x10] sm:$0xff]  ;;  %v15760_v49 = vld [vmem:[%s18170_s9] ss:$0 sm:$0xff] }
 0x492   :  { %v4595_v18 = vshll.u32 %v4140_v53, 16  ;;  %v4553_v26 = vor.u32 %v4552_v56, %v4549_v36  ;;  %v4523_v59 = vshll.u32 %v4132_v42, 16  ;;  %v4481_v8 = vor.u32 %v4480_v35, %v4477_v39  ;;  %v5373_v42 = vld [vmem:[%s18171_s10 + $0x28] sm:$0xff]  ;;  %v5374_v36 = vld [vmem:[%s18171_s10 + $0x30] sm:$0xff]  ;;  %v5375_v56 = vld [vmem:[%s18171_s10 + $0x38] sm:$0xff] }
 0x493   :  { %v4565_v33 = vshrl.u32 %v4137_v11, 16  ;;  %v4568_v55 = vshll.u32 %v4137_v11, 16  ;;  %v4437_v41 = vsel %vm2204_vm5, %v4391_v17, %v4436_v61  ;;  %v4522_v44 = vrot.slane %v4520_v1, 3 }
 0x494   :  { %v4594_v4 = vrot.slane %v4592_v20, 3  ;;  %v4597_v58 = vrot.slane %v4595_v18, 4  ;;  %v4554_v2 = vsel %vm2204_vm5, %v4508_v15, %v4553_v26  ;;  %v4525_v37 = vrot.slane %v4523_v59, 4 }
 0x495   :  { %v4600_v16 = vsel %vm2204_vm5, %v4562_v52, %v19119_v24  ;;  %v4482_v60 = vsel %vm2204_vm5, %v4436_v61, %v4481_v8  ;;  %v4567_v3 = vrot.slane %v4565_v33, 3  ;;  %v4570_v27 = vrot.slane %v4568_v55, 4 }
 0x496   :  { %v4598_v34 = vor.u32 %v4597_v58, %v4594_v4  ;;  %v4526_v10 = vor.u32 %v4525_v37, %v4522_v44  ;;  %v19121_v43 = vmov 0   ;;  %v10823_v32 = vpack.c.bf16 %v5369_v9, %v5368_v23 }
 0x497   :  { %v4571_v30 = vor.u32 %v4570_v27, %v4567_v3  ;;  %v10827_v25 = vpack.c.bf16 %v5371_v21, %v5370_v31  ;;  %v10831_v46 = vpack.c.bf16 %v5373_v42, %v5372_v14  ;;  %v10835_v20 = vpack.c.bf16 %v5375_v56, %v5374_v36 }
 0x498   :  { %5052 = vmatmul.mubr.bf16.gmra.mrb[72].mxu1 %v4554_v2  ;;  %10772 = vmatmul.mubr.msk.bf16.gmra.mrb[84].mxu0 %vm822_vm2, %v4437_v41  ;;  %v4599_v22 = vsel %vm2204_vm5, %v4553_v26, %v4598_v34  ;;  %v4527_v45 = vsel %vm2204_vm5, %v4481_v8, %v4526_v10 }
 0x499   :  { %5059 = vmatprep.mubr.bf16.mxu1 %v4600_v16  ;;  %10775 = vmatprep.mubr.msk.bf16.mxu0 %vm822_vm2, %v4482_v60  ;;  %v4572_v62 = vsel %vm2204_vm5, %v4526_v10, %v4571_v30  ;;  %v4601_v54 = vsel %vm2204_vm5, %v4571_v30, %v19120_v13 }
 0x49a   :  { %10824 = vmatprep.subr.bf16.mxu1 %v10823_v32 }
 0x49b   :  { %10826 = vmatpush3.bf16.msra.mxu1 %v10823_v32 }
 0x49c   :  { %10828 = vmatprep.subr.bf16.mxu1 %v10827_v25 }
 0x49f   :  { %10830 = vmatpush3.bf16.msra.mxu1 %v10827_v25 }
 0x4a0   :  { %5060 = vmatmul.mubr.bf16.gmra.mrb[76].mxu1 %v4599_v22  ;;  %10776 = vmatmul.mubr.msk.bf16.gmra.mrb[88].mxu0 %vm822_vm2, %v4527_v45 }
 0x4a1   :  { %10779 = vmatprep.mubr.msk.bf16.mxu0 %vm822_vm2, %v4572_v62  ;;  %10832 = vmatprep.subr.bf16.mxu1 %v10831_v46 }
 0x4a3   :  { %10834 = vmatpush3.bf16.msra.mxu1 %v10831_v46 }
 0x4a4   :  { %10836 = vmatprep.subr.bf16.mxu1 %v10835_v20 }
 0x4a7   :  { %10838 = vmatpush3.bf16.msra.mxu1 %v10835_v20 }
 0x4a8   :  { %10780 = vmatmul.mubr.msk.bf16.gmra.mrb[92].mxu0 %vm822_vm2, %v4601_v54 }
 0x4a9   :  { %7162 = vmatprep.mubr.bf16.mxu0 %v19121_v43 }
 0x512   :  { %v10522_v38 = vpop.f32.mrb[48].mxu0 }
 0x513   :  { %v10523_v17 = vpop.f32.mrb[49].mxu0 }
 0x514   :  { %v10524_v63 = vadd.f32 %v10523_v17, %v10522_v38  ;;  %v10525_v0 = vpop.f32.mrb[50].mxu0 }
 0x515   :  { %v10526_v28 = vpop.f32.mrb[51].mxu0 }
 0x516   :  { %v10527_v15 = vadd.f32 %v10526_v28, %v10525_v0  ;;  %v4909_v39 = vadd.f32 %v10524_v63, %v15760_v49 }
 0x518   :  { %v4912_v18 = vadd.f32 %v10527_v15, %v15760_v49 }
 0x51a   :  { %v10528_v12 = vpop.f32.mrb[52].mxu0 }
 0x51b   :  { %v10529_v47 = vpop.f32.mrb[53].mxu0 }
 0x51c   :  { %v10530_v6 = vadd.f32 %v10529_v47, %v10528_v12  ;;  %v10531_v48 = vpop.f32.mrb[54].mxu0 }
 0x51d   :  { %v10532_v7 = vpop.f32.mrb[55].mxu0 }
 0x51e   :  { %v10533_v50 = vadd.f32 %v10532_v7, %v10531_v48  ;;  %v4917_v34 = vadd.f32 %v10530_v6, %v15760_v49 }
 0x520   :  { %v4920_v45 = vadd.f32 %v10533_v50, %v15760_v49 }
 0x522   :  { %v10534_v52 = vpop.f32.mrb[56].mxu0 }
 0x523   :  { %v10535_v5 = vpop.f32.mrb[57].mxu0 }
 0x524   :  { %v10536_v40 = vadd.f32 %v10535_v5, %v10534_v52  ;;  %v10537_v29 = vpop.f32.mrb[58].mxu0 }
 0x525   :  { %v10538_v19 = vpop.f32.mrb[59].mxu0 }
 0x526   :  { %v10539_v51 = vadd.f32 %v10538_v19, %v10537_v29  ;;  %v4925_v0 = vadd.f32 %v10536_v40, %v15760_v49 }
 0x528   :  { %v4928_v48 = vadd.f32 %v10539_v51, %v15760_v49 }
 0x52f   :  { %v10586_v53 = vpop.f32.mrb[48].mxu1 }
 0x530   :  { %v10587_v57 = vpop.f32.mrb[49].mxu1 }
 0x531   :  { %v10588_v35 = vadd.f32 %v10587_v57, %v10586_v53  ;;  %v10589_v11 = vpop.f32.mrb[50].mxu1  ;;  %v10540_v61 = vpop.f32.mrb[60].mxu0 }
 0x532   :  { %v10590_v1 = vpop.f32.mrb[51].mxu1  ;;  %v10541_v26 = vpop.f32.mrb[61].mxu0 }
 0x533   :  { %v10591_v59 = vadd.f32 %v10590_v1, %v10589_v11  ;;  %v15773_v8 = vadd.f32 %v10588_v35, %v4909_v39  ;;  %v10542_v33 = vadd.f32 %v10541_v26, %v10540_v61  ;;  %v10543_v55 = vpop.f32.mrb[62].mxu0 }
 0x534   :  { %v10544_v41 = vpop.f32.mrb[63].mxu0 }
 0x535   :  { %v15775_v44 = vadd.f32 %v10591_v59, %v4912_v18  ;;  %v10545_v4 = vadd.f32 %v10544_v41, %v10543_v55  ;;  %v4933_v21 = vadd.f32 %v10542_v33, %v15760_v49 }
 0x537   :  { %v4936_v51 = vadd.f32 %v10545_v4, %v15760_v49 }
 0x53c   :  { %v10546_v58 = vpop.f32.mrb[64].mxu0 }
 0x53d   :  { %v10547_v2 = vpop.f32.mrb[65].mxu0 }
 0x53e   :  { %v10548_v37 = vadd.f32 %v10547_v2, %v10546_v58  ;;  %v10549_v24 = vpop.f32.mrb[66].mxu0 }
 0x53f   :  { %v10550_v16 = vpop.f32.mrb[67].mxu0  ;;  %v10592_v60 = vpop.f32.mrb[52].mxu1 }
 0x540   :  { %v10551_v3 = vadd.f32 %v10550_v16, %v10549_v24  ;;  %v10593_v27 = vpop.f32.mrb[53].mxu1  ;;  %v4941_v20 = vadd.f32 %v10548_v37, %v15760_v49 }
 0x541   :  { %v10594_v10 = vadd.f32 %v10593_v27, %v10592_v60  ;;  %v10595_v30 = vpop.f32.mrb[54].mxu1 }
 0x542   :  { %v10596_v22 = vpop.f32.mrb[55].mxu1  ;;  %v4944_v4 = vadd.f32 %v10551_v3, %v15760_v49 }
 0x543   :  { %v10597_v62 = vadd.f32 %v10596_v22, %v10595_v30  ;;  %v5014_v13 = vadd.f32 %v10594_v10, %v4917_v34 }
 0x545   :  { %v5017_v54 = vadd.f32 %v10597_v62, %v4920_v45 }
 0x549   :  { %v10552_v23 = vpop.f32.mrb[68].mxu0  ;;  %v10598_v9 = vpop.f32.mrb[56].mxu1 }
 0x54a   :  { %v10553_v32 = vpop.f32.mrb[69].mxu0  ;;  %v10599_v17 = vpop.f32.mrb[57].mxu1 }
 0x54b   :  { %v10554_v38 = vadd.f32 %v10553_v32, %v10552_v23  ;;  %v10555_v63 = vpop.f32.mrb[70].mxu0  ;;  %v10600_v28 = vadd.f32 %v10599_v17, %v10598_v9  ;;  %v10601_v15 = vpop.f32.mrb[58].mxu1 }
 0x54c   :  { %v10556_v12 = vpop.f32.mrb[71].mxu0  ;;  %v10602_v6 = vpop.f32.mrb[59].mxu1 }
 0x54d   :  { %v10557_v47 = vadd.f32 %v10556_v12, %v10555_v63  ;;  %v10603_v7 = vadd.f32 %v10602_v6, %v10601_v15  ;;  %v15781_v50 = vadd.f32 %v10600_v28, %v4925_v0  ;;  %v4949_v3 = vadd.f32 %v10554_v38, %v15760_v49 }
 0x54f   :  { %v15783_v52 = vadd.f32 %v10603_v7, %v4928_v48  ;;  %v4952_v17 = vadd.f32 %v10557_v47, %v15760_v49 }
 0x552   :  { %v10558_v5 = vpop.f32.mrb[72].mxu0  ;;  %v10604_v29 = vpop.f32.mrb[60].mxu1 }
 0x553   :  { %v10559_v19 = vpop.f32.mrb[73].mxu0  ;;  %v10605_v31 = vpop.f32.mrb[61].mxu1 }
 0x554   :  { %v15786_v14 = vadd.f32 %v10559_v19, %v10558_v5  ;;  %v10606_v40 = vadd.f32 %v10605_v31, %v10604_v29  ;;  %v10561_v25 = vpop.f32.mrb[74].mxu0  ;;  %v10607_v42 = vpop.f32.mrb[62].mxu1 }
 0x555   :  { %v10562_v53 = vpop.f32.mrb[75].mxu0  ;;  %v10608_v46 = vpop.f32.mrb[63].mxu1 }
 0x556   :  { %v15789_v36 = vadd.f32 %v10562_v53, %v10561_v25  ;;  %v10609_v56 = vadd.f32 %v10608_v46, %v10607_v42  ;;  %v5030_v57 = vadd.f32 %v10606_v40, %v4933_v21 }
 0x558   :  { %v15791_v39 = vadd.f32 %v10609_v56, %v4936_v51 }
 0x55b   :  { %v10564_v35 = vpop.f32.mrb[76].mxu0  ;;  %v10610_v11 = vpop.f32.mrb[64].mxu1 }
 0x55c   :  { %v10565_v61 = vpop.f32.mrb[77].mxu0  ;;  %v10611_v1 = vpop.f32.mrb[65].mxu1 }
 0x55d   :  { %v15794_v18 = vadd.f32 %v10565_v61, %v10564_v35  ;;  %v10612_v26 = vadd.f32 %v10611_v1, %v10610_v11  ;;  %v10567_v59 = vpop.f32.mrb[78].mxu0  ;;  %v10613_v33 = vpop.f32.mrb[66].mxu1  ;;  %v4957_v11 = vadd.f32 %v15786_v14, %v15760_v49 }
 0x55e   :  { %v10568_v55 = vpop.f32.mrb[79].mxu0  ;;  %v10614_v41 = vpop.f32.mrb[67].mxu1 }
 0x55f   :  { %v15797_v58 = vadd.f32 %v10568_v55, %v10567_v59  ;;  %v10615_v2 = vadd.f32 %v10614_v41, %v10613_v33  ;;  %v15799_v24 = vadd.f32 %v10612_v26, %v4941_v20  ;;  %v4960_v41 = vadd.f32 %v15789_v36, %v15760_v49 }
 0x561   :  { %v15801_v16 = vadd.f32 %v10615_v2, %v4944_v4 }
 0x563   :  { %v10616_v60 = vpop.f32.mrb[68].mxu1  ;;  %v10769_v27 = vpop.f32.mrb[80].mxu0 }
 0x564   :  { %v15803_v34 = vadd.f32 %v10769_v27, %v5014_v13  ;;  %v10617_v37 = vpop.f32.mrb[69].mxu1  ;;  %v5102_v10 = vpop.f32.mrb[81].mxu0 }
 0x565   :  { %v10618_v30 = vadd.f32 %v10617_v37, %v10616_v60  ;;  %v15806_v22 = vadd.f32 %v5102_v10, %v15773_v8  ;;  %v10619_v45 = vpop.f32.mrb[70].mxu1  ;;  %v10770_v62 = vpop.f32.mrb[82].mxu0 }
 0x566   :  { %v15809_v23 = vadd.f32 %v10770_v62, %v5017_v54  ;;  %v10620_v9 = vpop.f32.mrb[71].mxu1  ;;  %v5105_v32 = vpop.f32.mrb[83].mxu0  ;;  %v5205_v8 = vmul.f32 %v15803_v34, %v15803_v34 }
 0x567   :  { %v5203_v13 = vmul.f32 %v15806_v22, %v15806_v22  ;;  %v10621_v63 = vadd.f32 %v10620_v9, %v10619_v45  ;;  %v15815_v0 = vadd.f32 %v5105_v32, %v15775_v44  ;;  %v5046_v28 = vadd.f32 %v10618_v30, %v4949_v3 }
 0x568   :  { %v5165_v38 = vsel %vm822_vm2, %v15806_v22, 0.0  ;;  %v5206_v47 = vmul.f32 %v15809_v23, %v15809_v23  ;;  %v5168_v44 = vsel %vm822_vm2, %v15803_v34, 0.0  ;;  %v5222_v42 = vsel %vm822_vm2, %v5205_v8, 0.0 }
 0x569   :  { %v5166_v54 = vsel %vm822_vm2, %v15815_v0, 0.0  ;;  %v5204_v15 = vmul.f32 %v15815_v0, %v15815_v0  ;;  %v5049_v12 = vadd.f32 %v10621_v63, %v4952_v17  ;;  %v5219_v48 = vsel %vm822_vm2, %v5203_v13, 0.0 }
 0x56a   :  { %v5167_v6 = vadd.f32 %v5166_v54, %v5165_v38  ;;  %v5170_v53 = vsel %vm822_vm2, %v15809_v23, 0.0  ;;  %v5224_v61 = vsel %vm822_vm2, %v5206_v47, 0.0 }
 0x56b   :  { %v5220_v7 = vsel %vm822_vm2, %v5204_v15, 0.0  ;;  %v10622_v5 = vpop.f32.mrb[72].mxu1  ;;  %v10773_v29 = vpop.f32.mrb[84].mxu0 }
 0x56c   :  { %v5169_v19 = vadd.f32 %v5168_v44, %v5167_v6  ;;  %v5221_v31 = vadd.f32 %v5220_v7, %v5219_v48  ;;  %v15831_v21 = vadd.f32 %v10773_v29, %v5030_v57  ;;  %v10623_v40 = vpop.f32.mrb[73].mxu1  ;;  %v5118_v25 = vpop.f32.mrb[85].mxu0 }
 0x56d   :  { %v10624_v46 = vadd.f32 %v10623_v40, %v10622_v5  ;;  %v15837_v51 = vadd.f32 %v5118_v25, %v15781_v50  ;;  %v10625_v56 = vpop.f32.mrb[74].mxu1  ;;  %v10774_v35 = vpop.f32.mrb[86].mxu0  ;;  %v4965_v40 = vadd.f32 %v15794_v18, %v15760_v49  ;;  %v4968_v25 = vadd.f32 %v15797_v58, %v15760_v49 }
 0x56e   :  { %v5223_v57 = vadd.f32 %v5222_v42, %v5221_v31  ;;  %v5171_v1 = vadd.f32 %v5170_v53, %v5169_v19  ;;  %v10626_v20 = vpop.f32.mrb[75].mxu1  ;;  %v5121_v26 = vpop.f32.mrb[87].mxu0  ;;  %v15847_v50 = vadd.f32 %v10774_v35, %v15791_v39  ;;  %v5209_v60 = vmul.f32 %v15831_v21, %v15831_v21 }
 0x56f   :  { %v5172_v59 = vsel %vm822_vm2, %v15837_v51, 0.0  ;;  %v5207_v33 = vmul.f32 %v15837_v51, %v15837_v51  ;;  %v10627_v55 = vadd.f32 %v10626_v20, %v10625_v56  ;;  %v15852_v2 = vadd.f32 %v5121_v26, %v15783_v52 }
 0x570   :  { %v5173_v14 = vadd.f32 %v5172_v59, %v5171_v1  ;;  %v5225_v4 = vadd.f32 %v5224_v61, %v5223_v57  ;;  %v5054_v37 = vadd.f32 %v10624_v46, %v4957_v11  ;;  %v5176_v52 = vsel %vm822_vm2, %v15831_v21, 0.0 }
 0x571   :  { %v5226_v27 = vsel %vm822_vm2, %v5207_v33, 0.0  ;;  %v5174_v39 = vsel %vm822_vm2, %v15852_v2, 0.0  ;;  %v5208_v30 = vmul.f32 %v15852_v2, %v15852_v2  ;;  %v5057_v45 = vadd.f32 %v10627_v55, %v4960_v41 }
 0x572   :  { %v5227_v10 = vadd.f32 %v5226_v27, %v5225_v4  ;;  %v5175_v36 = vadd.f32 %v5174_v39, %v5173_v14  ;;  %v5210_v9 = vmul.f32 %v15847_v50, %v15847_v50  ;;  %v5230_v44 = vsel %vm822_vm2, %v5209_v60, 0.0 }
 0x573   :  { %v10628_v62 = vpop.f32.mrb[76].mxu1  ;;  %v10777_v3 = vpop.f32.mrb[88].mxu0  ;;  %v5228_v32 = vsel %vm822_vm2, %v5208_v30, 0.0  ;;  %v5178_v48 = vsel %vm822_vm2, %v15847_v50, 0.0 }
 0x574   :  { %v15866_v17 = vadd.f32 %v10777_v3, %v5046_v28  ;;  %v10629_v13 = vpop.f32.mrb[77].mxu1  ;;  %v5134_v63 = vpop.f32.mrb[89].mxu0  ;;  %v5177_v8 = vadd.f32 %v5176_v52, %v5175_v36  ;;  %v5229_v38 = vadd.f32 %v5228_v32, %v5227_v10  ;;  %v5232_v42 = vsel %vm822_vm2, %v5210_v9, 0.0 }
 0x575   :  { %v10630_v54 = vadd.f32 %v10629_v13, %v10628_v62  ;;  %v15869_v15 = vadd.f32 %v5134_v63, %v15799_v24  ;;  %v10631_v47 = vpop.f32.mrb[78].mxu1  ;;  %v10778_v6 = vpop.f32.mrb[90].mxu0 }
 0x576   :  { %v15874_v7 = vadd.f32 %v10778_v6, %v5049_v12  ;;  %v10632_v5 = vpop.f32.mrb[79].mxu1  ;;  %v5137_v28 = vpop.f32.mrb[91].mxu0  ;;  %v5231_v29 = vadd.f32 %v5230_v44, %v5229_v38  ;;  %v5179_v19 = vadd.f32 %v5178_v48, %v5177_v8  ;;  %v5213_v11 = vmul.f32 %v15866_v17, %v15866_v17 }
 0x577   :  { %v5180_v31 = vsel %vm822_vm2, %v15869_v15, 0.0  ;;  %v5211_v24 = vmul.f32 %v15869_v15, %v15869_v15  ;;  %v10633_v12 = vadd.f32 %v10632_v5, %v10631_v47  ;;  %v15887_v35 = vadd.f32 %v5137_v28, %v15801_v16 }
 0x578   :  { %v5181_v53 = vadd.f32 %v5180_v31, %v5179_v19  ;;  %v5233_v46 = vadd.f32 %v5232_v42, %v5231_v29  ;;  %v5062_v61 = vadd.f32 %v10630_v54, %v4965_v40  ;;  %v5184_v16 = vsel %vm822_vm2, %v15866_v17, 0.0 }
 0x579   :  { %v5234_v56 = vsel %vm822_vm2, %v5211_v24, 0.0  ;;  %v5065_v57 = vadd.f32 %v10633_v12, %v4968_v25  ;;  %v5182_v18 = vsel %vm822_vm2, %v15887_v35, 0.0  ;;  %v5212_v49 = vmul.f32 %v15887_v35, %v15887_v35 }
 0x57a   :  { %v5235_v1 = vadd.f32 %v5234_v56, %v5233_v46  ;;  %v5183_v20 = vadd.f32 %v5182_v18, %v5181_v53  ;;  %v5214_v33 = vmul.f32 %v15874_v7, %v15874_v7  ;;  %v5238_v4 = vsel %vm822_vm2, %v5213_v11, 0.0 }
 0x57b   :  { %v10781_v58 = vpop.f32.mrb[92].mxu0  ;;  %v5236_v55 = vsel %vm822_vm2, %v5212_v49, 0.0  ;;  %v5186_v60 = vsel %vm822_vm2, %v15874_v7, 0.0 }
 0x57c   :  { %v15895_v26 = vadd.f32 %v10781_v58, %v5062_v61  ;;  %v5150_v59 = vpop.f32.mrb[93].mxu0  ;;  %v5185_v27 = vadd.f32 %v5184_v16, %v5183_v20  ;;  %v5237_v10 = vadd.f32 %v5236_v55, %v5235_v1  ;;  %v5240_v9 = vsel %vm822_vm2, %v5214_v33, 0.0 }
 0x57d   :  { %v15902_v41 = vadd.f32 %v5150_v59, %v5054_v37  ;;  %v10782_v14 = vpop.f32.mrb[94].mxu0 }
 0x57e   :  { %v5153_v39 = vpop.f32.mrb[95].mxu0  ;;  %v15911_v62 = vadd.f32 %v10782_v14, %v5065_v57  ;;  %v5239_v37 = vadd.f32 %v5238_v4, %v5237_v10  ;;  %v5187_v52 = vadd.f32 %v5186_v60, %v5185_v27  ;;  %v5217_v54 = vmul.f32 %v15895_v26, %v15895_v26 }
 0x57f   :  { %v5188_v30 = vsel %vm822_vm2, %v15902_v41, 0.0  ;;  %v5215_v36 = vmul.f32 %v15902_v41, %v15902_v41  ;;  %v5154_v3 = vadd.f32 %v5153_v39, %v5057_v45  ;;  %v5192_v45 = vsel %vm822_vm2, %v15895_v26, 0.0 }
 0x580   :  { %v5189_v63 = vadd.f32 %v5188_v30, %v5187_v52  ;;  %v5241_v8 = vadd.f32 %v5240_v9, %v5239_v37  ;;  %v5218_v48 = vmul.f32 %v15911_v62, %v15911_v62  ;;  %v5246_v29 = vsel %vm822_vm2, %v5217_v54, 0.0 }
 0x581   :  { %v5242_v32 = vsel %vm822_vm2, %v5215_v36, 0.0  ;;  %v5190_v13 = vsel %vm822_vm2, %v5154_v3, 0.0  ;;  %v5216_v38 = vmul.f32 %v5154_v3, %v5154_v3  ;;  %v5194_v19 = vsel %vm822_vm2, %v15911_v62, 0.0 }
 0x582   :  { %v5243_v47 = vadd.f32 %v5242_v32, %v5241_v8  ;;  %v5191_v6 = vadd.f32 %v5190_v13, %v5189_v63  ;;  %v5248_v40 = vsel %vm822_vm2, %v5218_v48, 0.0 }
 0x583   :  { %v5244_v44 = vsel %vm822_vm2, %v5216_v38, 0.0 }
 0x584   :  { %v5193_v5 = vadd.f32 %v5192_v45, %v5191_v6  ;;  %v5245_v28 = vadd.f32 %v5244_v44, %v5243_v47 }
 0x586   :  { %v5195_v31 = vadd.f32 %v5194_v19, %v5193_v5  ;;  %v5247_v24 = vadd.f32 %v5246_v29, %v5245_v28  ;;  %v19122_v19 = vld [vmem:[#allocation53_spill] sm:$0xff] }
 0x588   :  { %v5196_v25 = vrot.slane %v5195_v31, 4  ;;  %v5249_v42 = vadd.f32 %v5248_v40, %v5247_v24  ;;  %v19123_v24 = vld [vmem:[#allocation66_spill] sm:$0xff] }
 0x58a   :  { %v5197_v12 = vadd.f32 %v5196_v25, %v5195_v31  ;;  %v5250_v53 = vrot.slane %v5249_v42, 4  ;;  %v19124_v25 = vld [vmem:[#allocation67_spill] sm:$0xff] }
 0x58c   :  { %v5198_v46 = vrot.slane %v5197_v12, 2  ;;  %v5251_v56 = vadd.f32 %v5250_v53, %v5249_v42 }
 0x58e   :  { %v5199_v11 = vadd.f32 %v5198_v46, %v5197_v12  ;;  %v5252_v61 = vrot.slane %v5251_v56, 2 }
 0x590   :  { %v5200_v57 = vrot.slane %v5199_v11, 1  ;;  %v5253_v1 = vadd.f32 %v5252_v61, %v5251_v56  ;;  %v19125_v56 = vld [vmem:[#allocation74_spill] sm:$0xff]  ;;  %v19126_v61 = vld [vmem:[#allocation79_spill] sm:$0xff] }
 0x592   :  { %v5201_v18 = vadd.f32 %v5200_v57, %v5199_v11  ;;  %v5254_v49 = vrot.slane %v5253_v1, 1 }
 0x594   :  { %v15927_v58 = vmul.f32 0.0078125, %v5201_v18  ;;  %v5255_v20 = vadd.f32 %v5254_v49, %v5253_v1 }
 0x596   :  { %v5256_v59 = vmul.f32 0.0078125, %v5255_v20  ;;  %v5257_v16 = vmul.f32 %v15927_v58, %v15927_v58  ;;  %v5274_v33 = vsub.f32 %v5154_v3, %v15927_v58  ;;  %v5261_v55 = vsub.f32 %v15806_v22, %v15927_v58 }
 0x597   :  { %v5262_v14 = vsub.f32 %v15815_v0, %v15927_v58  ;;  %v5263_v4 = vsub.f32 %v15803_v34, %v15927_v58  ;;  %v5264_v60 = vsub.f32 %v15809_v23, %v15927_v58  ;;  %v5265_v27 = vsub.f32 %v15837_v51, %v15927_v58 }
 0x598   :  { %v5258_v10 = vsub.f32 %v5256_v59, %v5257_v16  ;;  %v5266_v39 = vsub.f32 %v15852_v2, %v15927_v58  ;;  %v5267_v30 = vsub.f32 %v15831_v21, %v15927_v58  ;;  %v5268_v22 = vsub.f32 %v15847_v50, %v15927_v58 }
 0x599   :  { %v5269_v0 = vsub.f32 %v15869_v15, %v15927_v58  ;;  %v5270_v34 = vsub.f32 %v15887_v35, %v15927_v58  ;;  %v5271_v23 = vsub.f32 %v15866_v17, %v15927_v58  ;;  %v5272_v51 = vsub.f32 %v15874_v7, %v15927_v58  ;;  %v15965_v17 = vld [vmem:[%s18170_s9 + $0x1] ss:$0 sm:$0xff] }
 0x59a   :  { %v5259_v36 = vmax.f32 %v5258_v10, 0.0  ;;  %v5273_v2 = vsub.f32 %v15902_v41, %v15927_v58  ;;  %v5275_v21 = vsub.f32 %v15895_v26, %v15927_v58  ;;  %v5276_v50 = vsub.f32 %v15911_v62, %v15927_v58  ;;  %v15972_v26 = vld [vmem:[%s18170_s9 + $0x2] ss:$0 sm:$0xff]  ;;  %v19128_v10 = vld [vmem:[#allocation89_spill] sm:$0xff] }
 0x59c   :  { %v5277_v15 = vadd.f32 1e-05, %v5259_v36 }
 0x59e   :  { %11493 = vrsqrt.f32 %v5277_v15 }
 0x5a8   :  { %v11494_v3 = vpop.eup %11493 }
 0x5a9   :  { %v15967_v35 = vmul.f32 %v11494_v3, %v5274_v33  ;;  %v5279_v7 = vmul.f32 %v11494_v3, %v5261_v55  ;;  %v5280_v37 = vmul.f32 %v11494_v3, %v5262_v14  ;;  %v5281_v52 = vmul.f32 %v11494_v3, %v5263_v4  ;;  %v19127_v14 = vld [vmem:[#allocation82_spill] sm:$0xff] }
 0x5aa   :  { %v5282_v41 = vmul.f32 %v11494_v3, %v5264_v60  ;;  %v5283_v62 = vmul.f32 %v11494_v3, %v5265_v27  ;;  %v5284_v9 = vmul.f32 %v11494_v3, %v5266_v39  ;;  %v5285_v32 = vmul.f32 %v11494_v3, %v5267_v30 }
 0x5ab   :  { %v5299_v13 = vmul.f32 %v15965_v17, %v5279_v7  ;;  %v5300_v63 = vmul.f32 %v15965_v17, %v5280_v37  ;;  %v5301_v8 = vmul.f32 %v15965_v17, %v5281_v52  ;;  %v5286_v48 = vmul.f32 %v11494_v3, %v5268_v22  ;;  %v19130_v52 = vld [vmem:[#allocation65_spill] sm:$0xff] }
 0x5ac   :  { %v5302_v38 = vmul.f32 %v15965_v17, %v5282_v41  ;;  %v5303_v54 = vmul.f32 %v15965_v17, %v5283_v62  ;;  %v5304_v47 = vmul.f32 %v15965_v17, %v5284_v9  ;;  %v5305_v29 = vmul.f32 %v15965_v17, %v5285_v32  ;;  %v19131_v32 = vld [vmem:[#allocation85_spill] sm:$0xff] }
 0x5ad   :  { %v5320_v6 = vadd.f32 %v15972_v26, %v5299_v13  ;;  %v5321_v44 = vadd.f32 %v15972_v26, %v5300_v63  ;;  %v5322_v45 = vadd.f32 %v15972_v26, %v5301_v8  ;;  %v5306_v18 = vmul.f32 %v15965_v17, %v5286_v48 }
 0x5ae   :  { %v5323_v5 = vadd.f32 %v15972_v26, %v5302_v38  ;;  %v5324_v28 = vadd.f32 %v15972_v26, %v5303_v54  ;;  %v5325_v46 = vadd.f32 %v15972_v26, %v5304_v47  ;;  %v5326_v1 = vadd.f32 %v15972_v26, %v5305_v29  ;;  %v19132_v38 = vld [vmem:[#allocation83_spill] sm:$0xff] }
 0x5af   :  { %v5336_v31 = vadd.f32 %v5320_v6, %v19122_v19  ;;  %v5337_v40 = vadd.f32 %v5321_v44, %v19123_v24  ;;  %v5338_v42 = vadd.f32 %v5322_v45, %v19124_v25  ;;  %v5287_v58 = vmul.f32 %v11494_v3, %v5269_v0  ;;  %v19133_v45 = vld [vmem:[#allocation73_spill] sm:$0xff]  ;;  %v19134_v29 = vld [vmem:[#allocation75_spill] sm:$0xff] }
 0x5b0   :  { %v5339_v11 = vadd.f32 %v5323_v5, %v19125_v56  ;;  %v5340_v57 = vadd.f32 %v5324_v28, %v19126_v61  ;;  %v5288_v20 = vmul.f32 %v11494_v3, %v5270_v34  ;;  %v5289_v59 = vmul.f32 %v11494_v3, %v5271_v23  ;;  %v19137_v56 = vld [vmem:[#allocation100_spill] sm:$0xff] }
 0x5b1   :  { %v5352_v12 = vmax.f32 %v5336_v31, 0.0  ;;  %v5353_v53 = vmax.f32 %v5337_v40, 0.0  ;;  %v5354_v49 = vmax.f32 %v5338_v42, 0.0  ;;  %v5290_v16 = vmul.f32 %v11494_v3, %v5272_v51  ;;  %v19135_v40 = vld [vmem:[#allocation88_spill] sm:$0xff] }
 0x5b2   :  { %v5291_v33 = vmul.f32 %v11494_v3, %v5273_v2  ;;  %v5293_v55 = vmul.f32 %v11494_v3, %v5275_v21  ;;  %v5341_v4 = vadd.f32 %v5325_v46, %v19127_v14  ;;  %v5307_v60 = vmul.f32 %v15965_v17, %v5287_v58  ;;  %v19129_v2 = vld [vmem:[#allocation77_spill] sm:$0xff] }
 0x5b3   :  { %10799 = vmatprep.mubr.msk.f32.mxu1 %vm822_vm2, %v5352_v12  ;;  %v5355_v27 = vmax.f32 %v5339_v11, 0.0  ;;  %v5342_v39 = vadd.f32 %v5326_v1, %v19128_v10  ;;  %v5327_v30 = vadd.f32 %v15972_v26, %v5306_v18  ;;  %v5308_v22 = vmul.f32 %v15965_v17, %v5288_v20 }
 0x5b4   :  { %10800 = vmatmul.mubr.msk.f32.vlgmr.msra.gmra.mrb[80].mxu1 %vm822_vm2, %v5353_v53  ;;  %v5356_v0 = vmax.f32 %v5340_v57, 0.0  ;;  %v5328_v34 = vadd.f32 %v15972_v26, %v5307_v60  ;;  %v5309_v23 = vmul.f32 %v15965_v17, %v5289_v59  ;;  %v5294_v51 = vmul.f32 %v11494_v3, %v5276_v50  ;;  %v19136_v53 = vld [vmem:[#allocation90_spill] sm:$0xff] }
 0x5b5   :  { %10802 = vmatprep.mubr.msk.f32.mxu1 %vm822_vm2, %v5354_v49  ;;  %v5357_v36 = vmax.f32 %v5341_v4, 0.0  ;;  %v5343_v21 = vadd.f32 %v5327_v30, %v19129_v2  ;;  %v5329_v15 = vadd.f32 %v15972_v26, %v5308_v22  ;;  %v5310_v7 = vmul.f32 %v15965_v17, %v5290_v16 }
 0x5b6   :  { %v5358_v37 = vmax.f32 %v5342_v39, 0.0  ;;  %v5344_v41 = vadd.f32 %v5328_v34, %v19130_v52  ;;  %v5330_v62 = vadd.f32 %v15972_v26, %v5309_v23  ;;  %v5311_v9 = vmul.f32 %v15965_v17, %v5291_v33 }
 0x5b7   :  { %v5312_v50 = vmul.f32 %v15965_v17, %v15967_v35  ;;  %v5359_v3 = vmax.f32 %v5343_v21, 0.0  ;;  %v5345_v13 = vadd.f32 %v5329_v15, %v19131_v32  ;;  %v5331_v63 = vadd.f32 %v15972_v26, %v5310_v7 }
 0x5b8   :  { %10803 = vmatmul.mubr.msk.f32.gmra.mrb[82].mxu1 %vm822_vm2, %v5355_v27  ;;  %v5360_v8 = vmax.f32 %v5344_v41, 0.0  ;;  %v5346_v54 = vadd.f32 %v5330_v62, %v19132_v38  ;;  %v5332_v47 = vadd.f32 %v15972_v26, %v5311_v9  ;;  %v5313_v6 = vmul.f32 %v15965_v17, %v5293_v55 }
 0x5b9   :  { %10805 = vmatprep.mubr.msk.f32.mxu1 %vm822_vm2, %v5356_v0  ;;  %v5361_v44 = vmax.f32 %v5345_v13, 0.0  ;;  %v5347_v48 = vadd.f32 %v5331_v63, %v19133_v45  ;;  %v5333_v35 = vadd.f32 %v15972_v26, %v5312_v50  ;;  %v5314_v5 = vmul.f32 %v15965_v17, %v5294_v51 }
 0x5ba   :  { %v5362_v28 = vmax.f32 %v5346_v54, 0.0  ;;  %v5348_v19 = vadd.f32 %v5332_v47, %v19134_v29  ;;  %v5334_v31 = vadd.f32 %v15972_v26, %v5313_v6 }
 0x5bb   :  { %v5363_v24 = vmax.f32 %v5347_v48, 0.0  ;;  %v5349_v25 = vadd.f32 %v5333_v35, %v19135_v40  ;;  %v5335_v42 = vadd.f32 %v15972_v26, %v5314_v5  ;;  %v16042_v26 = vld [vmem:[%s18172_s11] ss:$0 sm:$0xff] }
 0x5bc   :  { %10806 = vmatmul.mubr.msk.f32.gmra.mrb[84].mxu1 %vm822_vm2, %v5357_v36  ;;  %v5364_v12 = vmax.f32 %v5348_v19, 0.0  ;;  %v5350_v46 = vadd.f32 %v5334_v31, %v19136_v53 }
 0x5bd   :  { %10808 = vmatprep.mubr.msk.f32.mxu1 %vm822_vm2, %v5358_v37  ;;  %v5365_v17 = vmax.f32 %v5349_v25, 0.0  ;;  %v5351_v11 = vadd.f32 %v5335_v42, %v19137_v56 }
 0x5be   :  { %v5366_v61 = vmax.f32 %v5350_v46, 0.0 }
 0x5bf   :  { %v5367_v57 = vmax.f32 %v5351_v11, 0.0 }
 0x5c0   :  { %10809 = vmatmul.mubr.msk.f32.gmra.mrb[86].mxu1 %vm822_vm2, %v5359_v3 }
 0x5c1   :  { %10811 = vmatprep.mubr.msk.f32.mxu1 %vm822_vm2, %v5360_v8 }
 0x5c4   :  { %10812 = vmatmul.mubr.msk.f32.gmra.mrb[88].mxu1 %vm822_vm2, %v5361_v44 }
 0x5c5   :  { %10814 = vmatprep.mubr.msk.f32.mxu1 %vm822_vm2, %v5362_v28 }
 0x5c8   :  { %10815 = vmatmul.mubr.msk.f32.gmra.mrb[90].mxu1 %vm822_vm2, %v5363_v24 }
 0x5c9   :  { %10817 = vmatprep.mubr.msk.f32.mxu1 %vm822_vm2, %v5364_v12 }
 0x5cc   :  { %10818 = vmatmul.mubr.msk.f32.gmra.mrb[92].mxu1 %vm822_vm2, %v5365_v17 }
 0x5cd   :  { %10820 = vmatprep.mubr.msk.f32.mxu1 %vm822_vm2, %v5366_v61 }
 0x5d0   :  { %10821 = vmatmul.mubr.msk.f32.gmra.mrb[94].mxu1 %vm822_vm2, %v5367_v57 }
 0x687   :  { %v10801_v1 = vpop.f32.mrb[80].mxu1 }
 0x688   :  { %v16045_v18 = vadd.f32 %v10801_v1, %v16042_v26  ;;  %v5495_v49 = vpop.f32.mrb[81].mxu1 }
 0x689   :  { %v16048_v58 = vadd.f32 %v16042_v26, %v5495_v49 }
 0x68a   :  { %v5576_v20 = vsel %vm5574_vm6, %v16045_v18, 0.0  ;;  %v5614_v59 = vmul.f32 %v16045_v18, %v16045_v18 }
 0x68b   :  { %v5575_v16 = vsel %vm5574_vm6, %v16048_v58, 0.0  ;;  %v5613_v33 = vmul.f32 %v16048_v58, %v16048_v58  ;;  %v10804_v55 = vpop.f32.mrb[82].mxu1 }
 0x68c   :  { %v5630_v14 = vsel %vm5574_vm6, %v5614_v59, 0.0  ;;  %v5577_v4 = vadd.f32 %v5576_v20, %v5575_v16  ;;  %v16060_v60 = vadd.f32 %v10804_v55, %v16042_v26  ;;  %v5505_v27 = vpop.f32.mrb[83].mxu1 }
 0x68d   :  { %v5629_v10 = vsel %vm5574_vm6, %v5613_v33, 0.0  ;;  %v16064_v39 = vadd.f32 %v16042_v26, %v5505_v27 }
 0x68e   :  { %v5631_v30 = vadd.f32 %v5630_v14, %v5629_v10  ;;  %v5616_v22 = vmul.f32 %v16060_v60, %v16060_v60  ;;  %v5580_v21 = vsel %vm5574_vm6, %v16060_v60, 0.0 }
 0x68f   :  { %v5578_v0 = vsel %vm5574_vm6, %v16064_v39, 0.0  ;;  %v5615_v34 = vmul.f32 %v16064_v39, %v16064_v39  ;;  %v10807_v23 = vpop.f32.mrb[84].mxu1 }
 0x690   :  { %v5579_v51 = vadd.f32 %v5578_v0, %v5577_v4  ;;  %v16073_v36 = vadd.f32 %v10807_v23, %v16042_v26  ;;  %v5515_v2 = vpop.f32.mrb[85].mxu1  ;;  %v5634_v41 = vsel %vm5574_vm6, %v5616_v22, 0.0 }
 0x691   :  { %v5632_v15 = vsel %vm5574_vm6, %v5615_v34, 0.0  ;;  %v16079_v7 = vadd.f32 %v16042_v26, %v5515_v2 }
 0x692   :  { %v5633_v37 = vadd.f32 %v5632_v15, %v5631_v30  ;;  %v5581_v52 = vadd.f32 %v5580_v21, %v5579_v51  ;;  %v5618_v62 = vmul.f32 %v16073_v36, %v16073_v36  ;;  %v5584_v38 = vsel %vm5574_vm6, %v16073_v36, 0.0 }
 0x693   :  { %v5582_v9 = vsel %vm5574_vm6, %v16079_v7, 0.0  ;;  %v5617_v50 = vmul.f32 %v16079_v7, %v16079_v7  ;;  %v10810_v3 = vpop.f32.mrb[86].mxu1 }
 0x694   :  { %v5583_v32 = vadd.f32 %v5582_v9, %v5581_v52  ;;  %v5635_v13 = vadd.f32 %v5634_v41, %v5633_v37  ;;  %v16089_v63 = vadd.f32 %v10810_v3, %v16042_v26  ;;  %v5525_v8 = vpop.f32.mrb[87].mxu1  ;;  %v5638_v45 = vsel %vm5574_vm6, %v5618_v62, 0.0 }
 0x695   :  { %v5636_v54 = vsel %vm5574_vm6, %v5617_v50, 0.0  ;;  %v16095_v47 = vadd.f32 %v16042_v26, %v5525_v8 }
 0x696   :  { %v5637_v6 = vadd.f32 %v5636_v54, %v5635_v13  ;;  %v5585_v44 = vadd.f32 %v5584_v38, %v5583_v32  ;;  %v5620_v48 = vmul.f32 %v16089_v63, %v16089_v63  ;;  %v5588_v40 = vsel %vm5574_vm6, %v16089_v63, 0.0 }
 0x697   :  { %v5586_v35 = vsel %vm5574_vm6, %v16095_v47, 0.0  ;;  %v5619_v5 = vmul.f32 %v16095_v47, %v16095_v47  ;;  %v10813_v28 = vpop.f32.mrb[88].mxu1 }
 0x698   :  { %v5587_v29 = vadd.f32 %v5586_v35, %v5585_v44  ;;  %v5639_v19 = vadd.f32 %v5638_v45, %v5637_v6  ;;  %v16105_v31 = vadd.f32 %v10813_v28, %v16042_v26  ;;  %v5535_v24 = vpop.f32.mrb[89].mxu1  ;;  %v5642_v46 = vsel %vm5574_vm6, %v5620_v48, 0.0 }
 0x699   :  { %v5640_v25 = vsel %vm5574_vm6, %v5619_v5, 0.0  ;;  %v16111_v42 = vadd.f32 %v16042_v26, %v5535_v24 }
 0x69a   :  { %v5641_v12 = vadd.f32 %v5640_v25, %v5639_v19  ;;  %v5589_v53 = vadd.f32 %v5588_v40, %v5587_v29  ;;  %v5622_v17 = vmul.f32 %v16105_v31, %v16105_v31  ;;  %v5592_v59 = vsel %vm5574_vm6, %v16105_v31, 0.0 }
 0x69b   :  { %v5590_v56 = vsel %vm5574_vm6, %v16111_v42, 0.0  ;;  %v5621_v11 = vmul.f32 %v16111_v42, %v16111_v42  ;;  %v10816_v61 = vpop.f32.mrb[90].mxu1 }
 0x69c   :  { %v5591_v57 = vadd.f32 %v5590_v56, %v5589_v53  ;;  %v5643_v1 = vadd.f32 %v5642_v46, %v5641_v12  ;;  %v16121_v49 = vadd.f32 %v10816_v61, %v16042_v26  ;;  %v5545_v20 = vpop.f32.mrb[91].mxu1  ;;  %v5646_v4 = vsel %vm5574_vm6, %v5622_v17, 0.0 }
 0x69d   :  { %v5644_v16 = vsel %vm5574_vm6, %v5621_v11, 0.0  ;;  %v16127_v33 = vadd.f32 %v16042_v26, %v5545_v20 }
 0x69e   :  { %v5645_v55 = vadd.f32 %v5644_v16, %v5643_v1  ;;  %v5593_v14 = vadd.f32 %v5592_v59, %v5591_v57  ;;  %v5624_v27 = vmul.f32 %v16121_v49, %v16121_v49  ;;  %v5596_v2 = vsel %vm5574_vm6, %v16121_v49, 0.0 }
 0x69f   :  { %v5594_v10 = vsel %vm5574_vm6, %v16127_v33, 0.0  ;;  %v5623_v30 = vmul.f32 %v16127_v33, %v16127_v33  ;;  %v10819_v22 = vpop.f32.mrb[92].mxu1 }
 0x6a0   :  { %v5595_v0 = vadd.f32 %v5594_v10, %v5593_v14  ;;  %v5647_v34 = vadd.f32 %v5646_v4, %v5645_v55  ;;  %v16137_v23 = vadd.f32 %v10819_v22, %v16042_v26  ;;  %v5555_v51 = vpop.f32.mrb[93].mxu1  ;;  %v5650_v41 = vsel %vm5574_vm6, %v5624_v27, 0.0 }
 0x6a1   :  { %v5648_v21 = vsel %vm5574_vm6, %v5623_v30, 0.0  ;;  %v16143_v15 = vadd.f32 %v16042_v26, %v5555_v51 }
 0x6a2   :  { %v5649_v37 = vadd.f32 %v5648_v21, %v5647_v34  ;;  %v5597_v52 = vadd.f32 %v5596_v2, %v5595_v0  ;;  %v5626_v62 = vmul.f32 %v16137_v23, %v16137_v23  ;;  %v5600_v54 = vsel %vm5574_vm6, %v16137_v23, 0.0 }
 0x6a3   :  { %v5598_v9 = vsel %vm5574_vm6, %v16143_v15, 0.0  ;;  %v5625_v50 = vmul.f32 %v16143_v15, %v16143_v15  ;;  %v10822_v3 = vpop.f32.mrb[94].mxu1 }
 0x6a4   :  { %v5599_v32 = vadd.f32 %v5598_v9, %v5597_v52  ;;  %v5651_v13 = vadd.f32 %v5650_v41, %v5649_v37  ;;  %v16153_v8 = vadd.f32 %v10822_v3, %v16042_v26  ;;  %v5565_v38 = vpop.f32.mrb[95].mxu1  ;;  %v5654_v35 = vsel %vm5574_vm6, %v5626_v62, 0.0 }
 0x6a5   :  { %v5652_v6 = vsel %vm5574_vm6, %v5625_v50, 0.0  ;;  %v5566_v44 = vadd.f32 %v16042_v26, %v5565_v38 }
 0x6a6   :  { %v5653_v45 = vadd.f32 %v5652_v6, %v5651_v13  ;;  %v5601_v48 = vadd.f32 %v5600_v54, %v5599_v32  ;;  %v5628_v5 = vmul.f32 %v16153_v8, %v16153_v8  ;;  %v5604_v40 = vsel %vm5574_vm6, %v16153_v8, 0.0 }
 0x6a7   :  { %v5602_v28 = vsel %vm5574_vm6, %v5566_v44, 0.0  ;;  %v5627_v29 = vmul.f32 %v5566_v44, %v5566_v44 }
 0x6a8   :  { %v5603_v19 = vadd.f32 %v5602_v28, %v5601_v48  ;;  %v5655_v24 = vadd.f32 %v5654_v35, %v5653_v45  ;;  %v5658_v26 = vsel %vm5574_vm6, %v5628_v5, 0.0 }
 0x6a9   :  { %v5656_v25 = vsel %vm5574_vm6, %v5627_v29, 0.0 }
 0x6aa   :  { %v5605_v12 = vadd.f32 %v5604_v40, %v5603_v19  ;;  %v5657_v53 = vadd.f32 %v5656_v25, %v5655_v24 }
 0x6ac   :  { %v5606_v46 = vrot.slane %v5605_v12, 4  ;;  %v5659_v17 = vadd.f32 %v5658_v26, %v5657_v53 }
 0x6ae   :  { %v5607_v56 = vadd.f32 %v5606_v46, %v5605_v12  ;;  %v5660_v11 = vrot.slane %v5659_v17, 4 }
 0x6b0   :  { %v5608_v61 = vrot.slane %v5607_v56, 2  ;;  %v5661_v57 = vadd.f32 %v5660_v11, %v5659_v17 }
 0x6b2   :  { %v5609_v1 = vadd.f32 %v5608_v61, %v5607_v56  ;;  %v5662_v20 = vrot.slane %v5661_v57, 2 }
 0x6b4   :  { %v5610_v59 = vrot.slane %v5609_v1, 1  ;;  %v5663_v16 = vadd.f32 %v5662_v20, %v5661_v57 }
 0x6b6   :  { %v5611_v55 = vadd.f32 %v5610_v59, %v5609_v1  ;;  %v5664_v14 = vrot.slane %v5663_v16, 1 }
 0x6b8   :  { %v16167_v4 = vmul.f32 0.0078125, %v5611_v55  ;;  %v5665_v27 = vadd.f32 %v5664_v14, %v5663_v16 }
 0x6ba   :  { %v5666_v10 = vmul.f32 0.0078125, %v5665_v27  ;;  %v5667_v30 = vmul.f32 %v16167_v4, %v16167_v4  ;;  %v5685_v22 = vsub.f32 %v5566_v44, %v16167_v4  ;;  %v5672_v0 = vsub.f32 %v16045_v18, %v16167_v4 }
 0x6bb   :  { %v5671_v34 = vsub.f32 %v16048_v58, %v16167_v4  ;;  %v5675_v51 = vsub.f32 %v16079_v7, %v16167_v4  ;;  %v5673_v2 = vsub.f32 %v16064_v39, %v16167_v4  ;;  %v5677_v21 = vsub.f32 %v16095_v47, %v16167_v4 }
 0x6bc   :  { %v5668_v37 = vsub.f32 %v5666_v10, %v5667_v30  ;;  %v5674_v52 = vsub.f32 %v16060_v60, %v16167_v4  ;;  %v5679_v41 = vsub.f32 %v16111_v42, %v16167_v4  ;;  %v5676_v18 = vsub.f32 %v16073_v36, %v16167_v4 }
 0x6bd   :  { %v5681_v58 = vsub.f32 %v16127_v33, %v16167_v4  ;;  %v5678_v7 = vsub.f32 %v16089_v63, %v16167_v4  ;;  %v5683_v39 = vsub.f32 %v16143_v15, %v16167_v4  ;;  %v5680_v47 = vsub.f32 %v16105_v31, %v16167_v4  ;;  %v16205_v63 = vld [vmem:[%s18172_s11 + $0x1] ss:$0 sm:$0xff] }
 0x6be   :  { %v5669_v62 = vmax.f32 %v5668_v37, 0.0  ;;  %v5682_v60 = vsub.f32 %v16121_v49, %v16167_v4  ;;  %v5684_v42 = vsub.f32 %v16137_v23, %v16167_v4  ;;  %v5686_v36 = vsub.f32 %v16153_v8, %v16167_v4  ;;  %v16210_v49 = vld [vmem:[%s18172_s11 + $0x2] ss:$0 sm:$0xff] }
 0x6c0   :  { %v5687_v33 = vadd.f32 1e-05, %v5669_v62 }
 0x6c2   :  { %11495 = vrsqrt.f32 %v5687_v33 }
 0x6cc   :  { %v11496_v9 = vpop.eup %11495 }
 0x6cd   :  { %v5703_v15 = vmul.f32 %v11496_v9, %v5685_v22  ;;  %v5690_v31 = vmul.f32 %v11496_v9, %v5672_v0  ;;  %v5689_v50 = vmul.f32 %v11496_v9, %v5671_v34  ;;  %v5693_v3 = vmul.f32 %v11496_v9, %v5675_v51 }
 0x6ce   :  { %v5691_v23 = vmul.f32 %v11496_v9, %v5673_v2  ;;  %v5695_v32 = vmul.f32 %v11496_v9, %v5677_v21  ;;  %v5692_v13 = vmul.f32 %v11496_v9, %v5674_v52  ;;  %v5697_v8 = vmul.f32 %v11496_v9, %v5679_v41 }
 0x6cf   :  { %v5710_v38 = vmul.f32 %v16205_v63, %v5690_v31  ;;  %v5709_v54 = vmul.f32 %v16205_v63, %v5689_v50  ;;  %v5713_v6 = vmul.f32 %v16205_v63, %v5693_v3  ;;  %v5694_v5 = vmul.f32 %v11496_v9, %v5676_v18 }
 0x6d0   :  { %v5711_v44 = vmul.f32 %v16205_v63, %v5691_v23  ;;  %v5715_v35 = vmul.f32 %v16205_v63, %v5695_v32  ;;  %v5712_v28 = vmul.f32 %v16205_v63, %v5692_v13  ;;  %v5717_v25 = vmul.f32 %v16205_v63, %v5697_v8 }
 0x6d1   :  { %v5731_v45 = vadd.f32 %v16210_v49, %v5710_v38  ;;  %v5730_v48 = vadd.f32 %v16210_v49, %v5709_v54  ;;  %v5734_v24 = vadd.f32 %v16210_v49, %v5713_v6  ;;  %v5699_v53 = vmul.f32 %v11496_v9, %v5681_v58 }
 0x6d2   :  { %v5732_v40 = vadd.f32 %v16210_v49, %v5711_v44  ;;  %v5736_v12 = vadd.f32 %v16210_v49, %v5715_v35  ;;  %v5696_v26 = vmul.f32 %v11496_v9, %v5678_v7  ;;  %v5714_v46 = vmul.f32 %v16205_v63, %v5694_v5  ;;  %v16325_v44 = vld [vmem:[%s19139_s28 + $0x10] sm:$0xff] }
 0x6d3   :  { %v16220_v29 = vmax.f32 %v5731_v45, 0.0  ;;  %v16222_v19 = vmax.f32 %v5730_v48, 0.0  ;;  %v5701_v17 = vmul.f32 %v11496_v9, %v5683_v39  ;;  %v5698_v56 = vmul.f32 %v11496_v9, %v5680_v47  ;;  %v16330_v45 = vld [vmem:[%s19139_s28 + $0x18] sm:$0xff] }
 0x6d4   :  { %v5700_v11 = vmul.f32 %v11496_v9, %v5682_v60  ;;  %v16231_v61 = vmax.f32 %v5734_v24, 0.0  ;;  %v5748_v57 = vmax.f32 %v5732_v40, 0.0  ;;  %v5733_v1 = vadd.f32 %v16210_v49, %v5712_v28 }
 0x6d5   :  { %5879 = vperm.xlu0 %11335, %v16220_v29   ;;  %5875 = vperm.xlu1 %11334, %v16222_v19   ;;  %v5702_v20 = vmul.f32 %v11496_v9, %v5684_v42  ;;  %v5738_v59 = vadd.f32 %v16210_v49, %v5717_v25  ;;  %v5735_v16 = vadd.f32 %v16210_v49, %v5714_v46  ;;  %v16237_v14 = vmax.f32 %v5736_v12, 0.0  ;;  %v16357_v46 = vld [vmem:[%s19139_s28 + $0x38] sm:$0xff] }
 0x6d6   :  { %v5704_v55 = vmul.f32 %v11496_v9, %v5686_v36  ;;  %v5749_v4 = vmax.f32 %v5733_v1, 0.0  ;;  %v5719_v27 = vmul.f32 %v16205_v63, %v5699_v53  ;;  %v5716_v10 = vmul.f32 %v16205_v63, %v5696_v26  ;;  %v16352_v26 = vld [vmem:[%s19139_s28 + $0x30] sm:$0xff]  ;;  %v16365_v1 = vld [vmem:[%s19139_s28 + $0x40] sm:$0xff] }
 0x6d7   :  { %v16242_v30 = vmax.f32 %v5738_v59, 0.0  ;;  %v5751_v22 = vmax.f32 %v5735_v16, 0.0  ;;  %v5721_v51 = vmul.f32 %v16205_v63, %v5701_v17  ;;  %v5718_v2 = vmul.f32 %v16205_v63, %v5698_v56 }
 0x6d8   :  { %v5740_v0 = vadd.f32 %v16210_v49, %v5719_v27  ;;  %v5737_v34 = vadd.f32 %v16210_v49, %v5716_v10  ;;  %v5723_v21 = vmul.f32 %v16205_v63, %v5703_v15  ;;  %v5720_v37 = vmul.f32 %v16205_v63, %v5700_v11  ;;  %v16379_v27 = vld [vmem:[%s19139_s28 + $0x50] sm:$0xff]  ;;  %v16384_v10 = vld [vmem:[%s19139_s28 + $0x58] sm:$0xff] }
 0x6d9   :  { %5891 = vperm.xlu0 %11335, %v16231_v61   ;;  %5883 = vperm.xlu1 %11334, %v5748_v57   ;;  %v5742_v18 = vadd.f32 %v16210_v49, %v5721_v51  ;;  %v5739_v58 = vadd.f32 %v16210_v49, %v5718_v2  ;;  %v5722_v60 = vmul.f32 %v16205_v63, %v5702_v20  ;;  %v19138_v3 = vmov 2   ;;  %v16370_v20 = vld [vmem:[%s19139_s28 + $0x48] sm:$0xff]  ;;  %v16393_v2 = vld [vmem:[%s19139_s28 + $0x60] sm:$0xff] }
 0x6da   :  { %v16251_v52 = vmax.f32 %v5740_v0, 0.0  ;;  %v5753_v41 = vmax.f32 %v5737_v34, 0.0  ;;  %v5744_v7 = vadd.f32 %v16210_v49, %v5723_v21  ;;  %v5741_v62 = vadd.f32 %v16210_v49, %v5720_v37  ;;  %v16398_v21 = vld [vmem:[%s19139_s28 + $0x68] sm:$0xff] }
 0x6db   :  { %v16257_v39 = vmax.f32 %v5742_v18, 0.0  ;;  %v5755_v47 = vmax.f32 %v5739_v58, 0.0  ;;  %v5743_v33 = vadd.f32 %v16210_v49, %v5722_v60  ;;  %v5724_v9 = vmul.f32 %v16205_v63, %v5704_v55  ;;  %v16312_v63 = vld [vmem:[%s19139_s28 + $0x8] sm:$0xff] }
 0x6dc   :  { %v16262_v42 = vmax.f32 %v5744_v7, 0.0  ;;  %v5757_v36 = vmax.f32 %v5741_v62, 0.0  ;;  %v16407_v7 = vld [vmem:[%s19139_s28 + $0x70] sm:$0xff] }
 0x6dd   :  { %5899 = vperm.xlu0 %11335, %v16237_v14   ;;  %5887 = vperm.xlu1 %11334, %v5749_v4   ;;  %v5759_v15 = vmax.f32 %v5743_v33, 0.0  ;;  %v5745_v31 = vadd.f32 %v16210_v49, %v5724_v9  ;;  %v16317_v49 = vld [vmem:[%s19139_s28] sm:$0xff] }
 0x6df   :  { %v16270_v50 = vmax.f32 %v5745_v31, 0.0 }
 0x6e1   :  { %5907 = vperm.xlu0 %11335, %v16242_v30   ;;  %5895 = vperm.xlu1 %11334, %v5751_v22  }
 0x6e5   :  { %5915 = vperm.xlu0 %11335, %v16251_v52   ;;  %5903 = vperm.xlu1 %11334, %v5753_v41  }
 0x6e9   :  { %5923 = vperm.xlu0 %11335, %v16257_v39   ;;  %5911 = vperm.xlu1 %11334, %v5755_v47  }
 0x6ed   :  { %5931 = vperm.xlu0 %11335, %v16262_v42   ;;  %5919 = vperm.xlu1 %11334, %v5757_v36  }
 0x6f1   :  { %11336 = vset.pattern.permute.xlu0 %v19121_v43  ;;  %5927 = vperm.xlu1 %11334, %v5759_v15  }
 0x6f2   :  { %5780 = vperm.xlu0 %11336, %v16222_v19  }
 0x6f5   :  { %5935 = vperm.xlu1 %11334, %v16270_v50  }
 0x6f6   :  { %11339 = vset.pattern.permute.xlu0 %v19138_v3 }
 0x6f7   :  { %5959 = vperm.xlu0 %11339, %v16220_v29  }
 0x6f9   :  { %11337 = vset.pattern.permute.xlu1 %v19121_v43 }
 0x6fa   :  { %5785 = vperm.xlu1 %11337, %v16220_v29   ;;  %v16338_v29 = vld [vmem:[%s19139_s28 + $0x20] sm:$0xff] }
 0x6fb   :  { %5963 = vperm.xlu0 %11339, %v5748_v57  }
 0x6fe   :  { %11338 = vset.pattern.permute.xlu1 %v19138_v3 }
 0x6ff   :  { %11342 = vset.pattern.permute.xlu0 %v19121_v43  ;;  %5955 = vperm.xlu1 %11338, %v16222_v19   ;;  %v16343_v19 = vld [vmem:[%s19139_s28 + $0x28] sm:$0xff] }
 0x700   :  { %5800 = vperm.xlu0 %11342, %v16231_v61  }
 0x703   :  { %11340 = vset.pattern.permute.xlu1 %v19121_v43 }
 0x704   :  { %11345 = vset.pattern.permute.xlu0 %v19138_v3  ;;  %5790 = vperm.xlu1 %11340, %v5748_v57  }
 0x705   :  { %5975 = vperm.xlu0 %11345, %v5751_v22  }
 0x708   :  { %5795 = vperm.xlu1 %11340, %v5749_v4  }
 0x709   :  { %11347 = vset.pattern.permute.xlu0 %v19121_v43 }
 0x70a   :  { %5815 = vperm.xlu0 %11347, %v5753_v41  }
 0x70c   :  { %11341 = vset.pattern.permute.xlu1 %v19138_v3 }
 0x70d   :  { %5967 = vperm.xlu1 %11341, %v5749_v4  }
 0x70e   :  { %5825 = vperm.xlu0 %11347, %v5755_v47  }
 0x711   :  { %11343 = vset.pattern.permute.xlu1 %v19121_v43 }
 0x712   :  { %11351 = vset.pattern.permute.xlu0 %v19138_v3  ;;  %5805 = vperm.xlu1 %11343, %v5751_v22  }
 0x713   :  { %5991 = vperm.xlu0 %11351, %v5755_v47   ;;  %v16413_v47 = vld [vmem:[%s19139_s28 + $0x78] sm:$0xff] }
 0x716   :  { %11344 = vset.pattern.permute.xlu1 %v19138_v3 }
 0x717   :  { %11353 = vset.pattern.permute.xlu0 %v19121_v43  ;;  %5971 = vperm.xlu1 %11344, %v16231_v61  }
 0x718   :  { %5835 = vperm.xlu0 %11353, %v5757_v36  }
 0x71b   :  { %11346 = vset.pattern.permute.xlu1 %v19121_v43 }
 0x71c   :  { %5845 = vperm.xlu0 %11353, %v5759_v15   ;;  %5810 = vperm.xlu1 %11346, %v16237_v14  }
 0x720   :  { %11357 = vset.pattern.permute.xlu0 %v19138_v3  ;;  %11348 = vset.pattern.permute.xlu1 %v19138_v3 }
 0x721   :  { %6007 = vperm.xlu0 %11357, %v5759_v15   ;;  %5979 = vperm.xlu1 %11348, %v16237_v14  }
 0x725   :  { %5983 = vperm.xlu1 %11348, %v5753_v41   ;;  %11379 = vset.pattern.permute.xlu0 %v19121_v43 }
 0x729   :  { %11349 = vset.pattern.permute.xlu1 %v19121_v43 }
 0x72a   :  { %5820 = vperm.xlu1 %11349, %v16242_v30  }
 0x72e   :  { %11350 = vset.pattern.permute.xlu1 %v19138_v3 }
 0x72f   :  { %5987 = vperm.xlu1 %11350, %v16242_v30  }
 0x733   :  { %11352 = vset.pattern.permute.xlu1 %v19121_v43 }
 0x734   :  { %5830 = vperm.xlu1 %11352, %v16251_v52  }
 0x738   :  { %11354 = vset.pattern.permute.xlu1 %v19138_v3 }
 0x739   :  { %5995 = vperm.xlu1 %11354, %v16251_v52  }
 0x73d   :  { %5999 = vperm.xlu1 %11354, %v5757_v36  }
 0x741   :  { %11355 = vset.pattern.permute.xlu1 %v19121_v43 }
 0x742   :  { %5840 = vperm.xlu1 %11355, %v16257_v39  }
 0x746   :  { %11356 = vset.pattern.permute.xlu1 %v19138_v3 }
 0x747   :  { %6003 = vperm.xlu1 %11356, %v16257_v39  }
 0x74b   :  { %11363 = vset.pattern.permute.xlu1 %v19121_v43 }
 0x754   :  { %v5880_v23 = vpop.permute.xlu0 %5879  ;;  %v5876_v32 = vpop.permute.xlu1 %5875 }
 0x755   :  { %v5939_v13 = vmul.f32 %v5880_v23, %v16312_v63  ;;  %v5938_v8 = vmul.f32 %v5876_v32, %v16317_v49  ;;  %v11616_v32 = vmov 0.0  }
 0x756   :  { %6179 = vmatprep.mubr.f32.mxu1 %v11616_v32 }
 0x757   :  { %v11358_v38 = vpack.i.bf16 %v5939_v13, %v5938_v8 }
 0x758   :  { %v5892_v54 = vpop.permute.xlu0 %5891  ;;  %v5884_v6 = vpop.permute.xlu1 %5883 }
 0x759   :  { %11359 = vrot.lane.b32.xlu1 %v11358_v38, %s11615_s30  ;;  %v5940_v5 = vmul.f32 %v5884_v6, %v16325_v44  ;;  %v5942_v12 = vmul.f32 %v5892_v54, %v16338_v29 }
 0x75c   :  { %v5900_v48 = vpop.permute.xlu0 %5899  ;;  %v5888_v35 = vpop.permute.xlu1 %5887 }
 0x75d   :  { %v5941_v28 = vmul.f32 %v5888_v35, %v16330_v45  ;;  %5850 = vperm.xlu1 %11363, %v16262_v42   ;;  %v5944_v61 = vmul.f32 %v5900_v48, %v16352_v26 }
 0x75f   :  { %v11364_v24 = vpack.i.bf16 %v5941_v28, %v5940_v5 }
 0x760   :  { %v5908_v40 = vpop.permute.xlu0 %5907  ;;  %v5896_v25 = vpop.permute.xlu1 %5895 }
 0x761   :  { %v5943_v53 = vmul.f32 %v5896_v25, %v16343_v19  ;;  %11365 = vrot.lane.b32.xlu0 %v11364_v24, %s11615_s30  ;;  %11380 = vset.pattern.permute.xlu1 %v19138_v3  ;;  %v5946_v14 = vmul.f32 %v5908_v40, %v16365_v1 }
 0x763   :  { %v11369_v17 = vpack.i.bf16 %v5943_v53, %v5942_v12 }
 0x764   :  { %v5916_v56 = vpop.permute.xlu0 %5915  ;;  %v5904_v11 = vpop.permute.xlu1 %5903 }
 0x765   :  { %v5945_v57 = vmul.f32 %v5904_v11, %v16357_v46  ;;  %11370 = vrot.lane.b32.xlu1 %v11369_v17, %s11615_s30  ;;  %v5948_v34 = vmul.f32 %v5916_v56, %v16379_v27 }
 0x767   :  { %v11374_v59 = vpack.i.bf16 %v5945_v57, %v5944_v61 }
 0x768   :  { %v5924_v16 = vpop.permute.xlu0 %5923  ;;  %v5912_v55 = vpop.permute.xlu1 %5911 }
 0x769   :  { %v5947_v4 = vmul.f32 %v5912_v55, %v16370_v20  ;;  %6011 = vperm.xlu1 %11380, %v16262_v42   ;;  %11375 = vrot.lane.b32.xlu0 %v11374_v59, %s11615_s30  ;;  %v5950_v41 = vmul.f32 %v5924_v16, %v16393_v2 }
 0x76b   :  { %v11381_v30 = vpack.i.bf16 %v5947_v4, %v5946_v14 }
 0x76c   :  { %v5932_v22 = vpop.permute.xlu0 %5931  ;;  %v5920_v0 = vpop.permute.xlu1 %5919 }
 0x76d   :  { %v5949_v51 = vmul.f32 %v5920_v0, %v16384_v10  ;;  %5855 = vperm.xlu0 %11379, %v16270_v50   ;;  %11382 = vrot.lane.b32.xlu1 %v11381_v30, %s11615_s30  ;;  %v5952_v42 = vmul.f32 %v5932_v22, %v16407_v7 }
 0x76f   :  { %v11386_v37 = vpack.i.bf16 %v5949_v51, %v5948_v34 }
 0x770   :  { %v5928_v52 = vpop.permute.xlu1 %5927 }
 0x771   :  { %v5951_v18 = vmul.f32 %v5928_v52, %v16398_v21  ;;  %v5781_v58 = vpop.permute.xlu0 %5780  ;;  %6015 = vperm.xlu1 %11380, %v16270_v50   ;;  %11387 = vrot.lane.b32.xlu0 %v11386_v37, %s11615_s30 }
 0x772   :  { %v5858_v39 = vmul.f32 %v5781_v58, %v16317_v49  ;;  %11401 = vset.pattern.permute.xlu0 %v19138_v3 }
 0x773   :  { %v11391_v62 = vpack.i.bf16 %v5951_v18, %v5950_v41 }
 0x774   :  { %v5936_v60 = vpop.permute.xlu1 %5935 }
 0x775   :  { %v5953_v36 = vmul.f32 %v5936_v60, %v16413_v47  ;;  %11392 = vrot.lane.b32.xlu1 %v11391_v62, %s11615_s30 }
 0x776   :  { %v5960_v31 = vpop.permute.xlu0 %5959 }
 0x777   :  { %v11396_v33 = vpack.i.bf16 %v5953_v36, %v5952_v42  ;;  %v6019_v23 = vmul.f32 %v5960_v31, %v16312_v63 }
 0x779   :  { %11397 = vrot.lane.b32.xlu0 %v11396_v33, %s11615_s30  ;;  %v5786_v9 = vpop.permute.xlu1 %5785 }
 0x77a   :  { %v5859_v15 = vmul.f32 %v5786_v9, %v16312_v63  ;;  %v5964_v6 = vpop.permute.xlu0 %5963 }
 0x77b   :  { %v6020_v5 = vmul.f32 %v5964_v6, %v16325_v44 }
 0x77e   :  { %v5956_v50 = vpop.permute.xlu1 %5955 }
 0x77f   :  { %v6018_v3 = vmul.f32 %v5956_v50, %v16317_v49  ;;  %v5801_v63 = vpop.permute.xlu0 %5800 }
 0x781   :  { %v10839_v13 = vpack.c.bf16 %v6019_v23, %v6018_v3 }
 0x783   :  { %10840 = vmatprep.subr.bf16.mxu1 %v10839_v13  ;;  %v5791_v8 = vpop.permute.xlu1 %5790 }
 0x784   :  { %v5860_v38 = vmul.f32 %v5791_v8, %v16325_v44  ;;  %v5976_v25 = vpop.permute.xlu0 %5975 }
 0x785   :  { %v6023_v53 = vmul.f32 %v5976_v25, %v16343_v19 }
 0x787   :  { %v5796_v54 = vpop.permute.xlu1 %5795 }
 0x788   :  { %v5861_v48 = vmul.f32 %v5796_v54, %v16330_v45 }
 0x789   :  { %v5816_v44 = vpop.permute.xlu0 %5815 }
 0x78a   :  { %v5865_v23 = vmul.f32 %v5816_v44, %v16357_v46 }
 0x78c   :  { %v5968_v35 = vpop.permute.xlu1 %5967 }
 0x78d   :  { %v6021_v28 = vmul.f32 %v5968_v35, %v16330_v45  ;;  %v5826_v45 = vpop.permute.xlu0 %5825 }
 0x78f   :  { %v10843_v24 = vpack.c.bf16 %v6021_v28, %v6020_v5 }
 0x791   :  { %v5806_v49 = vpop.permute.xlu1 %5805 }
 0x792   :  { %v5863_v40 = vmul.f32 %v5806_v49, %v16343_v19  ;;  %v5992_v30 = vpop.permute.xlu0 %5991 }
 0x796   :  { %v5972_v12 = vpop.permute.xlu1 %5971 }
 0x797   :  { %v6022_v17 = vmul.f32 %v5972_v12, %v16338_v29  ;;  %v5836_v0 = vpop.permute.xlu0 %5835 }
 0x799   :  { %v10847_v56 = vpack.c.bf16 %v6023_v53, %v6022_v17 }
 0x79b   :  { %v5811_v11 = vpop.permute.xlu1 %5810  ;;  %v16435_v19 = vpop.permute.xlu0 %5845 }
 0x7a0   :  { %v5980_v61 = vpop.permute.xlu1 %5979  ;;  %v6008_v58 = vpop.permute.xlu0 %6007 }
 0x7a4   :  { %v5984_v57 = vpop.permute.xlu1 %5983 }
 0x7a9   :  { %v5821_v59 = vpop.permute.xlu1 %5820 }
 0x7ae   :  { %v5988_v16 = vpop.permute.xlu1 %5987 }
 0x7af   :  { %v6026_v17 = vmul.f32 %v5988_v16, %v16365_v1 }
 0x7b3   :  { %v16431_v55 = vpop.permute.xlu1 %5830 }
 0x7b8   :  { %v5996_v14 = vpop.permute.xlu1 %5995 }
 0x7b9   :  { %v6028_v16 = vmul.f32 %v5996_v14, %v16379_v27  ;;  %v5871_v14 = vmul.f32 %v16435_v19, %v16398_v21 }
 0x7bc   :  { %v6000_v4 = vpop.permute.xlu1 %5999 }
 0x7c1   :  { %v16433_v22 = vpop.permute.xlu1 %5840 }
 0x7c6   :  { %v6004_v34 = vpop.permute.xlu1 %6003 }
 0x7cb   :  { %v11360_v51 = vpop.permute.xlu1 %11359 }
 0x7cc   :  { %v11362_v37 = vunpack.i.h.bf16 %v11360_v51  ;;  %v11361_v52 = vunpack.i.l.bf16 %v11360_v51 }
 0x7ce   :  { %v6099_v41 = vsel %vm822_vm2, %v5859_v15, %v11362_v37  ;;  %v6098_v18 = vsel %vm822_vm2, %v5858_v39, %v11361_v52  ;;  %v5864_v15 = vmul.f32 %v5811_v11, %v16352_v26  ;;  %v5869_v37 = vmul.f32 %v5836_v0, %v16384_v10 }
 0x7cf   :  { %v10841_v62 = vpack.c.bf16 %v6099_v41, %v6098_v18  ;;  %v6030_v52 = vmul.f32 %v6004_v34, %v16393_v2  ;;  %v5870_v0 = vmul.f32 %v16433_v22, %v16393_v2 }
 0x7d1   :  { %10842 = vmatpush1.bf16.msra.mxu1 %v10841_v62  ;;  %v6031_v62 = vmul.f32 %v6008_v58, %v16398_v21 }
 0x7d2   :  { %10844 = vmatprep.subr.bf16.mxu1 %v10843_v24  ;;  %v6024_v24 = vmul.f32 %v5980_v61, %v16352_v26  ;;  %v6029_v61 = vmul.f32 %v6000_v4, %v16384_v10 }
 0x7d3   :  { %v11366_v60 = vpop.permute.xlu0 %11365  ;;  %v10863_v34 = vpack.c.bf16 %v6031_v62, %v6030_v52  ;;  %v6411_v52 = vld [vmem:[%s18174_s13 + $0x300] sm:$0xff] }
 0x7d4   :  { %v11368_v42 = vunpack.i.h.bf16 %v11366_v60  ;;  %v11367_v36 = vunpack.i.l.bf16 %v11366_v60 }
 0x7d6   :  { %v6100_v33 = vsel %vm822_vm2, %v5860_v38, %v11367_v36  ;;  %v6101_v9 = vsel %vm822_vm2, %v5861_v48, %v11368_v42  ;;  %v5862_v38 = vmul.f32 %v5801_v63, %v16338_v29  ;;  %v6025_v48 = vmul.f32 %v5984_v57, %v16357_v46 }
 0x7d7   :  { %v10845_v31 = vpack.c.bf16 %v6101_v9, %v6100_v33  ;;  %v5867_v46 = vmul.f32 %v5826_v45, %v16370_v20 }
 0x7d8   :  { %v10851_v53 = vpack.c.bf16 %v6025_v48, %v6024_v24  ;;  %v6315_v48 = vld [vmem:[%s18174_s13] sm:$0xff] }
 0x7d9   :  { %10846 = vmatpush1.bf16.msra.mxu1 %v10845_v31 }
 0x7da   :  { %10848 = vmatprep.subr.bf16.mxu1 %v10847_v56  ;;  %v6027_v56 = vmul.f32 %v5992_v30, %v16370_v20 }
 0x7db   :  { %v11376_v50 = vpop.permute.xlu0 %11375 }
 0x7dc   :  { %v11378_v39 = vunpack.i.h.bf16 %v11376_v50  ;;  %v11377_v3 = vunpack.i.l.bf16 %v11376_v50  ;;  %v5851_v13 = vpop.permute.xlu1 %5850  ;;  %v10855_v29 = vpack.c.bf16 %v6027_v56, %v6026_v17  ;;  %v6363_v17 = vld [vmem:[%s18174_s13 + $0x180] sm:$0xff] }
 0x7dd   :  { %v5872_v21 = vmul.f32 %v5851_v13, %v16407_v7  ;;  %v6332_v13 = vld [vmem:[%s18174_s13 + $0x88] sm:$0xff]  ;;  %v6379_v56 = vld [vmem:[%s18174_s13 + $0x200] sm:$0xff] }
 0x7de   :  { %v6105_v8 = vsel %vm822_vm2, %v5865_v23, %v11378_v39  ;;  %v6104_v54 = vsel %vm822_vm2, %v5864_v15, %v11377_v3 }
 0x7df   :  { %v10853_v6 = vpack.c.bf16 %v6105_v8, %v6104_v54  ;;  %v6348_v54 = vld [vmem:[%s18174_s13 + $0x108] sm:$0xff] }
 0x7e0   :  { %v11371_v35 = vpop.permute.xlu1 %11370 }
 0x7e1   :  { %v11373_v5 = vunpack.i.h.bf16 %v11371_v35  ;;  %v11372_v28 = vunpack.i.l.bf16 %v11371_v35 }
 0x7e3   :  { %v6103_v49 = vsel %vm822_vm2, %v5863_v40, %v11373_v5  ;;  %v6102_v25 = vsel %vm822_vm2, %v5862_v38, %v11372_v28  ;;  %v5866_v40 = vmul.f32 %v5821_v59, %v16365_v1  ;;  %v5868_v1 = vmul.f32 %v16431_v55, %v16379_v27  ;;  %v6364_v38 = vld [vmem:[%s18174_s13 + $0x188] sm:$0xff]  ;;  %v6331_v5 = vld [vmem:[%s18174_s13 + $0x80] sm:$0xff] }
 0x7e4   :  { %v10849_v12 = vpack.c.bf16 %v6103_v49, %v6102_v25  ;;  %v10859_v59 = vpack.c.bf16 %v6029_v61, %v6028_v16  ;;  %v10096_v28 = vcombine.high %v6348_v54, %v6364_v38  ;;  %v10061_v24 = vcombine.low %v6315_v48, %v6331_v5  ;;  %v6380_v25 = vld [vmem:[%s18174_s13 + $0x208] sm:$0xff]  ;;  %v6317_v61 = vld [vmem:[%s18174_s13 + $0x10] sm:$0xff] }
 0x7e5   :  { %v10062_v49 = vcombine.high %v6315_v48, %v6331_v5  ;;  %v6428_v16 = vld [vmem:[%s18174_s13 + $0x388] sm:$0xff] }
 0x7e6   :  { %10850 = vmatpush1.bf16.msra.mxu1 %v10849_v12  ;;  %v6396_v12 = vld [vmem:[%s18174_s13 + $0x288] sm:$0xff] }
 0x7e7   :  { %10852 = vmatprep.subr.bf16.mxu1 %v10851_v53  ;;  %v6347_v53 = vld [vmem:[%s18174_s13 + $0x100] sm:$0xff]  ;;  %v6320_v48 = vld [vmem:[%s18174_s13 + $0x28] sm:$0xff] }
 0x7e8   :  { %v6012_v11 = vpop.permute.xlu1 %6011  ;;  %v6336_v5 = vld [vmem:[%s18174_s13 + $0xa8] sm:$0xff] }
 0x7e9   :  { %v6032_v19 = vmul.f32 %v6012_v11, %v16407_v7  ;;  %v6114_v7 = vld [vmem:[%s19140_s29] sm:$0x3] }
 0x7ea   :  { %10854 = vmatpush1.bf16.msra.mxu1 %v10853_v6  ;;  %v6395_v11 = vld [vmem:[%s18174_s13 + $0x280] sm:$0xff] }
 0x7eb   :  { %10856 = vmatprep.subr.bf16.mxu1 %v10855_v29  ;;  %v10095_v29 = vcombine.low %v6348_v54, %v6364_v38  ;;  %v6335_v38 = vld [vmem:[%s18174_s13 + $0xa0] sm:$0xff] }
 0x7ec   :  { %v5856_v63 = vpop.permute.xlu0 %5855  ;;  %v11383_v26 = vpop.permute.xlu1 %11382 }
 0x7ed   :  { %v11385_v57 = vunpack.i.h.bf16 %v11383_v26  ;;  %v11384_v44 = vunpack.i.l.bf16 %v11383_v26  ;;  %v5873_v50 = vmul.f32 %v5856_v63, %v16413_v47  ;;  %v10128_v63 = vcombine.high %v6380_v25, %v6396_v12 }
 0x7ee   :  { %v10093_v26 = vcombine.low %v6347_v53, %v6363_v17 }
 0x7ef   :  { %v6107_v51 = vsel %vm822_vm2, %v5867_v46, %v11385_v57  ;;  %v6106_v30 = vsel %vm822_vm2, %v5866_v40, %v11384_v44  ;;  %v10094_v46 = vcombine.high %v6347_v53, %v6363_v17  ;;  %v6412_v40 = vld [vmem:[%s18174_s13 + $0x308] sm:$0xff]  ;;  %v6333_v57 = vld [vmem:[%s18174_s13 + $0x90] sm:$0xff]  ;;  %v10126_v44 = vcombine.high %v6379_v56, %v6395_v11  ;;  %v6367_v53 = vld [vmem:[%s18174_s13 + $0x1a0] sm:$0xff] }
 0x7f0   :  { %v10857_v41 = vpack.c.bf16 %v6107_v51, %v6106_v30  ;;  %v11388_v20 = vpop.permute.xlu0 %11387  ;;  %v6016_v45 = vpop.permute.xlu1 %6015  ;;  %v10065_v51 = vcombine.low %v6317_v61, %v6333_v57  ;;  %v6318_v30 = vld [vmem:[%s18174_s13 + $0x18] sm:$0xff]  ;;  %v6352_v17 = vld [vmem:[%s18174_s13 + $0x128] sm:$0xff] }
 0x7f1   :  { %v11390_v4 = vunpack.i.h.bf16 %v11388_v20  ;;  %v11389_v18 = vunpack.i.l.bf16 %v11388_v20  ;;  %v6033_v27 = vmul.f32 %v6016_v45, %v16413_v47  ;;  %v6316_v47 = vld [vmem:[%s18174_s13 + $0x8] sm:$0xff]  ;;  %v10127_v45 = vcombine.low %v6380_v25, %v6396_v12  ;;  %v6351_v12 = vld [vmem:[%s18174_s13 + $0x120] sm:$0xff] }
 0x7f2   :  { %10858 = vmatpush1.bf16.msra.mxu1 %v10857_v41  ;;  %v10063_v6 = vcombine.low %v6316_v47, %v6332_v13  ;;  %v10064_v35 = vcombine.high %v6316_v47, %v6332_v13  ;;  %v6427_v41 = vld [vmem:[%s18174_s13 + $0x380] sm:$0xff]  ;;  %v10072_v25 = vcombine.high %v6320_v48, %v6336_v5 }
 0x7f3   :  { %v6109_v60 = vsel %vm822_vm2, %v5869_v37, %v11390_v4  ;;  %v6108_v10 = vsel %vm822_vm2, %v5868_v1, %v11389_v18  ;;  %10860 = vmatprep.subr.bf16.mxu1 %v10859_v59  ;;  %v10867_v15 = vpack.c.bf16 %v6033_v27, %v6032_v19  ;;  %v6334_v37 = vld [vmem:[%s18174_s13 + $0x98] sm:$0xff]  ;;  %v10125_v1 = vcombine.low %v6379_v56, %v6395_v11  ;;  %v6365_v27 = vld [vmem:[%s18174_s13 + $0x190] sm:$0xff]  ;;  %v6368_v56 = vld [vmem:[%s18174_s13 + $0x1a8] sm:$0xff] }
 0x7f4   :  { %v10861_v42 = vpack.c.bf16 %v6109_v60, %v6108_v10  ;;  %v11398_v55 = vpop.permute.xlu0 %11397  ;;  %v11393_v36 = vpop.permute.xlu1 %11392  ;;  %7130 = vmatprep.subr.bf16.mxu0 %v10064_v35  ;;  %v10067_v20 = vcombine.low %v6318_v30, %v6334_v37  ;;  %v10160_v59 = vcombine.high %v6412_v40, %v6428_v16  ;;  %v10158_v4 = vcombine.high %v6411_v52, %v6427_v41  ;;  %v6382_v19 = vld [vmem:[%s18174_s13 + $0x218] sm:$0xff]  ;;  %v6319_v35 = vld [vmem:[%s18174_s13 + $0x20] sm:$0xff] }
 0x7f5   :  { %v11400_v33 = vunpack.i.h.bf16 %v11398_v55  ;;  %v11399_v58 = vunpack.i.l.bf16 %v11398_v55  ;;  %v11395_v9 = vunpack.i.h.bf16 %v11393_v36  ;;  %v11394_v31 = vunpack.i.l.bf16 %v11393_v36  ;;  %7131 = vmatpush1.bf16.msra.mxu0 %v10063_v6  ;;  %v6350_v55 = vld [vmem:[%s18174_s13 + $0x118] sm:$0xff] }
 0x7f6   :  { %10862 = vmatpush1.bf16.msra.mxu1 %v10861_v42  ;;  %7132 = vmatprep.subr.bf16.mxu0 %v10096_v28  ;;  %v10159_v18 = vcombine.low %v6412_v40, %v6428_v16  ;;  %v10157_v62 = vcombine.low %v6411_v52, %v6427_v41  ;;  %v10066_v60 = vcombine.high %v6317_v61, %v6333_v57  ;;  %v6349_v42 = vld [vmem:[%s18174_s13 + $0x110] sm:$0xff]  ;;  %v6366_v36 = vld [vmem:[%s18174_s13 + $0x198] sm:$0xff]  ;;  %v6399_v40 = vld [vmem:[%s18174_s13 + $0x2a0] sm:$0xff] }
 0x7f7   :  { %v6111_v23 = vsel %vm822_vm2, %v5871_v14, %v11395_v9  ;;  %v6110_v2 = vsel %vm822_vm2, %v5870_v0, %v11394_v31  ;;  %10864 = vmatprep.subr.bf16.mxu1 %v10863_v34  ;;  %v6113_v39 = vsel %vm822_vm2, %v5873_v50, %v11400_v33  ;;  %v6112_v3 = vsel %vm822_vm2, %v5872_v21, %v11399_v58  ;;  %v6381_v9 = vld [vmem:[%s18174_s13 + $0x210] sm:$0xff]  ;;  %v6398_v50 = vld [vmem:[%s18174_s13 + $0x298] sm:$0xff]  ;;  %v6384_v61 = vld [vmem:[%s18174_s13 + $0x228] sm:$0xff] }
 0x7f8   :  { %v10865_v22 = vpack.c.bf16 %v6111_v23, %v6110_v2  ;;  %v10869_v8 = vpack.c.bf16 %v6113_v39, %v6112_v3  ;;  %v10068_v14 = vcombine.high %v6318_v30, %v6334_v37  ;;  %v10098_v33 = vcombine.high %v6349_v42, %v6365_v27  ;;  %v6397_v21 = vld [vmem:[%s18174_s13 + $0x290] sm:$0xff]  ;;  %v6400_v57 = vld [vmem:[%s18174_s13 + $0x2a8] sm:$0xff]  ;;  %v6415_v37 = vld [vmem:[%s18174_s13 + $0x320] sm:$0xff] }
 0x7f9   :  { %7133 = vmatpush1.bf16.msra.mxu0 %v10095_v29  ;;  %v10100_v58 = vcombine.high %v6350_v55, %v6366_v36  ;;  %v10097_v23 = vcombine.low %v6349_v42, %v6365_v27  ;;  %v10099_v2 = vcombine.low %v6350_v55, %v6366_v36  ;;  %v6413_v39 = vld [vmem:[%s18174_s13 + $0x310] sm:$0xff]  ;;  %v10129_v47 = vcombine.low %v6381_v9, %v6397_v21  ;;  %v6431_v52 = vld [vmem:[%s18174_s13 + $0x3a0] sm:$0xff]  ;;  %v6416_v41 = vld [vmem:[%s18174_s13 + $0x328] sm:$0xff] }
 0x7fa   :  { %10866 = vmatpush1.bf16.msra.mxu1 %v10865_v22  ;;  %7134 = vmatprep.subr.bf16.mxu0 %v10128_v63  ;;  %v10130_v22 = vcombine.high %v6381_v9, %v6397_v21  ;;  %v6429_v3 = vld [vmem:[%s18174_s13 + $0x390] sm:$0xff]  ;;  %v10131_v13 = vcombine.low %v6382_v19, %v6398_v50  ;;  %v10069_v11 = vcombine.low %v6319_v35, %v6335_v38  ;;  %v6370_v9 = vld [vmem:[%s18174_s13 + $0x1b8] sm:$0xff] }
 0x7fb   :  { %10868 = vmatprep.subr.bf16.mxu1 %v10867_v15  ;;  %v10132_v15 = vcombine.high %v6382_v19, %v6398_v50  ;;  %v10162_v54 = vcombine.high %v6413_v39, %v6429_v3  ;;  %v10161_v28 = vcombine.low %v6413_v39, %v6429_v3  ;;  %v10071_v29 = vcombine.low %v6320_v48, %v6336_v5  ;;  %v6353_v36 = vld [vmem:[%s18174_s13 + $0x130] sm:$0xff]  ;;  %v6402_v39 = vld [vmem:[%s18174_s13 + $0x2b8] sm:$0xff] }
 0x7fc   :  { %v10104_v63 = vcombine.high %v6352_v17, %v6368_v56  ;;  %v10103_v16 = vcombine.low %v6352_v17, %v6368_v56  ;;  %v10136_v30 = vcombine.high %v6384_v61, %v6400_v57 }
 0x7fd   :  { %7135 = vmatpush1.bf16.msra.mxu0 %v10127_v45 }
 0x7fe   :  { %10870 = vmatpush1.bf16.msra.mxu1 %v10869_v8  ;;  %7136 = vmatprep.subr.bf16.mxu0 %v10160_v59  ;;  %v6414_v8 = vld [vmem:[%s18174_s13 + $0x318] sm:$0xff]  ;;  %v10166_v59 = vcombine.high %v6415_v37, %v6431_v52 }
 0x7ff   :  { %7089 = vmatprep.subr.bf16.mxu1 %v10062_v49  ;;  %v10070_v49 = vcombine.high %v6319_v35, %v6335_v38  ;;  %v6434_v35 = vld [vmem:[%s18174_s13 + $0x3b8] sm:$0xff] }
 0x801   :  { %6180 = vmatmul.mubr.f32.vlgmr.msra.gmra.mrb[96].mxu1 %v6114_v7  ;;  %7137 = vmatpush1.bf16.msra.mxu0 %v10159_v18  ;;  %v6430_v7 = vld [vmem:[%s18174_s13 + $0x398] sm:$0xff]  ;;  %v6321_v18 = vld [vmem:[%s18174_s13 + $0x30] sm:$0xff] }
 0x802   :  { %7121 = vmatprep.mubr.bf16.mxu1 %v19121_v43  ;;  %7090 = vmatpush1.bf16.msra.mxu1 %v10061_v24  ;;  %v10164_v6 = vcombine.high %v6414_v8, %v6430_v7  ;;  %v10163_v24 = vcombine.low %v6414_v8, %v6430_v7 }
 0x803   :  { %7091 = vmatprep.subr.bf16.mxu1 %v10094_v46  ;;  %7212 = vmatprep.subr.bf16.mxu0 %v10068_v14  ;;  %v10102_v46 = vcombine.high %v6351_v12, %v6367_v53  ;;  %v6322_v14 = vld [vmem:[%s18174_s13 + $0x38] sm:$0xff] }
 0x806   :  { %7092 = vmatpush1.bf16.msra.mxu1 %v10093_v26  ;;  %v6383_v26 = vld [vmem:[%s18174_s13 + $0x220] sm:$0xff] }
 0x807   :  { %7093 = vmatprep.subr.bf16.mxu1 %v10126_v44  ;;  %v10101_v44 = vcombine.low %v6351_v12, %v6367_v53  ;;  %v10133_v45 = vcombine.low %v6383_v26, %v6399_v40  ;;  %v6340_v12 = vld [vmem:[%s18174_s13 + $0xc8] sm:$0xff] }
 0x80a   :  { %7094 = vmatpush1.bf16.msra.mxu1 %v10125_v1  ;;  %v10135_v1 = vcombine.low %v6384_v61, %v6400_v57 }
 0x80b   :  { %7095 = vmatprep.subr.bf16.mxu1 %v10158_v4 }
 0x80e   :  { %7096 = vmatpush1.bf16.msra.mxu1 %v10157_v62  ;;  %v6337_v62 = vld [vmem:[%s18174_s13 + $0xb0] sm:$0xff] }
 0x80f   :  { %7171 = vmatprep.subr.bf16.mxu1 %v10066_v60  ;;  %v6338_v60 = vld [vmem:[%s18174_s13 + $0xb8] sm:$0xff]  ;;  %v10074_v27 = vcombine.high %v6321_v18, %v6337_v62  ;;  %v10073_v21 = vcombine.low %v6321_v18, %v6337_v62  ;;  %v6436_v18 = vld [vmem:[%s18174_s13 + $0x3c8] sm:$0xff] }
 0x810   :  { %v10076_v55 = vcombine.high %v6322_v14, %v6338_v60  ;;  %v10075_v19 = vcombine.low %v6322_v14, %v6338_v60 }
 0x8d4   :  { %v6181_v10 = vpop.f32.mrb[96].mxu1 }
 0x8d5   :  { %v16541_v0 = vpack.c.bf16 %v6181_v10, %v6181_v10  ;;  %v16543_v34 = vpop.f32.mrb[97].mxu1  ;;  %v10165_v10 = vcombine.low %v6415_v37, %v6431_v52  ;;  %v6404_v37 = vld [vmem:[%s18174_s13 + $0x2c8] sm:$0xff] }
 0x8d7   :  { %6444 = vrot.lane.b32.xlu1 %v16541_v0, %s11615_s30 }
 0x949   :  { %v16562_v31 = vpop.permute.xlu1 %6444 }
 0x94a   :  { %10189 = vmatmul.mubr.msk.bf16.vlgmr.msra.gmra.mrb[100].mxu1 %vm822_vm2, %v16562_v31  ;;  %10190 = vmatmul.mubr.msk.bf16.vlgmr.msra.gmra.mrb[96].mxu0 %vm822_vm2, %v16562_v31 }
 0x94b   :  { %7172 = vmatpush1.bf16.msra.mxu1 %v10065_v51  ;;  %7213 = vmatpush1.bf16.msra.mxu0 %v10067_v20  ;;  %v10134_v51 = vcombine.high %v6383_v26, %v6399_v40  ;;  %v6432_v20 = vld [vmem:[%s18174_s13 + $0x3a8] sm:$0xff] }
 0x94c   :  { %7173 = vmatprep.subr.bf16.mxu1 %v10098_v33  ;;  %7214 = vmatprep.subr.bf16.mxu0 %v10100_v58  ;;  %v10168_v4 = vcombine.high %v6416_v41, %v6432_v20  ;;  %v10167_v42 = vcombine.low %v6416_v41, %v6432_v20  ;;  %v6369_v33 = vld [vmem:[%s18174_s13 + $0x1b0] sm:$0xff]  ;;  %v6354_v58 = vld [vmem:[%s18174_s13 + $0x138] sm:$0xff]  ;;  %v6372_v26 = vld [vmem:[%s18174_s13 + $0x1c8] sm:$0xff] }
 0x94d   :  { %7203 = vmatprep.mubr.bf16.mxu1 %v19121_v43  ;;  %7244 = vmatprep.mubr.bf16.mxu0 %v19121_v43  ;;  %v10106_v50 = vcombine.high %v6353_v36, %v6369_v33  ;;  %v10105_v3 = vcombine.low %v6353_v36, %v6369_v33  ;;  %v10107_v8 = vcombine.low %v6354_v58, %v6370_v9  ;;  %v6342_v36 = vld [vmem:[%s18174_s13 + $0xd8] sm:$0xff] }
 0x94f   :  { %7174 = vmatpush1.bf16.msra.mxu1 %v10097_v23  ;;  %7215 = vmatpush1.bf16.msra.mxu0 %v10099_v2  ;;  %v10108_v23 = vcombine.high %v6354_v58, %v6370_v9  ;;  %v6385_v2 = vld [vmem:[%s18174_s13 + $0x230] sm:$0xff] }
 0x950   :  { %7175 = vmatprep.subr.bf16.mxu1 %v10130_v22  ;;  %7216 = vmatprep.subr.bf16.mxu0 %v10132_v15  ;;  %v6401_v22 = vld [vmem:[%s18174_s13 + $0x2b0] sm:$0xff]  ;;  %v6386_v15 = vld [vmem:[%s18174_s13 + $0x238] sm:$0xff] }
 0x951   :  { %v10138_v7 = vcombine.high %v6385_v2, %v6401_v22  ;;  %v10137_v38 = vcombine.low %v6385_v2, %v6401_v22  ;;  %v10139_v48 = vcombine.low %v6386_v15, %v6402_v39  ;;  %v6374_v2 = vld [vmem:[%s18174_s13 + $0x1d8] sm:$0xff] }
 0x953   :  { %7176 = vmatpush1.bf16.msra.mxu1 %v10129_v47  ;;  %7217 = vmatpush1.bf16.msra.mxu0 %v10131_v13  ;;  %v10140_v47 = vcombine.high %v6386_v15, %v6402_v39  ;;  %v6417_v13 = vld [vmem:[%s18174_s13 + $0x330] sm:$0xff] }
 0x954   :  { %7177 = vmatprep.subr.bf16.mxu1 %v10162_v54  ;;  %7218 = vmatprep.subr.bf16.mxu0 %v10164_v6  ;;  %v6433_v54 = vld [vmem:[%s18174_s13 + $0x3b0] sm:$0xff]  ;;  %v6418_v6 = vld [vmem:[%s18174_s13 + $0x338] sm:$0xff] }
 0x955   :  { %v10170_v5 = vcombine.high %v6417_v13, %v6433_v54  ;;  %v10169_v53 = vcombine.low %v6417_v13, %v6433_v54  ;;  %v10171_v17 = vcombine.low %v6418_v6, %v6434_v35  ;;  %v6406_v13 = vld [vmem:[%s18174_s13 + $0x2d8] sm:$0xff] }
 0x957   :  { %7178 = vmatpush1.bf16.msra.mxu1 %v10161_v28  ;;  %7219 = vmatpush1.bf16.msra.mxu0 %v10163_v24  ;;  %v10172_v28 = vcombine.high %v6418_v6, %v6434_v35  ;;  %v6323_v24 = vld [vmem:[%s18174_s13 + $0x40] sm:$0xff] }
 0x958   :  { %7253 = vmatprep.subr.bf16.mxu1 %v10070_v49  ;;  %7294 = vmatprep.subr.bf16.mxu0 %v10072_v25  ;;  %v6339_v49 = vld [vmem:[%s18174_s13 + $0xc0] sm:$0xff]  ;;  %v6324_v25 = vld [vmem:[%s18174_s13 + $0x48] sm:$0xff] }
 0x959   :  { %v10078_v56 = vcombine.high %v6323_v24, %v6339_v49  ;;  %v10077_v40 = vcombine.low %v6323_v24, %v6339_v49  ;;  %v10079_v61 = vcombine.low %v6324_v25, %v6340_v12  ;;  %v6438_v24 = vld [vmem:[%s18174_s13 + $0x3d8] sm:$0xff] }
 0x95a   :  { %10191 = vmatmul.mubr.msk.bf16.vlgmr.msra.gmra.mrb[104].mxu1 %vm822_vm2, %v16562_v31  ;;  %10192 = vmatmul.mubr.msk.bf16.vlgmr.msra.gmra.mrb[100].mxu0 %vm822_vm2, %v16562_v31 }
 0x95b   :  { %7254 = vmatpush1.bf16.msra.mxu1 %v10069_v11  ;;  %7295 = vmatpush1.bf16.msra.mxu0 %v10071_v29  ;;  %v10080_v11 = vcombine.high %v6324_v25, %v6340_v12  ;;  %v6355_v29 = vld [vmem:[%s18174_s13 + $0x140] sm:$0xff] }
 0x95c   :  { %7255 = vmatprep.subr.bf16.mxu1 %v10102_v46  ;;  %7296 = vmatprep.subr.bf16.mxu0 %v10104_v63  ;;  %v6371_v46 = vld [vmem:[%s18174_s13 + $0x1c0] sm:$0xff]  ;;  %v6356_v63 = vld [vmem:[%s18174_s13 + $0x148] sm:$0xff] }
 0x95d   :  { %7285 = vmatprep.mubr.bf16.mxu1 %v19121_v43  ;;  %7326 = vmatprep.mubr.bf16.mxu0 %v19121_v43  ;;  %v10110_v57 = vcombine.high %v6355_v29, %v6371_v46  ;;  %v10109_v52 = vcombine.low %v6355_v29, %v6371_v46  ;;  %v10111_v41 = vcombine.low %v6356_v63, %v6372_v26  ;;  %v6344_v29 = vld [vmem:[%s18174_s13 + $0xe8] sm:$0xff] }
 0x95f   :  { %7256 = vmatpush1.bf16.msra.mxu1 %v10101_v44  ;;  %7297 = vmatpush1.bf16.msra.mxu0 %v10103_v16  ;;  %v10112_v44 = vcombine.high %v6356_v63, %v6372_v26  ;;  %v6387_v16 = vld [vmem:[%s18174_s13 + $0x240] sm:$0xff] }
 0x960   :  { %7257 = vmatprep.subr.bf16.mxu1 %v10134_v51  ;;  %7298 = vmatprep.subr.bf16.mxu0 %v10136_v30  ;;  %v6403_v51 = vld [vmem:[%s18174_s13 + $0x2c0] sm:$0xff]  ;;  %v6388_v30 = vld [vmem:[%s18174_s13 + $0x248] sm:$0xff] }
 0x961   :  { %v10142_v20 = vcombine.high %v6387_v16, %v6403_v51  ;;  %v10141_v62 = vcombine.low %v6387_v16, %v6403_v51  ;;  %v10143_v14 = vcombine.low %v6388_v30, %v6404_v37  ;;  %v6376_v16 = vld [vmem:[%s18174_s13 + $0x1e8] sm:$0xff] }
 0x963   :  { %7258 = vmatpush1.bf16.msra.mxu1 %v10133_v45  ;;  %7299 = vmatpush1.bf16.msra.mxu0 %v10135_v1  ;;  %v10144_v45 = vcombine.high %v6388_v30, %v6404_v37  ;;  %v6419_v1 = vld [vmem:[%s18174_s13 + $0x340] sm:$0xff] }
 0x964   :  { %7259 = vmatprep.subr.bf16.mxu1 %v10166_v59  ;;  %7300 = vmatprep.subr.bf16.mxu0 %v10168_v4  ;;  %v6435_v59 = vld [vmem:[%s18174_s13 + $0x3c0] sm:$0xff]  ;;  %v6420_v4 = vld [vmem:[%s18174_s13 + $0x348] sm:$0xff] }
 0x965   :  { %v10174_v60 = vcombine.high %v6419_v1, %v6435_v59  ;;  %v10173_v33 = vcombine.low %v6419_v1, %v6435_v59  ;;  %v10175_v58 = vcombine.low %v6420_v4, %v6436_v18  ;;  %v6408_v1 = vld [vmem:[%s18174_s13 + $0x2e8] sm:$0xff] }
 0x967   :  { %7260 = vmatpush1.bf16.msra.mxu1 %v10165_v10  ;;  %7301 = vmatpush1.bf16.msra.mxu0 %v10167_v42  ;;  %v10176_v10 = vcombine.high %v6420_v4, %v6436_v18  ;;  %v6325_v42 = vld [vmem:[%s18174_s13 + $0x50] sm:$0xff] }
 0x968   :  { %7335 = vmatprep.subr.bf16.mxu1 %v10074_v27  ;;  %7376 = vmatprep.subr.bf16.mxu0 %v10076_v55  ;;  %v6341_v27 = vld [vmem:[%s18174_s13 + $0xd0] sm:$0xff]  ;;  %v6326_v55 = vld [vmem:[%s18174_s13 + $0x58] sm:$0xff] }
 0x969   :  { %v10082_v9 = vcombine.high %v6325_v42, %v6341_v27  ;;  %v10081_v22 = vcombine.low %v6325_v42, %v6341_v27  ;;  %v10083_v15 = vcombine.low %v6326_v55, %v6342_v36  ;;  %v6440_v42 = vld [vmem:[%s18174_s13 + $0x3e8] sm:$0xff] }
 0x96a   :  { %10193 = vmatmul.mubr.msk.bf16.vlgmr.msra.gmra.mrb[108].mxu1 %vm822_vm2, %v16562_v31  ;;  %10194 = vmatmul.mubr.msk.bf16.vlgmr.msra.gmra.mrb[104].mxu0 %vm822_vm2, %v16562_v31 }
 0x96b   :  { %7336 = vmatpush1.bf16.msra.mxu1 %v10073_v21  ;;  %7377 = vmatpush1.bf16.msra.mxu0 %v10075_v19  ;;  %v10084_v21 = vcombine.high %v6326_v55, %v6342_v36  ;;  %v6357_v19 = vld [vmem:[%s18174_s13 + $0x150] sm:$0xff] }
 0x96c   :  { %7337 = vmatprep.subr.bf16.mxu1 %v10106_v50  ;;  %7378 = vmatprep.subr.bf16.mxu0 %v10108_v23  ;;  %v6373_v50 = vld [vmem:[%s18174_s13 + $0x1d0] sm:$0xff]  ;;  %v6358_v23 = vld [vmem:[%s18174_s13 + $0x158] sm:$0xff] }
 0x96d   :  { %7367 = vmatprep.mubr.bf16.mxu1 %v19121_v43  ;;  %7408 = vmatprep.mubr.bf16.mxu0 %v19121_v43  ;;  %v10114_v39 = vcombine.high %v6357_v19, %v6373_v50  ;;  %v10113_v54 = vcombine.low %v6357_v19, %v6373_v50  ;;  %v10115_v6 = vcombine.low %v6358_v23, %v6374_v2  ;;  %v6346_v19 = vld [vmem:[%s18174_s13 + $0xf8] sm:$0xff] }
 0x96f   :  { %7338 = vmatpush1.bf16.msra.mxu1 %v10105_v3  ;;  %7379 = vmatpush1.bf16.msra.mxu0 %v10107_v8  ;;  %v10116_v3 = vcombine.high %v6358_v23, %v6374_v2  ;;  %v6389_v8 = vld [vmem:[%s18174_s13 + $0x250] sm:$0xff] }
 0x970   :  { %7339 = vmatprep.subr.bf16.mxu1 %v10138_v7  ;;  %7380 = vmatprep.subr.bf16.mxu0 %v10140_v47  ;;  %v6405_v7 = vld [vmem:[%s18174_s13 + $0x2d0] sm:$0xff]  ;;  %v6390_v47 = vld [vmem:[%s18174_s13 + $0x258] sm:$0xff] }
 0x971   :  { %v10146_v35 = vcombine.high %v6389_v8, %v6405_v7  ;;  %v10145_v49 = vcombine.low %v6389_v8, %v6405_v7  ;;  %v10147_v25 = vcombine.low %v6390_v47, %v6406_v13  ;;  %v6378_v8 = vld [vmem:[%s18174_s13 + $0x1f8] sm:$0xff] }
 0x973   :  { %7340 = vmatpush1.bf16.msra.mxu1 %v10137_v38  ;;  %7381 = vmatpush1.bf16.msra.mxu0 %v10139_v48  ;;  %v10148_v38 = vcombine.high %v6390_v47, %v6406_v13  ;;  %v6421_v48 = vld [vmem:[%s18174_s13 + $0x350] sm:$0xff] }
 0x974   :  { %7341 = vmatprep.subr.bf16.mxu1 %v10170_v5  ;;  %7382 = vmatprep.subr.bf16.mxu0 %v10172_v28  ;;  %v6437_v5 = vld [vmem:[%s18174_s13 + $0x3d0] sm:$0xff]  ;;  %v6422_v28 = vld [vmem:[%s18174_s13 + $0x358] sm:$0xff] }
 0x975   :  { %v10178_v12 = vcombine.high %v6421_v48, %v6437_v5  ;;  %v10177_v46 = vcombine.low %v6421_v48, %v6437_v5  ;;  %v10179_v63 = vcombine.low %v6422_v28, %v6438_v24  ;;  %v6410_v48 = vld [vmem:[%s18174_s13 + $0x2f8] sm:$0xff] }
 0x977   :  { %7342 = vmatpush1.bf16.msra.mxu1 %v10169_v53  ;;  %7383 = vmatpush1.bf16.msra.mxu0 %v10171_v17  ;;  %v10180_v53 = vcombine.high %v6422_v28, %v6438_v24  ;;  %v6327_v17 = vld [vmem:[%s18174_s13 + $0x60] sm:$0xff] }
 0x978   :  { %7417 = vmatprep.subr.bf16.mxu1 %v10078_v56  ;;  %7458 = vmatprep.subr.bf16.mxu0 %v10080_v11  ;;  %v6343_v56 = vld [vmem:[%s18174_s13 + $0xe0] sm:$0xff]  ;;  %v6328_v11 = vld [vmem:[%s18174_s13 + $0x68] sm:$0xff] }
 0x979   :  { %v10086_v26 = vcombine.high %v6327_v17, %v6343_v56  ;;  %v10085_v51 = vcombine.low %v6327_v17, %v6343_v56  ;;  %v10087_v30 = vcombine.low %v6328_v11, %v6344_v29  ;;  %v6442_v17 = vld [vmem:[%s18174_s13 + $0x3f8] sm:$0xff] }
 0x97a   :  { %10195 = vmatmul.mubr.msk.bf16.vlgmr.msra.gmra.mrb[112].mxu1 %vm822_vm2, %v16562_v31  ;;  %10196 = vmatmul.mubr.msk.bf16.vlgmr.msra.gmra.mrb[108].mxu0 %vm822_vm2, %v16562_v31 }
 0x97b   :  { %7418 = vmatpush1.bf16.msra.mxu1 %v10077_v40  ;;  %7459 = vmatpush1.bf16.msra.mxu0 %v10079_v61  ;;  %v10088_v40 = vcombine.high %v6328_v11, %v6344_v29  ;;  %v6359_v61 = vld [vmem:[%s18174_s13 + $0x160] sm:$0xff] }
 0x97c   :  { %7419 = vmatprep.subr.bf16.mxu1 %v10110_v57  ;;  %7460 = vmatprep.subr.bf16.mxu0 %v10112_v44  ;;  %v6375_v57 = vld [vmem:[%s18174_s13 + $0x1e0] sm:$0xff]  ;;  %v6360_v44 = vld [vmem:[%s18174_s13 + $0x168] sm:$0xff] }
 0x97d   :  { %7449 = vmatprep.mubr.bf16.mxu1 %v19121_v43  ;;  %7490 = vmatprep.mubr.bf16.mxu0 %v19121_v43  ;;  %v10118_v37 = vcombine.high %v6359_v61, %v6375_v57  ;;  %v10117_v59 = vcombine.low %v6359_v61, %v6375_v57  ;;  %v10119_v4 = vcombine.low %v6360_v44, %v6376_v16  ;;  %v6204_v61 = vld [vmem:[%s18173_s12 + $0x88] sm:$0xff] }
 0x97f   :  { %7420 = vmatpush1.bf16.msra.mxu1 %v10109_v52  ;;  %7461 = vmatpush1.bf16.msra.mxu0 %v10111_v41  ;;  %v10120_v52 = vcombine.high %v6360_v44, %v6376_v16  ;;  %v6391_v41 = vld [vmem:[%s18174_s13 + $0x260] sm:$0xff] }
 0x980   :  { %7421 = vmatprep.subr.bf16.mxu1 %v10142_v20  ;;  %7462 = vmatprep.subr.bf16.mxu0 %v10144_v45  ;;  %v6407_v20 = vld [vmem:[%s18174_s13 + $0x2e0] sm:$0xff]  ;;  %v6392_v45 = vld [vmem:[%s18174_s13 + $0x268] sm:$0xff] }
 0x981   :  { %v10150_v18 = vcombine.high %v6391_v41, %v6407_v20  ;;  %v10149_v27 = vcombine.low %v6391_v41, %v6407_v20  ;;  %v10151_v55 = vcombine.low %v6392_v45, %v6408_v1  ;;  %v6236_v41 = vld [vmem:[%s18173_s12 + $0x188] sm:$0xff] }
 0x983   :  { %7422 = vmatpush1.bf16.msra.mxu1 %v10141_v62  ;;  %7463 = vmatpush1.bf16.msra.mxu0 %v10143_v14  ;;  %v10152_v62 = vcombine.high %v6392_v45, %v6408_v1  ;;  %v6423_v14 = vld [vmem:[%s18174_s13 + $0x360] sm:$0xff] }
 0x984   :  { %7423 = vmatprep.subr.bf16.mxu1 %v10174_v60  ;;  %7464 = vmatprep.subr.bf16.mxu0 %v10176_v10  ;;  %v6439_v60 = vld [vmem:[%s18174_s13 + $0x3e0] sm:$0xff]  ;;  %v6424_v10 = vld [vmem:[%s18174_s13 + $0x368] sm:$0xff] }
 0x985   :  { %v10182_v36 = vcombine.high %v6423_v14, %v6439_v60  ;;  %v10181_v50 = vcombine.low %v6423_v14, %v6439_v60  ;;  %v10183_v23 = vcombine.low %v6424_v10, %v6440_v42  ;;  %v6268_v14 = vld [vmem:[%s18173_s12 + $0x288] sm:$0xff] }
 0x987   :  { %7424 = vmatpush1.bf16.msra.mxu1 %v10173_v33  ;;  %7465 = vmatpush1.bf16.msra.mxu0 %v10175_v58  ;;  %v10184_v33 = vcombine.high %v6424_v10, %v6440_v42  ;;  %v6329_v58 = vld [vmem:[%s18174_s13 + $0x70] sm:$0xff] }
 0x988   :  { %7499 = vmatprep.subr.bf16.mxu1 %v10082_v9  ;;  %7540 = vmatprep.subr.bf16.mxu0 %v10084_v21  ;;  %v6345_v9 = vld [vmem:[%s18174_s13 + $0xf0] sm:$0xff]  ;;  %v6330_v21 = vld [vmem:[%s18174_s13 + $0x78] sm:$0xff] }
 0x989   :  { %v10090_v2 = vcombine.high %v6329_v58, %v6345_v9  ;;  %v10089_v7 = vcombine.low %v6329_v58, %v6345_v9  ;;  %v10091_v47 = vcombine.low %v6330_v21, %v6346_v19 }
 0x98a   :  { %10197 = vmatmul.mubr.msk.bf16.vlgmr.msra.gmra.mrb[116].mxu1 %vm822_vm2, %v16562_v31  ;;  %10198 = vmatmul.mubr.msk.bf16.vlgmr.msra.gmra.mrb[112].mxu0 %vm822_vm2, %v16562_v31 }
 0x98b   :  { %7500 = vmatpush1.bf16.msra.mxu1 %v10081_v22  ;;  %7541 = vmatpush1.bf16.msra.mxu0 %v10083_v15  ;;  %v10092_v22 = vcombine.high %v6330_v21, %v6346_v19  ;;  %v6361_v15 = vld [vmem:[%s18174_s13 + $0x170] sm:$0xff] }
 0x98c   :  { %7501 = vmatprep.subr.bf16.mxu1 %v10114_v39  ;;  %7542 = vmatprep.subr.bf16.mxu0 %v10116_v3  ;;  %v6377_v39 = vld [vmem:[%s18174_s13 + $0x1f0] sm:$0xff]  ;;  %v6362_v3 = vld [vmem:[%s18174_s13 + $0x178] sm:$0xff] }
 0x98d   :  { %7531 = vmatprep.mubr.bf16.mxu1 %v19121_v43  ;;  %7572 = vmatprep.mubr.bf16.mxu0 %v19121_v43  ;;  %v10122_v13 = vcombine.high %v6361_v15, %v6377_v39  ;;  %v10121_v5 = vcombine.low %v6361_v15, %v6377_v39  ;;  %v10123_v28 = vcombine.low %v6362_v3, %v6378_v8 }
 0x98f   :  { %7502 = vmatpush1.bf16.msra.mxu1 %v10113_v54  ;;  %7543 = vmatpush1.bf16.msra.mxu0 %v10115_v6  ;;  %v10124_v54 = vcombine.high %v6362_v3, %v6378_v8  ;;  %v6393_v6 = vld [vmem:[%s18174_s13 + $0x270] sm:$0xff] }
 0x990   :  { %7503 = vmatprep.subr.bf16.mxu1 %v10146_v35  ;;  %7544 = vmatprep.subr.bf16.mxu0 %v10148_v38  ;;  %v6409_v35 = vld [vmem:[%s18174_s13 + $0x2f0] sm:$0xff]  ;;  %v6394_v38 = vld [vmem:[%s18174_s13 + $0x278] sm:$0xff] }
 0x991   :  { %v10154_v24 = vcombine.high %v6393_v6, %v6409_v35  ;;  %v10153_v56 = vcombine.low %v6393_v6, %v6409_v35  ;;  %v10155_v11 = vcombine.low %v6394_v38, %v6410_v48 }
 0x993   :  { %7504 = vmatpush1.bf16.msra.mxu1 %v10145_v49  ;;  %7545 = vmatpush1.bf16.msra.mxu0 %v10147_v25  ;;  %v10156_v49 = vcombine.high %v6394_v38, %v6410_v48  ;;  %v6425_v25 = vld [vmem:[%s18174_s13 + $0x370] sm:$0xff] }
 0x994   :  { %7505 = vmatprep.subr.bf16.mxu1 %v10178_v12  ;;  %7546 = vmatprep.subr.bf16.mxu0 %v10180_v53  ;;  %v6441_v12 = vld [vmem:[%s18174_s13 + $0x3f0] sm:$0xff]  ;;  %v6426_v53 = vld [vmem:[%s18174_s13 + $0x378] sm:$0xff] }
 0x995   :  { %v10186_v29 = vcombine.high %v6425_v25, %v6441_v12  ;;  %v10185_v57 = vcombine.low %v6425_v25, %v6441_v12  ;;  %v10187_v44 = vcombine.low %v6426_v53, %v6442_v17 }
 0x997   :  { %7506 = vmatpush1.bf16.msra.mxu1 %v10177_v46  ;;  %7547 = vmatpush1.bf16.msra.mxu0 %v10179_v63  ;;  %v10188_v46 = vcombine.high %v6426_v53, %v6442_v17  ;;  %v6187_v63 = vld [vmem:[%s18173_s12] sm:$0xff] }
 0x998   :  { %7581 = vmatprep.subr.bf16.mxu1 %v10086_v26  ;;  %7622 = vmatprep.subr.bf16.mxu0 %v10088_v40  ;;  %v6203_v26 = vld [vmem:[%s18173_s12 + $0x80] sm:$0xff]  ;;  %v6188_v40 = vld [vmem:[%s18173_s12 + $0x8] sm:$0xff] }
 0x999   :  { %v10206_v16 = vcombine.high %v6187_v63, %v6203_v26  ;;  %v10205_v20 = vcombine.low %v6187_v63, %v6203_v26  ;;  %v10207_v45 = vcombine.low %v6188_v40, %v6204_v61 }
 0x99a   :  { %10199 = vmatmul.mubr.msk.bf16.vlgmr.msra.gmra.mrb[120].mxu1 %vm822_vm2, %v16562_v31  ;;  %10200 = vmatmul.mubr.msk.bf16.vlgmr.msra.gmra.mrb[116].mxu0 %vm822_vm2, %v16562_v31 }
 0x99b   :  { %7582 = vmatpush1.bf16.msra.mxu1 %v10085_v51  ;;  %7623 = vmatpush1.bf16.msra.mxu0 %v10087_v30  ;;  %v10208_v51 = vcombine.high %v6188_v40, %v6204_v61  ;;  %v6219_v30 = vld [vmem:[%s18173_s12 + $0x100] sm:$0xff] }
 0x99c   :  { %7583 = vmatprep.subr.bf16.mxu1 %v10118_v37  ;;  %7624 = vmatprep.subr.bf16.mxu0 %v10120_v52  ;;  %v6235_v37 = vld [vmem:[%s18173_s12 + $0x180] sm:$0xff]  ;;  %v6220_v52 = vld [vmem:[%s18173_s12 + $0x108] sm:$0xff] }
 0x99d   :  { %7613 = vmatprep.mubr.bf16.mxu1 %v19121_v43  ;;  %7654 = vmatprep.mubr.bf16.mxu0 %v19121_v43  ;;  %v10238_v1 = vcombine.high %v6219_v30, %v6235_v37  ;;  %v10237_v60 = vcombine.low %v6219_v30, %v6235_v37  ;;  %v10239_v10 = vcombine.low %v6220_v52, %v6236_v41 }
 0x99f   :  { %7584 = vmatpush1.bf16.msra.mxu1 %v10117_v59  ;;  %7625 = vmatpush1.bf16.msra.mxu0 %v10119_v4  ;;  %v10240_v59 = vcombine.high %v6220_v52, %v6236_v41  ;;  %v6251_v4 = vld [vmem:[%s18173_s12 + $0x200] sm:$0xff] }
 0x9a0   :  { %7585 = vmatprep.subr.bf16.mxu1 %v10150_v18  ;;  %7626 = vmatprep.subr.bf16.mxu0 %v10152_v62  ;;  %v6267_v18 = vld [vmem:[%s18173_s12 + $0x280] sm:$0xff]  ;;  %v6252_v62 = vld [vmem:[%s18173_s12 + $0x208] sm:$0xff] }
 0x9a1   :  { %v10270_v42 = vcombine.high %v6251_v4, %v6267_v18  ;;  %v10269_v58 = vcombine.low %v6251_v4, %v6267_v18  ;;  %v10271_v9 = vcombine.low %v6252_v62, %v6268_v14 }
 0x9a3   :  { %7586 = vmatpush1.bf16.msra.mxu1 %v10149_v27  ;;  %7627 = vmatpush1.bf16.msra.mxu0 %v10151_v55  ;;  %v10272_v27 = vcombine.high %v6252_v62, %v6268_v14  ;;  %v6283_v55 = vld [vmem:[%s18173_s12 + $0x300] sm:$0xff] }
 0x9a4   :  { %7587 = vmatprep.subr.bf16.mxu1 %v10182_v36  ;;  %7628 = vmatprep.subr.bf16.mxu0 %v10184_v33  ;;  %v6299_v36 = vld [vmem:[%s18173_s12 + $0x380] sm:$0xff]  ;;  %v6300_v33 = vld [vmem:[%s18173_s12 + $0x388] sm:$0xff] }
 0x9a5   :  { %v10302_v21 = vcombine.high %v6283_v55, %v6299_v36  ;;  %v10301_v15 = vcombine.low %v6283_v55, %v6299_v36 }
 0x9a7   :  { %7588 = vmatpush1.bf16.msra.mxu1 %v10181_v50  ;;  %7629 = vmatpush1.bf16.msra.mxu0 %v10183_v23  ;;  %v6189_v50 = vld [vmem:[%s18173_s12 + $0x10] sm:$0xff] }
 0x9a8   :  { %7663 = vmatprep.subr.bf16.mxu1 %v10090_v2  ;;  %7704 = vmatprep.subr.bf16.mxu0 %v10092_v22  ;;  %v6205_v23 = vld [vmem:[%s18173_s12 + $0x90] sm:$0xff]  ;;  %v6190_v2 = vld [vmem:[%s18173_s12 + $0x18] sm:$0xff] }
 0x9a9   :  { %v6206_v22 = vld [vmem:[%s18173_s12 + $0x98] sm:$0xff]  ;;  %v10210_v3 = vcombine.high %v6189_v50, %v6205_v23  ;;  %v10209_v6 = vcombine.low %v6189_v50, %v6205_v23 }
 0x9aa   :  { %10201 = vmatmul.mubr.msk.bf16.vlgmr.msra.gmra.mrb[124].mxu1 %vm822_vm2, %v16562_v31  ;;  %10202 = vmatmul.mubr.msk.bf16.vlgmr.msra.gmra.mrb[120].mxu0 %vm822_vm2, %v16562_v31  ;;  %v10212_v8 = vcombine.high %v6190_v2, %v6206_v22  ;;  %v10211_v35 = vcombine.low %v6190_v2, %v6206_v22 }
 0x9ab   :  { %7664 = vmatpush1.bf16.msra.mxu1 %v10089_v7  ;;  %7705 = vmatpush1.bf16.msra.mxu0 %v10091_v47  ;;  %v6221_v7 = vld [vmem:[%s18173_s12 + $0x110] sm:$0xff] }
 0x9ac   :  { %7665 = vmatprep.subr.bf16.mxu1 %v10122_v13  ;;  %7706 = vmatprep.subr.bf16.mxu0 %v10124_v54  ;;  %v6237_v47 = vld [vmem:[%s18173_s12 + $0x190] sm:$0xff]  ;;  %v6222_v13 = vld [vmem:[%s18173_s12 + $0x118] sm:$0xff] }
 0x9ad   :  { %7695 = vmatprep.mubr.bf16.mxu1 %v19121_v43  ;;  %7736 = vmatprep.mubr.bf16.mxu0 %v19121_v43  ;;  %v6238_v54 = vld [vmem:[%s18173_s12 + $0x198] sm:$0xff]  ;;  %v10242_v38 = vcombine.high %v6221_v7, %v6237_v47  ;;  %v10241_v25 = vcombine.low %v6221_v7, %v6237_v47 }
 0x9ae   :  { %v10244_v48 = vcombine.high %v6222_v13, %v6238_v54  ;;  %v10243_v12 = vcombine.low %v6222_v13, %v6238_v54 }
 0x9af   :  { %7666 = vmatpush1.bf16.msra.mxu1 %v10121_v5  ;;  %7707 = vmatpush1.bf16.msra.mxu0 %v10123_v28  ;;  %v6253_v5 = vld [vmem:[%s18173_s12 + $0x210] sm:$0xff] }
 0x9b0   :  { %7667 = vmatprep.subr.bf16.mxu1 %v10154_v24  ;;  %7708 = vmatprep.subr.bf16.mxu0 %v10156_v49  ;;  %v6269_v28 = vld [vmem:[%s18173_s12 + $0x290] sm:$0xff]  ;;  %v6254_v24 = vld [vmem:[%s18173_s12 + $0x218] sm:$0xff] }
 0x9b1   :  { %v6270_v49 = vld [vmem:[%s18173_s12 + $0x298] sm:$0xff]  ;;  %v10274_v53 = vcombine.high %v6253_v5, %v6269_v28  ;;  %v10273_v63 = vcombine.low %v6253_v5, %v6269_v28 }
 0x9b2   :  { %v10276_v17 = vcombine.high %v6254_v24, %v6270_v49  ;;  %v10275_v26 = vcombine.low %v6254_v24, %v6270_v49 }
 0x9b3   :  { %7668 = vmatpush1.bf16.msra.mxu1 %v10153_v56  ;;  %7709 = vmatpush1.bf16.msra.mxu0 %v10155_v11  ;;  %v6285_v56 = vld [vmem:[%s18173_s12 + $0x310] sm:$0xff] }
 0x9b4   :  { %7669 = vmatprep.subr.bf16.mxu1 %v10186_v29  ;;  %7710 = vmatprep.subr.bf16.mxu0 %v10188_v46  ;;  %v6301_v11 = vld [vmem:[%s18173_s12 + $0x390] sm:$0xff]  ;;  %v6286_v29 = vld [vmem:[%s18173_s12 + $0x318] sm:$0xff] }
 0x9b5   :  { %v6302_v46 = vld [vmem:[%s18173_s12 + $0x398] sm:$0xff]  ;;  %v10306_v40 = vcombine.high %v6285_v56, %v6301_v11  ;;  %v10305_v30 = vcombine.low %v6285_v56, %v6301_v11 }
 0x9b6   :  { %v10308_v61 = vcombine.high %v6286_v29, %v6302_v46  ;;  %v10307_v37 = vcombine.low %v6286_v29, %v6302_v46 }
 0x9b7   :  { %7670 = vmatpush1.bf16.msra.mxu1 %v10185_v57  ;;  %7711 = vmatpush1.bf16.msra.mxu0 %v10187_v44  ;;  %v6191_v57 = vld [vmem:[%s18173_s12 + $0x20] sm:$0xff] }
 0x9b8   :  { %8388 = vmatprep.subr.bf16.mxu1 %v10206_v16  ;;  %8429 = vmatprep.subr.bf16.mxu0 %v10208_v51  ;;  %v6207_v44 = vld [vmem:[%s18173_s12 + $0xa0] sm:$0xff]  ;;  %v6192_v16 = vld [vmem:[%s18173_s12 + $0x28] sm:$0xff] }
 0x9b9   :  { %v6208_v51 = vld [vmem:[%s18173_s12 + $0xa8] sm:$0xff]  ;;  %v10214_v52 = vcombine.high %v6191_v57, %v6207_v44  ;;  %v10213_v4 = vcombine.low %v6191_v57, %v6207_v44 }
 0x9ba   :  { %10203 = vmatmul.mubr.msk.bf16.vlgmr.msra.gmra.mrb[128].mxu1 %vm822_vm2, %v16562_v31  ;;  %10204 = vmatmul.mubr.msk.bf16.vlgmr.msra.gmra.mrb[124].mxu0 %vm822_vm2, %v16562_v31  ;;  %v6284_v31 = vld [vmem:[%s18173_s12 + $0x308] sm:$0xff]  ;;  %v10216_v41 = vcombine.high %v6192_v16, %v6208_v51  ;;  %v10215_v18 = vcombine.low %v6192_v16, %v6208_v51 }
 0x9bb   :  { %8389 = vmatpush1.bf16.msra.mxu1 %v10205_v20  ;;  %8430 = vmatpush1.bf16.msra.mxu0 %v10207_v45  ;;  %v10304_v19 = vcombine.high %v6284_v31, %v6300_v33  ;;  %v10303_v39 = vcombine.low %v6284_v31, %v6300_v33  ;;  %v6223_v20 = vld [vmem:[%s18173_s12 + $0x120] sm:$0xff] }
 0x9bc   :  { %8390 = vmatprep.subr.bf16.mxu1 %v10238_v1  ;;  %8431 = vmatprep.subr.bf16.mxu0 %v10240_v59  ;;  %v6239_v45 = vld [vmem:[%s18173_s12 + $0x1a0] sm:$0xff]  ;;  %v6224_v1 = vld [vmem:[%s18173_s12 + $0x128] sm:$0xff] }
 0x9bd   :  { %8420 = vmatprep.mubr.bf16.mxu1 %v19121_v43  ;;  %8461 = vmatprep.mubr.bf16.mxu0 %v19121_v43  ;;  %v6240_v59 = vld [vmem:[%s18173_s12 + $0x1a8] sm:$0xff]  ;;  %v10246_v62 = vcombine.high %v6223_v20, %v6239_v45  ;;  %v10245_v55 = vcombine.low %v6223_v20, %v6239_v45 }
 0x9be   :  { %v10248_v14 = vcombine.high %v6224_v1, %v6240_v59  ;;  %v10247_v36 = vcombine.low %v6224_v1, %v6240_v59 }
 0x9bf   :  { %8391 = vmatpush1.bf16.msra.mxu1 %v10237_v60  ;;  %8432 = vmatpush1.bf16.msra.mxu0 %v10239_v10  ;;  %v6255_v60 = vld [vmem:[%s18173_s12 + $0x220] sm:$0xff] }
 0x9c0   :  { %8392 = vmatprep.subr.bf16.mxu1 %v10270_v42  ;;  %8433 = vmatprep.subr.bf16.mxu0 %v10272_v27  ;;  %v6271_v10 = vld [vmem:[%s18173_s12 + $0x2a0] sm:$0xff]  ;;  %v6256_v42 = vld [vmem:[%s18173_s12 + $0x228] sm:$0xff] }
 0x9c1   :  { %v6272_v27 = vld [vmem:[%s18173_s12 + $0x2a8] sm:$0xff]  ;;  %v10278_v31 = vcombine.high %v6255_v60, %v6271_v10  ;;  %v10277_v50 = vcombine.low %v6255_v60, %v6271_v10 }
 0x9c2   :  { %v10280_v33 = vcombine.high %v6256_v42, %v6272_v27  ;;  %v10279_v23 = vcombine.low %v6256_v42, %v6272_v27 }
 0x9c3   :  { %8393 = vmatpush1.bf16.msra.mxu1 %v10269_v58  ;;  %8434 = vmatpush1.bf16.msra.mxu0 %v10271_v9  ;;  %v6287_v58 = vld [vmem:[%s18173_s12 + $0x320] sm:$0xff] }
 0x9c4   :  { %8394 = vmatprep.subr.bf16.mxu1 %v10302_v21  ;;  %8435 = vmatprep.subr.bf16.mxu0 %v10304_v19  ;;  %v6303_v9 = vld [vmem:[%s18173_s12 + $0x3a0] sm:$0xff]  ;;  %v6288_v21 = vld [vmem:[%s18173_s12 + $0x328] sm:$0xff] }
 0x9c5   :  { %v6304_v19 = vld [vmem:[%s18173_s12 + $0x3a8] sm:$0xff]  ;;  %v10310_v2 = vcombine.high %v6287_v58, %v6303_v9  ;;  %v10309_v7 = vcombine.low %v6287_v58, %v6303_v9 }
 0x9c6   :  { %v10312_v22 = vcombine.high %v6288_v21, %v6304_v19  ;;  %v10311_v47 = vcombine.low %v6288_v21, %v6304_v19 }
 0x9c7   :  { %8395 = vmatpush1.bf16.msra.mxu1 %v10301_v15  ;;  %8436 = vmatpush1.bf16.msra.mxu0 %v10303_v39  ;;  %v6193_v15 = vld [vmem:[%s18173_s12 + $0x30] sm:$0xff] }
 0x9c8   :  { %8470 = vmatprep.subr.bf16.mxu1 %v10210_v3  ;;  %8511 = vmatprep.subr.bf16.mxu0 %v10212_v8  ;;  %v6209_v39 = vld [vmem:[%s18173_s12 + $0xb0] sm:$0xff]  ;;  %v6194_v3 = vld [vmem:[%s18173_s12 + $0x38] sm:$0xff] }
 0x9c9   :  { %v6210_v8 = vld [vmem:[%s18173_s12 + $0xb8] sm:$0xff]  ;;  %v10218_v13 = vcombine.high %v6193_v15, %v6209_v39  ;;  %v10217_v5 = vcombine.low %v6193_v15, %v6209_v39 }
 0x9ca   :  { %10333 = vmatmul.mubr.msk.bf16.vlgmr.msra.gmra.mrb[132].mxu1 %vm822_vm2, %v16541_v0  ;;  %10334 = vmatmul.mubr.msk.bf16.vlgmr.msra.gmra.mrb[128].mxu0 %vm822_vm2, %v16541_v0  ;;  %v10220_v54 = vcombine.high %v6194_v3, %v6210_v8  ;;  %v10219_v28 = vcombine.low %v6194_v3, %v6210_v8 }
 0x9cb   :  { %8471 = vmatpush1.bf16.msra.mxu1 %v10209_v6  ;;  %8512 = vmatpush1.bf16.msra.mxu0 %v10211_v35  ;;  %v6225_v6 = vld [vmem:[%s18173_s12 + $0x130] sm:$0xff] }
 0x9cc   :  { %8472 = vmatprep.subr.bf16.mxu1 %v10242_v38  ;;  %8513 = vmatprep.subr.bf16.mxu0 %v10244_v48  ;;  %v6241_v35 = vld [vmem:[%s18173_s12 + $0x1b0] sm:$0xff]  ;;  %v6226_v38 = vld [vmem:[%s18173_s12 + $0x138] sm:$0xff] }
 0x9cd   :  { %8502 = vmatprep.mubr.bf16.mxu1 %v19121_v43  ;;  %8543 = vmatprep.mubr.bf16.mxu0 %v19121_v43  ;;  %v6242_v48 = vld [vmem:[%s18173_s12 + $0x1b8] sm:$0xff]  ;;  %v10250_v24 = vcombine.high %v6225_v6, %v6241_v35  ;;  %v10249_v56 = vcombine.low %v6225_v6, %v6241_v35 }
 0x9ce   :  { %v10252_v49 = vcombine.high %v6226_v38, %v6242_v48  ;;  %v10251_v11 = vcombine.low %v6226_v38, %v6242_v48 }
 0x9cf   :  { %8473 = vmatpush1.bf16.msra.mxu1 %v10241_v25  ;;  %8514 = vmatpush1.bf16.msra.mxu0 %v10243_v12  ;;  %v6257_v25 = vld [vmem:[%s18173_s12 + $0x230] sm:$0xff] }
 0x9d0   :  { %8474 = vmatprep.subr.bf16.mxu1 %v10274_v53  ;;  %8515 = vmatprep.subr.bf16.mxu0 %v10276_v17  ;;  %v6273_v12 = vld [vmem:[%s18173_s12 + $0x2b0] sm:$0xff]  ;;  %v6258_v53 = vld [vmem:[%s18173_s12 + $0x238] sm:$0xff] }
 0x9d1   :  { %v6274_v17 = vld [vmem:[%s18173_s12 + $0x2b8] sm:$0xff]  ;;  %v10282_v29 = vcombine.high %v6257_v25, %v6273_v12  ;;  %v10281_v57 = vcombine.low %v6257_v25, %v6273_v12 }
 0x9d2   :  { %v10284_v46 = vcombine.high %v6258_v53, %v6274_v17  ;;  %v10283_v44 = vcombine.low %v6258_v53, %v6274_v17 }
 0x9d3   :  { %8475 = vmatpush1.bf16.msra.mxu1 %v10273_v63  ;;  %8516 = vmatpush1.bf16.msra.mxu0 %v10275_v26  ;;  %v6289_v63 = vld [vmem:[%s18173_s12 + $0x330] sm:$0xff] }
 0x9d4   :  { %8476 = vmatprep.subr.bf16.mxu1 %v10306_v40  ;;  %8517 = vmatprep.subr.bf16.mxu0 %v10308_v61  ;;  %v6305_v26 = vld [vmem:[%s18173_s12 + $0x3b0] sm:$0xff]  ;;  %v6290_v40 = vld [vmem:[%s18173_s12 + $0x338] sm:$0xff] }
 0x9d5   :  { %v6306_v61 = vld [vmem:[%s18173_s12 + $0x3b8] sm:$0xff]  ;;  %v10314_v16 = vcombine.high %v6289_v63, %v6305_v26  ;;  %v10313_v20 = vcombine.low %v6289_v63, %v6305_v26 }
 0x9d6   :  { %v10316_v51 = vcombine.high %v6290_v40, %v6306_v61  ;;  %v10315_v45 = vcombine.low %v6290_v40, %v6306_v61 }
 0x9d7   :  { %8477 = vmatpush1.bf16.msra.mxu1 %v10305_v30  ;;  %8518 = vmatpush1.bf16.msra.mxu0 %v10307_v37  ;;  %v6195_v30 = vld [vmem:[%s18173_s12 + $0x40] sm:$0xff] }
 0x9d8   :  { %8552 = vmatprep.subr.bf16.mxu1 %v10214_v52  ;;  %8593 = vmatprep.subr.bf16.mxu0 %v10216_v41  ;;  %v6211_v37 = vld [vmem:[%s18173_s12 + $0xc0] sm:$0xff]  ;;  %v6196_v52 = vld [vmem:[%s18173_s12 + $0x48] sm:$0xff] }
 0x9d9   :  { %v6212_v41 = vld [vmem:[%s18173_s12 + $0xc8] sm:$0xff]  ;;  %v10222_v1 = vcombine.high %v6195_v30, %v6211_v37  ;;  %v10221_v60 = vcombine.low %v6195_v30, %v6211_v37 }
 0x9da   :  { %10335 = vmatmul.mubr.msk.bf16.vlgmr.msra.gmra.mrb[136].mxu1 %vm822_vm2, %v16541_v0  ;;  %10336 = vmatmul.mubr.msk.bf16.vlgmr.msra.gmra.mrb[132].mxu0 %vm822_vm2, %v16541_v0  ;;  %v10224_v59 = vcombine.high %v6196_v52, %v6212_v41  ;;  %v10223_v10 = vcombine.low %v6196_v52, %v6212_v41 }
 0x9db   :  { %8553 = vmatpush1.bf16.msra.mxu1 %v10213_v4  ;;  %8594 = vmatpush1.bf16.msra.mxu0 %v10215_v18  ;;  %v6227_v4 = vld [vmem:[%s18173_s12 + $0x140] sm:$0xff] }
 0x9dc   :  { %8554 = vmatprep.subr.bf16.mxu1 %v10246_v62  ;;  %8595 = vmatprep.subr.bf16.mxu0 %v10248_v14  ;;  %v6243_v18 = vld [vmem:[%s18173_s12 + $0x1c0] sm:$0xff]  ;;  %v6228_v62 = vld [vmem:[%s18173_s12 + $0x148] sm:$0xff] }
 0x9dd   :  { %8584 = vmatprep.mubr.bf16.mxu1 %v19121_v43  ;;  %8625 = vmatprep.mubr.bf16.mxu0 %v19121_v43  ;;  %v6244_v14 = vld [vmem:[%s18173_s12 + $0x1c8] sm:$0xff]  ;;  %v10254_v42 = vcombine.high %v6227_v4, %v6243_v18  ;;  %v10253_v58 = vcombine.low %v6227_v4, %v6243_v18 }
 0x9de   :  { %v10256_v27 = vcombine.high %v6228_v62, %v6244_v14  ;;  %v10255_v9 = vcombine.low %v6228_v62, %v6244_v14 }
 0x9df   :  { %8555 = vmatpush1.bf16.msra.mxu1 %v10245_v55  ;;  %8596 = vmatpush1.bf16.msra.mxu0 %v10247_v36  ;;  %v6259_v55 = vld [vmem:[%s18173_s12 + $0x240] sm:$0xff] }
 0x9e0   :  { %8556 = vmatprep.subr.bf16.mxu1 %v10278_v31  ;;  %8597 = vmatprep.subr.bf16.mxu0 %v10280_v33  ;;  %v6275_v36 = vld [vmem:[%s18173_s12 + $0x2c0] sm:$0xff]  ;;  %v6260_v31 = vld [vmem:[%s18173_s12 + $0x248] sm:$0xff] }
 0x9e1   :  { %v6276_v33 = vld [vmem:[%s18173_s12 + $0x2c8] sm:$0xff]  ;;  %v10286_v21 = vcombine.high %v6259_v55, %v6275_v36  ;;  %v10285_v15 = vcombine.low %v6259_v55, %v6275_v36 }
 0x9e2   :  { %v10288_v19 = vcombine.high %v6260_v31, %v6276_v33  ;;  %v10287_v39 = vcombine.low %v6260_v31, %v6276_v33 }
 0x9e3   :  { %8557 = vmatpush1.bf16.msra.mxu1 %v10277_v50  ;;  %8598 = vmatpush1.bf16.msra.mxu0 %v10279_v23  ;;  %v6291_v50 = vld [vmem:[%s18173_s12 + $0x340] sm:$0xff] }
 0x9e4   :  { %8558 = vmatprep.subr.bf16.mxu1 %v10310_v2  ;;  %8599 = vmatprep.subr.bf16.mxu0 %v10312_v22  ;;  %v6307_v23 = vld [vmem:[%s18173_s12 + $0x3c0] sm:$0xff]  ;;  %v6292_v2 = vld [vmem:[%s18173_s12 + $0x348] sm:$0xff] }
 0x9e5   :  { %v6308_v22 = vld [vmem:[%s18173_s12 + $0x3c8] sm:$0xff]  ;;  %v10318_v3 = vcombine.high %v6291_v50, %v6307_v23  ;;  %v10317_v6 = vcombine.low %v6291_v50, %v6307_v23 }
 0x9e6   :  { %v10320_v8 = vcombine.high %v6292_v2, %v6308_v22  ;;  %v10319_v35 = vcombine.low %v6292_v2, %v6308_v22 }
 0x9e7   :  { %8559 = vmatpush1.bf16.msra.mxu1 %v10309_v7  ;;  %8600 = vmatpush1.bf16.msra.mxu0 %v10311_v47  ;;  %v6197_v7 = vld [vmem:[%s18173_s12 + $0x50] sm:$0xff] }
 0x9e8   :  { %8634 = vmatprep.subr.bf16.mxu1 %v10218_v13  ;;  %8675 = vmatprep.subr.bf16.mxu0 %v10220_v54  ;;  %v6213_v47 = vld [vmem:[%s18173_s12 + $0xd0] sm:$0xff]  ;;  %v6198_v13 = vld [vmem:[%s18173_s12 + $0x58] sm:$0xff] }
 0x9e9   :  { %v6214_v54 = vld [vmem:[%s18173_s12 + $0xd8] sm:$0xff]  ;;  %v10226_v38 = vcombine.high %v6197_v7, %v6213_v47  ;;  %v10225_v25 = vcombine.low %v6197_v7, %v6213_v47  ;;  %v6296_v7 = vld [vmem:[%s18173_s12 + $0x368] sm:$0xff] }
 0x9ea   :  { %10337 = vmatmul.mubr.msk.bf16.vlgmr.msra.gmra.mrb[140].mxu1 %vm822_vm2, %v16541_v0  ;;  %10338 = vmatmul.mubr.msk.bf16.vlgmr.msra.gmra.mrb[136].mxu0 %vm822_vm2, %v16541_v0  ;;  %v10228_v48 = vcombine.high %v6198_v13, %v6214_v54  ;;  %v10227_v12 = vcombine.low %v6198_v13, %v6214_v54  ;;  %v6312_v47 = vld [vmem:[%s18173_s12 + $0x3e8] sm:$0xff] }
 0x9eb   :  { %8635 = vmatpush1.bf16.msra.mxu1 %v10217_v5  ;;  %8676 = vmatpush1.bf16.msra.mxu0 %v10219_v28  ;;  %v6229_v5 = vld [vmem:[%s18173_s12 + $0x150] sm:$0xff] }
 0x9ec   :  { %8636 = vmatprep.subr.bf16.mxu1 %v10250_v24  ;;  %8677 = vmatprep.subr.bf16.mxu0 %v10252_v49  ;;  %v6245_v28 = vld [vmem:[%s18173_s12 + $0x1d0] sm:$0xff]  ;;  %v6230_v24 = vld [vmem:[%s18173_s12 + $0x158] sm:$0xff] }
 0x9ed   :  { %8666 = vmatprep.mubr.bf16.mxu1 %v19121_v43  ;;  %8707 = vmatprep.mubr.bf16.mxu0 %v19121_v43  ;;  %v6246_v49 = vld [vmem:[%s18173_s12 + $0x1d8] sm:$0xff]  ;;  %v10258_v53 = vcombine.high %v6229_v5, %v6245_v28  ;;  %v10257_v63 = vcombine.low %v6229_v5, %v6245_v28 }
 0x9ee   :  { %v10260_v17 = vcombine.high %v6230_v24, %v6246_v49  ;;  %v10259_v26 = vcombine.low %v6230_v24, %v6246_v49  ;;  %v10328_v49 = vcombine.high %v6296_v7, %v6312_v47 }
 0x9ef   :  { %8637 = vmatpush1.bf16.msra.mxu1 %v10249_v56  ;;  %8678 = vmatpush1.bf16.msra.mxu0 %v10251_v11  ;;  %v6261_v56 = vld [vmem:[%s18173_s12 + $0x250] sm:$0xff] }
 0x9f0   :  { %8638 = vmatprep.subr.bf16.mxu1 %v10282_v29  ;;  %8679 = vmatprep.subr.bf16.mxu0 %v10284_v46  ;;  %v6277_v11 = vld [vmem:[%s18173_s12 + $0x2d0] sm:$0xff]  ;;  %v6262_v29 = vld [vmem:[%s18173_s12 + $0x258] sm:$0xff] }
 0x9f1   :  { %v6278_v46 = vld [vmem:[%s18173_s12 + $0x2d8] sm:$0xff]  ;;  %v10290_v40 = vcombine.high %v6261_v56, %v6277_v11  ;;  %v10289_v30 = vcombine.low %v6261_v56, %v6277_v11  ;;  %v10327_v11 = vcombine.low %v6296_v7, %v6312_v47  ;;  %v9693_v7 = vld [vmem:[%s18176_s15 + $0x28] sm:$0xff] }
 0x9f2   :  { %v10292_v61 = vcombine.high %v6262_v29, %v6278_v46  ;;  %v10291_v37 = vcombine.low %v6262_v29, %v6278_v46  ;;  %v9695_v47 = vld [vmem:[%s18176_s15 + $0x38] sm:$0xff] }
 0x9f3   :  { %8639 = vmatpush1.bf16.msra.mxu1 %v10281_v57  ;;  %8680 = vmatpush1.bf16.msra.mxu0 %v10283_v44  ;;  %v6293_v57 = vld [vmem:[%s18173_s12 + $0x350] sm:$0xff] }
 0x9f4   :  { %8640 = vmatprep.subr.bf16.mxu1 %v10314_v16  ;;  %8681 = vmatprep.subr.bf16.mxu0 %v10316_v51  ;;  %v6309_v44 = vld [vmem:[%s18173_s12 + $0x3d0] sm:$0xff]  ;;  %v6294_v16 = vld [vmem:[%s18173_s12 + $0x358] sm:$0xff] }
 0x9f5   :  { %v6310_v51 = vld [vmem:[%s18173_s12 + $0x3d8] sm:$0xff]  ;;  %v10322_v52 = vcombine.high %v6293_v57, %v6309_v44  ;;  %v10321_v4 = vcombine.low %v6293_v57, %v6309_v44 }
 0x9f6   :  { %v10324_v41 = vcombine.high %v6294_v16, %v6310_v51  ;;  %v10323_v18 = vcombine.low %v6294_v16, %v6310_v51 }
 0x9f7   :  { %8641 = vmatpush1.bf16.msra.mxu1 %v10313_v20  ;;  %8682 = vmatpush1.bf16.msra.mxu0 %v10315_v45  ;;  %v6199_v20 = vld [vmem:[%s18173_s12 + $0x60] sm:$0xff] }
 0x9f8   :  { %8716 = vmatprep.subr.bf16.mxu1 %v10222_v1  ;;  %8757 = vmatprep.subr.bf16.mxu0 %v10224_v59  ;;  %v6215_v45 = vld [vmem:[%s18173_s12 + $0xe0] sm:$0xff]  ;;  %v6200_v1 = vld [vmem:[%s18173_s12 + $0x68] sm:$0xff] }
 0x9f9   :  { %v6216_v59 = vld [vmem:[%s18173_s12 + $0xe8] sm:$0xff]  ;;  %v10230_v62 = vcombine.high %v6199_v20, %v6215_v45  ;;  %v10229_v55 = vcombine.low %v6199_v20, %v6215_v45 }
 0x9fa   :  { %10339 = vmatmul.mubr.msk.bf16.vlgmr.msra.gmra.mrb[144].mxu1 %vm822_vm2, %v16541_v0  ;;  %10340 = vmatmul.mubr.msk.bf16.vlgmr.msra.gmra.mrb[140].mxu0 %vm822_vm2, %v16541_v0  ;;  %v10232_v14 = vcombine.high %v6200_v1, %v6216_v59  ;;  %v10231_v36 = vcombine.low %v6200_v1, %v6216_v59 }
 0x9fb   :  { %8717 = vmatpush1.bf16.msra.mxu1 %v10221_v60  ;;  %8758 = vmatpush1.bf16.msra.mxu0 %v10223_v10  ;;  %v6231_v60 = vld [vmem:[%s18173_s12 + $0x160] sm:$0xff] }
 0x9fc   :  { %8718 = vmatprep.subr.bf16.mxu1 %v10254_v42  ;;  %8759 = vmatprep.subr.bf16.mxu0 %v10256_v27  ;;  %v6247_v10 = vld [vmem:[%s18173_s12 + $0x1e0] sm:$0xff]  ;;  %v6232_v42 = vld [vmem:[%s18173_s12 + $0x168] sm:$0xff] }
 0x9fd   :  { %8748 = vmatprep.mubr.bf16.mxu1 %v19121_v43  ;;  %8789 = vmatprep.mubr.bf16.mxu0 %v19121_v43  ;;  %v6248_v27 = vld [vmem:[%s18173_s12 + $0x1e8] sm:$0xff]  ;;  %v10262_v31 = vcombine.high %v6231_v60, %v6247_v10  ;;  %v10261_v50 = vcombine.low %v6231_v60, %v6247_v10  ;;  %v6298_v60 = vld [vmem:[%s18173_s12 + $0x378] sm:$0xff] }
 0x9fe   :  { %v10264_v33 = vcombine.high %v6232_v42, %v6248_v27  ;;  %v10263_v23 = vcombine.low %v6232_v42, %v6248_v27  ;;  %v6314_v10 = vld [vmem:[%s18173_s12 + $0x3f8] sm:$0xff] }
 0x9ff   :  { %8719 = vmatpush1.bf16.msra.mxu1 %v10253_v58  ;;  %8760 = vmatpush1.bf16.msra.mxu0 %v10255_v9  ;;  %v6263_v58 = vld [vmem:[%s18173_s12 + $0x260] sm:$0xff] }
 0xa00   :  { %8720 = vmatprep.subr.bf16.mxu1 %v10286_v21  ;;  %8761 = vmatprep.subr.bf16.mxu0 %v10288_v19  ;;  %v6279_v9 = vld [vmem:[%s18173_s12 + $0x2e0] sm:$0xff]  ;;  %v6264_v21 = vld [vmem:[%s18173_s12 + $0x268] sm:$0xff] }
 0xa01   :  { %v6280_v19 = vld [vmem:[%s18173_s12 + $0x2e8] sm:$0xff]  ;;  %v10294_v2 = vcombine.high %v6263_v58, %v6279_v9 }
 0xa02   :  { %v10296_v22 = vcombine.high %v6264_v21, %v6280_v19 }
 0xa03   :  { %8721 = vmatpush1.bf16.msra.mxu1 %v10285_v15  ;;  %8762 = vmatpush1.bf16.msra.mxu0 %v10287_v39  ;;  %v6295_v15 = vld [vmem:[%s18173_s12 + $0x360] sm:$0xff] }
 0xa04   :  { %8722 = vmatprep.subr.bf16.mxu1 %v10318_v3  ;;  %8763 = vmatprep.subr.bf16.mxu0 %v10320_v8  ;;  %v6311_v8 = vld [vmem:[%s18173_s12 + $0x3e0] sm:$0xff] }
 0xa05   :  { %v10326_v24 = vcombine.high %v6295_v15, %v6311_v8  ;;  %v10325_v56 = vcombine.low %v6295_v15, %v6311_v8  ;;  %v9688_v15 = vld [vmem:[%s18176_s15] sm:$0xff]  ;;  %v9690_v8 = vld [vmem:[%s18176_s15 + $0x10] sm:$0xff] }
 0xa07   :  { %8723 = vmatpush1.bf16.msra.mxu1 %v10317_v6  ;;  %8764 = vmatpush1.bf16.msra.mxu0 %v10319_v35 }
 0xa08   :  { %8798 = vmatprep.subr.bf16.mxu1 %v10226_v38  ;;  %8839 = vmatprep.subr.bf16.mxu0 %v10228_v48  ;;  %v10293_v38 = vcombine.low %v6263_v58, %v6279_v9  ;;  %v10295_v48 = vcombine.low %v6264_v21, %v6280_v19  ;;  %v10332_v19 = vcombine.high %v6298_v60, %v6314_v10 }
 0xa0a   :  { %10341 = vmatmul.mubr.msk.bf16.vlgmr.msra.gmra.mrb[148].mxu1 %vm822_vm2, %v16541_v0  ;;  %10342 = vmatmul.mubr.msk.bf16.vlgmr.msra.gmra.mrb[144].mxu0 %vm822_vm2, %v16541_v0 }
 0xa0b   :  { %8799 = vmatpush1.bf16.msra.mxu1 %v10225_v25  ;;  %8840 = vmatpush1.bf16.msra.mxu0 %v10227_v12  ;;  %v6201_v25 = vld [vmem:[%s18173_s12 + $0x70] sm:$0xff] }
 0xa0c   :  { %8800 = vmatprep.subr.bf16.mxu1 %v10258_v53  ;;  %8841 = vmatprep.subr.bf16.mxu0 %v10260_v17  ;;  %v6217_v12 = vld [vmem:[%s18173_s12 + $0xf0] sm:$0xff]  ;;  %v6202_v53 = vld [vmem:[%s18173_s12 + $0x78] sm:$0xff] }
 0xa0d   :  { %8830 = vmatprep.mubr.bf16.mxu1 %v19121_v43  ;;  %8871 = vmatprep.mubr.bf16.mxu0 %v19121_v43  ;;  %v6218_v17 = vld [vmem:[%s18173_s12 + $0xf8] sm:$0xff]  ;;  %v10234_v29 = vcombine.high %v6201_v25, %v6217_v12  ;;  %v10233_v57 = vcombine.low %v6201_v25, %v6217_v12  ;;  %v9696_v25 = vld [vmem:[%s18176_s15 + $0x40] sm:$0xff]  ;;  %v9698_v12 = vld [vmem:[%s18176_s15 + $0x50] sm:$0xff] }
 0xa0e   :  { %v10236_v46 = vcombine.high %v6202_v53, %v6218_v17  ;;  %v10235_v44 = vcombine.low %v6202_v53, %v6218_v17 }
 0xa0f   :  { %8801 = vmatpush1.bf16.msra.mxu1 %v10257_v63  ;;  %8842 = vmatpush1.bf16.msra.mxu0 %v10259_v26  ;;  %v6233_v63 = vld [vmem:[%s18173_s12 + $0x170] sm:$0xff] }
 0xa10   :  { %8802 = vmatprep.subr.bf16.mxu1 %v10290_v40  ;;  %8843 = vmatprep.subr.bf16.mxu0 %v10292_v61  ;;  %v6249_v26 = vld [vmem:[%s18173_s12 + $0x1f0] sm:$0xff]  ;;  %v6234_v40 = vld [vmem:[%s18173_s12 + $0x178] sm:$0xff] }
 0xa11   :  { %v6250_v61 = vld [vmem:[%s18173_s12 + $0x1f8] sm:$0xff]  ;;  %v10266_v16 = vcombine.high %v6233_v63, %v6249_v26  ;;  %v10265_v20 = vcombine.low %v6233_v63, %v6249_v26  ;;  %v10881_v63 = vpack.c.bf16 %v9698_v12, %v9696_v25 }
 0xa12   :  { %v10268_v51 = vcombine.high %v6234_v40, %v6250_v61  ;;  %v10267_v45 = vcombine.low %v6234_v40, %v6250_v61 }
 0xa13   :  { %8803 = vmatpush1.bf16.msra.mxu1 %v10289_v30  ;;  %8844 = vmatpush1.bf16.msra.mxu0 %v10291_v37  ;;  %v6265_v30 = vld [vmem:[%s18173_s12 + $0x270] sm:$0xff] }
 0xa14   :  { %8804 = vmatprep.subr.bf16.mxu1 %v10322_v52  ;;  %8845 = vmatprep.subr.bf16.mxu0 %v10324_v41  ;;  %v6281_v37 = vld [vmem:[%s18173_s12 + $0x2f0] sm:$0xff]  ;;  %v6266_v52 = vld [vmem:[%s18173_s12 + $0x278] sm:$0xff] }
 0xa15   :  { %v6282_v41 = vld [vmem:[%s18173_s12 + $0x2f8] sm:$0xff]  ;;  %v10298_v1 = vcombine.high %v6265_v30, %v6281_v37 }
 0xa16   :  { %v10300_v59 = vcombine.high %v6266_v52, %v6282_v41 }
 0xa17   :  { %8805 = vmatpush1.bf16.msra.mxu1 %v10321_v4  ;;  %8846 = vmatpush1.bf16.msra.mxu0 %v10323_v18  ;;  %v6297_v4 = vld [vmem:[%s18173_s12 + $0x370] sm:$0xff] }
 0xa18   :  { %8880 = vmatprep.subr.bf16.mxu1 %v10230_v62  ;;  %8921 = vmatprep.subr.bf16.mxu0 %v10232_v14  ;;  %v6313_v14 = vld [vmem:[%s18173_s12 + $0x3f0] sm:$0xff] }
 0xa19   :  { %v10330_v21 = vcombine.high %v6297_v4, %v6313_v14 }
 0xa1a   :  { %10343 = vmatmul.mubr.msk.bf16.vlgmr.msra.gmra.mrb[152].mxu1 %vm822_vm2, %v16541_v0  ;;  %10344 = vmatmul.mubr.msk.bf16.vlgmr.msra.gmra.mrb[148].mxu0 %vm822_vm2, %v16541_v0 }
 0xa1b   :  { %8881 = vmatpush1.bf16.msra.mxu1 %v10229_v55  ;;  %8922 = vmatpush1.bf16.msra.mxu0 %v10231_v36 }
 0xa1c   :  { %8882 = vmatprep.subr.bf16.mxu1 %v10262_v31  ;;  %8923 = vmatprep.subr.bf16.mxu0 %v10264_v33  ;;  %v10297_v31 = vcombine.low %v6265_v30, %v6281_v37  ;;  %v10299_v33 = vcombine.low %v6266_v52, %v6282_v41 }
 0xa1d   :  { %v17282_v39 = vpop.f32.mrb[100].mxu1  ;;  %v17284_v3 = vpop.f32.mrb[96].mxu0  ;;  %8912 = vmatprep.mubr.bf16.mxu1 %v19121_v43  ;;  %8953 = vmatprep.mubr.bf16.mxu0 %v19121_v43 }
 0xa1e   :  { %v17297_v13 = vpop.f32.mrb[101].mxu1  ;;  %v17299_v54 = vpop.f32.mrb[97].mxu0 }
 0xa1f   :  { %8883 = vmatpush1.bf16.msra.mxu1 %v10261_v50  ;;  %8924 = vmatpush1.bf16.msra.mxu0 %v10263_v23  ;;  %v7127_v6 = vpop.f32.mrb[102].mxu1  ;;  %v7168_v35 = vpop.f32.mrb[98].mxu0  ;;  %v9691_v50 = vld [vmem:[%s18176_s15 + $0x18] sm:$0xff]  ;;  %v10329_v23 = vcombine.low %v6297_v4, %v6313_v14 }
 0xa20   :  { %v7128_v5 = vpop.f32.mrb[103].mxu1  ;;  %v7169_v28 = vpop.f32.mrb[99].mxu0  ;;  %8884 = vmatprep.subr.bf16.mxu1 %v10294_v2  ;;  %8925 = vmatprep.subr.bf16.mxu0 %v10296_v22  ;;  %v10331_v2 = vcombine.low %v6298_v60, %v6314_v10  ;;  %v10873_v6 = vpack.c.bf16 %v9690_v8, %v9688_v15  ;;  %v10875_v35 = vpack.c.bf16 %v9695_v47, %v9693_v7 }
 0xa21   :  { %v9697_v5 = vld [vmem:[%s18176_s15 + $0x48] sm:$0xff]  ;;  %v9699_v28 = vld [vmem:[%s18176_s15 + $0x58] sm:$0xff] }
 0xa23   :  { %8885 = vmatpush1.bf16.msra.mxu1 %v10293_v38  ;;  %8926 = vmatpush1.bf16.msra.mxu0 %v10295_v48  ;;  %v9692_v38 = vld [vmem:[%s18176_s15 + $0x20] sm:$0xff]  ;;  %v9694_v48 = vld [vmem:[%s18176_s15 + $0x30] sm:$0xff] }
 0xa24   :  { %8886 = vmatprep.subr.bf16.mxu1 %v10326_v24  ;;  %8927 = vmatprep.subr.bf16.mxu0 %v10328_v49  ;;  %v10877_v24 = vpack.c.bf16 %v9694_v48, %v9692_v38  ;;  %v10879_v49 = vpack.c.bf16 %v9699_v28, %v9697_v5  ;;  %v9809_v38 = vld [vmem:[%s18178_s17 + $0x88] sm:$0xff]  ;;  %v9792_v48 = vld [vmem:[%s18178_s17] sm:$0xff] }
 0xa25   :  { %v9793_v28 = vld [vmem:[%s18178_s17 + $0x8] sm:$0xff] }
 0xa26   :  { %v10889_v25 = vpack.c.bf16 %v9793_v28, %v9792_v48  ;;  %v9819_v48 = vld [vmem:[%s18178_s17 + $0xd8] sm:$0xff] }
 0xa27   :  { %8887 = vmatpush1.bf16.msra.mxu1 %v10325_v56  ;;  %8928 = vmatpush1.bf16.msra.mxu0 %v10327_v11 }
 0xa28   :  { %8962 = vmatprep.subr.bf16.mxu1 %v10234_v29  ;;  %9003 = vmatprep.subr.bf16.mxu0 %v10236_v46 }
 0xa2a   :  { %10345 = vmatmul.mubr.msk.bf16.vlgmr.msra.gmra.mrb[156].mxu1 %vm822_vm2, %v16541_v0  ;;  %10346 = vmatmul.mubr.msk.bf16.vlgmr.msra.gmra.mrb[152].mxu0 %vm822_vm2, %v16541_v0 }
 0xa2b   :  { %8963 = vmatpush1.bf16.msra.mxu1 %v10233_v57  ;;  %9004 = vmatpush1.bf16.msra.mxu0 %v10235_v44  ;;  %v9700_v57 = vld [vmem:[%s18176_s15 + $0x60] sm:$0xff]  ;;  %v9702_v44 = vld [vmem:[%s18176_s15 + $0x70] sm:$0xff] }
 0xa2c   :  { %8964 = vmatprep.subr.bf16.mxu1 %v10266_v16  ;;  %9005 = vmatprep.subr.bf16.mxu0 %v10268_v51  ;;  %v10885_v16 = vpack.c.bf16 %v9702_v44, %v9700_v57 }
 0xa2d   :  { %v17344_v18 = vpop.f32.mrb[104].mxu1  ;;  %v17346_v62 = vpop.f32.mrb[100].mxu0  ;;  %8994 = vmatprep.mubr.bf16.mxu1 %v19121_v43  ;;  %9035 = vmatprep.mubr.bf16.mxu0 %v19121_v43  ;;  %v9689_v43 = vld [vmem:[%s18176_s15 + $0x8] sm:$0xff] }
 0xa2e   :  { %v17359_v42 = vpop.f32.mrb[105].mxu1  ;;  %v17361_v27 = vpop.f32.mrb[101].mxu0  ;;  %v10871_v22 = vpack.c.bf16 %v9691_v50, %v9689_v43 }
 0xa2f   :  { %v7209_v55 = vpop.f32.mrb[106].mxu1  ;;  %v7250_v36 = vpop.f32.mrb[102].mxu0  ;;  %8965 = vmatpush1.bf16.msra.mxu1 %v10265_v20  ;;  %9006 = vmatpush1.bf16.msra.mxu0 %v10267_v45 }
 0xa30   :  { %v7210_v58 = vpop.f32.mrb[107].mxu1  ;;  %v7251_v9 = vpop.f32.mrb[103].mxu0  ;;  %8966 = vmatprep.subr.bf16.mxu1 %v10298_v1  ;;  %9007 = vmatprep.subr.bf16.mxu0 %v10300_v59 }
 0xa33   :  { %8967 = vmatpush1.bf16.msra.mxu1 %v10297_v31  ;;  %9008 = vmatpush1.bf16.msra.mxu0 %v10299_v33 }
 0xa34   :  { %8968 = vmatprep.subr.bf16.mxu1 %v10330_v21  ;;  %9009 = vmatprep.subr.bf16.mxu0 %v10332_v19 }
 0xa37   :  { %8969 = vmatpush1.bf16.msra.mxu1 %v10329_v23  ;;  %9010 = vmatpush1.bf16.msra.mxu0 %v10331_v2 }
 0xa38   :  { %10872 = vmatprep.subr.bf16.mxu1 %v10871_v22 }
 0xa3a   :  { %10347 = vmatmul.mubr.msk.bf16.vlgmr.msra.gmra.mrb[160].mxu1 %vm822_vm2, %v16541_v0  ;;  %10348 = vmatmul.mubr.msk.bf16.vlgmr.msra.gmra.mrb[156].mxu0 %vm822_vm2, %v16541_v0  ;;  %v9701_v0 = vld [vmem:[%s18176_s15 + $0x68] sm:$0xff] }
 0xa3b   :  { %10874 = vmatpush1.bf16.msra.mxu1 %v10873_v6  ;;  %9783 = vmatprep.mubr.f32.mxu1 %v11616_v32  ;;  %v9703_v32 = vld [vmem:[%s18176_s15 + $0x78] sm:$0xff] }
 0xa3c   :  { %10876 = vmatprep.subr.bf16.mxu1 %v10875_v35  ;;  %v10883_v61 = vpack.c.bf16 %v9703_v32, %v9701_v0  ;;  %v9808_v35 = vld [vmem:[%s18178_s17 + $0x80] sm:$0xff]  ;;  %v9794_v0 = vld [vmem:[%s18178_s17 + $0x10] sm:$0xff]  ;;  %v9795_v32 = vld [vmem:[%s18178_s17 + $0x18] sm:$0xff] }
 0xa3d   :  { %v17404_v53 = vpop.f32.mrb[108].mxu1  ;;  %v17406_v17 = vpop.f32.mrb[104].mxu0  ;;  %v10887_v5 = vpack.c.bf16 %v9809_v38, %v9808_v35  ;;  %v9801_v35 = vld [vmem:[%s18178_s17 + $0x48] sm:$0xff]  ;;  %v9818_v38 = vld [vmem:[%s18178_s17 + $0xd0] sm:$0xff] }
 0xa3e   :  { %v17414_v56 = vpop.f32.mrb[109].mxu1  ;;  %v17416_v11 = vpop.f32.mrb[105].mxu0  ;;  %v10907_v28 = vpack.c.bf16 %v9819_v48, %v9818_v38 }
 0xa3f   :  { %v7291_v29 = vpop.f32.mrb[110].mxu1  ;;  %v7332_v46 = vpop.f32.mrb[106].mxu0  ;;  %10878 = vmatpush1.bf16.msra.mxu1 %v10877_v24  ;;  %v9810_v24 = vld [vmem:[%s18178_s17 + $0x90] sm:$0xff]  ;;  %10888 = vmatprep.subr.bf16.mxu0 %v10887_v5 }
 0xa40   :  { %v7292_v26 = vpop.f32.mrb[111].mxu1  ;;  %v7333_v40 = vpop.f32.mrb[107].mxu0  ;;  %10880 = vmatprep.subr.bf16.mxu1 %v10879_v49  ;;  %v9811_v49 = vld [vmem:[%s18178_s17 + $0x98] sm:$0xff]  ;;  %v9812_v29 = vld [vmem:[%s18178_s17 + $0xa0] sm:$0xff]  ;;  %v9813_v46 = vld [vmem:[%s18178_s17 + $0xa8] sm:$0xff]  ;;  %10890 = vmatpush3.bf16.msra.mxu0 %v10889_v25 }
 0xa41   :  { %v10891_v12 = vpack.c.bf16 %v9811_v49, %v9810_v24  ;;  %v10895_v26 = vpack.c.bf16 %v9813_v46, %v9812_v29  ;;  %v9802_v24 = vld [vmem:[%s18178_s17 + $0x50] sm:$0xff]  ;;  %v9803_v49 = vld [vmem:[%s18178_s17 + $0x58] sm:$0xff]  ;;  %v9820_v25 = vld [vmem:[%s18178_s17 + $0xe0] sm:$0xff] }
 0xa43   :  { %10882 = vmatpush1.bf16.msra.mxu1 %v10881_v63  ;;  %v10893_v63 = vpack.c.bf16 %v9795_v32, %v9794_v0  ;;  %10892 = vmatprep.subr.bf16.mxu0 %v10891_v12  ;;  %v9821_v12 = vld [vmem:[%s18178_s17 + $0xe8] sm:$0xff] }
 0xa44   :  { %10884 = vmatprep.subr.bf16.mxu1 %v10883_v61 }
 0xa45   :  { %10894 = vmatpush3.bf16.msra.mxu0 %v10893_v63 }
 0xa46   :  { %10896 = vmatprep.subr.bf16.mxu0 %v10895_v26 }
 0xa47   :  { %10886 = vmatpush1.bf16.msra.mxu1 %v10885_v16 }
 0xa4a   :  { %10349 = vmatmul.mubr.msk.f32.vlgmr.msra.gmra.mrb[98].mxu1 %vm822_vm2, %v16543_v34 }
 0xa4d   :  { %v17426_v51 = vpop.f32.mrb[112].mxu1  ;;  %v17428_v30 = vpop.f32.mrb[108].mxu0 }
 0xa4e   :  { %v17430_v37 = vpop.f32.mrb[113].mxu1  ;;  %v17432_v52 = vpop.f32.mrb[109].mxu0 }
 0xa4f   :  { %v7373_v41 = vpop.f32.mrb[114].mxu1  ;;  %v7414_v20 = vpop.f32.mrb[110].mxu0 }
 0xa50   :  { %v7374_v45 = vpop.f32.mrb[115].mxu1  ;;  %v7415_v1 = vpop.f32.mrb[111].mxu0 }
 0xa51   :  { %v9796_v1 = vld [vmem:[%s18178_s17 + $0x20] sm:$0xff] }
 0xa5d   :  { %v17434_v59 = vpop.f32.mrb[116].mxu1  ;;  %v17436_v4 = vpop.f32.mrb[112].mxu0 }
 0xa5e   :  { %v17438_v14 = vpop.f32.mrb[117].mxu1  ;;  %v17440_v60 = vpop.f32.mrb[113].mxu0 }
 0xa5f   :  { %v7455_v34 = vpop.f32.mrb[118].mxu1  ;;  %v7496_v10 = vpop.f32.mrb[114].mxu0 }
 0xa60   :  { %v7456_v55 = vpop.f32.mrb[119].mxu1  ;;  %v7497_v36 = vpop.f32.mrb[115].mxu0  ;;  %v9797_v34 = vld [vmem:[%s18178_s17 + $0x28] sm:$0xff] }
 0xa61   :  { %v10897_v10 = vpack.c.bf16 %v9797_v34, %v9796_v1  ;;  %v9814_v55 = vld [vmem:[%s18178_s17 + $0xb0] sm:$0xff]  ;;  %v9815_v36 = vld [vmem:[%s18178_s17 + $0xb8] sm:$0xff]  ;;  %v10911_v34 = vpack.c.bf16 %v9821_v12, %v9820_v25 }
 0xa63   :  { %10898 = vmatpush3.bf16.msra.mxu0 %v10897_v10 }
 0xa6d   :  { %v17442_v31 = vpop.f32.mrb[120].mxu1  ;;  %v17444_v33 = vpop.f32.mrb[116].mxu0 }
 0xa6e   :  { %v17446_v58 = vpop.f32.mrb[121].mxu1  ;;  %v17448_v9 = vpop.f32.mrb[117].mxu0 }
 0xa6f   :  { %v7537_v21 = vpop.f32.mrb[122].mxu1  ;;  %v7578_v19 = vpop.f32.mrb[118].mxu0 }
 0xa70   :  { %v7538_v43 = vpop.f32.mrb[123].mxu1  ;;  %v7579_v50 = vpop.f32.mrb[119].mxu0  ;;  %v9798_v21 = vld [vmem:[%s18178_s17 + $0x30] sm:$0xff]  ;;  %v10899_v19 = vpack.c.bf16 %v9815_v36, %v9814_v55  ;;  %v9805_v55 = vld [vmem:[%s18178_s17 + $0x68] sm:$0xff] }
 0xa71   :  { %v9799_v43 = vld [vmem:[%s18178_s17 + $0x38] sm:$0xff]  ;;  %v9816_v50 = vld [vmem:[%s18178_s17 + $0xc0] sm:$0xff] }
 0xa72   :  { %10900 = vmatprep.subr.bf16.mxu0 %v10899_v19  ;;  %v9806_v19 = vld [vmem:[%s18178_s17 + $0x70] sm:$0xff] }
 0xa7d   :  { %v17450_v23 = vpop.f32.mrb[124].mxu1  ;;  %v17452_v2 = vpop.f32.mrb[120].mxu0 }
 0xa7e   :  { %v17454_v22 = vpop.f32.mrb[125].mxu1  ;;  %v17456_v15 = vpop.f32.mrb[121].mxu0 }
 0xa7f   :  { %v7619_v8 = vpop.f32.mrb[126].mxu1  ;;  %v7660_v7 = vpop.f32.mrb[122].mxu0 }
 0xa80   :  { %v7620_v47 = vpop.f32.mrb[127].mxu1  ;;  %v7661_v6 = vpop.f32.mrb[123].mxu0  ;;  %v9817_v8 = vld [vmem:[%s18178_s17 + $0xc8] sm:$0xff]  ;;  %v10901_v7 = vpack.c.bf16 %v9799_v43, %v9798_v21  ;;  %v9807_v43 = vld [vmem:[%s18178_s17 + $0x78] sm:$0xff] }
 0xa81   :  { %v10903_v47 = vpack.c.bf16 %v9817_v8, %v9816_v50  ;;  %v9800_v6 = vld [vmem:[%s18178_s17 + $0x40] sm:$0xff]  ;;  %v10917_v50 = vpack.c.bf16 %v9807_v43, %v9806_v19 }
 0xa82   :  { %10902 = vmatpush3.bf16.msra.mxu0 %v10901_v7  ;;  %v10905_v5 = vpack.c.bf16 %v9801_v35, %v9800_v6 }
 0xa83   :  { %10904 = vmatprep.subr.bf16.mxu0 %v10903_v47 }
 0xa86   :  { %10906 = vmatpush3.bf16.msra.mxu0 %v10905_v5 }
 0xa87   :  { %10908 = vmatprep.subr.bf16.mxu0 %v10907_v28 }
 0xa8d   :  { %v17488_v40 = vpop.f32.mrb[128].mxu1  ;;  %v17490_v61 = vpop.f32.mrb[124].mxu0 }
 0xa8e   :  { %19141 = vst [vmem:[#allocation62_spill] sm:$0xff] %v17490_v61  ;;  %v17492_v57 = vpop.f32.mrb[129].mxu1  ;;  %v17494_v44 = vpop.f32.mrb[125].mxu0 }
 0xa8f   :  { %19142 = vst [vmem:[#allocation78_spill] sm:$0xff] %v17492_v57  ;;  %19143 = vst [vmem:[#allocation21_spill] sm:$0xff] %v17494_v44  ;;  %v7701_v16 = vpop.f32.mrb[130].mxu1  ;;  %v7742_v41 = vpop.f32.mrb[126].mxu0 }
 0xa90   :  { %v7702_v20 = vpop.f32.mrb[131].mxu1  ;;  %v7743_v45 = vpop.f32.mrb[127].mxu0  ;;  %v10909_v16 = vpack.c.bf16 %v9803_v49, %v9802_v24 }
 0xa92   :  { %10910 = vmatpush3.bf16.msra.mxu0 %v10909_v16 }
 0xa93   :  { %10912 = vmatprep.subr.bf16.mxu0 %v10911_v34 }
 0xa9d   :  { %v8422_v0 = vpop.f32.mrb[132].mxu1  ;;  %v8463_v32 = vpop.f32.mrb[128].mxu0 }
 0xa9e   :  { %v17545_v29 = vadd.f32 %v8422_v0, %v17282_v39  ;;  %v17548_v46 = vadd.f32 %v8463_v32, %v17284_v3  ;;  %v8424_v63 = vpop.f32.mrb[133].mxu1  ;;  %v8465_v26 = vpop.f32.mrb[129].mxu0  ;;  %v9804_v3 = vld [vmem:[%s18178_s17 + $0x60] sm:$0xff] }
 0xa9f   :  { %v17551_v41 = vadd.f32 %v8424_v63, %v17297_v13  ;;  %v17554_v20 = vadd.f32 %v8465_v26, %v17299_v54  ;;  %v8426_v45 = vpop.f32.mrb[134].mxu1  ;;  %v8467_v1 = vpop.f32.mrb[130].mxu0  ;;  %v9822_v13 = vld [vmem:[%s18178_s17 + $0xf0] sm:$0xff]  ;;  %v9823_v54 = vld [vmem:[%s18178_s17 + $0xf8] sm:$0xff]  ;;  %v10913_v36 = vpack.c.bf16 %v9805_v55, %v9804_v3 }
 0xaa0   :  { %v8427_v10 = vpop.f32.mrb[135].mxu1  ;;  %v8468_v39 = vpop.f32.mrb[131].mxu0  ;;  %v10915_v21 = vpack.c.bf16 %v9823_v54, %v9822_v13 }
 0xaa1   :  { %10914 = vmatpush3.bf16.msra.mxu0 %v10913_v36 }
 0xaa2   :  { %10916 = vmatprep.subr.bf16.mxu0 %v10915_v21 }
 0xaa5   :  { %10918 = vmatpush3.bf16.msra.mxu0 %v10917_v50 }
 0xaad   :  { %v8504_v8 = vpop.f32.mrb[136].mxu1  ;;  %v8545_v7 = vpop.f32.mrb[132].mxu0 }
 0xaae   :  { %v17575_v47 = vadd.f32 %v8504_v8, %v17344_v18  ;;  %v17578_v6 = vadd.f32 %v8545_v7, %v17346_v62  ;;  %v8506_v35 = vpop.f32.mrb[137].mxu1  ;;  %v8547_v38 = vpop.f32.mrb[133].mxu0 }
 0xaaf   :  { %v17581_v48 = vadd.f32 %v8506_v35, %v17359_v42  ;;  %v17584_v5 = vadd.f32 %v8547_v38, %v17361_v27  ;;  %v8508_v28 = vpop.f32.mrb[138].mxu1  ;;  %v8549_v24 = vpop.f32.mrb[134].mxu0 }
 0xab0   :  { %v8509_v49 = vpop.f32.mrb[139].mxu1  ;;  %v8550_v25 = vpop.f32.mrb[135].mxu0  ;;  %v9052_v28 = vlaneseq }
 0xab2   :  { %v17622_v24 = vshrl.u32 %v9052_v28, 7 }
 0xab4   :  { %19144 = vst [vmem:[#allocation22_spill] sm:$0xff] %v17622_v24 }
 0xabd   :  { %v8586_v12 = vpop.f32.mrb[140].mxu1  ;;  %v8627_v0 = vpop.f32.mrb[136].mxu0 }
 0xabe   :  { %v17587_v18 = vadd.f32 %v8586_v12, %v17404_v53  ;;  %v17590_v62 = vadd.f32 %v8627_v0, %v17406_v17  ;;  %v8588_v32 = vpop.f32.mrb[141].mxu1  ;;  %v8629_v63 = vpop.f32.mrb[137].mxu0  ;;  %v17634_v0 = vsub.s32 0, %v17622_v24 }
 0xabf   :  { %v17593_v42 = vadd.f32 %v8588_v32, %v17414_v56  ;;  %v17596_v27 = vadd.f32 %v8629_v63, %v17416_v11  ;;  %v8590_v26 = vpop.f32.mrb[142].mxu1  ;;  %v8631_v16 = vpop.f32.mrb[138].mxu0  ;;  %v17637_v32 = vsub.s32 2, %v17622_v24 }
 0xac0   :  { %v8591_v45 = vpop.f32.mrb[143].mxu1  ;;  %v8632_v1 = vpop.f32.mrb[139].mxu0  ;;  %v17646_v16 = vsub.s32 1, %v17622_v24 }
 0xac1   :  { %v17649_v45 = vsub.s32 3, %v17622_v24  ;;  %v17652_v1 = vsub.s32 4, %v17622_v24 }
 0xacd   :  { %v8668_v34 = vpop.f32.mrb[144].mxu1  ;;  %v8709_v10 = vpop.f32.mrb[140].mxu0 }
 0xace   :  { %v17599_v53 = vadd.f32 %v8668_v34, %v17426_v51  ;;  %v17602_v17 = vadd.f32 %v8709_v10, %v17428_v30  ;;  %v8670_v39 = vpop.f32.mrb[145].mxu1  ;;  %v8711_v3 = vpop.f32.mrb[141].mxu0  ;;  %v17655_v34 = vsub.s32 6, %v17622_v24 }
 0xacf   :  { %v17605_v56 = vadd.f32 %v8670_v39, %v17430_v37  ;;  %v17608_v11 = vadd.f32 %v8711_v3, %v17432_v52  ;;  %v8672_v55 = vpop.f32.mrb[146].mxu1  ;;  %v8713_v13 = vpop.f32.mrb[142].mxu0  ;;  %v17658_v39 = vsub.s32 5, %v17622_v24  ;;  %v17666_v3 = vld [vmem:[%s18175_s14 + $0x8] sm:$0xff] }
 0xad0   :  { %v8673_v54 = vpop.f32.mrb[147].mxu1  ;;  %v8714_v36 = vpop.f32.mrb[143].mxu0  ;;  %v9099_v28 = vrot.slane %v17666_v3, %v17649_v45 }
 0xadd   :  { %v8750_v21 = vpop.f32.mrb[148].mxu1  ;;  %v8791_v19 = vpop.f32.mrb[144].mxu0 }
 0xade   :  { %v17611_v51 = vadd.f32 %v8750_v21, %v17434_v59  ;;  %v17614_v30 = vadd.f32 %v8791_v19, %v17436_v4  ;;  %v8752_v43 = vpop.f32.mrb[149].mxu1  ;;  %v8793_v50 = vpop.f32.mrb[145].mxu0 }
 0xadf   :  { %v17617_v37 = vadd.f32 %v8752_v43, %v17438_v14  ;;  %v17620_v52 = vadd.f32 %v8793_v50, %v17440_v60  ;;  %v8754_v8 = vpop.f32.mrb[150].mxu1  ;;  %v8795_v7 = vpop.f32.mrb[146].mxu0  ;;  %v9044_v60 = vld [vmem:[%s18175_s14] sm:$0xff]  ;;  %v17677_v43 = vld [vmem:[%s18175_s14 + $0x10] sm:$0xff] }
 0xae0   :  { %v8755_v35 = vpop.f32.mrb[151].mxu1  ;;  %v8796_v38 = vpop.f32.mrb[147].mxu0  ;;  %v9055_v55 = vrot.slane %v9044_v60, %v17634_v0  ;;  %v9063_v13 = vrot.slane %v9044_v60, %v17637_v32  ;;  %v9059_v54 = vrot.slane %v9044_v60, %v17646_v16  ;;  %v9067_v36 = vrot.slane %v9044_v60, %v17649_v45 }
 0xae1   :  { %v9071_v21 = vrot.slane %v9044_v60, %v17652_v1  ;;  %v9079_v19 = vrot.slane %v9044_v60, %v17655_v34  ;;  %v9075_v50 = vrot.slane %v9044_v60, %v17658_v39  ;;  %v9087_v7 = vrot.slane %v17666_v3, %v17634_v0 }
 0xae2   :  { %v9095_v35 = vrot.slane %v17666_v3, %v17637_v32  ;;  %v9091_v38 = vrot.slane %v17666_v3, %v17646_v16  ;;  %v17717_v44 = vadd.f32 %v9059_v54, %v17551_v41  ;;  %v9135_v61 = vrot.slane %v17677_v43, %v17652_v1 }
 0xae3   :  { %v9143_v41 = vrot.slane %v17677_v43, %v17655_v34 }
 0xae4   :  { %19147 = vst [vmem:[#allocation97_spill] sm:$0xff] %v17717_v44 }
 0xaed   :  { %v8832_v59 = vpop.f32.mrb[152].mxu1  ;;  %v8873_v49 = vpop.f32.mrb[148].mxu0 }
 0xaee   :  { %v17625_v4 = vadd.f32 %v8832_v59, %v17442_v31  ;;  %v17628_v25 = vadd.f32 %v8873_v49, %v17444_v33  ;;  %v8834_v14 = vpop.f32.mrb[153].mxu1  ;;  %v8875_v12 = vpop.f32.mrb[149].mxu0  ;;  %v9103_v59 = vrot.slane %v17666_v3, %v17652_v1  ;;  %v9111_v49 = vrot.slane %v17666_v3, %v17655_v34 }
 0xaef   :  { %v17640_v63 = vadd.f32 %v8834_v14, %v17446_v58  ;;  %v17643_v31 = vadd.f32 %v8875_v12, %v17448_v9  ;;  %v8836_v33 = vpop.f32.mrb[154].mxu1  ;;  %v8877_v26 = vpop.f32.mrb[150].mxu0  ;;  %v17661_v9 = vsub.s32 7, %v17622_v24  ;;  %v9107_v14 = vrot.slane %v17666_v3, %v17658_v39 }
 0xaf0   :  { %v8837_v10 = vpop.f32.mrb[155].mxu1  ;;  %v8878_v58 = vpop.f32.mrb[151].mxu0  ;;  %v9127_v33 = vrot.slane %v17677_v43, %v17637_v32  ;;  %v17702_v26 = vadd.f32 %v9055_v55, %v17545_v29  ;;  %v9131_v24 = vrot.slane %v17677_v43, %v17649_v45  ;;  %v17720_v29 = vadd.f32 %v9067_v36, %v17554_v20 }
 0xaf1   :  { %v9083_v8 = vrot.slane %v9044_v60, %v17661_v9  ;;  %v9115_v12 = vrot.slane %v17666_v3, %v17661_v9  ;;  %v9119_v60 = vrot.slane %v17677_v43, %v17634_v0  ;;  %v17705_v10 = vadd.f32 %v9063_v13, %v17548_v46  ;;  %v17714_v3 = vld [vmem:[%s18175_s14 + $0x18] sm:$0xff] }
 0xaf2   :  { %19145 = vst [vmem:[#allocation27_spill] sm:$0xff] %v17702_v26  ;;  %v9123_v58 = vrot.slane %v17677_v43, %v17646_v16  ;;  %19148 = vst [vmem:[#allocation38_spill] sm:$0xff] %v17720_v29  ;;  %v17723_v46 = vadd.f32 %v9071_v21, %v17575_v47  ;;  %v17726_v55 = vadd.f32 %v9079_v19, %v17578_v6  ;;  %v9246_v19 = vsel %vm9244_vm7, %v17717_v44, -inf }
 0xaf3   :  { %19146 = vst [vmem:[#allocation108_spill] sm:$0xff] %v17705_v10  ;;  %v17729_v13 = vadd.f32 %v9075_v50, %v17581_v48  ;;  %v17732_v57 = vadd.f32 %v9083_v8, %v17584_v5  ;;  %v9245_v5 = vsel %vm9244_vm7, %v17702_v26, -inf  ;;  %v9247_v54 = vsel %vm9244_vm7, %v17705_v10, -inf }
 0xaf4   :  { %19149 = vst [vmem:[#allocation28_spill] sm:$0xff] %v17723_v46  ;;  %19150 = vst [vmem:[#allocation106_spill] sm:$0xff] %v17726_v55  ;;  %v17751_v36 = vadd.f32 %v9087_v7, %v17587_v18  ;;  %v17754_v21 = vadd.f32 %v9095_v35, %v17590_v62  ;;  %v9248_v50 = vsel %vm9244_vm7, %v17720_v29, -inf  ;;  %v9249_v8 = vsel %vm9244_vm7, %v17723_v46, -inf }
 0xaf5   :  { %19151 = vst [vmem:[#allocation107_spill] sm:$0xff] %v17729_v13  ;;  %19152 = vst [vmem:[#allocation39_spill] sm:$0xff] %v17732_v57  ;;  %v9253_v48 = vsel %vm9244_vm7, %v17726_v55, -inf  ;;  %v9251_v18 = vsel %vm9244_vm7, %v17729_v13, -inf  ;;  %v9255_v62 = vsel %vm9244_vm7, %v17732_v57, -inf  ;;  %v17771_v10 = vadd.f32 %v9091_v38, %v17593_v42 }
 0xaf6   :  { %v17774_v46 = vadd.f32 %v9099_v28, %v17596_v27  ;;  %v9257_v57 = vsel %vm9244_vm7, %v17751_v36, -inf  ;;  %v17786_v42 = vadd.f32 %v9111_v49, %v17602_v17  ;;  %v9250_v28 = vmax.f32 %v9245_v5, %v9249_v8 }
 0xaf7   :  { %v9259_v49 = vsel %vm9244_vm7, %v17771_v10, -inf }
 0xaf8   :  { %v9258_v17 = vmax.f32 %v9250_v28, %v9257_v57 }
 0xafd   :  { %v8914_v6 = vpop.f32.mrb[156].mxu1  ;;  %v8955_v47 = vpop.f32.mrb[152].mxu0 }
 0xafe   :  { %v8915_v7 = vadd.f32 %v8914_v6, %v17450_v23  ;;  %v8956_v35 = vadd.f32 %v8955_v47, %v17452_v2  ;;  %v8916_v20 = vpop.f32.mrb[157].mxu1  ;;  %v8957_v29 = vpop.f32.mrb[153].mxu0  ;;  %v9261_v23 = vsel %vm9244_vm7, %v17754_v21, -inf  ;;  %v17783_v2 = vadd.f32 %v9103_v59, %v17599_v53 }
 0xaff   :  { %v8917_v55 = vadd.f32 %v8916_v20, %v17454_v22  ;;  %v8958_v44 = vadd.f32 %v8957_v29, %v17456_v15  ;;  %v8918_v13 = vpop.f32.mrb[158].mxu1  ;;  %v8959_v26 = vpop.f32.mrb[154].mxu0  ;;  %v9254_v22 = vmax.f32 %v9247_v54, %v9253_v48  ;;  %v17789_v15 = vadd.f32 %v9107_v14, %v17605_v56 }
 0xb00   :  { %v8919_v27 = vpop.f32.mrb[159].mxu1  ;;  %v8960_v38 = vpop.f32.mrb[155].mxu0  ;;  %v17792_v26 = vadd.f32 %v9115_v12, %v17608_v11  ;;  %v9252_v29 = vmax.f32 %v9246_v19, %v9251_v18  ;;  %v9256_v13 = vmax.f32 %v9248_v50, %v9255_v62  ;;  %v9155_v20 = vrot.slane %v17714_v3, %v17646_v16 }
 0xb01   :  { %v9163_v53 = vrot.slane %v17714_v3, %v17649_v45  ;;  %v9262_v59 = vmax.f32 %v9254_v22, %v9261_v23  ;;  %v9263_v56 = vsel %vm9244_vm7, %v17774_v46, -inf  ;;  %v9265_v11 = vsel %vm9244_vm7, %v17783_v2, -inf }
 0xb02   :  { %v9269_v14 = vsel %vm9244_vm7, %v17786_v42, -inf  ;;  %v17807_v12 = vadd.f32 %v9119_v60, %v17611_v51  ;;  %v17810_v47 = vadd.f32 %v9127_v33, %v17614_v30  ;;  %v9267_v57 = vsel %vm9244_vm7, %v17789_v15, -inf }
 0xb03   :  { %v9271_v45 = vsel %vm9244_vm7, %v17792_v26, -inf  ;;  %v17817_v6 = vadd.f32 %v9123_v58, %v17617_v37  ;;  %v17820_v48 = vadd.f32 %v9131_v24, %v17620_v52  ;;  %v9260_v5 = vmax.f32 %v9252_v29, %v9259_v49  ;;  %v19157_v49 = vld [vmem:[#allocation62_spill] sm:$0xff] }
 0xb04   :  { %v9264_v54 = vmax.f32 %v9256_v13, %v9263_v56  ;;  %v17823_v51 = vadd.f32 %v9135_v61, %v17625_v4  ;;  %v17826_v30 = vadd.f32 %v9143_v41, %v17628_v25  ;;  %v9266_v60 = vmax.f32 %v9258_v17, %v9265_v11 }
 0xb05   :  { %v9270_v33 = vmax.f32 %v9262_v59, %v9269_v14  ;;  %v9167_v19 = vrot.slane %v17714_v3, %v17652_v1  ;;  %v9175_v37 = vrot.slane %v17714_v3, %v17655_v34  ;;  %v9268_v58 = vmax.f32 %v9260_v5, %v9267_v57  ;;  %v19158_v57 = vld [vmem:[#allocation78_spill] sm:$0xff]  ;;  %v19159_v5 = vld [vmem:[#allocation21_spill] sm:$0xff] }
 0xb06   :  { %v9272_v50 = vmax.f32 %v9264_v54, %v9271_v45  ;;  %v9273_v52 = vsel %vm9244_vm7, %v17807_v12, -inf  ;;  %v9277_v61 = vsel %vm9244_vm7, %v17810_v47, -inf  ;;  %v9275_v24 = vsel %vm9244_vm7, %v17817_v6, -inf }
 0xb07   :  { %v9279_v4 = vsel %vm9244_vm7, %v17820_v48, -inf  ;;  %v19153_v25 = vrot.slane %v17677_v43, %v17658_v39  ;;  %v19154_v34 = vrot.slane %v17677_v43, %v17661_v9  ;;  %v9281_v8 = vsel %vm9244_vm7, %v17823_v51, -inf }
 0xb08   :  { %v9285_v18 = vsel %vm9244_vm7, %v17826_v30, -inf  ;;  %v19155_v62 = vrot.slane %v17714_v3, %v17634_v0  ;;  %v9274_v38 = vmax.f32 %v9266_v60, %v9273_v52  ;;  %v9278_v43 = vmax.f32 %v9270_v33, %v9277_v61 }
 0xb09   :  { %v17844_v1 = vadd.f32 %v19153_v25, %v17640_v63  ;;  %v17850_v41 = vadd.f32 %v19154_v34, %v17643_v31  ;;  %v19156_v63 = vrot.slane %v17714_v3, %v17637_v32  ;;  %v17866_v31 = vadd.f32 %v9155_v20, %v8917_v55 }
 0xb0a   :  { %v17859_v23 = vadd.f32 %v19155_v62, %v8915_v7  ;;  %v17868_v28 = vadd.f32 %v9163_v53, %v8958_v44  ;;  %v9276_v22 = vmax.f32 %v9268_v58, %v9275_v24  ;;  %v9280_v29 = vmax.f32 %v9272_v50, %v9279_v4 }
 0xb0b   :  { %v17864_v27 = vadd.f32 %v19156_v63, %v8956_v35  ;;  %v9171_v13 = vrot.slane %v17714_v3, %v17658_v39  ;;  %v9179_v7 = vrot.slane %v17714_v3, %v17661_v9  ;;  %v9282_v17 = vmax.f32 %v9274_v38, %v9281_v8 }
 0xb0c   :  { %v9286_v59 = vmax.f32 %v9278_v43, %v9285_v18  ;;  %v9283_v32 = vsel %vm9244_vm7, %v17844_v1, -inf  ;;  %v9287_v35 = vsel %vm9244_vm7, %v17850_v41, -inf  ;;  %v9289_v44 = vsel %vm9244_vm7, %v17859_v23, -inf }
 0xb0d   :  { %v8996_v55 = vpop.f32.mrb[160].mxu1  ;;  %v9037_v20 = vpop.f32.mrb[156].mxu0  ;;  %v9293_v53 = vsel %vm9244_vm7, %v17864_v27, -inf  ;;  %v9291_v11 = vsel %vm9244_vm7, %v17866_v31, -inf  ;;  %v9295_v14 = vsel %vm9244_vm7, %v17868_v28, -inf  ;;  %v9284_v58 = vmax.f32 %v9276_v22, %v9283_v32 }
 0xb0e   :  { %v8997_v39 = vadd.f32 %v8996_v55, %v17488_v40  ;;  %v9038_v9 = vadd.f32 %v9037_v20, %v19157_v49  ;;  %v8998_v3 = vpop.f32.mrb[161].mxu1  ;;  %v9039_v56 = vpop.f32.mrb[157].mxu0  ;;  %v9288_v50 = vmax.f32 %v9280_v29, %v9287_v35  ;;  %v9290_v4 = vmax.f32 %v9282_v17, %v9289_v44 }
 0xb0f   :  { %v8999_v45 = vadd.f32 %v8998_v3, %v19158_v57  ;;  %v9040_v54 = vadd.f32 %v9039_v56, %v19159_v5  ;;  %v9000_v60 = vpop.f32.mrb[162].mxu1  ;;  %v9041_v33 = vpop.f32.mrb[158].mxu0  ;;  %v9294_v25 = vmax.f32 %v9286_v59, %v9293_v53  ;;  %v9292_v18 = vmax.f32 %v9284_v58, %v9291_v11  ;;  %v9704_v59 = vld [vmem:[%s18177_s16] sm:$0x3]  ;;  %v19160_v56 = vld [vmem:[#allocation27_spill] sm:$0xff] }
 0xb10   :  { %v17890_v52 = vadd.f32 %v9167_v19, %v8997_v39  ;;  %v17892_v40 = vadd.f32 %v9175_v37, %v9038_v9  ;;  %v9001_v61 = vpop.f32.mrb[163].mxu1  ;;  %v9042_v24 = vpop.f32.mrb[159].mxu0  ;;  %v9296_v62 = vmax.f32 %v9288_v50, %v9295_v14  ;;  %v9709_v35 = vrot.slane %v9704_v59, %v17634_v0  ;;  %v19161_v14 = vld [vmem:[#allocation97_spill] sm:$0xff]  ;;  %v19162_v0 = vld [vmem:[#allocation108_spill] sm:$0xff] }
 0xb11   :  { %v17894_v34 = vadd.f32 %v9171_v13, %v8999_v45  ;;  %v17896_v8 = vadd.f32 %v9179_v7, %v9040_v54  ;;  %v9713_v55 = vrot.slane %v9704_v59, %v17646_v16  ;;  %v19163_v16 = vld [vmem:[#allocation38_spill] sm:$0xff]  ;;  %v19164_v54 = vld [vmem:[#allocation28_spill] sm:$0xff]  ;;  %v19165_v61 = vld [vmem:[#allocation107_spill] sm:$0xff] }
 0xb12   :  { %v9297_v63 = vsel %vm9244_vm7, %v17890_v52, -inf  ;;  %v9301_v38 = vsel %vm9244_vm7, %v17892_v40, -inf }
 0xb13   :  { %v9298_v19 = vmax.f32 %v9290_v4, %v9297_v63  ;;  %v9302_v43 = vmax.f32 %v9294_v25, %v9301_v38  ;;  %v9299_v37 = vsel %vm9244_vm7, %v17894_v34, -inf  ;;  %v9303_v22 = vsel %vm9244_vm7, %v17896_v8, -inf  ;;  %v19166_v25 = vld [vmem:[#allocation106_spill] sm:$0xff]  ;;  %v19167_v63 = vld [vmem:[#allocation39_spill] sm:$0xff] }
 0xb14   :  { %v9300_v29 = vmax.f32 %v9292_v18, %v9299_v37  ;;  %v9304_v13 = vmax.f32 %v9296_v62, %v9303_v22 }
 0xb16   :  { %v9305_v7 = vmax.f32 %v9298_v19, %v9300_v29  ;;  %v9306_v17 = vmax.f32 %v9302_v43, %v9304_v13 }
 0xb18   :  { %v9307_v32 = vmax.f32 %v9305_v7, %v9306_v17 }
 0xb1a   :  { %9308 = vmax.xlane.f32.xlu0 %v9307_v32 }
 0xb1d   :  { %v9785_v20 = vpop.f32.mrb[98].mxu1 }
 0xb1e   :  { %v9786_v44 = vadd.f32 %v9785_v20, %v9709_v35  ;;  %v9787_v53 = vpop.f32.mrb[99].mxu1 }
 0xb1f   :  { %v9788_v39 = vadd.f32 %v9787_v53, %v9713_v55 }
 0xb20   :  { %v9790_v9 = vmax.f32 %v9786_v44, 0.0 }
 0xb21   :  { %v9791_v49 = vmax.f32 %v9788_v39, 0.0 }
 0xb23   :  { %9895 = vmatprep.mubr.f32.mxu0 %v9791_v49 }
 0xb24   :  { %9896 = vmatmul.mubr.f32.vlgmr.msra.gmra.mrb[160].mxu0 %v9790_v9 }
 0xba7   :  { %v17911_v3 = vpop.xlane.xlu0 %9308 }
 0xba8   :  { %v9310_v11 = vsub.f32 %v19160_v56, %v17911_v3  ;;  %v9311_v57 = vsub.f32 %v19161_v14, %v17911_v3  ;;  %v9312_v45 = vsub.f32 %v19162_v0, %v17911_v3  ;;  %v9313_v5 = vsub.f32 %v19163_v16, %v17911_v3 }
 0xba9   :  { %v9314_v60 = vsub.f32 %v19164_v54, %v17911_v3  ;;  %v9315_v24 = vsub.f32 %v19165_v61, %v17911_v3  ;;  %v9316_v18 = vsub.f32 %v19166_v25, %v17911_v3  ;;  %v9317_v38 = vsub.f32 %v19167_v63, %v17911_v3 }
 0xbaa   :  { %v9342_v33 = vmul.f32 1.442695, %v9310_v11  ;;  %v9344_v58 = vmul.f32 1.442695, %v9311_v57  ;;  %v9346_v50 = vmul.f32 1.442695, %v9312_v45  ;;  %v9318_v43 = vsub.f32 %v17751_v36, %v17911_v3 }
 0xbab   :  { %v9348_v4 = vmul.f32 1.442695, %v9313_v5  ;;  %v9350_v62 = vmul.f32 1.442695, %v9314_v60  ;;  %v9352_v19 = vmul.f32 1.442695, %v9315_v24  ;;  %v9319_v22 = vsub.f32 %v17771_v10, %v17911_v3 }
 0xbac   :  { %11497 = vpow2.f32 %v9342_v33  ;;  %v9354_v37 = vmul.f32 1.442695, %v9316_v18  ;;  %v9356_v29 = vmul.f32 1.442695, %v9317_v38  ;;  %v9320_v13 = vsub.f32 %v17754_v21, %v17911_v3 }
 0xbad   :  { %11499 = vpow2.f32 %v9344_v58  ;;  %v9358_v7 = vmul.f32 1.442695, %v9318_v43  ;;  %v9321_v32 = vsub.f32 %v17774_v46, %v17911_v3  ;;  %v9360_v36 = vmul.f32 1.442695, %v9319_v22 }
 0xbae   :  { %11501 = vpow2.f32 %v9346_v50  ;;  %v9322_v20 = vsub.f32 %v17783_v2, %v17911_v3  ;;  %v9362_v44 = vmul.f32 1.442695, %v9320_v13  ;;  %v9323_v49 = vsub.f32 %v17789_v15, %v17911_v3 }
 0xbaf   :  { %11503 = vpow2.f32 %v9348_v4  ;;  %v9364_v9 = vmul.f32 1.442695, %v9321_v32  ;;  %v9324_v2 = vsub.f32 %v17786_v42, %v17911_v3  ;;  %v9325_v15 = vsub.f32 %v17792_v26, %v17911_v3 }
 0xbb0   :  { %11505 = vpow2.f32 %v9350_v62  ;;  %v9366_v57 = vmul.f32 1.442695, %v9322_v20  ;;  %v9368_v5 = vmul.f32 1.442695, %v9323_v49  ;;  %v9326_v42 = vsub.f32 %v17807_v12, %v17911_v3 }
 0xbb1   :  { %11507 = vpow2.f32 %v9352_v19  ;;  %v9370_v58 = vmul.f32 1.442695, %v9324_v2  ;;  %v9327_v26 = vsub.f32 %v17817_v6, %v17911_v3  ;;  %v9372_v4 = vmul.f32 1.442695, %v9325_v15 }
 0xbb2   :  { %11509 = vpow2.f32 %v9354_v37  ;;  %v9328_v12 = vsub.f32 %v17810_v47, %v17911_v3  ;;  %v9374_v63 = vmul.f32 1.442695, %v9326_v42  ;;  %v9329_v6 = vsub.f32 %v17820_v48, %v17911_v3 }
 0xbb3   :  { %11511 = vpow2.f32 %v9356_v29  ;;  %v9376_v37 = vmul.f32 1.442695, %v9327_v26  ;;  %v9330_v47 = vsub.f32 %v17823_v51, %v17911_v3  ;;  %v9331_v48 = vsub.f32 %v17844_v1, %v17911_v3 }
 0xbb4   :  { %11513 = vpow2.f32 %v9358_v7  ;;  %v9378_v7 = vmul.f32 1.442695, %v9328_v12  ;;  %v9332_v51 = vsub.f32 %v17826_v30, %v17911_v3  ;;  %v9333_v1 = vsub.f32 %v17850_v41, %v17911_v3 }
 0xbb5   :  { %11515 = vpow2.f32 %v9360_v36  ;;  %v9334_v30 = vsub.f32 %v17859_v23, %v17911_v3  ;;  %v9335_v41 = vsub.f32 %v17866_v31, %v17911_v3  ;;  %v9336_v23 = vsub.f32 %v17864_v27, %v17911_v3 }
 0xbb6   :  { %v17935_v17 = vpop.eup %11497  ;;  %11517 = vpow2.f32 %v9362_v44  ;;  %v9337_v31 = vsub.f32 %v17868_v28, %v17911_v3  ;;  %v9338_v27 = vsub.f32 %v17890_v52, %v17911_v3  ;;  %v9339_v28 = vsub.f32 %v17894_v34, %v17911_v3 }
 0xbb7   :  { %v17937_v59 = vpop.eup %11499  ;;  %v9406_v35 = vsel %vm9244_vm7, %v17935_v17, 0.0  ;;  %11519 = vpow2.f32 %v9364_v9  ;;  %v9340_v52 = vsub.f32 %v17892_v40, %v17911_v3  ;;  %v9341_v34 = vsub.f32 %v17896_v8, %v17911_v3 }
 0xbb8   :  { %v17943_v10 = vpop.eup %11501  ;;  %v9407_v55 = vsel %vm9244_vm7, %v17937_v59, 0.0  ;;  %11521 = vpow2.f32 %v9366_v57 }
 0xbb9   :  { %v17947_v21 = vpop.eup %11503  ;;  %v9408_v53 = vadd.f32 %v9407_v55, %v9406_v35  ;;  %v9409_v46 = vsel %vm9244_vm7, %v17943_v10, 0.0  ;;  %11523 = vpow2.f32 %v9368_v5  ;;  %v9380_v55 = vmul.f32 1.442695, %v9329_v6 }
 0xbba   :  { %v17953_v39 = vpop.eup %11505  ;;  %v9411_v11 = vsel %vm9244_vm7, %v17947_v21, 0.0  ;;  %11525 = vpow2.f32 %v9370_v58  ;;  %v9402_v40 = vmul.f32 1.442695, %v9340_v52 }
 0xbbb   :  { %v9410_v56 = vadd.f32 %v9409_v46, %v9408_v53  ;;  %v17959_v14 = vpop.eup %11507  ;;  %v9413_v45 = vsel %vm9244_vm7, %v17953_v39, 0.0  ;;  %11527 = vpow2.f32 %v9372_v4  ;;  %v9382_v46 = vmul.f32 1.442695, %v9330_v47 }
 0xbbc   :  { %v17965_v16 = vpop.eup %11509  ;;  %v9415_v60 = vsel %vm9244_vm7, %v17959_v14, 0.0  ;;  %11529 = vpow2.f32 %v9374_v63 }
 0xbbd   :  { %v9412_v0 = vadd.f32 %v9411_v11, %v9410_v56  ;;  %v17971_v33 = vpop.eup %11511  ;;  %v9417_v61 = vsel %vm9244_vm7, %v17965_v16, 0.0  ;;  %11531 = vpow2.f32 %v9376_v37  ;;  %v9384_v11 = vmul.f32 1.442695, %v9331_v48 }
 0xbbe   :  { %v17977_v24 = vpop.eup %11513  ;;  %v9419_v18 = vsel %vm9244_vm7, %v17971_v33, 0.0  ;;  %11533 = vpow2.f32 %v9378_v7 }
 0xbbf   :  { %v9414_v54 = vadd.f32 %v9413_v45, %v9412_v0  ;;  %v17983_v62 = vpop.eup %11515  ;;  %v9421_v19 = vsel %vm9244_vm7, %v17977_v24, 0.0  ;;  %11535 = vpow2.f32 %v9380_v55  ;;  %v9386_v45 = vmul.f32 1.442695, %v9332_v51 }
 0xbc0   :  { %v17989_v43 = vpop.eup %11517  ;;  %v9423_v29 = vsel %vm9244_vm7, %v17983_v62, 0.0  ;;  %11537 = vpow2.f32 %v9382_v46 }
 0xbc1   :  { %v9416_v50 = vadd.f32 %v9415_v60, %v9414_v54  ;;  %v17995_v13 = vpop.eup %11519  ;;  %v9425_v36 = vsel %vm9244_vm7, %v17989_v43, 0.0  ;;  %11539 = vpow2.f32 %v9384_v11  ;;  %v9388_v60 = vmul.f32 1.442695, %v9333_v1 }
 0xbc2   :  { %v18001_v35 = vpop.eup %11521  ;;  %v9427_v44 = vsel %vm9244_vm7, %v17995_v13, 0.0  ;;  %11541 = vpow2.f32 %v9386_v45 }
 0xbc3   :  { %v9418_v25 = vadd.f32 %v9417_v61, %v9416_v50  ;;  %v18007_v53 = vpop.eup %11523  ;;  %v9429_v9 = vsel %vm9244_vm7, %v18001_v35, 0.0  ;;  %v9390_v61 = vmul.f32 1.442695, %v9334_v30  ;;  %11543 = vpow2.f32 %v9388_v60 }
 0xbc4   :  { %v18013_v56 = vpop.eup %11525  ;;  %v9431_v57 = vsel %vm9244_vm7, %v18007_v53, 0.0 }
 0xbc5   :  { %v9420_v38 = vadd.f32 %v9419_v18, %v9418_v25  ;;  %v18019_v0 = vpop.eup %11527  ;;  %v9433_v5 = vsel %vm9244_vm7, %v18013_v56, 0.0  ;;  %v9392_v18 = vmul.f32 1.442695, %v9335_v41  ;;  %11545 = vpow2.f32 %v9390_v61 }
 0xbc6   :  { %v18025_v54 = vpop.eup %11529  ;;  %v9435_v58 = vsel %vm9244_vm7, %v18019_v0, 0.0 }
 0xbc7   :  { %v9422_v22 = vadd.f32 %v9421_v19, %v9420_v38  ;;  %v18031_v50 = vpop.eup %11531  ;;  %v9437_v4 = vsel %vm9244_vm7, %v18025_v54, 0.0  ;;  %v9394_v19 = vmul.f32 1.442695, %v9336_v23  ;;  %11547 = vpow2.f32 %v9392_v18 }
 0xbc8   :  { %v18037_v25 = vpop.eup %11533  ;;  %v9439_v63 = vsel %vm9244_vm7, %v18031_v50, 0.0 }
 0xbc9   :  { %v9424_v32 = vadd.f32 %v9423_v29, %v9422_v22  ;;  %v18043_v38 = vpop.eup %11535  ;;  %v9441_v37 = vsel %vm9244_vm7, %v18037_v25, 0.0  ;;  %v9396_v29 = vmul.f32 1.442695, %v9337_v31  ;;  %11549 = vpow2.f32 %v9394_v19 }
 0xbca   :  { %v18049_v22 = vpop.eup %11537  ;;  %v9443_v7 = vsel %vm9244_vm7, %v18043_v38, 0.0 }
 0xbcb   :  { %v9426_v20 = vadd.f32 %v9425_v36, %v9424_v32  ;;  %v18055_v32 = vpop.eup %11539  ;;  %v9398_v36 = vmul.f32 1.442695, %v9338_v27  ;;  %v9445_v55 = vsel %vm9244_vm7, %v18049_v22, 0.0  ;;  %11551 = vpow2.f32 %v9396_v29  ;;  %v10350_v29 = vld [vmem:[#allocation2] ss:$0 sm:$0xff] }
 0xbcc   :  { %v9447_v46 = vsel %vm9244_vm7, %v18055_v32, 0.0 }
 0xbcd   :  { %v9428_v49 = vadd.f32 %v9427_v44, %v9426_v20  ;;  %v18061_v20 = vpop.eup %11541  ;;  %v9400_v44 = vmul.f32 1.442695, %v9339_v28  ;;  %11553 = vpow2.f32 %v9398_v36 }
 0xbce   :  { %v9449_v1 = vsel %vm9244_vm7, %v18061_v20, 0.0 }
 0xbcf   :  { %v9430_v2 = vadd.f32 %v9429_v9, %v9428_v49  ;;  %v18067_v49 = vpop.eup %11543  ;;  %11555 = vpow2.f32 %v9400_v44 }
 0xbd0   :  { %v18071_v11 = vpop.eup %11545  ;;  %v9451_v8 = vsel %vm9244_vm7, %v18067_v49, 0.0  ;;  %11557 = vpow2.f32 %v9402_v40 }
 0xbd1   :  { %v9432_v15 = vadd.f32 %v9431_v57, %v9430_v2  ;;  %v9404_v2 = vmul.f32 1.442695, %v9341_v34  ;;  %v18075_v3 = vpop.eup %11547  ;;  %v9453_v45 = vsel %vm9244_vm7, %v18071_v11, 0.0 }
 0xbd2   :  { %v9455_v41 = vsel %vm9244_vm7, %v18075_v3, 0.0 }
 0xbd3   :  { %v9434_v42 = vadd.f32 %v9433_v5, %v9432_v15  ;;  %v18079_v15 = vpop.eup %11549  ;;  %11559 = vpow2.f32 %v9404_v2 }
 0xbd5   :  { %v9436_v26 = vadd.f32 %v9435_v58, %v9434_v42  ;;  %v18083_v60 = vpop.eup %11551  ;;  %v9457_v58 = vsel %vm9244_vm7, %v18079_v15, 0.0 }
 0xbd7   :  { %v9438_v12 = vadd.f32 %v9437_v4, %v9436_v26  ;;  %v11554_v23 = vpop.eup %11553  ;;  %v9459_v26 = vsel %vm9244_vm7, %v18083_v60, 0.0 }
 0xbd8   :  { %v9461_v18 = vsel %vm9244_vm7, %v11554_v23, 0.0 }
 0xbd9   :  { %v9440_v6 = vadd.f32 %v9439_v63, %v9438_v12  ;;  %v11556_v4 = vpop.eup %11555 }
 0xbda   :  { %v11558_v12 = vpop.eup %11557  ;;  %v9463_v27 = vsel %vm9244_vm7, %v11556_v4, 0.0 }
 0xbdb   :  { %v9442_v47 = vadd.f32 %v9441_v37, %v9440_v6  ;;  %v9465_v28 = vsel %vm9244_vm7, %v11558_v12, 0.0 }
 0xbdd   :  { %v9444_v48 = vadd.f32 %v9443_v7, %v9442_v47  ;;  %v11560_v19 = vpop.eup %11559 }
 0xbde   :  { %v9467_v36 = vsel %vm9244_vm7, %v11560_v19, 0.0 }
 0xbdf   :  { %v9446_v51 = vadd.f32 %v9445_v55, %v9444_v48 }
 0xbe1   :  { %v9448_v9 = vadd.f32 %v9447_v46, %v9446_v51  ;;  %v11617_v51 = vmov 1983009808  }
 0xbe2   :  { %v9539_v46 = vunpack.c.l.s4 %v11617_v51 }
 0xbe3   :  { %v9450_v57 = vadd.f32 %v9449_v1, %v9448_v9  ;;  %v19168_v1 = vld [vmem:[#allocation22_spill] sm:$0xff] }
 0xbe4   :  { %v9540_v40 = vunpack.c.0.s8 %v9539_v46 }
 0xbe5   :  { %v9452_v30 = vadd.f32 %v9451_v8, %v9450_v57 }
 0xbe6   :  { %v18097_v2 = vsub.s32 %v9540_v40, %v19168_v1 }
 0xbe7   :  { %v9454_v5 = vadd.f32 %v9453_v45, %v9452_v30 }
 0xbe9   :  { %v9456_v42 = vadd.f32 %v9455_v41, %v9454_v5 }
 0xbeb   :  { %v9458_v61 = vadd.f32 %v9457_v58, %v9456_v42 }
 0xbed   :  { %v9460_v31 = vadd.f32 %v9459_v26, %v9458_v61 }
 0xbef   :  { %v9462_v63 = vadd.f32 %v9461_v18, %v9460_v31 }
 0xbf1   :  { %v9464_v6 = vadd.f32 %v9463_v27, %v9462_v63 }
 0xbf3   :  { %v9466_v7 = vadd.f32 %v9465_v28, %v9464_v6 }
 0xbf5   :  { %v9468_v48 = vadd.f32 %v9467_v36, %v9466_v7 }
 0xbf7   :  { %v10702_v37 = vpop.f32.mrb[160].mxu0  ;;  %9469 = vadd.xlane.f32.xlu1 %v9468_v48 }
 0xbf8   :  { %v10703_v47 = vpop.f32.mrb[161].mxu0 }
 0xbf9   :  { %v10704_v52 = vadd.f32 %v10703_v47, %v10702_v37 }
 0xbfb   :  { %v9898_v55 = vadd.f32 %v10704_v52, %v10350_v29 }
 0xbfd   :  { %11561 = vtanh.f32 %v9898_v55 }
 0xc07   :  { %v11562_v34 = vpop.eup %11561 }
 0xc08   :  { %9903 = vst.msk [vmem:[%s18181_s20] sm:$0x3] %vm9902_vm8, %v11562_v34  ;;  %s11618_s20 = smov [#allocation3]  }
 0xc09   :  { %s9910_s10 = sshll.u32 %s11618_s20, 4  ;;  %s9911_s10 = int_to_ptr.vmem [resolvable:$true] %s9910_s10 }
 0xc0a   :  { %s11582_s29 = scalar_lea.vmem %s9911_s10, 1024  ;;  %p11587_p1 = scmp.lt.s32.totalorder %s9911_s10, %s9911_s10 }
 0xc0b   :  { %p11583_p0 = scmp.ne.s32.totalorder %s9911_s10, %s11582_s29  ;;  %p11588_p2 = scmp.lt.s32.totalorder %s11582_s29, %s11582_s29 }
 0xc0d   :  { %p11589_p3 = por %p11588_p2, %p11587_p1 }
 0xc0f   :  { %p11590_p4 = pnand %p11589_p3, %p11583_p0 }
 0xc84   :  { %v9470_v44 = vpop.xlane.xlu1 %9469 }
 0xc85   :  { %11563 = vrcp.f32 %v9470_v44 }
 0xc8f   :  { %v11564_v9 = vpop.eup %11563 }
 0xc90   :  { %v18099_v57 = vmul.f32 %v11564_v9, %v11558_v12  ;;  %v18101_v8 = vmul.f32 %v11564_v9, %v11560_v19  ;;  %v9472_v30 = vmul.f32 %v11564_v9, %v17935_v17  ;;  %v9473_v45 = vmul.f32 %v11564_v9, %v17937_v59 }
 0xc91   :  { %v9474_v5 = vmul.f32 %v11564_v9, %v17943_v10  ;;  %v9475_v41 = vmul.f32 %v11564_v9, %v17947_v21  ;;  %v9476_v42 = vmul.f32 %v11564_v9, %v17953_v39  ;;  %v9477_v58 = vmul.f32 %v11564_v9, %v17959_v14 }
 0xc92   :  { %v9478_v61 = vmul.f32 %v11564_v9, %v17965_v16  ;;  %v9479_v26 = vmul.f32 %v11564_v9, %v17971_v33  ;;  %v9480_v31 = vmul.f32 %v11564_v9, %v17977_v24  ;;  %v9481_v18 = vmul.f32 %v11564_v9, %v17983_v62 }
 0xc93   :  { %v9482_v17 = vmul.f32 %v11564_v9, %v17989_v43  ;;  %v9483_v59 = vmul.f32 %v11564_v9, %v17995_v13  ;;  %v9484_v10 = vmul.f32 %v11564_v9, %v18001_v35  ;;  %v9485_v21 = vmul.f32 %v11564_v9, %v18007_v53 }
 0xc94   :  { %v9486_v39 = vmul.f32 %v11564_v9, %v18013_v56  ;;  %v9487_v14 = vmul.f32 %v11564_v9, %v18019_v0  ;;  %v9488_v16 = vmul.f32 %v11564_v9, %v18025_v54  ;;  %v9489_v33 = vmul.f32 %v11564_v9, %v18031_v50 }
 0xc95   :  { %v9490_v24 = vmul.f32 %v11564_v9, %v18037_v25  ;;  %v9491_v62 = vmul.f32 %v11564_v9, %v18043_v38  ;;  %v9492_v43 = vmul.f32 %v11564_v9, %v18049_v22  ;;  %v9493_v13 = vmul.f32 %v11564_v9, %v18055_v32 }
 0xc96   :  { %v9494_v35 = vmul.f32 %v11564_v9, %v18061_v20  ;;  %v9495_v53 = vmul.f32 %v11564_v9, %v18067_v49  ;;  %v9496_v56 = vmul.f32 %v11564_v9, %v18071_v11  ;;  %v9497_v0 = vmul.f32 %v11564_v9, %v18075_v3 }
 0xc97   :  { %v9498_v54 = vmul.f32 %v11564_v9, %v18079_v15  ;;  %v9499_v50 = vmul.f32 %v11564_v9, %v18083_v60  ;;  %v9500_v12 = vmul.f32 %v11564_v9, %v11554_v23  ;;  %v9501_v25 = vmul.f32 %v11564_v9, %v11556_v4 }
 0xc98   :  { %v9536_v63 = vcombine.low %v9472_v30, %v9473_v45  ;;  %v9537_v38 = vcombine.low %v9474_v5, %v9475_v41  ;;  %v9553_v27 = vcombine.low %v9476_v42, %v9477_v58  ;;  %v9554_v22 = vcombine.low %v9478_v61, %v9479_v26 }
 0xc99   :  { %v9570_v19 = vcombine.low %v9480_v31, %v9481_v18  ;;  %v9571_v32 = vcombine.low %v9482_v17, %v9483_v59  ;;  %v9587_v6 = vcombine.low %v9484_v10, %v9485_v21  ;;  %v9588_v20 = vcombine.low %v9486_v39, %v9487_v14 }
 0xc9a   :  { %v9544_v49 = vrot.slane %v9536_v63, %v18097_v2  ;;  %v9551_v11 = vrot.slane %v9537_v38, %v18097_v2  ;;  %v9561_v3 = vrot.slane %v9553_v27, %v18097_v2  ;;  %v9568_v15 = vrot.slane %v9554_v22, %v18097_v2 }
 0xc9b   :  { %v9578_v60 = vrot.slane %v9570_v19, %v18097_v2  ;;  %v9585_v23 = vrot.slane %v9571_v32, %v18097_v2  ;;  %v9595_v4 = vrot.slane %v9587_v6, %v18097_v2  ;;  %v9602_v37 = vrot.slane %v9588_v20, %v18097_v2 }
 0xc9c   :  { %v9552_v28 = vcombine.low %v9544_v49, %v9551_v11  ;;  %v9569_v29 = vcombine.low %v9561_v3, %v9568_v15  ;;  %v9604_v47 = vcombine.low %v9488_v16, %v9489_v33  ;;  %v9605_v7 = vcombine.low %v9490_v24, %v9491_v62 }
 0xc9d   :  { %v9586_v52 = vcombine.low %v9578_v60, %v9585_v23  ;;  %v9603_v36 = vcombine.low %v9595_v4, %v9602_v37  ;;  %v9621_v48 = vcombine.low %v9492_v43, %v9493_v13  ;;  %v9622_v55 = vcombine.low %v9494_v35, %v9495_v53 }
 0xc9e   :  { %v9612_v34 = vrot.slane %v9604_v47, %v18097_v2  ;;  %v9619_v44 = vrot.slane %v9605_v7, %v18097_v2  ;;  %v9638_v51 = vcombine.low %v9496_v56, %v9497_v0  ;;  %v9639_v46 = vcombine.low %v9498_v54, %v9499_v50  ;;  %9680 = vst [vmem:[#allocation3] sm:$0xff] %v9552_v28 }
 0xc9f   :  { %9681 = vst [vmem:[#allocation3 + $0x8] sm:$0xff] %v9569_v29  ;;  %v9629_v40 = vrot.slane %v9621_v48, %v18097_v2  ;;  %v9636_v9 = vrot.slane %v9622_v55, %v18097_v2  ;;  %v9655_v1 = vcombine.low %v9500_v12, %v9501_v25  ;;  %v9656_v30 = vcombine.low %v18099_v57, %v18101_v8 }
 0xca0   :  { %9682 = vst [vmem:[#allocation3 + $0x10] sm:$0xff] %v9586_v52  ;;  %9683 = vst [vmem:[#allocation3 + $0x18] sm:$0xff] %v9603_v36  ;;  %v9620_v45 = vcombine.low %v9612_v34, %v9619_v44  ;;  %v9646_v5 = vrot.slane %v9638_v51, %v18097_v2  ;;  %v9653_v41 = vrot.slane %v9639_v46, %v18097_v2 }
 0xca1   :  { %v9637_v42 = vcombine.low %v9629_v40, %v9636_v9  ;;  %v9663_v58 = vrot.slane %v9655_v1, %v18097_v2  ;;  %v9670_v61 = vrot.slane %v9656_v30, %v18097_v2 }
 0xca2   :  { %v9654_v26 = vcombine.low %v9646_v5, %v9653_v41  ;;  %9684 = vst [vmem:[#allocation3 + $0x20] sm:$0xff] %v9620_v45 }
 0xca3   :  { %v9671_v31 = vcombine.low %v9663_v58, %v9670_v61  ;;  %9685 = vst [vmem:[#allocation3 + $0x28] sm:$0xff] %v9637_v42 }
 0xca4   :  { %9686 = vst [vmem:[#allocation3 + $0x30] sm:$0xff] %v9654_v26 }
 0xca5   :  { %9687 = vst [vmem:[#allocation3 + $0x38] sm:$0xff] %v9671_v31 }
 0xca6   :  { %11593 = shalt.err (!%p11590_p4)
}
 0xca7   :  { %s11594_s9 = scalar_lea.hbm %s18180_s19, 1024 }
 0xca8   :  { %p11595_p5 = scmp.ne.s32.totalorder %s18180_s19, %s11594_s9  ;;  %p11598_p6 = scmp.lt.u32.totalorder %s11594_s9, %s18180_s19 }
 0xcaa   :  { %p11600_p7 = pnand %p11598_p6, %p11595_p5 }
 0xcac   :  { %11603 = shalt.err (!%p11600_p7)
}
 0xcad   :  { %9913 = dma.vmem_to_hbm [thread:$0]  %s9911_s10, 1024, %s18180_s19, [#allocation4]  }
 0xcae   :  { %11604 = dma.done.wait [#allocation4], 1024  }
 0xcaf   :  { %11605 = vsyncadd [#allocation4], 4294966272 }
 0xcb0   :  { %9921 = vsyncpa [#allocation4], 1 }

</bundles_post_ra>
